<compile_context>
chip_gen: v5e
topology: v5e:2x2
jax: 0.10.0
libtpu: 0.0.40
codegen_flags: <defaults>
</compile_context>

<pallas_src>
import functools
import math
from datetime import datetime

import numpy as np
import jax
import jax.numpy as jnp
from jax.experimental import pallas as pl
from jax.experimental.pallas import tpu as pltpu

LANE = 128


# ----------------------------------------------------------------------------
# Fused forward kernel (grid=(num_chunks,), weights resident in VMEM)
# ----------------------------------------------------------------------------
def fused_transformer_kernel(src_ref, pe_ref, mask_ref, pool_ref,
                             wemb_ref, bemb_ref,
                             wqkv_ref, bqkv_ref, wo_ref, bo_ref,
                             g1_ref, bt1_ref, w1_ref, b1_ref,
                             w2_ref, b2_ref, g2_ref, bt2_ref,
                             fcw_ref, fcb_ref, out_ref,
                             *, num_layers, nhead):
    f32 = jnp.float32
    bf16 = jnp.bfloat16
    E = pe_ref.shape[1]
    Dh = E // nhead

    def matT(x_bf, w_bf):
        # PyTorch nn.Linear style: x @ W^T, bf16 operands, f32 accumulation.
        return jax.lax.dot_general(x_bf, w_bf, (((1,), (1,)), ((), ())),
                                   preferred_element_type=f32)

    def layernorm(v, g, b, eps=1e-5):
        mu = jnp.mean(v, axis=-1, keepdims=True)
        var = jnp.mean((v - mu) ** 2, axis=-1, keepdims=True)
        return (v - mu) * jax.lax.rsqrt(var + eps) * g + b

    # ---- ObservationEmbedding: concat(feature_embed(src), PE) ---------------
    # K=3 contraction is pure MXU fill/drain -> 3 VPU broadcast-FMAs instead.
    # wemb holds feature_embed^T in lanes 0:E/2 (zeros above); pe_ref carries
    # the positional encoding in lanes E/2:E; bias lives in lanes 0:E/2.
    src = src_ref[...]                                   # (TM, F) f32
    wemb = wemb_ref[...]                                 # (F, E)  f32
    x = pe_ref[...] + bemb_ref[...]                      # (TM, E) f32
    for f in range(src.shape[1]):                        # F static (=3)
        x = x + src[:, f:f + 1] * wemb[f:f + 1, :]

    mask = mask_ref[...]                                 # (TM, TM) additive f32

    # ---- TransformerEncoder (post-norm layers; eval-mode dropout = identity)
    for l in range(num_layers):
        qkv = matT(x.astype(bf16), wqkv_ref[l]) + bqkv_ref[l]     # (TM, 3E) f32
        qkv_bf = qkv.astype(bf16)                                 # cast once

        ctx_heads = []
        for h in range(nhead):                                    # static (=2)
            q = qkv_bf[:, h * Dh:(h + 1) * Dh]            # 1/sqrt(Dh) pre-folded
            k = qkv_bf[:, E + h * Dh:E + (h + 1) * Dh]
            v = qkv_bf[:, 2 * E + h * Dh:2 * E + (h + 1) * Dh]

            s = jax.lax.dot_general(q, k, (((1,), (1,)), ((), ())),
                                    preferred_element_type=f32) + mask
            s = s - jnp.max(s, axis=-1, keepdims=True)
            p = jnp.exp(s)
            p = p / jnp.sum(p, axis=-1, keepdims=True)            # exact recip
            ctx_heads.append(
                jax.lax.dot_general(p.astype(bf16), v, (((1,), (0,)), ((), ())),
                                    preferred_element_type=f32))  # (TM, Dh)

        # one fused out-projection over all heads (K = E, not per-head K = Dh)
        ctx = jnp.concatenate(ctx_heads, axis=-1)                 # (TM, E) f32
        attn = matT(ctx.astype(bf16), wo_ref[l]) + bo_ref[l]

        x1 = layernorm(x + attn, g1_ref[l], bt1_ref[l])
        h1 = jnp.maximum(matT(x1.astype(bf16), w1_ref[l]) + b1_ref[l], 0.0)
        ffn = matT(h1.astype(bf16), w2_ref[l]) + b2_ref[l]
        x = layernorm(x1 + ffn, g2_ref[l], bt2_ref[l])

    # ---- Classifier: mean over time via precomputed pooling matmul + Linear -
    xm = jax.lax.dot_general(pool_ref[...], x.astype(bf16),
                             (((1,), (0,)), ((), ())),
                             preferred_element_type=f32)          # (rows, E)
    out_ref[...] = matT(xm.astype(bf16), fcw_ref[...]) + fcb_ref[...]


# ----------------------------------------------------------------------------
# Host-side positional encoding (exact replica of the PyTorch/numpy code)
# ----------------------------------------------------------------------------
def positional_encoding_host(dates, date_embed_dim):
    start_date = datetime.strptime(min(dates), "%m%d")
    positions = [(datetime.strptime(d, "%m%d") - start_date).days for d in dates]
    pe = np.zeros((len(positions), date_embed_dim))
    for pos, day in enumerate(positions):
        for i in range(0, date_embed_dim, 2):
            pe[pos, i] = np.sin(day / 10000 ** (2 * i / date_embed_dim))
            pe[pos, i + 1] = np.cos(day / 10000 ** (2 * i / date_embed_dim))
    return jnp.asarray(pe, dtype=jnp.float32)            # (T, E/2)


# ----------------------------------------------------------------------------
# Parameter construction (deterministic, synthetic, layer-stacked)
# ----------------------------------------------------------------------------
def make_params(key, input_dim, E, num_layers, num_classes):
    def nrm(k, shape, scale=0.05):
        return (scale * jax.random.normal(k, shape)).astype(jnp.float32)

    L = num_layers
    ks = jax.random.split(key, 12)
    return {
        "fe_w": nrm(ks[0], (E // 2, input_dim)),     # ObservationEmbedding Linear
        "fe_b": nrm(ks[1], (1, E // 2)),
        "fc_w": nrm(ks[2], (num_classes, E)),        # Classifier Linear
        "fc_b": nrm(ks[3], (1, num_classes)),
        "wqkv": nrm(ks[4], (L, 3 * E, E)),           # MHA packed in_proj
        "bqkv": nrm(ks[5], (L, 1, 3 * E)),
        "wo":   nrm(ks[6], (L, E, E)),               # MHA out_proj
        "bo":   nrm(ks[7], (L, 1, E)),
        "g1":   jnp.ones((L, 1, E), jnp.float32),    # norm1
        "bt1":  jnp.zeros((L, 1, E), jnp.float32),
        "w1":   nrm(ks[8], (L, E, E)),               # linear1 (dim_ff = E)
        "b1":   nrm(ks[9], (L, 1, E)),
        "w2":   nrm(ks[10], (L, E, E)),              # linear2
        "b2":   nrm(ks[11], (L, 1, E)),
        "g2":   jnp.ones((L, 1, E), jnp.float32),    # norm2
        "bt2":  jnp.zeros((L, 1, E), jnp.float32),
    }


# ----------------------------------------------------------------------------
# Full forward pass (TransformerModel.forward) over G independent batches
# ----------------------------------------------------------------------------
@functools.partial(jax.jit, static_argnames=("nhead",))
def transformer_model_forward(src, pe, params, nhead):
    """src: (G, B, T, F) = G independent invocations of the PyTorch forward
    (a dataloader's worth of batches); (B, T, F) also accepted (G = 1).
    Returns (G, B, num_classes) (or (B, num_classes))."""
    single = src.ndim == 3
    if single:
        src = src[None]
    G, B, T, F = src.shape
    E_half = params["fe_w"].shape[0]
    E = 2 * E_half
    L = params["wqkv"].shape[0]
    num_classes = params["fc_w"].shape[0]
    bf16 = jnp.bfloat16

    NS = B * T                                   # tokens per (B,T) batch
    SPB = max(1, LANE // NS)                     # batches packed per grid step
    while (SPB * NS) % 8 != 0 or (SPB * B) % 8 != 0:
        SPB += 1                                 # keep sublane dims tile-friendly
    TM = SPB * NS                                # tokens per grid step (>=128 here)
    rows = SPB * B                               # classifier rows per grid step
    CPAD = max(LANE, ((num_classes + LANE - 1) // LANE) * LANE)

    # pad batch axis to a multiple of SPB (padded samples sliced away at the end)
    Gp = ((G + SPB - 1) // SPB) * SPB
    if Gp != G:
        src = jnp.concatenate([src, jnp.zeros((Gp - G, B, T, F), src.dtype)], 0)
    num_chunks = Gp // SPB

    # time-major token layout: row r = s*(T*B) + t*B + b  ->  attention groups
    # (same sample, same time) are contiguous B-row blocks.
    src_tok = src.transpose(0, 2, 1, 3).reshape(Gp * T * B, F)

    # ---- constant-folded preprocessing (hoisted out of the kernel) ----------
    scale = 1.0 / math.sqrt(E // nhead)
    wqkv = params["wqkv"].at[:, :E, :].multiply(scale).astype(bf16)  # fold into W_q
    bqkv = params["bqkv"].at[:, :, :E].multiply(scale)               # and b_q
    wo = params["wo"].astype(bf16)
    w1 = params["w1"].astype(bf16)
    w2 = params["w2"].astype(bf16)

    # feature-embed as (F, E): columns 0:E/2 = fe_w^T (concat order: features, PE)
    wemb = jnp.zeros((F, E), jnp.float32).at[:, :E_half].set(params["fe_w"].T)
    bemb = jnp.zeros((1, E), jnp.float32).at[:, :E_half].set(params["fe_b"])
    # PE in lanes E/2:E, tiled to the per-chunk token layout (same every chunk)
    pe_rows = jnp.repeat(pe, B, axis=0)                              # (T*B, E/2)
    pe_full = jnp.zeros((TM, E), jnp.float32).at[:, E_half:].set(
        jnp.tile(pe_rows, (SPB, 1)))

    # additive block-diagonal attention mask (same (sample, time) group)
    grp = jnp.arange(TM, dtype=jnp.int32) // B
    mask_add = jnp.where(grp[:, None] == grp[None, :], 0.0, -1e30).astype(jnp.float32)

    # pooling matrix: mean over T for each (sample, batch-row)
    r_tok = jnp.arange(TM, dtype=jnp.int32)
    out_row_of_tok = (r_tok // (T * B)) * B + (r_tok % B)
    pool = (out_row_of_tok[None, :] == jnp.arange(rows, dtype=jnp.int32)[:, None])
    pool = (pool.astype(jnp.float32) / T).astype(bf16)               # (rows, TM)

    fcw = jnp.zeros((CPAD, E), jnp.float32).at[:num_classes].set(params["fc_w"]).astype(bf16)
    fcb = jnp.zeros((1, CPAD), jnp.float32).at[:, :num_classes].set(params["fc_b"])

    kernel = functools.partial(fused_transformer_kernel, num_layers=L, nhead=nhead)

    def resident(*shape):          # weights/constants: DMA'd once, stay in VMEM
        return pl.BlockSpec(shape, lambda i: (0,) * len(shape))

    out_pad = pl.pallas_call(
        kernel,
        out_shape=jax.ShapeDtypeStruct((num_chunks * rows, CPAD), jnp.float32),
        grid=(num_chunks,),
        in_specs=[
            pl.BlockSpec((TM, F), lambda i: (i, 0)),     # src tokens (pipelined)
            resident(TM, E),                             # positional encoding
            resident(TM, TM),                            # additive attn mask
            resident(rows, TM),                          # time-pooling matrix
            resident(F, E), resident(1, E),              # wemb, bemb
            resident(L, 3 * E, E), resident(L, 1, 3 * E),  # wqkv, bqkv
            resident(L, E, E), resident(L, 1, E),        # wo, bo
            resident(L, 1, E), resident(L, 1, E),        # g1, bt1
            resident(L, E, E), resident(L, 1, E),        # w1, b1
            resident(L, E, E), resident(L, 1, E),        # w2, b2
            resident(L, 1, E), resident(L, 1, E),        # g2, bt2
            resident(CPAD, E), resident(1, CPAD),        # fcw, fcb
        ],
        out_specs=pl.BlockSpec((rows, CPAD), lambda i: (i, 0)),
        compiler_params=pltpu.CompilerParams(
            dimension_semantics=("parallel",)),          # v7x: 2 TCs split grid
    )(src_tok, pe_full, mask_add, pool, wemb, bemb,
      wqkv, bqkv, wo, params["bo"],
      params["g1"], params["bt1"], w1, params["b1"],
      w2, params["b2"], params["g2"], params["bt2"],
      fcw, fcb)

    out = out_pad.reshape(Gp, B, CPAD)[:G, :, :num_classes]
    return out[0] if single else out


# ----------------------------------------------------------------------------
# Pure-JAX f32 reference (replica of the PyTorch eval-mode forward)
# ----------------------------------------------------------------------------
def _ln(v, g, b, eps=1e-5):
    mu = v.mean(axis=-1, keepdims=True)
    var = ((v - mu) ** 2).mean(axis=-1, keepdims=True)
    return (v - mu) / jnp.sqrt(var + eps) * g + b


def reference_forward(src, pe, params, nhead):
    G, B, T, F = src.shape
    E_half = params["fe_w"].shape[0]
    E = 2 * E_half
    L = params["wqkv"].shape[0]
    Dh = E // nhead

    x = jnp.einsum("gbtf,ef->gbte", src, params["fe_w"]) + params["fe_b"][0]
    pe_b = jnp.broadcast_to(pe[None, None], (G, B, T, E_half))
    x = jnp.concatenate([x, pe_b], axis=-1)                       # (G,B,T,E)

    for l in range(L):
        qkv = jnp.einsum("gbte,ce->gbtc", x, params["wqkv"][l]) + params["bqkv"][l][0]
        q, k, v = qkv[..., :E], qkv[..., E:2 * E], qkv[..., 2 * E:]
        sh = (G, B, T, nhead, Dh)
        qh, kh, vh = q.reshape(sh), k.reshape(sh), v.reshape(sh)
        # batch_first=False: attention over the leading (batch) axis B per t
        s = jnp.einsum("gbthd,gcthd->gthbc", qh, kh) / math.sqrt(Dh)
        p = jax.nn.softmax(s, axis=-1)
        ctx = jnp.einsum("gthbc,gcthd->gbthd", p, vh).reshape(G, B, T, E)
        attn = jnp.einsum("gbte,oe->gbto", ctx, params["wo"][l]) + params["bo"][l][0]
        x = _ln(x + attn, params["g1"][l][0], params["bt1"][l][0])
        h1 = jax.nn.relu(jnp.einsum("gbte,fe->gbtf", x, params["w1"][l]) + params["b1"][l][0])
        ffn = jnp.einsum("gbtf,ef->gbte", h1, params["w2"][l]) + params["b2"][l][0]
        x = _ln(x + ffn, params["g2"][l][0], params["bt2"][l][0])

    xm = x.mean(axis=2)                                           # mean over time
    return jnp.einsum("gbe,ce->gbc", xm, params["fc_w"]) + params["fc_b"][0]


# ----------------------------------------------------------------------------
if __name__ == "__main__":
    # Module hyper-parameters (PyTorch defaults of EncoderBlock/Classifier)
    nhead = 2
    output_dim = 128
    num_encoder_layers = 2
    input_dim = 3
    num_classes = 9
    # dropout=0.2 in __init__, but this forward is eval-mode -> identity.

    num_batches, batch, time_steps = 16, 2, 8     # 16 independent forward calls
    dates = ["0101", "0103", "0107", "0112", "0118", "0125", "0202", "0210"]

    key = jax.random.PRNGKey(0)
    k_x, k_p = jax.random.split(key)
    src = jax.random.normal(k_x, (num_batches, batch, time_steps, input_dim),
                            dtype=jnp.float32)

    pe = positional_encoding_host(dates, output_dim // 2)
    params = make_params(k_p, input_dim, output_dim, num_encoder_layers, num_classes)

    out = transformer_model_forward(src, pe, params, nhead=nhead)
    out = jax.block_until_ready(out)

    assert out.shape == (num_batches, batch, num_classes)
    assert bool(jnp.all(jnp.isfinite(out)))

    # loose-tolerance check vs pure-JAX f32 reference (kernel uses bf16 matmuls)
    ref = reference_forward(src, pe, params, nhead)
    max_err = float(jnp.max(jnp.abs(out - ref)))
    assert max_err < 0.1, f"max abs error vs reference: {max_err}"

    print("KERNEL_OK")
</pallas_src>

<mosaic_0001>
module attributes {stable_mosaic.version = 11 : i64} {
  func.func @fused_transformer_kernel(%arg0: i32, %arg1: memref<128x3xf32, #tpu.memory_space<vmem>>, %arg2: memref<128x128xf32, #tpu.memory_space<vmem>>, %arg3: memref<128x128xf32, #tpu.memory_space<vmem>>, %arg4: memref<16x128xbf16, #tpu.memory_space<vmem>>, %arg5: memref<3x128xf32, #tpu.memory_space<vmem>>, %arg6: memref<1x128xf32, #tpu.memory_space<vmem>>, %arg7: memref<2x384x128xbf16, #tpu.memory_space<vmem>>, %arg8: memref<2x1x384xf32, #tpu.memory_space<vmem>>, %arg9: memref<2x128x128xbf16, #tpu.memory_space<vmem>>, %arg10: memref<2x1x128xf32, #tpu.memory_space<vmem>>, %arg11: memref<2x1x128xf32, #tpu.memory_space<vmem>>, %arg12: memref<2x1x128xf32, #tpu.memory_space<vmem>>, %arg13: memref<2x128x128xbf16, #tpu.memory_space<vmem>>, %arg14: memref<2x1x128xf32, #tpu.memory_space<vmem>>, %arg15: memref<2x128x128xbf16, #tpu.memory_space<vmem>>, %arg16: memref<2x1x128xf32, #tpu.memory_space<vmem>>, %arg17: memref<2x1x128xf32, #tpu.memory_space<vmem>>, %arg18: memref<2x1x128xf32, #tpu.memory_space<vmem>>, %arg19: memref<128x128xbf16, #tpu.memory_space<vmem>>, %arg20: memref<1x128xf32, #tpu.memory_space<vmem>>, %arg21: memref<16x128xf32, #tpu.memory_space<vmem>>) attributes {dimension_semantics = [#tpu.dimension_semantics<parallel>], iteration_bounds = array<i64: 2>, scalar_prefetch = 0 : i64, scratch_operands = 0 : i64, tpu.core_type = #tpu.core_type<tc>, window_params = [{transform_indices = @transform_0, window_bounds = array<i64: 128, 3>}, {pipeline_mode = #tpu.pipeline_mode<synchronous>, transform_indices = @transform_1, window_bounds = array<i64: 128, 128>}, {pipeline_mode = #tpu.pipeline_mode<synchronous>, transform_indices = @transform_2, window_bounds = array<i64: 128, 128>}, {pipeline_mode = #tpu.pipeline_mode<synchronous>, transform_indices = @transform_3, window_bounds = array<i64: 16, 128>}, {pipeline_mode = #tpu.pipeline_mode<synchronous>, transform_indices = @transform_4, window_bounds = array<i64: 3, 128>}, {pipeline_mode = #tpu.pipeline_mode<synchronous>, transform_indices = @transform_5, window_bounds = array<i64: 1, 128>}, {pipeline_mode = #tpu.pipeline_mode<synchronous>, transform_indices = @transform_6, window_bounds = array<i64: 2, 384, 128>}, {pipeline_mode = #tpu.pipeline_mode<synchronous>, transform_indices = @transform_7, window_bounds = array<i64: 2, 1, 384>}, {pipeline_mode = #tpu.pipeline_mode<synchronous>, transform_indices = @transform_8, window_bounds = array<i64: 2, 128, 128>}, {pipeline_mode = #tpu.pipeline_mode<synchronous>, transform_indices = @transform_9, window_bounds = array<i64: 2, 1, 128>}, {pipeline_mode = #tpu.pipeline_mode<synchronous>, transform_indices = @transform_10, window_bounds = array<i64: 2, 1, 128>}, {pipeline_mode = #tpu.pipeline_mode<synchronous>, transform_indices = @transform_11, window_bounds = array<i64: 2, 1, 128>}, {pipeline_mode = #tpu.pipeline_mode<synchronous>, transform_indices = @transform_12, window_bounds = array<i64: 2, 128, 128>}, {pipeline_mode = #tpu.pipeline_mode<synchronous>, transform_indices = @transform_13, window_bounds = array<i64: 2, 1, 128>}, {pipeline_mode = #tpu.pipeline_mode<synchronous>, transform_indices = @transform_14, window_bounds = array<i64: 2, 128, 128>}, {pipeline_mode = #tpu.pipeline_mode<synchronous>, transform_indices = @transform_15, window_bounds = array<i64: 2, 1, 128>}, {pipeline_mode = #tpu.pipeline_mode<synchronous>, transform_indices = @transform_16, window_bounds = array<i64: 2, 1, 128>}, {pipeline_mode = #tpu.pipeline_mode<synchronous>, transform_indices = @transform_17, window_bounds = array<i64: 2, 1, 128>}, {pipeline_mode = #tpu.pipeline_mode<synchronous>, transform_indices = @transform_18, window_bounds = array<i64: 128, 128>}, {pipeline_mode = #tpu.pipeline_mode<synchronous>, transform_indices = @transform_19, window_bounds = array<i64: 1, 128>}, {transform_indices = @transform_20, window_bounds = array<i64: 16, 128>}]} {
    %c0 = arith.constant 0 : index
    %c0_0 = arith.constant 0 : index
    %0 = vector.load %arg1[%c0, %c0_0] : memref<128x3xf32, #tpu.memory_space<vmem>>, vector<128x3xf32>
    %c0_1 = arith.constant 0 : index
    %c0_2 = arith.constant 0 : index
    %1 = vector.load %arg5[%c0_1, %c0_2] : memref<3x128xf32, #tpu.memory_space<vmem>>, vector<3x128xf32>
    %c0_3 = arith.constant 0 : index
    %c0_4 = arith.constant 0 : index
    %2 = vector.load %arg2[%c0_3, %c0_4] : memref<128x128xf32, #tpu.memory_space<vmem>>, vector<128x128xf32>
    %c0_5 = arith.constant 0 : index
    %c0_6 = arith.constant 0 : index
    %3 = vector.load %arg6[%c0_5, %c0_6] : memref<1x128xf32, #tpu.memory_space<vmem>>, vector<1x128xf32>
    %4 = vector.broadcast %3 : vector<1x128xf32> to vector<128x128xf32>
    %5 = arith.addf %2, %4 : vector<128x128xf32>
    %6 = vector.extract_strided_slice %0 {offsets = [0, 0], sizes = [128, 1], strides = [1, 1]} : vector<128x3xf32> to vector<128x1xf32>
    %7 = vector.extract_strided_slice %1 {offsets = [0, 0], sizes = [1, 128], strides = [1, 1]} : vector<3x128xf32> to vector<1x128xf32>
    %8 = vector.broadcast %6 : vector<128x1xf32> to vector<128x128xf32>
    %9 = vector.broadcast %7 : vector<1x128xf32> to vector<128x128xf32>
    %10 = arith.mulf %8, %9 : vector<128x128xf32>
    %11 = arith.addf %5, %10 : vector<128x128xf32>
    %12 = vector.extract_strided_slice %0 {offsets = [0, 1], sizes = [128, 1], strides = [1, 1]} : vector<128x3xf32> to vector<128x1xf32>
    %13 = vector.extract_strided_slice %1 {offsets = [1, 0], sizes = [1, 128], strides = [1, 1]} : vector<3x128xf32> to vector<1x128xf32>
    %14 = vector.broadcast %12 : vector<128x1xf32> to vector<128x128xf32>
    %15 = vector.broadcast %13 : vector<1x128xf32> to vector<128x128xf32>
    %16 = arith.mulf %14, %15 : vector<128x128xf32>
    %17 = arith.addf %11, %16 : vector<128x128xf32>
    %18 = vector.extract_strided_slice %0 {offsets = [0, 2], sizes = [128, 1], strides = [1, 1]} : vector<128x3xf32> to vector<128x1xf32>
    %19 = vector.extract_strided_slice %1 {offsets = [2, 0], sizes = [1, 128], strides = [1, 1]} : vector<3x128xf32> to vector<1x128xf32>
    %20 = vector.broadcast %18 : vector<128x1xf32> to vector<128x128xf32>
    %21 = vector.broadcast %19 : vector<1x128xf32> to vector<128x128xf32>
    %22 = arith.mulf %20, %21 : vector<128x128xf32>
    %23 = arith.addf %17, %22 : vector<128x128xf32>
    %c0_7 = arith.constant 0 : index
    %c0_8 = arith.constant 0 : index
    %24 = vector.load %arg3[%c0_7, %c0_8] : memref<128x128xf32, #tpu.memory_space<vmem>>, vector<128x128xf32>
    %25 = arith.truncf %23 : vector<128x128xf32> to vector<128x128xbf16>
    %c0_9 = arith.constant 0 : index
    %c0_10 = arith.constant 0 : index
    %c0_11 = arith.constant 0 : index
    %26 = vector.load %arg7[%c0_9, %c0_10, %c0_11] : memref<2x384x128xbf16, #tpu.memory_space<vmem>>, vector<1x384x128xbf16>
    %27 = vector.shape_cast %26 : vector<1x384x128xbf16> to vector<384x128xbf16>
    %cst = arith.constant dense<0.000000e+00> : vector<128x384xf32>
    %28 = tpu.matmul %25, %27, %cst {dimension_numbers = #tpu.dot_dimension_numbers<[1], [1], [0], [0], [0, 0, 1, 0], [], []>} : vector<128x128xbf16>, vector<384x128xbf16>, vector<128x384xf32> -> vector<128x384xf32>
    %c0_12 = arith.constant 0 : index
    %c0_13 = arith.constant 0 : index
    %c0_14 = arith.constant 0 : index
    %29 = vector.load %arg8[%c0_12, %c0_13, %c0_14] : memref<2x1x384xf32, #tpu.memory_space<vmem>>, vector<1x1x384xf32>
    %30 = vector.shape_cast %29 : vector<1x1x384xf32> to vector<1x384xf32>
    %31 = vector.broadcast %30 : vector<1x384xf32> to vector<128x384xf32>
    %32 = arith.addf %28, %31 : vector<128x384xf32>
    %33 = arith.truncf %32 : vector<128x384xf32> to vector<128x384xbf16>
    %34 = vector.extract_strided_slice %33 {offsets = [0, 0], sizes = [128, 64], strides = [1, 1]} : vector<128x384xbf16> to vector<128x64xbf16>
    %35 = vector.extract_strided_slice %33 {offsets = [0, 128], sizes = [128, 64], strides = [1, 1]} : vector<128x384xbf16> to vector<128x64xbf16>
    %36 = vector.extract_strided_slice %33 {offsets = [0, 256], sizes = [128, 64], strides = [1, 1]} : vector<128x384xbf16> to vector<128x64xbf16>
    %cst_15 = arith.constant dense<0.000000e+00> : vector<128x128xf32>
    %37 = tpu.matmul %34, %35, %cst_15 {dimension_numbers = #tpu.dot_dimension_numbers<[1], [1], [0], [0], [0, 0, 1, 0], [], []>} : vector<128x64xbf16>, vector<128x64xbf16>, vector<128x128xf32> -> vector<128x128xf32>
    %38 = arith.addf %37, %24 : vector<128x128xf32>
    %cst_16 = arith.constant dense<0xFF800000> : vector<128xf32>
    %39 = vector.multi_reduction <maximumf>, %38, %cst_16 [1] : vector<128x128xf32> to vector<128xf32>
    %40 = vector.shape_cast %39 : vector<128xf32> to vector<128x1xf32>
    %41 = vector.broadcast %40 : vector<128x1xf32> to vector<128x128xf32>
    %42 = arith.subf %38, %41 : vector<128x128xf32>
    %43 = math.exp %42 : vector<128x128xf32>
    %cst_17 = arith.constant dense<0.000000e+00> : vector<128xf32>
    %44 = vector.multi_reduction <add>, %43, %cst_17 [1] : vector<128x128xf32> to vector<128xf32>
    %45 = vector.shape_cast %44 : vector<128xf32> to vector<128x1xf32>
    %46 = vector.broadcast %45 : vector<128x1xf32> to vector<128x128xf32>
    %47 = arith.divf %43, %46 : vector<128x128xf32>
    %48 = arith.truncf %47 : vector<128x128xf32> to vector<128x128xbf16>
    %cst_18 = arith.constant dense<0.000000e+00> : vector<128x64xf32>
    %49 = tpu.matmul %48, %36, %cst_18 {dimension_numbers = #tpu.dot_dimension_numbers<[1], [0], [0], [1], [0, 0, 1, 1], [], []>} : vector<128x128xbf16>, vector<128x64xbf16>, vector<128x64xf32> -> vector<128x64xf32>
    %50 = vector.extract_strided_slice %33 {offsets = [0, 64], sizes = [128, 64], strides = [1, 1]} : vector<128x384xbf16> to vector<128x64xbf16>
    %51 = vector.extract_strided_slice %33 {offsets = [0, 192], sizes = [128, 64], strides = [1, 1]} : vector<128x384xbf16> to vector<128x64xbf16>
    %52 = vector.extract_strided_slice %33 {offsets = [0, 320], sizes = [128, 64], strides = [1, 1]} : vector<128x384xbf16> to vector<128x64xbf16>
    %cst_19 = arith.constant dense<0.000000e+00> : vector<128x128xf32>
    %53 = tpu.matmul %50, %51, %cst_19 {dimension_numbers = #tpu.dot_dimension_numbers<[1], [1], [0], [0], [0, 0, 1, 0], [], []>} : vector<128x64xbf16>, vector<128x64xbf16>, vector<128x128xf32> -> vector<128x128xf32>
    %54 = arith.addf %53, %24 : vector<128x128xf32>
    %cst_20 = arith.constant dense<0xFF800000> : vector<128xf32>
    %55 = vector.multi_reduction <maximumf>, %54, %cst_20 [1] : vector<128x128xf32> to vector<128xf32>
    %56 = vector.shape_cast %55 : vector<128xf32> to vector<128x1xf32>
    %57 = vector.broadcast %56 : vector<128x1xf32> to vector<128x128xf32>
    %58 = arith.subf %54, %57 : vector<128x128xf32>
    %59 = math.exp %58 : vector<128x128xf32>
    %cst_21 = arith.constant dense<0.000000e+00> : vector<128xf32>
    %60 = vector.multi_reduction <add>, %59, %cst_21 [1] : vector<128x128xf32> to vector<128xf32>
    %61 = vector.shape_cast %60 : vector<128xf32> to vector<128x1xf32>
    %62 = vector.broadcast %61 : vector<128x1xf32> to vector<128x128xf32>
    %63 = arith.divf %59, %62 : vector<128x128xf32>
    %64 = arith.truncf %63 : vector<128x128xf32> to vector<128x128xbf16>
    %cst_22 = arith.constant dense<0.000000e+00> : vector<128x64xf32>
    %65 = tpu.matmul %64, %52, %cst_22 {dimension_numbers = #tpu.dot_dimension_numbers<[1], [0], [0], [1], [0, 0, 1, 1], [], []>} : vector<128x128xbf16>, vector<128x64xbf16>, vector<128x64xf32> -> vector<128x64xf32>
    %66 = tpu.concatenate %49, %65 in 1 : vector<128x64xf32>, vector<128x64xf32> -> vector<128x128xf32>
    %67 = arith.truncf %66 : vector<128x128xf32> to vector<128x128xbf16>
    %c0_23 = arith.constant 0 : index
    %c0_24 = arith.constant 0 : index
    %c0_25 = arith.constant 0 : index
    %68 = vector.load %arg9[%c0_23, %c0_24, %c0_25] : memref<2x128x128xbf16, #tpu.memory_space<vmem>>, vector<1x128x128xbf16>
    %69 = vector.shape_cast %68 : vector<1x128x128xbf16> to vector<128x128xbf16>
    %cst_26 = arith.constant dense<0.000000e+00> : vector<128x128xf32>
    %70 = tpu.matmul %67, %69, %cst_26 {dimension_numbers = #tpu.dot_dimension_numbers<[1], [1], [0], [0], [0, 0, 1, 0], [], []>} : vector<128x128xbf16>, vector<128x128xbf16>, vector<128x128xf32> -> vector<128x128xf32>
    %c0_27 = arith.constant 0 : index
    %c0_28 = arith.constant 0 : index
    %c0_29 = arith.constant 0 : index
    %71 = vector.load %arg10[%c0_27, %c0_28, %c0_29] : memref<2x1x128xf32, #tpu.memory_space<vmem>>, vector<1x1x128xf32>
    %72 = vector.shape_cast %71 : vector<1x1x128xf32> to vector<1x128xf32>
    %73 = vector.broadcast %72 : vector<1x128xf32> to vector<128x128xf32>
    %74 = arith.addf %70, %73 : vector<128x128xf32>
    %75 = arith.addf %23, %74 : vector<128x128xf32>
    %c0_30 = arith.constant 0 : index
    %c0_31 = arith.constant 0 : index
    %c0_32 = arith.constant 0 : index
    %76 = vector.load %arg11[%c0_30, %c0_31, %c0_32] : memref<2x1x128xf32, #tpu.memory_space<vmem>>, vector<1x1x128xf32>
    %77 = vector.shape_cast %76 : vector<1x1x128xf32> to vector<1x128xf32>
    %c0_33 = arith.constant 0 : index
    %c0_34 = arith.constant 0 : index
    %c0_35 = arith.constant 0 : index
    %78 = vector.load %arg12[%c0_33, %c0_34, %c0_35] : memref<2x1x128xf32, #tpu.memory_space<vmem>>, vector<1x1x128xf32>
    %79 = vector.shape_cast %78 : vector<1x1x128xf32> to vector<1x128xf32>
    %cst_36 = arith.constant dense<0.000000e+00> : vector<128xf32>
    %80 = vector.multi_reduction <add>, %75, %cst_36 [1] : vector<128x128xf32> to vector<128xf32>
    %81 = vector.shape_cast %80 : vector<128xf32> to vector<128x1xf32>
    %cst_37 = arith.constant 1.280000e+02 : f32
    %82 = vector.broadcast %cst_37 : f32 to vector<128x1xf32>
    %83 = arith.divf %81, %82 : vector<128x1xf32>
    %84 = vector.broadcast %83 : vector<128x1xf32> to vector<128x128xf32>
    %85 = arith.subf %75, %84 : vector<128x128xf32>
    %86 = arith.mulf %85, %85 : vector<128x128xf32>
    %cst_38 = arith.constant dense<0.000000e+00> : vector<128xf32>
    %87 = vector.multi_reduction <add>, %86, %cst_38 [1] : vector<128x128xf32> to vector<128xf32>
    %88 = vector.shape_cast %87 : vector<128xf32> to vector<128x1xf32>
    %cst_39 = arith.constant 1.280000e+02 : f32
    %89 = vector.broadcast %cst_39 : f32 to vector<128x1xf32>
    %90 = arith.divf %88, %89 : vector<128x1xf32>
    %91 = vector.broadcast %83 : vector<128x1xf32> to vector<128x128xf32>
    %92 = arith.subf %75, %91 : vector<128x128xf32>
    %cst_40 = arith.constant 9.99999974E-6 : f32
    %93 = vector.broadcast %cst_40 : f32 to vector<128x1xf32>
    %94 = arith.addf %90, %93 : vector<128x1xf32>
    %95 = math.rsqrt %94 : vector<128x1xf32>
    %96 = vector.broadcast %95 : vector<128x1xf32> to vector<128x128xf32>
    %97 = arith.mulf %92, %96 : vector<128x128xf32>
    %98 = vector.broadcast %77 : vector<1x128xf32> to vector<128x128xf32>
    %99 = arith.mulf %97, %98 : vector<128x128xf32>
    %100 = vector.broadcast %79 : vector<1x128xf32> to vector<128x128xf32>
    %101 = arith.addf %99, %100 : vector<128x128xf32>
    %102 = arith.truncf %101 : vector<128x128xf32> to vector<128x128xbf16>
    %c0_41 = arith.constant 0 : index
    %c0_42 = arith.constant 0 : index
    %c0_43 = arith.constant 0 : index
    %103 = vector.load %arg13[%c0_41, %c0_42, %c0_43] : memref<2x128x128xbf16, #tpu.memory_space<vmem>>, vector<1x128x128xbf16>
    %104 = vector.shape_cast %103 : vector<1x128x128xbf16> to vector<128x128xbf16>
    %cst_44 = arith.constant dense<0.000000e+00> : vector<128x128xf32>
    %105 = tpu.matmul %102, %104, %cst_44 {dimension_numbers = #tpu.dot_dimension_numbers<[1], [1], [0], [0], [0, 0, 1, 0], [], []>} : vector<128x128xbf16>, vector<128x128xbf16>, vector<128x128xf32> -> vector<128x128xf32>
    %c0_45 = arith.constant 0 : index
    %c0_46 = arith.constant 0 : index
    %c0_47 = arith.constant 0 : index
    %106 = vector.load %arg14[%c0_45, %c0_46, %c0_47] : memref<2x1x128xf32, #tpu.memory_space<vmem>>, vector<1x1x128xf32>
    %107 = vector.shape_cast %106 : vector<1x1x128xf32> to vector<1x128xf32>
    %108 = vector.broadcast %107 : vector<1x128xf32> to vector<128x128xf32>
    %109 = arith.addf %105, %108 : vector<128x128xf32>
    %cst_48 = arith.constant 0.000000e+00 : f32
    %110 = vector.broadcast %cst_48 : f32 to vector<128x128xf32>
    %111 = arith.maximumf %109, %110 : vector<128x128xf32>
    %112 = arith.truncf %111 : vector<128x128xf32> to vector<128x128xbf16>
    %c0_49 = arith.constant 0 : index
    %c0_50 = arith.constant 0 : index
    %c0_51 = arith.constant 0 : index
    %113 = vector.load %arg15[%c0_49, %c0_50, %c0_51] : memref<2x128x128xbf16, #tpu.memory_space<vmem>>, vector<1x128x128xbf16>
    %114 = vector.shape_cast %113 : vector<1x128x128xbf16> to vector<128x128xbf16>
    %cst_52 = arith.constant dense<0.000000e+00> : vector<128x128xf32>
    %115 = tpu.matmul %112, %114, %cst_52 {dimension_numbers = #tpu.dot_dimension_numbers<[1], [1], [0], [0], [0, 0, 1, 0], [], []>} : vector<128x128xbf16>, vector<128x128xbf16>, vector<128x128xf32> -> vector<128x128xf32>
    %c0_53 = arith.constant 0 : index
    %c0_54 = arith.constant 0 : index
    %c0_55 = arith.constant 0 : index
    %116 = vector.load %arg16[%c0_53, %c0_54, %c0_55] : memref<2x1x128xf32, #tpu.memory_space<vmem>>, vector<1x1x128xf32>
    %117 = vector.shape_cast %116 : vector<1x1x128xf32> to vector<1x128xf32>
    %118 = vector.broadcast %117 : vector<1x128xf32> to vector<128x128xf32>
    %119 = arith.addf %115, %118 : vector<128x128xf32>
    %120 = arith.addf %101, %119 : vector<128x128xf32>
    %c0_56 = arith.constant 0 : index
    %c0_57 = arith.constant 0 : index
    %c0_58 = arith.constant 0 : index
    %121 = vector.load %arg17[%c0_56, %c0_57, %c0_58] : memref<2x1x128xf32, #tpu.memory_space<vmem>>, vector<1x1x128xf32>
    %122 = vector.shape_cast %121 : vector<1x1x128xf32> to vector<1x128xf32>
    %c0_59 = arith.constant 0 : index
    %c0_60 = arith.constant 0 : index
    %c0_61 = arith.constant 0 : index
    %123 = vector.load %arg18[%c0_59, %c0_60, %c0_61] : memref<2x1x128xf32, #tpu.memory_space<vmem>>, vector<1x1x128xf32>
    %124 = vector.shape_cast %123 : vector<1x1x128xf32> to vector<1x128xf32>
    %cst_62 = arith.constant dense<0.000000e+00> : vector<128xf32>
    %125 = vector.multi_reduction <add>, %120, %cst_62 [1] : vector<128x128xf32> to vector<128xf32>
    %126 = vector.shape_cast %125 : vector<128xf32> to vector<128x1xf32>
    %cst_63 = arith.constant 1.280000e+02 : f32
    %127 = vector.broadcast %cst_63 : f32 to vector<128x1xf32>
    %128 = arith.divf %126, %127 : vector<128x1xf32>
    %129 = vector.broadcast %128 : vector<128x1xf32> to vector<128x128xf32>
    %130 = arith.subf %120, %129 : vector<128x128xf32>
    %131 = arith.mulf %130, %130 : vector<128x128xf32>
    %cst_64 = arith.constant dense<0.000000e+00> : vector<128xf32>
    %132 = vector.multi_reduction <add>, %131, %cst_64 [1] : vector<128x128xf32> to vector<128xf32>
    %133 = vector.shape_cast %132 : vector<128xf32> to vector<128x1xf32>
    %cst_65 = arith.constant 1.280000e+02 : f32
    %134 = vector.broadcast %cst_65 : f32 to vector<128x1xf32>
    %135 = arith.divf %133, %134 : vector<128x1xf32>
    %136 = vector.broadcast %128 : vector<128x1xf32> to vector<128x128xf32>
    %137 = arith.subf %120, %136 : vector<128x128xf32>
    %cst_66 = arith.constant 9.99999974E-6 : f32
    %138 = vector.broadcast %cst_66 : f32 to vector<128x1xf32>
    %139 = arith.addf %135, %138 : vector<128x1xf32>
    %140 = math.rsqrt %139 : vector<128x1xf32>
    %141 = vector.broadcast %140 : vector<128x1xf32> to vector<128x128xf32>
    %142 = arith.mulf %137, %141 : vector<128x128xf32>
    %143 = vector.broadcast %122 : vector<1x128xf32> to vector<128x128xf32>
    %144 = arith.mulf %142, %143 : vector<128x128xf32>
    %145 = vector.broadcast %124 : vector<1x128xf32> to vector<128x128xf32>
    %146 = arith.addf %144, %145 : vector<128x128xf32>
    %147 = arith.truncf %146 : vector<128x128xf32> to vector<128x128xbf16>
    %c1 = arith.constant 1 : index
    %c0_67 = arith.constant 0 : index
    %c0_68 = arith.constant 0 : index
    %148 = vector.load %arg7[%c1, %c0_67, %c0_68] : memref<2x384x128xbf16, #tpu.memory_space<vmem>>, vector<1x384x128xbf16>
    %149 = vector.shape_cast %148 : vector<1x384x128xbf16> to vector<384x128xbf16>
    %cst_69 = arith.constant dense<0.000000e+00> : vector<128x384xf32>
    %150 = tpu.matmul %147, %149, %cst_69 {dimension_numbers = #tpu.dot_dimension_numbers<[1], [1], [0], [0], [0, 0, 1, 0], [], []>} : vector<128x128xbf16>, vector<384x128xbf16>, vector<128x384xf32> -> vector<128x384xf32>
    %c1_70 = arith.constant 1 : index
    %c0_71 = arith.constant 0 : index
    %c0_72 = arith.constant 0 : index
    %151 = vector.load %arg8[%c1_70, %c0_71, %c0_72] : memref<2x1x384xf32, #tpu.memory_space<vmem>>, vector<1x1x384xf32>
    %152 = vector.shape_cast %151 : vector<1x1x384xf32> to vector<1x384xf32>
    %153 = vector.broadcast %152 : vector<1x384xf32> to vector<128x384xf32>
    %154 = arith.addf %150, %153 : vector<128x384xf32>
    %155 = arith.truncf %154 : vector<128x384xf32> to vector<128x384xbf16>
    %156 = vector.extract_strided_slice %155 {offsets = [0, 0], sizes = [128, 64], strides = [1, 1]} : vector<128x384xbf16> to vector<128x64xbf16>
    %157 = vector.extract_strided_slice %155 {offsets = [0, 128], sizes = [128, 64], strides = [1, 1]} : vector<128x384xbf16> to vector<128x64xbf16>
    %158 = vector.extract_strided_slice %155 {offsets = [0, 256], sizes = [128, 64], strides = [1, 1]} : vector<128x384xbf16> to vector<128x64xbf16>
    %cst_73 = arith.constant dense<0.000000e+00> : vector<128x128xf32>
    %159 = tpu.matmul %156, %157, %cst_73 {dimension_numbers = #tpu.dot_dimension_numbers<[1], [1], [0], [0], [0, 0, 1, 0], [], []>} : vector<128x64xbf16>, vector<128x64xbf16>, vector<128x128xf32> -> vector<128x128xf32>
    %160 = arith.addf %159, %24 : vector<128x128xf32>
    %cst_74 = arith.constant dense<0xFF800000> : vector<128xf32>
    %161 = vector.multi_reduction <maximumf>, %160, %cst_74 [1] : vector<128x128xf32> to vector<128xf32>
    %162 = vector.shape_cast %161 : vector<128xf32> to vector<128x1xf32>
    %163 = vector.broadcast %162 : vector<128x1xf32> to vector<128x128xf32>
    %164 = arith.subf %160, %163 : vector<128x128xf32>
    %165 = math.exp %164 : vector<128x128xf32>
    %cst_75 = arith.constant dense<0.000000e+00> : vector<128xf32>
    %166 = vector.multi_reduction <add>, %165, %cst_75 [1] : vector<128x128xf32> to vector<128xf32>
    %167 = vector.shape_cast %166 : vector<128xf32> to vector<128x1xf32>
    %168 = vector.broadcast %167 : vector<128x1xf32> to vector<128x128xf32>
    %169 = arith.divf %165, %168 : vector<128x128xf32>
    %170 = arith.truncf %169 : vector<128x128xf32> to vector<128x128xbf16>
    %cst_76 = arith.constant dense<0.000000e+00> : vector<128x64xf32>
    %171 = tpu.matmul %170, %158, %cst_76 {dimension_numbers = #tpu.dot_dimension_numbers<[1], [0], [0], [1], [0, 0, 1, 1], [], []>} : vector<128x128xbf16>, vector<128x64xbf16>, vector<128x64xf32> -> vector<128x64xf32>
    %172 = vector.extract_strided_slice %155 {offsets = [0, 64], sizes = [128, 64], strides = [1, 1]} : vector<128x384xbf16> to vector<128x64xbf16>
    %173 = vector.extract_strided_slice %155 {offsets = [0, 192], sizes = [128, 64], strides = [1, 1]} : vector<128x384xbf16> to vector<128x64xbf16>
    %174 = vector.extract_strided_slice %155 {offsets = [0, 320], sizes = [128, 64], strides = [1, 1]} : vector<128x384xbf16> to vector<128x64xbf16>
    %cst_77 = arith.constant dense<0.000000e+00> : vector<128x128xf32>
    %175 = tpu.matmul %172, %173, %cst_77 {dimension_numbers = #tpu.dot_dimension_numbers<[1], [1], [0], [0], [0, 0, 1, 0], [], []>} : vector<128x64xbf16>, vector<128x64xbf16>, vector<128x128xf32> -> vector<128x128xf32>
    %176 = arith.addf %175, %24 : vector<128x128xf32>
    %cst_78 = arith.constant dense<0xFF800000> : vector<128xf32>
    %177 = vector.multi_reduction <maximumf>, %176, %cst_78 [1] : vector<128x128xf32> to vector<128xf32>
    %178 = vector.shape_cast %177 : vector<128xf32> to vector<128x1xf32>
    %179 = vector.broadcast %178 : vector<128x1xf32> to vector<128x128xf32>
    %180 = arith.subf %176, %179 : vector<128x128xf32>
    %181 = math.exp %180 : vector<128x128xf32>
    %cst_79 = arith.constant dense<0.000000e+00> : vector<128xf32>
    %182 = vector.multi_reduction <add>, %181, %cst_79 [1] : vector<128x128xf32> to vector<128xf32>
    %183 = vector.shape_cast %182 : vector<128xf32> to vector<128x1xf32>
    %184 = vector.broadcast %183 : vector<128x1xf32> to vector<128x128xf32>
    %185 = arith.divf %181, %184 : vector<128x128xf32>
    %186 = arith.truncf %185 : vector<128x128xf32> to vector<128x128xbf16>
    %cst_80 = arith.constant dense<0.000000e+00> : vector<128x64xf32>
    %187 = tpu.matmul %186, %174, %cst_80 {dimension_numbers = #tpu.dot_dimension_numbers<[1], [0], [0], [1], [0, 0, 1, 1], [], []>} : vector<128x128xbf16>, vector<128x64xbf16>, vector<128x64xf32> -> vector<128x64xf32>
    %188 = tpu.concatenate %171, %187 in 1 : vector<128x64xf32>, vector<128x64xf32> -> vector<128x128xf32>
    %189 = arith.truncf %188 : vector<128x128xf32> to vector<128x128xbf16>
    %c1_81 = arith.constant 1 : index
    %c0_82 = arith.constant 0 : index
    %c0_83 = arith.constant 0 : index
    %190 = vector.load %arg9[%c1_81, %c0_82, %c0_83] : memref<2x128x128xbf16, #tpu.memory_space<vmem>>, vector<1x128x128xbf16>
    %191 = vector.shape_cast %190 : vector<1x128x128xbf16> to vector<128x128xbf16>
    %cst_84 = arith.constant dense<0.000000e+00> : vector<128x128xf32>
    %192 = tpu.matmul %189, %191, %cst_84 {dimension_numbers = #tpu.dot_dimension_numbers<[1], [1], [0], [0], [0, 0, 1, 0], [], []>} : vector<128x128xbf16>, vector<128x128xbf16>, vector<128x128xf32> -> vector<128x128xf32>
    %c1_85 = arith.constant 1 : index
    %c0_86 = arith.constant 0 : index
    %c0_87 = arith.constant 0 : index
    %193 = vector.load %arg10[%c1_85, %c0_86, %c0_87] : memref<2x1x128xf32, #tpu.memory_space<vmem>>, vector<1x1x128xf32>
    %194 = vector.shape_cast %193 : vector<1x1x128xf32> to vector<1x128xf32>
    %195 = vector.broadcast %194 : vector<1x128xf32> to vector<128x128xf32>
    %196 = arith.addf %192, %195 : vector<128x128xf32>
    %197 = arith.addf %146, %196 : vector<128x128xf32>
    %c1_88 = arith.constant 1 : index
    %c0_89 = arith.constant 0 : index
    %c0_90 = arith.constant 0 : index
    %198 = vector.load %arg11[%c1_88, %c0_89, %c0_90] : memref<2x1x128xf32, #tpu.memory_space<vmem>>, vector<1x1x128xf32>
    %199 = vector.shape_cast %198 : vector<1x1x128xf32> to vector<1x128xf32>
    %c1_91 = arith.constant 1 : index
    %c0_92 = arith.constant 0 : index
    %c0_93 = arith.constant 0 : index
    %200 = vector.load %arg12[%c1_91, %c0_92, %c0_93] : memref<2x1x128xf32, #tpu.memory_space<vmem>>, vector<1x1x128xf32>
    %201 = vector.shape_cast %200 : vector<1x1x128xf32> to vector<1x128xf32>
    %cst_94 = arith.constant dense<0.000000e+00> : vector<128xf32>
    %202 = vector.multi_reduction <add>, %197, %cst_94 [1] : vector<128x128xf32> to vector<128xf32>
    %203 = vector.shape_cast %202 : vector<128xf32> to vector<128x1xf32>
    %cst_95 = arith.constant 1.280000e+02 : f32
    %204 = vector.broadcast %cst_95 : f32 to vector<128x1xf32>
    %205 = arith.divf %203, %204 : vector<128x1xf32>
    %206 = vector.broadcast %205 : vector<128x1xf32> to vector<128x128xf32>
    %207 = arith.subf %197, %206 : vector<128x128xf32>
    %208 = arith.mulf %207, %207 : vector<128x128xf32>
    %cst_96 = arith.constant dense<0.000000e+00> : vector<128xf32>
    %209 = vector.multi_reduction <add>, %208, %cst_96 [1] : vector<128x128xf32> to vector<128xf32>
    %210 = vector.shape_cast %209 : vector<128xf32> to vector<128x1xf32>
    %cst_97 = arith.constant 1.280000e+02 : f32
    %211 = vector.broadcast %cst_97 : f32 to vector<128x1xf32>
    %212 = arith.divf %210, %211 : vector<128x1xf32>
    %213 = vector.broadcast %205 : vector<128x1xf32> to vector<128x128xf32>
    %214 = arith.subf %197, %213 : vector<128x128xf32>
    %cst_98 = arith.constant 9.99999974E-6 : f32
    %215 = vector.broadcast %cst_98 : f32 to vector<128x1xf32>
    %216 = arith.addf %212, %215 : vector<128x1xf32>
    %217 = math.rsqrt %216 : vector<128x1xf32>
    %218 = vector.broadcast %217 : vector<128x1xf32> to vector<128x128xf32>
    %219 = arith.mulf %214, %218 : vector<128x128xf32>
    %220 = vector.broadcast %199 : vector<1x128xf32> to vector<128x128xf32>
    %221 = arith.mulf %219, %220 : vector<128x128xf32>
    %222 = vector.broadcast %201 : vector<1x128xf32> to vector<128x128xf32>
    %223 = arith.addf %221, %222 : vector<128x128xf32>
    %224 = arith.truncf %223 : vector<128x128xf32> to vector<128x128xbf16>
    %c1_99 = arith.constant 1 : index
    %c0_100 = arith.constant 0 : index
    %c0_101 = arith.constant 0 : index
    %225 = vector.load %arg13[%c1_99, %c0_100, %c0_101] : memref<2x128x128xbf16, #tpu.memory_space<vmem>>, vector<1x128x128xbf16>
    %226 = vector.shape_cast %225 : vector<1x128x128xbf16> to vector<128x128xbf16>
    %cst_102 = arith.constant dense<0.000000e+00> : vector<128x128xf32>
    %227 = tpu.matmul %224, %226, %cst_102 {dimension_numbers = #tpu.dot_dimension_numbers<[1], [1], [0], [0], [0, 0, 1, 0], [], []>} : vector<128x128xbf16>, vector<128x128xbf16>, vector<128x128xf32> -> vector<128x128xf32>
    %c1_103 = arith.constant 1 : index
    %c0_104 = arith.constant 0 : index
    %c0_105 = arith.constant 0 : index
    %228 = vector.load %arg14[%c1_103, %c0_104, %c0_105] : memref<2x1x128xf32, #tpu.memory_space<vmem>>, vector<1x1x128xf32>
    %229 = vector.shape_cast %228 : vector<1x1x128xf32> to vector<1x128xf32>
    %230 = vector.broadcast %229 : vector<1x128xf32> to vector<128x128xf32>
    %231 = arith.addf %227, %230 : vector<128x128xf32>
    %cst_106 = arith.constant 0.000000e+00 : f32
    %232 = vector.broadcast %cst_106 : f32 to vector<128x128xf32>
    %233 = arith.maximumf %231, %232 : vector<128x128xf32>
    %234 = arith.truncf %233 : vector<128x128xf32> to vector<128x128xbf16>
    %c1_107 = arith.constant 1 : index
    %c0_108 = arith.constant 0 : index
    %c0_109 = arith.constant 0 : index
    %235 = vector.load %arg15[%c1_107, %c0_108, %c0_109] : memref<2x128x128xbf16, #tpu.memory_space<vmem>>, vector<1x128x128xbf16>
    %236 = vector.shape_cast %235 : vector<1x128x128xbf16> to vector<128x128xbf16>
    %cst_110 = arith.constant dense<0.000000e+00> : vector<128x128xf32>
    %237 = tpu.matmul %234, %236, %cst_110 {dimension_numbers = #tpu.dot_dimension_numbers<[1], [1], [0], [0], [0, 0, 1, 0], [], []>} : vector<128x128xbf16>, vector<128x128xbf16>, vector<128x128xf32> -> vector<128x128xf32>
    %c1_111 = arith.constant 1 : index
    %c0_112 = arith.constant 0 : index
    %c0_113 = arith.constant 0 : index
    %238 = vector.load %arg16[%c1_111, %c0_112, %c0_113] : memref<2x1x128xf32, #tpu.memory_space<vmem>>, vector<1x1x128xf32>
    %239 = vector.shape_cast %238 : vector<1x1x128xf32> to vector<1x128xf32>
    %240 = vector.broadcast %239 : vector<1x128xf32> to vector<128x128xf32>
    %241 = arith.addf %237, %240 : vector<128x128xf32>
    %242 = arith.addf %223, %241 : vector<128x128xf32>
    %c1_114 = arith.constant 1 : index
    %c0_115 = arith.constant 0 : index
    %c0_116 = arith.constant 0 : index
    %243 = vector.load %arg17[%c1_114, %c0_115, %c0_116] : memref<2x1x128xf32, #tpu.memory_space<vmem>>, vector<1x1x128xf32>
    %244 = vector.shape_cast %243 : vector<1x1x128xf32> to vector<1x128xf32>
    %c1_117 = arith.constant 1 : index
    %c0_118 = arith.constant 0 : index
    %c0_119 = arith.constant 0 : index
    %245 = vector.load %arg18[%c1_117, %c0_118, %c0_119] : memref<2x1x128xf32, #tpu.memory_space<vmem>>, vector<1x1x128xf32>
    %246 = vector.shape_cast %245 : vector<1x1x128xf32> to vector<1x128xf32>
    %cst_120 = arith.constant dense<0.000000e+00> : vector<128xf32>
    %247 = vector.multi_reduction <add>, %242, %cst_120 [1] : vector<128x128xf32> to vector<128xf32>
    %248 = vector.shape_cast %247 : vector<128xf32> to vector<128x1xf32>
    %cst_121 = arith.constant 1.280000e+02 : f32
    %249 = vector.broadcast %cst_121 : f32 to vector<128x1xf32>
    %250 = arith.divf %248, %249 : vector<128x1xf32>
    %251 = vector.broadcast %250 : vector<128x1xf32> to vector<128x128xf32>
    %252 = arith.subf %242, %251 : vector<128x128xf32>
    %253 = arith.mulf %252, %252 : vector<128x128xf32>
    %cst_122 = arith.constant dense<0.000000e+00> : vector<128xf32>
    %254 = vector.multi_reduction <add>, %253, %cst_122 [1] : vector<128x128xf32> to vector<128xf32>
    %255 = vector.shape_cast %254 : vector<128xf32> to vector<128x1xf32>
    %cst_123 = arith.constant 1.280000e+02 : f32
    %256 = vector.broadcast %cst_123 : f32 to vector<128x1xf32>
    %257 = arith.divf %255, %256 : vector<128x1xf32>
    %258 = vector.broadcast %250 : vector<128x1xf32> to vector<128x128xf32>
    %259 = arith.subf %242, %258 : vector<128x128xf32>
    %cst_124 = arith.constant 9.99999974E-6 : f32
    %260 = vector.broadcast %cst_124 : f32 to vector<128x1xf32>
    %261 = arith.addf %257, %260 : vector<128x1xf32>
    %262 = math.rsqrt %261 : vector<128x1xf32>
    %263 = vector.broadcast %262 : vector<128x1xf32> to vector<128x128xf32>
    %264 = arith.mulf %259, %263 : vector<128x128xf32>
    %265 = vector.broadcast %244 : vector<1x128xf32> to vector<128x128xf32>
    %266 = arith.mulf %264, %265 : vector<128x128xf32>
    %267 = vector.broadcast %246 : vector<1x128xf32> to vector<128x128xf32>
    %268 = arith.addf %266, %267 : vector<128x128xf32>
    %c0_125 = arith.constant 0 : index
    %c0_126 = arith.constant 0 : index
    %269 = vector.load %arg4[%c0_125, %c0_126] : memref<16x128xbf16, #tpu.memory_space<vmem>>, vector<16x128xbf16>
    %270 = arith.truncf %268 : vector<128x128xf32> to vector<128x128xbf16>
    %cst_127 = arith.constant dense<0.000000e+00> : vector<16x128xf32>
    %271 = tpu.matmul %269, %270, %cst_127 {dimension_numbers = #tpu.dot_dimension_numbers<[1], [0], [0], [1], [0, 0, 1, 1], [], []>} : vector<16x128xbf16>, vector<128x128xbf16>, vector<16x128xf32> -> vector<16x128xf32>
    %272 = arith.truncf %271 : vector<16x128xf32> to vector<16x128xbf16>
    %c0_128 = arith.constant 0 : index
    %c0_129 = arith.constant 0 : index
    %273 = vector.load %arg19[%c0_128, %c0_129] : memref<128x128xbf16, #tpu.memory_space<vmem>>, vector<128x128xbf16>
    %cst_130 = arith.constant dense<0.000000e+00> : vector<16x128xf32>
    %274 = tpu.matmul %272, %273, %cst_130 {dimension_numbers = #tpu.dot_dimension_numbers<[1], [1], [0], [0], [0, 0, 1, 0], [], []>} : vector<16x128xbf16>, vector<128x128xbf16>, vector<16x128xf32> -> vector<16x128xf32>
    %c0_131 = arith.constant 0 : index
    %c0_132 = arith.constant 0 : index
    %275 = vector.load %arg20[%c0_131, %c0_132] : memref<1x128xf32, #tpu.memory_space<vmem>>, vector<1x128xf32>
    %276 = vector.broadcast %275 : vector<1x128xf32> to vector<16x128xf32>
    %277 = arith.addf %274, %276 : vector<16x128xf32>
    %c0_133 = arith.constant 0 : index
    %c0_134 = arith.constant 0 : index
    %278 = vector.load %arg21[%c0_133, %c0_134] : memref<16x128xf32, #tpu.memory_space<vmem>>, vector<16x128xf32>
    tpu.vector_store %arg21[%c0_133, %c0_134], %277 {strides = array<i32>} : memref<16x128xf32, #tpu.memory_space<vmem>>, vector<16x128xf32>,
    return
  }
  func.func @transform_0(%arg0: i32) -> (i32, i32) {
    %c0_i32 = arith.constant 0 : i32
    %c0_i32_0 = arith.constant 0 : i32
    return %arg0, %c0_i32 : i32, i32
  }
  func.func @transform_1(%arg0: i32) -> (i32, i32) {
    %c0_i32 = arith.constant 0 : i32
    %c0_i32_0 = arith.constant 0 : i32
    %c0_i32_1 = arith.constant 0 : i32
    return %c0_i32, %c0_i32_0 : i32, i32
  }
  func.func @transform_2(%arg0: i32) -> (i32, i32) {
    %c0_i32 = arith.constant 0 : i32
    %c0_i32_0 = arith.constant 0 : i32
    %c0_i32_1 = arith.constant 0 : i32
    return %c0_i32, %c0_i32_0 : i32, i32
  }
  func.func @transform_3(%arg0: i32) -> (i32, i32) {
    %c0_i32 = arith.constant 0 : i32
    %c0_i32_0 = arith.constant 0 : i32
    %c0_i32_1 = arith.constant 0 : i32
    return %c0_i32, %c0_i32_0 : i32, i32
  }
  func.func @transform_4(%arg0: i32) -> (i32, i32) {
    %c0_i32 = arith.constant 0 : i32
    %c0_i32_0 = arith.constant 0 : i32
    %c0_i32_1 = arith.constant 0 : i32
    return %c0_i32, %c0_i32_0 : i32, i32
  }
  func.func @transform_5(%arg0: i32) -> (i32, i32) {
    %c0_i32 = arith.constant 0 : i32
    %c0_i32_0 = arith.constant 0 : i32
    %c0_i32_1 = arith.constant 0 : i32
    return %c0_i32, %c0_i32_0 : i32, i32
  }
  func.func @transform_6(%arg0: i32) -> (i32, i32, i32) {
    %c0_i32 = arith.constant 0 : i32
    %c0_i32_0 = arith.constant 0 : i32
    %c0_i32_1 = arith.constant 0 : i32
    %c0_i32_2 = arith.constant 0 : i32
    return %c0_i32, %c0_i32_0, %c0_i32_1 : i32, i32, i32
  }
  func.func @transform_7(%arg0: i32) -> (i32, i32, i32) {
    %c0_i32 = arith.constant 0 : i32
    %c0_i32_0 = arith.constant 0 : i32
    %c0_i32_1 = arith.constant 0 : i32
    %c0_i32_2 = arith.constant 0 : i32
    return %c0_i32, %c0_i32_0, %c0_i32_1 : i32, i32, i32
  }
  func.func @transform_8(%arg0: i32) -> (i32, i32, i32) {
    %c0_i32 = arith.constant 0 : i32
    %c0_i32_0 = arith.constant 0 : i32
    %c0_i32_1 = arith.constant 0 : i32
    %c0_i32_2 = arith.constant 0 : i32
    return %c0_i32, %c0_i32_0, %c0_i32_1 : i32, i32, i32
  }
  func.func @transform_9(%arg0: i32) -> (i32, i32, i32) {
    %c0_i32 = arith.constant 0 : i32
    %c0_i32_0 = arith.constant 0 : i32
    %c0_i32_1 = arith.constant 0 : i32
    %c0_i32_2 = arith.constant 0 : i32
    return %c0_i32, %c0_i32_0, %c0_i32_1 : i32, i32, i32
  }
  func.func @transform_10(%arg0: i32) -> (i32, i32, i32) {
    %c0_i32 = arith.constant 0 : i32
    %c0_i32_0 = arith.constant 0 : i32
    %c0_i32_1 = arith.constant 0 : i32
    %c0_i32_2 = arith.constant 0 : i32
    return %c0_i32, %c0_i32_0, %c0_i32_1 : i32, i32, i32
  }
  func.func @transform_11(%arg0: i32) -> (i32, i32, i32) {
    %c0_i32 = arith.constant 0 : i32
    %c0_i32_0 = arith.constant 0 : i32
    %c0_i32_1 = arith.constant 0 : i32
    %c0_i32_2 = arith.constant 0 : i32
    return %c0_i32, %c0_i32_0, %c0_i32_1 : i32, i32, i32
  }
  func.func @transform_12(%arg0: i32) -> (i32, i32, i32) {
    %c0_i32 = arith.constant 0 : i32
    %c0_i32_0 = arith.constant 0 : i32
    %c0_i32_1 = arith.constant 0 : i32
    %c0_i32_2 = arith.constant 0 : i32
    return %c0_i32, %c0_i32_0, %c0_i32_1 : i32, i32, i32
  }
  func.func @transform_13(%arg0: i32) -> (i32, i32, i32) {
    %c0_i32 = arith.constant 0 : i32
    %c0_i32_0 = arith.constant 0 : i32
    %c0_i32_1 = arith.constant 0 : i32
    %c0_i32_2 = arith.constant 0 : i32
    return %c0_i32, %c0_i32_0, %c0_i32_1 : i32, i32, i32
  }
  func.func @transform_14(%arg0: i32) -> (i32, i32, i32) {
    %c0_i32 = arith.constant 0 : i32
    %c0_i32_0 = arith.constant 0 : i32
    %c0_i32_1 = arith.constant 0 : i32
    %c0_i32_2 = arith.constant 0 : i32
    return %c0_i32, %c0_i32_0, %c0_i32_1 : i32, i32, i32
  }
  func.func @transform_15(%arg0: i32) -> (i32, i32, i32) {
    %c0_i32 = arith.constant 0 : i32
    %c0_i32_0 = arith.constant 0 : i32
    %c0_i32_1 = arith.constant 0 : i32
    %c0_i32_2 = arith.constant 0 : i32
    return %c0_i32, %c0_i32_0, %c0_i32_1 : i32, i32, i32
  }
  func.func @transform_16(%arg0: i32) -> (i32, i32, i32) {
    %c0_i32 = arith.constant 0 : i32
    %c0_i32_0 = arith.constant 0 : i32
    %c0_i32_1 = arith.constant 0 : i32
    %c0_i32_2 = arith.constant 0 : i32
    return %c0_i32, %c0_i32_0, %c0_i32_1 : i32, i32, i32
  }
  func.func @transform_17(%arg0: i32) -> (i32, i32, i32) {
    %c0_i32 = arith.constant 0 : i32
    %c0_i32_0 = arith.constant 0 : i32
    %c0_i32_1 = arith.constant 0 : i32
    %c0_i32_2 = arith.constant 0 : i32
    return %c0_i32, %c0_i32_0, %c0_i32_1 : i32, i32, i32
  }
  func.func @transform_18(%arg0: i32) -> (i32, i32) {
    %c0_i32 = arith.constant 0 : i32
    %c0_i32_0 = arith.constant 0 : i32
    %c0_i32_1 = arith.constant 0 : i32
    return %c0_i32, %c0_i32_0 : i32, i32
  }
  func.func @transform_19(%arg0: i32) -> (i32, i32) {
    %c0_i32 = arith.constant 0 : i32
    %c0_i32_0 = arith.constant 0 : i32
    %c0_i32_1 = arith.constant 0 : i32
    return %c0_i32, %c0_i32_0 : i32, i32
  }
  func.func @transform_20(%arg0: i32) -> (i32, i32) {
    %c0_i32 = arith.constant 0 : i32
    %c0_i32_0 = arith.constant 0 : i32
    return %arg0, %c0_i32 : i32, i32
  }
}

</mosaic_0001>

<bundles_post_ra>
// kernel: transformer_model_forward.1
= control target key start
LH: loop header
LB: loop body
LE: loop exit
PB: predicated region body
PF: predicated region fallthrough
CT: control target
= control target key end

     0   :  { %s12194_s0 = inlined_call_operand.vmem [shape: f32[256,3], index: 0, kind: input, shape index: {}]   ;;  %s12195_s1 = inlined_call_operand.vmem [shape: f32[128,128], index: 1, kind: input, shape index: {}]   ;;  %s12196_s2 = inlined_call_operand.vmem [shape: f32[128,128], index: 2, kind: input, shape index: {}]   ;;  %s12197_s3 = inlined_call_operand.vmem [shape: bf16[16,128], index: 3, kind: input, shape index: {}]   ;;  %s12198_s4 = inlined_call_operand.vmem [shape: f32[3,128], index: 4, kind: input, shape index: {}]   ;;  %s12199_s5 = inlined_call_operand.vmem [shape: f32[1,128], index: 5, kind: input, shape index: {}]   ;;  %s12200_s6 = inlined_call_operand.vmem [shape: bf16[2,384,128], index: 6, kind: input, shape index: {}]   ;;  %s12201_s7 = inlined_call_operand.vmem [shape: f32[2,1,384], index: 7, kind: input, shape index: {}]   ;;  %s12202_s8 = inlined_call_operand.vmem [shape: bf16[2,128,128], index: 8, kind: input, shape index: {}]   ;;  %s12203_s9 = inlined_call_operand.vmem [shape: f32[2,1,128], index: 9, kind: input, shape index: {}]   ;;  %s12204_s10 = inlined_call_operand.vmem [shape: f32[2,1,128], index: 10, kind: input, shape index: {}]   ;;  %s12205_s11 = inlined_call_operand.vmem [shape: f32[2,1,128], index: 11, kind: input, shape index: {}]   ;;  %s12206_s12 = inlined_call_operand.vmem [shape: bf16[2,128,128], index: 12, kind: input, shape index: {}]   ;;  %s12207_s13 = inlined_call_operand.vmem [shape: f32[2,1,128], index: 13, kind: input, shape index: {}]   ;;  %s12208_s14 = inlined_call_operand.vmem [shape: bf16[2,128,128], index: 14, kind: input, shape index: {}]   ;;  %s12209_s15 = inlined_call_operand.vmem [shape: f32[2,1,128], index: 15, kind: input, shape index: {}]   ;;  %s12210_s16 = inlined_call_operand.vmem [shape: f32[2,1,128], index: 16, kind: input, shape index: {}]   ;;  %s12211_s17 = inlined_call_operand.vmem [shape: f32[2,1,128], index: 17, kind: input, shape index: {}]   ;;  %s12212_s18 = inlined_call_operand.vmem [shape: bf16[128,128], index: 18, kind: input, shape index: {}]   ;;  %s12213_s19 = inlined_call_operand.vmem [shape: f32[1,128], index: 19, kind: input, shape index: {}]   ;;  %s12214_s20 = inlined_call_operand.vmem [shape: f32[32,128], index: 20, kind: output, shape index: {}]  }
   0x1   :  { %12241 = sst [smem:[#allocation14_spill]] %s12194_s0 }
   0x2   :  { %12242 = sst [smem:[#allocation15_spill]] %s12195_s1  ;;  %s8120_s1 = smov 0  }
   0x3   :  { %12243 = sst [smem:[#allocation16_spill]] %s12196_s2 }
   0x4   :  { %12244 = sst [smem:[#allocation17_spill]] %s12197_s3 }
   0x5   :  { %12245 = sst [smem:[#allocation18_spill]] %s12198_s4 }
   0x6 LB: > { %s6780_s22 = sadd.s32 4294967295, %s8008_s1   ;;  %p6784_p0 = scmp.ge.s32.totalorder %s8008_s1, 1  ;;  %s8008_s1 = sphi %s8120_s1, %s30_s1  }
   0x7   : > { %p563_p1 = scmp.lt.s32.totalorder %s8008_s1, 3 }
   0x9   : > { %p564_p2 = pnand %p6784_p0, %p563_p1 }
   0xb   : > { %567 = sbr.rel (%p564_p2) target bundleno = 5008 (0x1390), region = 100 }
  0x10   : > { %s6785_s23 = sshll.u32 %s6780_s22, 4  ;;  %v8010_v0 = vmov 1   ;;  %v8011_v1 = vmov 0   ;;  %v8012_v2 = vmov 2   ;;  %s12246_s3 = sld [smem:[#allocation14_spill]]  ;;  %v7354_v7 = vld [vmem:[%s12200_s6 + $0x38] sm:$0xff] }
  0x11   : > { %7466 = vset.pattern.permute.xlu1 %v8010_v0  ;;  %7465 = vset.pattern.permute.xlu0 %v8011_v1  ;;  %p622_p3 = scmp.lt.s32.totalorder %s6785_s23, 31  ;;  %v7362_v8 = vld [vmem:[%s12200_s6 + $0x78] sm:$0xff]  ;;  %v7353_v12 = vld [vmem:[%s12200_s6 + $0x30] sm:$0xff]  ;;  %v7352_v15 = vld [vmem:[%s12200_s6 + $0x28] sm:$0xff]  ;;  %s12247_s4 = sld [smem:[#allocation18_spill]]  ;;  %vm1460_vm0 = vcmask 523264  }
  0x12   : > { %7467 = vset.pattern.permute.xlu2 %v8012_v2  ;;  %v7370_v9 = vld [vmem:[%s12200_s6 + $0xb8] sm:$0xff]  ;;  %1217 = vmatpush.bf16.xpose.msra.mxu0 %v7354_v7  ;;  %v7361_v13 = vld [vmem:[%s12200_s6 + $0x70] sm:$0xff]  ;;  %v7360_v16 = vld [vmem:[%s12200_s6 + $0x68] sm:$0xff]  ;;  %s8013_s29 = smov 64   ;;  %s12260_s21 = sld [smem:[#allocation16_spill]] }
  0x13   : > { %s12390_s23 = smov (!%p622_p3, %s6785_s23), 31  ;;  %1266 = vmatpush.bf16.xpose.msra.mxu1 %v7362_v8  ;;  %1315 = vmatpush.bf16.xpose.msra.mxu2 %v7370_v9  ;;  %v7369_v14 = vld [vmem:[%s12200_s6 + $0xb0] sm:$0xff]  ;;  %v7368_v18 = vld [vmem:[%s12200_s6 + $0xa8] sm:$0xff]  ;;  %v7351_v21 = vld [vmem:[%s12200_s6 + $0x20] sm:$0xff]  ;;  %s12388_s2 = sld [smem:[#allocation17_spill]] }
  0x14   : > { %s6786_s24 = sshll.u32 %s12390_s23, 3  ;;  %v7359_v22 = vld [vmem:[%s12200_s6 + $0x60] sm:$0xff]  ;;  %v7350_v25 = vld [vmem:[%s12200_s6 + $0x18] sm:$0xff]  ;;  %v7349_v30 = vld [vmem:[%s12200_s6 + $0x10] sm:$0xff]  ;;  %s12248_s23 = sld [smem:[#allocation15_spill]] }
  0x15   : > { %v7367_v23 = vld [vmem:[%s12200_s6 + $0xa0] sm:$0xff]  ;;  %v7358_v26 = vld [vmem:[%s12200_s6 + $0x58] sm:$0xff]  ;;  %v7357_v31 = vld [vmem:[%s12200_s6 + $0x50] sm:$0xff]  ;;  %s6787_s0 = sshll.u32 %s6780_s22, 1 }
  0x16   : > { %s8136_s26 = scalar_lea.vmem %s12246_s3, %s6786_s24  ;;  %v7366_v27 = vld [vmem:[%s12200_s6 + $0x98] sm:$0xff]  ;;  %v7365_v32 = vld [vmem:[%s12200_s6 + $0x90] sm:$0xff]  ;;  %v7348_v34 = vld [vmem:[%s12200_s6 + $0x8] sm:$0xff]  ;;  %p628_p4 = scmp.lt.s32.totalorder %s6787_s0, 3 }
  0x17   : > { %v633_v3 = vld [vmem:[%s8136_s26] sm:$0xff]  ;;  %v634_v4 = vld [vmem:[%s8136_s26 + $0x8] sm:$0xff]  ;;  %v635_v5 = vld [vmem:[%s8136_s26 + $0x10] sm:$0xff] }
  0x18   : > { %800 = vperm.xlu1 %7466, %v633_v3   ;;  %688 = vperm.xlu0 %7465, %v633_v3   ;;  %v636_v6 = vld [vmem:[%s8136_s26 + $0x18] sm:$0xff]  ;;  %v637_v10 = vld [vmem:[%s8136_s26 + $0x20] sm:$0xff]  ;;  %v638_v11 = vld [vmem:[%s8136_s26 + $0x28] sm:$0xff]  ;;  %s12392_s0 = smov (!%p628_p4, %s6787_s0), 3 }
  0x19   : > { %897 = vperm.xlu2 %7467, %v633_v3   ;;  %v639_v17 = vld [vmem:[%s8136_s26 + $0x30] sm:$0xff]  ;;  %v640_v19 = vld [vmem:[%s8136_s26 + $0x38] sm:$0xff]  ;;  %v642_v20 = vld [vmem:[%s8136_s26 + $0x48] sm:$0xff]  ;;  %s6788_s24 = sshll.u32 %s12392_s0, 3 }
  0x1a   : > { %1218 = vmatpush.bf16.xpose.msra.mxu0 %v7353_v12  ;;  %v643_v24 = vld [vmem:[%s8136_s26 + $0x50] sm:$0xff]  ;;  %v641_v28 = vld [vmem:[%s8136_s26 + $0x40] sm:$0xff]  ;;  %v644_v29 = vld [vmem:[%s8136_s26 + $0x58] sm:$0xff]  ;;  %s631_s27 = scalar_lea.vmem %s12214_s20, %s6788_s24 }
  0x1b   : > { %1267 = vmatpush.bf16.xpose.msra.mxu1 %v7361_v13  ;;  %1316 = vmatpush.bf16.xpose.msra.mxu2 %v7369_v14  ;;  %v645_v33 = vld [vmem:[%s8136_s26 + $0x60] sm:$0xff]  ;;  %v7356_v35 = vld [vmem:[%s12200_s6 + $0x48] sm:$0xff]  ;;  %v8250_v42 = vld [vmem:[%s8136_s26 + $0x70] sm:$0xff] }
  0x1c   : > { %v7364_v36 = vld [vmem:[%s12200_s6 + $0x88] sm:$0xff]  ;;  %v7347_v38 = vld [vmem:[%s12200_s6] sm:$0xff]  ;;  %v652_v7 = vld [vmem:[%s12248_s23 + $0x10] sm:$0xff] }
  0x1d   : > { %v646_v37 = vld [vmem:[%s8136_s26 + $0x68] sm:$0xff]  ;;  %v7355_v39 = vld [vmem:[%s12200_s6 + $0x40] sm:$0xff] }
  0x1e   : > { %v7363_v40 = vld [vmem:[%s12200_s6 + $0x80] sm:$0xff]  ;;  %v651_v52 = vld [vmem:[%s12248_s23 + $0x8] sm:$0xff] }
  0x1f   : > { %v649_v44 = vld [vmem:[%s12247_s4] sm:$0x7] }
  0x20   : > { %804 = vperm.xlu1 %7466, %v634_v4   ;;  %693 = vperm.xlu0 %7465, %v634_v4   ;;  %v8261_v45 = vld [vmem:[%s12199_s5] ss:$0 sm:$0xff]  ;;  %v8263_v46 = vperm.slane %v649_v44, 0  ;;  %v8275_v53 = vperm.slane %v649_v44, 1  ;;  %v8277_v55 = vperm.slane %v649_v44, 2 }
  0x21   : > { %901 = vperm.xlu2 %7467, %v634_v4   ;;  %v650_v48 = vld [vmem:[%s12248_s23] sm:$0xff]  ;;  %v671_v57 = vadd.f32 %v8261_v45, %v651_v52  ;;  %v672_v13 = vadd.f32 %v8261_v45, %v652_v7 }
  0x22   : > { %1219 = vmatpush.bf16.xpose.msra.mxu0 %v7352_v15  ;;  %v670_v50 = vadd.f32 %v8261_v45, %v650_v48 }
  0x23   : > { %1268 = vmatpush.bf16.xpose.msra.mxu1 %v7360_v16  ;;  %1317 = vmatpush.bf16.xpose.msra.mxu2 %v7368_v18  ;;  %v653_v16 = vld [vmem:[%s12248_s23 + $0x18] sm:$0xff] }
  0x28   : > { %7468 = vset.pattern.permute.xlu1 %v8011_v1  ;;  %698 = vperm.xlu0 %7465, %v635_v5  }
  0x29   : > { %703 = vperm.xlu1 %7468, %v636_v6   ;;  %7469 = vset.pattern.permute.xlu2 %v8010_v0 }
  0x2a   : > { %808 = vperm.xlu2 %7469, %v635_v5   ;;  %1220 = vmatpush.bf16.xpose.msra.mxu0 %v7351_v21 }
  0x2b   : > { %1269 = vmatpush.bf16.xpose.msra.mxu1 %v7359_v22  ;;  %1318 = vmatpush.bf16.xpose.msra.mxu2 %v7367_v23 }
  0x30   : > { %7470 = vset.pattern.permute.xlu0 %v8010_v0 }
  0x31   : > { %7471 = vset.pattern.permute.xlu1 %v8012_v2  ;;  %812 = vperm.xlu0 %7470, %v636_v6  }
  0x32   : > { %905 = vperm.xlu1 %7471, %v635_v5   ;;  %7472 = vset.pattern.permute.xlu2 %v8012_v2 }
  0x33   : > { %909 = vperm.xlu2 %7472, %v636_v6   ;;  %1221 = vmatpush.bf16.xpose.msra.mxu0 %v7350_v25 }
  0x34   : > { %1270 = vmatpush.bf16.xpose.msra.mxu1 %v7358_v26  ;;  %1319 = vmatpush.bf16.xpose.msra.mxu2 %v7366_v27 }
  0x39   : > { %816 = vperm.xlu0 %7470, %v637_v10  }
  0x3a   : > { %7473 = vset.pattern.permute.xlu1 %v8011_v1 }
  0x3b   : > { %708 = vperm.xlu1 %7473, %v637_v10   ;;  %7474 = vset.pattern.permute.xlu2 %v8011_v1 }
  0x3c   : > { %713 = vperm.xlu2 %7474, %v638_v11   ;;  %1222 = vmatpush.bf16.xpose.msra.mxu0 %v7349_v30 }
  0x3d   : > { %1271 = vmatpush.bf16.xpose.msra.mxu1 %v7357_v31  ;;  %1320 = vmatpush.bf16.xpose.msra.mxu2 %v7365_v32 }
  0x41   : > { %7477 = vset.pattern.permute.xlu0 %v8012_v2 }
  0x42   : > { %917 = vperm.xlu0 %7477, %v638_v11  }
  0x43   : > { %7475 = vset.pattern.permute.xlu1 %v8010_v0 }
  0x44   : > { %820 = vperm.xlu1 %7475, %v638_v11   ;;  %7476 = vset.pattern.permute.xlu2 %v8012_v2 }
  0x45   : > { %913 = vperm.xlu2 %7476, %v637_v10   ;;  %1223 = vmatpush.bf16.xpose.msra.mxu0 %v7348_v34  ;;  %v654_v34 = vld [vmem:[%s12248_s23 + $0x20] sm:$0xff] }
  0x46   : > { %1272 = vmatpush.bf16.xpose.msra.mxu1 %v7356_v35  ;;  %1321 = vmatpush.bf16.xpose.msra.mxu2 %v7364_v36 }
  0x4a   : > { %921 = vperm.xlu0 %7477, %v639_v17  }
  0x4c   : > { %7478 = vset.pattern.permute.xlu1 %v8011_v1 }
  0x4d   : > { %718 = vperm.xlu1 %7478, %v639_v17   ;;  %7479 = vset.pattern.permute.xlu2 %v8011_v1 }
  0x4e   : > { %723 = vperm.xlu2 %7479, %v640_v19   ;;  %1224 = vmatpush.bf16.xpose.msra.mxu0 %v7347_v38 }
  0x4f   : > { %1273 = vmatpush.bf16.xpose.msra.mxu1 %v7355_v39  ;;  %1322 = vmatpush.bf16.xpose.msra.mxu2 %v7363_v40 }
  0x52   : > { %7484 = vset.pattern.permute.xlu0 %v8011_v1 }
  0x53   : > { %733 = vperm.xlu0 %7484, %v642_v20  }
  0x55   : > { %7480 = vset.pattern.permute.xlu1 %v8010_v0 }
  0x56   : > { %824 = vperm.xlu1 %7480, %v639_v17   ;;  %7481 = vset.pattern.permute.xlu2 %v8010_v0 }
  0x57   : > { %828 = vperm.xlu2 %7481, %v640_v19  }
  0x5b   : > { %738 = vperm.xlu0 %7484, %v643_v24  }
  0x5e   : > { %7482 = vset.pattern.permute.xlu1 %v8012_v2 }
  0x5f   : > { %925 = vperm.xlu1 %7482, %v640_v19   ;;  %7483 = vset.pattern.permute.xlu2 %v8011_v1  ;;  %v648_v19 = vld [vmem:[%s8136_s26 + $0x78] sm:$0xff] }
  0x60   : > { %728 = vperm.xlu2 %7483, %v641_v28  }
  0x63   : > { %7491 = vset.pattern.permute.xlu0 %v8010_v0 }
  0x64   : > { %844 = vperm.xlu0 %7491, %v644_v29  }
  0x67   : > { %7485 = vset.pattern.permute.xlu1 %v8010_v0 }
  0x68   : > { %832 = vperm.xlu1 %7485, %v641_v28   ;;  %7486 = vset.pattern.permute.xlu2 %v8010_v0 }
  0x69   : > { %836 = vperm.xlu2 %7486, %v642_v20  }
  0x6c   : > { %848 = vperm.xlu0 %7491, %v645_v33  }
  0x70   : > { %7487 = vset.pattern.permute.xlu1 %v8012_v2 }
  0x71   : > { %929 = vperm.xlu1 %7487, %v641_v28   ;;  %7488 = vset.pattern.permute.xlu2 %v8012_v2 }
  0x72   : > { %933 = vperm.xlu2 %7488, %v642_v20   ;;  %v673_v20 = vadd.f32 %v8261_v45, %v653_v16 }
  0x73   : > { %v898_v41 = vpop.permute.xlu2 %897 }
  0x74   : > { %7498 = vset.pattern.permute.xlu0 %v8012_v2  ;;  %v961_v62 = vmul.f32 %v8277_v55, %v898_v41 }
  0x75   : > { %949 = vperm.xlu0 %7498, %v646_v37  }
  0x79   : > { %7489 = vset.pattern.permute.xlu1 %v8011_v1 }
  0x7a   : > { %743 = vperm.xlu1 %7489, %v644_v29   ;;  %7490 = vset.pattern.permute.xlu2 %v8010_v0 }
  0x7b   : > { %840 = vperm.xlu2 %7490, %v643_v24   ;;  %v902_v43 = vpop.permute.xlu2 %901 }
  0x7c   : > { %v962_v5 = vmul.f32 %v8277_v55, %v902_v43 }
  0x7d   : > { %953 = vperm.xlu0 %7498, %v8250_v42  }
  0x82   : > { %7492 = vset.pattern.permute.xlu1 %v8012_v2 }
  0x83   : > { %937 = vperm.xlu1 %7492, %v643_v24   ;;  %7493 = vset.pattern.permute.xlu2 %v8012_v2 }
  0x84   : > { %941 = vperm.xlu2 %7493, %v644_v29   ;;  %v809_v54 = vpop.permute.xlu2 %808 }
  0x85   : > { %v866_v17 = vmul.f32 %v8275_v53, %v809_v54 }
  0x8a   : > { %v801_v47 = vpop.permute.xlu1 %800  ;;  %v689_v49 = vpop.permute.xlu0 %688 }
  0x8b   : > { %7494 = vset.pattern.permute.xlu1 %v8011_v1  ;;  %v767_v51 = vmul.f32 %v8263_v46, %v689_v49  ;;  %v864_v60 = vmul.f32 %v8275_v53, %v801_v47 }
  0x8c   : > { %748 = vperm.xlu1 %7494, %v645_v33   ;;  %7495 = vset.pattern.permute.xlu2 %v8011_v1 }
  0x8d   : > { %753 = vperm.xlu2 %7495, %v646_v37   ;;  %v783_v56 = vadd.f32 %v767_v51, %v670_v50  ;;  %v910_v10 = vpop.permute.xlu2 %909 }
  0x8e   : > { %v964_v26 = vmul.f32 %v8277_v55, %v910_v10 }
  0x8f   : > { %v880_v63 = vadd.f32 %v864_v60, %v783_v56  ;;  %v656_v60 = vld [vmem:[%s12248_s23 + $0x30] sm:$0xff] }
  0x91   : > { %v8290_v8 = vadd.f32 %v961_v62, %v880_v63 }
  0x92   : > { %v805_v58 = vpop.permute.xlu1 %804  ;;  %v694_v59 = vpop.permute.xlu0 %693 }
  0x93   : > { %v768_v61 = vmul.f32 %v8263_v46, %v694_v59  ;;  %v865_v3 = vmul.f32 %v8275_v53, %v805_v58 }
  0x94   : > { %7496 = vset.pattern.permute.xlu1 %v8010_v0 }
  0x95   : > { %v784_v4 = vadd.f32 %v768_v61, %v671_v57  ;;  %852 = vperm.xlu1 %7496, %v646_v37   ;;  %7497 = vset.pattern.permute.xlu2 %v8012_v2  ;;  %v655_v37 = vld [vmem:[%s12248_s23 + $0x28] sm:$0xff]  ;;  %v657_v61 = vld [vmem:[%s12248_s23 + $0x38] sm:$0xff] }
  0x96   : > { %945 = vperm.xlu2 %7497, %v645_v33   ;;  %v714_v24 = vpop.permute.xlu2 %713  ;;  %v675_v39 = vadd.f32 %v8261_v45, %v655_v37 }
  0x97   : > { %v881_v6 = vadd.f32 %v865_v3, %v784_v4  ;;  %v772_v40 = vmul.f32 %v8263_v46, %v714_v24  ;;  %v676_v3 = vadd.f32 %v8261_v45, %v656_v60 }
  0x99   : > { %v8292_v9 = vadd.f32 %v962_v5, %v881_v6  ;;  %v788_v44 = vadd.f32 %v772_v40, %v675_v39  ;;  %v677_v5 = vadd.f32 %v8261_v45, %v657_v61 }
  0x9a   : > { %v699_v11 = vpop.permute.xlu0 %698 }
  0x9b   : > { %v704_v12 = vpop.permute.xlu1 %703  ;;  %v769_v14 = vmul.f32 %v8263_v46, %v699_v11  ;;  %v1009_v15 = vpack.c.bf16 %v8292_v9, %v8290_v8 }
  0x9c   : > { %v770_v21 = vmul.f32 %v8263_v46, %v704_v12 }
  0x9d   : > { %7499 = vset.pattern.permute.xlu1 %v8011_v1  ;;  %1225 = vmatmul.bf16.vlgmr.msra.gmra.mxu0 %v1009_v15  ;;  %v785_v18 = vadd.f32 %v769_v14, %v672_v13 }
  0x9e   : > { %1274 = vmatmul.bf16.vlgmr.msra.gmra.mxu1 %v1009_v15  ;;  %1323 = vmatmul.bf16.vlgmr.msra.gmra.mxu2 %v1009_v15  ;;  %v786_v25 = vadd.f32 %v770_v21, %v673_v20 }
  0x9f   : > { %758 = vperm.xlu1 %7499, %v8250_v42   ;;  %7500 = vset.pattern.permute.xlu2 %v8011_v1  ;;  %v882_v23 = vadd.f32 %v866_v17, %v785_v18  ;;  %v914_v36 = vpop.permute.xlu2 %913 }
  0xa0   : > { %763 = vperm.xlu2 %7500, %v648_v19   ;;  %v965_v50 = vmul.f32 %v8277_v55, %v914_v36 }
  0xa3   : > { %v813_v22 = vpop.permute.xlu0 %812 }
  0xa4   : > { %v867_v27 = vmul.f32 %v8275_v53, %v813_v22  ;;  %v906_v28 = vpop.permute.xlu1 %905  ;;  %v659_v22 = vld [vmem:[%s12248_s23 + $0x48] sm:$0xff] }
  0xa5   : > { %v963_v29 = vmul.f32 %v8277_v55, %v906_v28 }
  0xa6   : > { %v883_v30 = vadd.f32 %v867_v27, %v786_v25  ;;  %v679_v25 = vadd.f32 %v8261_v45, %v659_v22  ;;  %v658_v27 = vld [vmem:[%s12248_s23 + $0x40] sm:$0xff] }
  0xa7   : > { %v8311_v31 = vadd.f32 %v963_v29, %v882_v23  ;;  %7501 = vset.pattern.permute.xlu1 %v8010_v0  ;;  %v678_v29 = vadd.f32 %v8261_v45, %v658_v27 }
  0xa8   : > { %v8314_v1 = vadd.f32 %v964_v26, %v883_v30  ;;  %856 = vperm.xlu1 %7501, %v8250_v42   ;;  %7502 = vset.pattern.permute.xlu2 %v8010_v0  ;;  %v674_v0 = vadd.f32 %v8261_v45, %v654_v34  ;;  %v724_v47 = vpop.permute.xlu2 %723 }
  0xa9   : > { %860 = vperm.xlu2 %7502, %v648_v19   ;;  %v774_v6 = vmul.f32 %v8263_v46, %v724_v47 }
  0xaa   : > { %v1010_v32 = vpack.c.bf16 %v8314_v1, %v8311_v31 }
  0xab   : > { %v817_v33 = vpop.permute.xlu0 %816  ;;  %v790_v12 = vadd.f32 %v774_v6, %v677_v5 }
  0xac   : > { %v868_v42 = vmul.f32 %v8275_v53, %v817_v33 }
  0xad   : > { %v709_v35 = vpop.permute.xlu1 %708  ;;  %1230 = vmatmul.bf16.gmra.mxu0 %v1010_v32 }
  0xae   : > { %1279 = vmatmul.bf16.gmra.mxu1 %v1010_v32  ;;  %1328 = vmatmul.bf16.gmra.mxu2 %v1010_v32  ;;  %v771_v38 = vmul.f32 %v8263_v46, %v709_v35 }
  0xb0   : > { %7503 = vset.pattern.permute.xlu1 %v8012_v2  ;;  %v787_v41 = vadd.f32 %v771_v38, %v674_v0 }
  0xb1   : > { %957 = vperm.xlu1 %7503, %v648_v19   ;;  %v829_v59 = vpop.permute.xlu2 %828 }
  0xb2   : > { %v884_v49 = vadd.f32 %v868_v42, %v787_v41  ;;  %v871_v13 = vmul.f32 %v8275_v53, %v829_v59 }
  0xb4   : > { %v918_v43 = vpop.permute.xlu0 %917  ;;  %v8335_v54 = vadd.f32 %v965_v50, %v884_v49  ;;  %v887_v17 = vadd.f32 %v871_v13, %v790_v12  ;;  %v660_v49 = vld [vmem:[%s12248_s23 + $0x50] sm:$0xff] }
  0xb5   : > { %v966_v52 = vmul.f32 %v8277_v55, %v918_v43 }
  0xb6   : > { %v821_v48 = vpop.permute.xlu1 %820 }
  0xb7   : > { %v869_v51 = vmul.f32 %v8275_v53, %v821_v48  ;;  %v661_v48 = vld [vmem:[%s12248_s23 + $0x58] sm:$0xff] }
  0xb8   : > { %v681_v50 = vadd.f32 %v8261_v45, %v661_v48  ;;  %v665_v48 = vld [vmem:[%s12248_s23 + $0x78] sm:$0xff] }
  0xb9   : > { %v885_v2 = vadd.f32 %v869_v51, %v788_v44 }
  0xba   : > { %v729_v63 = vpop.permute.xlu2 %728 }
  0xbb   : > { %v8337_v56 = vadd.f32 %v966_v52, %v885_v2  ;;  %v775_v30 = vmul.f32 %v8263_v46, %v729_v63 }
  0xbc   : > { %v922_v10 = vpop.permute.xlu0 %921 }
  0xbd   : > { %12249 = vst [vmem:[#allocation2_spill] sm:$0xff] %v8337_v56  ;;  %v1011_v57 = vpack.c.bf16 %v8337_v56, %v8335_v54  ;;  %v967_v15 = vmul.f32 %v8277_v55, %v922_v10  ;;  %v791_v35 = vadd.f32 %v775_v30, %v678_v29 }
  0xbf   : > { %v719_v58 = vpop.permute.xlu1 %718  ;;  %1235 = vmatmul.bf16.gmra.mxu0 %v1011_v57  ;;  %1284 = vmatmul.bf16.gmra.mxu1 %v1011_v57 }
  0xc0   : > { %1333 = vmatmul.bf16.gmra.mxu2 %v1011_v57  ;;  %v773_v4 = vmul.f32 %v8263_v46, %v719_v58  ;;  %v680_v57 = vadd.f32 %v8261_v45, %v660_v49 }
  0xc2   : > { %v789_v11 = vadd.f32 %v773_v4, %v676_v3 }
  0xc3   : > { %v837_v19 = vpop.permute.xlu2 %836 }
  0xc4   : > { %v873_v32 = vmul.f32 %v8275_v53, %v837_v19 }
  0xc5   : > { %v734_v23 = vpop.permute.xlu0 %733 }
  0xc6   : > { %v776_v26 = vmul.f32 %v8263_v46, %v734_v23 }
  0xc8   : > { %v825_v62 = vpop.permute.xlu1 %824  ;;  %v792_v33 = vadd.f32 %v776_v26, %v679_v25 }
  0xc9   : > { %v870_v7 = vmul.f32 %v8275_v53, %v825_v62 }
  0xca   : > { %v889_v37 = vadd.f32 %v873_v32, %v792_v33 }
  0xcb   : > { %v886_v14 = vadd.f32 %v870_v7, %v789_v11 }
  0xcc   : > { %v934_v34 = vpop.permute.xlu2 %933 }
  0xcd   : > { %v8355_v20 = vadd.f32 %v967_v15, %v886_v14  ;;  %v970_v0 = vmul.f32 %v8277_v55, %v934_v34  ;;  %v739_v39 = vpop.permute.xlu0 %738  ;;  %v662_v15 = vld [vmem:[%s12248_s23 + $0x60] sm:$0xff] }
  0xce   : > { %v777_v58 = vmul.f32 %v8263_v46, %v739_v39 }
  0xcf   : > { %12250 = vst [vmem:[#allocation3_spill] sm:$0xff] %v8355_v20  ;;  %v8374_v41 = vadd.f32 %v970_v0, %v889_v37 }
  0xd0   : > { %v793_v62 = vadd.f32 %v777_v58, %v680_v57  ;;  %v685_v58 = vadd.f32 %v8261_v45, %v665_v48 }
  0xd1   : > { %v926_v16 = vpop.permute.xlu1 %925  ;;  %12252 = vst [vmem:[#allocation5_spill] sm:$0xff] %v8374_v41 }
  0xd2   : > { %v968_v18 = vmul.f32 %v8277_v55, %v926_v16 }
  0xd4   : > { %v8357_v21 = vadd.f32 %v968_v18, %v887_v17  ;;  %v663_v17 = vld [vmem:[%s12248_s23 + $0x68] sm:$0xff]  ;;  %v682_v18 = vadd.f32 %v8261_v45, %v662_v15 }
  0xd5   : > { %v841_v44 = vpop.permute.xlu2 %840  ;;  %v683_v22 = vadd.f32 %v8261_v45, %v663_v17 }
  0xd6   : > { %12251 = vst [vmem:[#allocation4_spill] sm:$0xff] %v8357_v21  ;;  %v1012_v24 = vpack.c.bf16 %v8357_v21, %v8355_v20  ;;  %v845_v2 = vpop.permute.xlu0 %844  ;;  %v874_v63 = vmul.f32 %v8275_v53, %v841_v44  ;;  %v664_v44 = vld [vmem:[%s12248_s23 + $0x70] sm:$0xff] }
  0xd7   : > { %v875_v60 = vmul.f32 %v8275_v53, %v845_v2 }
  0xd8   : > { %1240 = vmatmul.bf16.gmra.mxu0 %v1012_v24  ;;  %1289 = vmatmul.bf16.gmra.mxu1 %v1012_v24  ;;  %v890_v6 = vadd.f32 %v874_v63, %v793_v62 }
  0xd9   : > { %1338 = vmatmul.bf16.gmra.mxu2 %v1012_v24 }
  0xda   : > { %v833_v28 = vpop.permute.xlu1 %832 }
  0xdb   : > { %v872_v36 = vmul.f32 %v8275_v53, %v833_v28 }
  0xdd   : > { %v888_v40 = vadd.f32 %v872_v36, %v791_v35 }
  0xde   : > { %v942_v61 = vpop.permute.xlu2 %941  ;;  %v849_v14 = vpop.permute.xlu0 %848 }
  0xdf   : > { %v972_v4 = vmul.f32 %v8277_v55, %v942_v61  ;;  %v876_v25 = vmul.f32 %v8275_v53, %v849_v14 }
  0xe3   : > { %v930_v38 = vpop.permute.xlu1 %929 }
  0xe4   : > { %v969_v42 = vmul.f32 %v8277_v55, %v930_v38 }
  0xe6   : > { %v8377_v43 = vadd.f32 %v969_v42, %v888_v40  ;;  %v8424_v40 = vld [vmem:[%s12201_s7] sm:$0x7] }
  0xe7   : > { %v754_v13 = vpop.permute.xlu2 %753  ;;  %v950_v27 = vpop.permute.xlu0 %949  ;;  %v8427_v42 = vperm.slane %v8424_v40, 0 }
  0xe8   : > { %12253 = vst [vmem:[#allocation6_spill] sm:$0xff] %v8377_v43  ;;  %v1013_v47 = vpack.c.bf16 %v8374_v41, %v8377_v43  ;;  %v780_v23 = vmul.f32 %v8263_v46, %v754_v13  ;;  %v974_v34 = vmul.f32 %v8277_v55, %v950_v27 }
  0xea   : > { %1245 = vmatmul.bf16.gmra.mxu0 %v1013_v47  ;;  %1294 = vmatmul.bf16.gmra.mxu1 %v1013_v47  ;;  %v796_v28 = vadd.f32 %v780_v23, %v683_v22 }
  0xeb   : > { %1343 = vmatmul.bf16.gmra.mxu2 %v1013_v47  ;;  %v8433_v47 = vperm.slane %v8424_v40, 1 }
  0xec   : > { %v744_v51 = vpop.permute.xlu1 %743 }
  0xed   : > { %v778_v52 = vmul.f32 %v8263_v46, %v744_v51  ;;  %v684_v51 = vadd.f32 %v8261_v45, %v664_v44 }
  0xef   : > { %v794_v59 = vadd.f32 %v778_v52, %v681_v50 }
  0xf0   : > { %v946_v26 = vpop.permute.xlu2 %945 }
  0xf1   : > { %v891_v3 = vadd.f32 %v875_v60, %v794_v59  ;;  %v973_v32 = vmul.f32 %v8277_v55, %v946_v26 }
  0xf3   : > { %v8395_v10 = vadd.f32 %v972_v4, %v891_v3 }
  0xf5   : > { %v938_v5 = vpop.permute.xlu1 %937  ;;  %12254 = vst [vmem:[#allocation7_spill] sm:$0xff] %v8395_v10 }
  0xf6   : > { %v971_v7 = vmul.f32 %v8277_v55, %v938_v5 }
  0xf8   : > { %v8397_v11 = vadd.f32 %v971_v7, %v890_v6  ;;  %v954_v6 = vpop.permute.xlu0 %953 }
  0xf9   : > { %v975_v45 = vmul.f32 %v8277_v55, %v954_v6 }
  0xfa   : > { %12255 = vst [vmem:[#allocation8_spill] sm:$0xff] %v8397_v11  ;;  %v1014_v12 = vpack.c.bf16 %v8395_v10, %v8397_v11  ;;  %v764_v39 = vpop.permute.xlu2 %763 }
  0xfb   : > { %v782_v59 = vmul.f32 %v8263_v46, %v764_v39 }
  0xfc   : > { %1250 = vmatmul.bf16.gmra.mxu0 %v1014_v12  ;;  %1299 = vmatmul.bf16.gmra.mxu1 %v1014_v12 }
  0xfd   : > { %1348 = vmatmul.bf16.gmra.mxu2 %v1014_v12  ;;  %v798_v4 = vadd.f32 %v782_v59, %v685_v58 }
  0xfe   : > { %v749_v16 = vpop.permute.xlu1 %748 }
  0xff   : > { %v779_v19 = vmul.f32 %v8263_v46, %v749_v16 }
 0x101   : > { %v795_v24 = vadd.f32 %v779_v19, %v682_v18 }
 0x103   : > { %v892_v30 = vadd.f32 %v876_v25, %v795_v24  ;;  %v861_v61 = vpop.permute.xlu2 %860 }
 0x104   : > { %v879_v5 = vmul.f32 %v8275_v53, %v861_v61 }
 0x105   : > { %v8415_v36 = vadd.f32 %v973_v32, %v892_v30 }
 0x107   : > { %v853_v29 = vpop.permute.xlu1 %852  ;;  %12256 = vst [vmem:[#allocation9_spill] sm:$0xff] %v8415_v36 }
 0x108   : > { %v877_v33 = vmul.f32 %v8275_v53, %v853_v29 }
 0x10a   : > { %v893_v35 = vadd.f32 %v877_v33, %v796_v28 }
 0x10c   : > { %v8417_v37 = vadd.f32 %v974_v34, %v893_v35 }
 0x10e   : > { %12257 = vst [vmem:[#allocation10_spill] sm:$0xff] %v8417_v37  ;;  %v1015_v0 = vpack.c.bf16 %v8417_v37, %v8415_v36 }
 0x110   : > { %1255 = vmatmul.bf16.gmra.mxu0 %v1015_v0  ;;  %1304 = vmatmul.bf16.gmra.mxu1 %v1015_v0 }
 0x111   : > { %v759_v38 = vpop.permute.xlu1 %758  ;;  %1353 = vmatmul.bf16.gmra.mxu2 %v1015_v0 }
 0x112   : > { %v781_v57 = vmul.f32 %v8263_v46, %v759_v38  ;;  %v895_v46 = vadd.f32 %v879_v5, %v798_v4 }
 0x114   : > { %v797_v3 = vadd.f32 %v781_v57, %v684_v51 }
 0x11a   : > { %v857_v49 = vpop.permute.xlu1 %856  ;;  %v1226_v50 = vpop.f32.mrf.mxu0 }
 0x11b   : > { %v1227_v52 = vadd.f32 %v1226_v50, %v8427_v42  ;;  %v1275_v2 = vpop.f32.mrf.mxu1  ;;  %v878_v62 = vmul.f32 %v8275_v53, %v857_v49 }
 0x11c   : > { %v1276_v60 = vadd.f32 %v1275_v2, %v8433_v47 }
 0x11d   : > { %v894_v7 = vadd.f32 %v878_v62, %v797_v3 }
 0x11e   : > { %v8445_v63 = vpack.c.bf16 %v1276_v60, %v1227_v52 }
 0x11f   : > { %v8454_v16 = vadd.f32 %v975_v45, %v894_v7 }
 0x121   : > { %12258 = vst [vmem:[#allocation11_spill] sm:$0xff] %v8454_v16  ;;  %v8462_v24 = vpop.f32.mrf.mxu2 }
 0x122   : > { %v8448_v12 = vpop.f32.mrf.mxu0 }
 0x123   : > { %v958_v13 = vpop.permute.xlu1 %957  ;;  %v8450_v14 = vpop.f32.mrf.mxu1 }
 0x124   : > { %v976_v15 = vmul.f32 %v8277_v55, %v958_v13 }
 0x126   : > { %v8456_v17 = vadd.f32 %v976_v15, %v895_v46 }
 0x128   : > { %12259 = vst [vmem:[#allocation12_spill] sm:$0xff] %v8456_v17  ;;  %v1016_v18 = vpack.c.bf16 %v8456_v17, %v8454_v16 }
 0x129   : > { %v8470_v27 = vpop.f32.mrf.mxu2 }
 0x12a   : > { %1260 = vmatmul.bf16.gmra.mxu0 %v1016_v18  ;;  %1309 = vmatmul.bf16.gmra.mxu1 %v1016_v18  ;;  %v1231_v53 = vpop.f32.mrf.mxu0 }
 0x12b   : > { %1358 = vmatmul.bf16.gmra.mxu2 %v1016_v18  ;;  %v1232_v19 = vadd.f32 %v1231_v53, %v8427_v42  ;;  %v1280_v22 = vpop.f32.mrf.mxu1 }
 0x12c   : > { %v1281_v23 = vadd.f32 %v1280_v22, %v8433_v47 }
 0x12e   : > { %v8464_v25 = vpack.c.bf16 %v1281_v23, %v1232_v19 }
 0x131   : > { %v8476_v34 = vpop.f32.mrf.mxu2 }
 0x132   : > { %v8466_v55 = vpop.f32.mrf.mxu0 }
 0x133   : > { %v8468_v26 = vpop.f32.mrf.mxu1 }
 0x139   : > { %v8478_v35 = vpop.f32.mrf.mxu2 }
 0x13c   : > { %v1236_v28 = vpop.f32.mrf.mxu0  ;;  %v1285_v29 = vpop.f32.mrf.mxu1 }
 0x13d   : > { %v1237_v30 = vadd.f32 %v1236_v28, %v8427_v42  ;;  %v1286_v32 = vadd.f32 %v1285_v29, %v8433_v47 }
 0x13f   : > { %v8474_v33 = vpack.c.bf16 %v1286_v32, %v1237_v30 }
 0x143   : > { %v8480_v39 = vpop.f32.mrf.mxu2 }
 0x144   : > { %v1238_v0 = vpop.f32.mrf.mxu0  ;;  %v1287_v38 = vpop.f32.mrf.mxu1 }
 0x145   : > { %v1239_v29 = vadd.f32 %v1238_v0, %v8427_v42  ;;  %v1288_v30 = vadd.f32 %v1287_v38, %v8433_v47  ;;  %v1229_v0 = vadd.f32 %v8448_v12, %v8427_v42  ;;  %v1278_v38 = vadd.f32 %v8450_v14, %v8433_v47 }
 0x14b   : > { %v8486_v52 = vpop.f32.mrf.mxu2 }
 0x155   : > { %v1241_v44 = vpop.f32.mrf.mxu0  ;;  %v1290_v48 = vpop.f32.mrf.mxu1 }
 0x156   : > { %v1242_v49 = vadd.f32 %v1241_v44, %v8427_v42  ;;  %v1291_v50 = vadd.f32 %v1290_v48, %v8433_v47 }
 0x158   : > { %v8484_v51 = vpack.c.bf16 %v1291_v50, %v1242_v49  ;;  %v8514_v49 = vpack.c.bf16 %v1288_v30, %v1239_v29  ;;  %v1412_v30 = vunpack.c.l.b16 %v8445_v63 }
 0x15a   : > { %v1418_v16 = vunpack.c.l.b16 %v8484_v51 }
 0x15c   : > { %v8488_v58 = vpop.f32.mrf.mxu2 }
 0x15d   : > { %v1243_v2 = vpop.f32.mrf.mxu0  ;;  %v1292_v57 = vpop.f32.mrf.mxu1 }
 0x15e   : > { %v1293_v14 = vadd.f32 %v1292_v57, %v8433_v47 }
 0x164   : > { %v1341_v4 = vpop.f32.mrf.mxu2 }
 0x167   : > { %v1246_v59 = vpop.f32.mrf.mxu0  ;;  %v1295_v60 = vpop.f32.mrf.mxu1 }
 0x168   : > { %v1247_v61 = vadd.f32 %v1246_v59, %v8427_v42  ;;  %v1296_v62 = vadd.f32 %v1295_v60, %v8433_v47  ;;  %v1441_v60 = vunpack.c.h.b16 %v8514_v49 }
 0x16a   : > { %v8492_v3 = vpack.c.bf16 %v1296_v62, %v1247_v61 }
 0x16e   : > { %v8498_v7 = vpop.f32.mrf.mxu2 }
 0x16f   : > { %v8494_v5 = vpop.f32.mrf.mxu0  ;;  %v8496_v6 = vpop.f32.mrf.mxu1 }
 0x176   : > { %v8502_v19 = vpop.f32.mrf.mxu2 }
 0x179   : > { %v1251_v13 = vpop.f32.mrf.mxu0  ;;  %v1300_v45 = vpop.f32.mrf.mxu1 }
 0x17a   : > { %v1252_v46 = vadd.f32 %v1251_v13, %v8427_v42  ;;  %v1301_v15 = vadd.f32 %v1300_v45, %v8433_v47  ;;  %v1440_v13 = vunpack.c.h.b16 %v8474_v33  ;;  %v1366_v45 = vpack.c.bf16 %v1278_v38, %v1229_v0 }
 0x17c   : > { %v8504_v22 = vpack.c.bf16 %v1301_v15, %v1252_v46  ;;  %v8528_v46 = vpack.c.b16 %v1441_v60, %v1440_v13  ;;  %v1413_v12 = vunpack.c.l.b16 %v1366_v45 }
 0x17e   : > { %v1446_v44 = vunpack.c.h.b16 %v8504_v22 }
 0x180   : > { %v8518_v59 = vpop.f32.mrf.mxu2 }
 0x181   : > { %v1253_v18 = vpop.f32.mrf.mxu0  ;;  %v1302_v53 = vpop.f32.mrf.mxu1 }
 0x182   : > { %v1254_v23 = vadd.f32 %v1253_v18, %v8427_v42  ;;  %v1303_v28 = vadd.f32 %v1302_v53, %v8433_v47  ;;  %v1244_v53 = vadd.f32 %v1243_v2, %v8427_v42 }
 0x184   : > { %v8510_v32 = vpack.c.bf16 %v1303_v28, %v1254_v23  ;;  %v1378_v38 = vpack.c.bf16 %v1293_v14, %v1244_v53  ;;  %v1442_v53 = vunpack.c.h.b16 %v8484_v51 }
 0x186   : > { %v1447_v48 = vunpack.c.h.b16 %v8510_v32  ;;  %v1419_v2 = vunpack.c.l.b16 %v1378_v38 }
 0x188   : > { %v8516_v50 = vpack.c.b16 %v1447_v48, %v1446_v44  ;;  %v8536_v23 = vpop.f32.mrf.mxu2 }
 0x18a   : > { %2041 = vrot.lane.b32.xlu1 %v8516_v50, %s8013_s29 }
 0x18d   : > { %v1256_v61 = vpop.f32.mrf.mxu0  ;;  %v1305_v62 = vpop.f32.mrf.mxu1 }
 0x18e   : > { %v1257_v15 = vadd.f32 %v1256_v61, %v8427_v42  ;;  %v1306_v18 = vadd.f32 %v1305_v62, %v8433_v47  ;;  %v8541_v61 = vpack.c.b16 %v1413_v12, %v1412_v30  ;;  %v8553_v12 = vperm.slane %v8424_v40, 2 }
 0x190   : > { %v1388_v44 = vpack.c.bf16 %v1306_v18, %v1257_v15  ;;  %v1443_v15 = vunpack.c.h.b16 %v1378_v38  ;;  %v8550_v18 = vpack.c.b16 %v1419_v2, %v1418_v16  ;;  %v1342_v14 = vadd.f32 %v1341_v4, %v8553_v12 }
 0x191   : > { %v1340_v30 = vadd.f32 %v8488_v58, %v8553_v12  ;;  %v1437_v38 = vunpack.c.h.b16 %v1366_v45  ;;  %v1417_v45 = vunpack.c.l.b16 %v8514_v49 }
 0x192   : > { %2035 = vrot.lane.b32.xlu1 %v8528_v46, %s8013_s29  ;;  %v1448_v62 = vunpack.c.h.b16 %v1388_v44  ;;  %v1379_v51 = vpack.c.bf16 %v1342_v14, %v1342_v14 }
 0x193   : > { %v1377_v4 = vpack.c.bf16 %v1340_v30, %v1340_v30 }
 0x194   : > { %v1354_v57 = vpop.f32.mrf.mxu2 }
 0x195   : > { %v1258_v28 = vpop.f32.mrf.mxu0  ;;  %v1307_v29 = vpop.f32.mrf.mxu1 }
 0x196   : > { %v1259_v48 = vadd.f32 %v1258_v28, %v8427_v42  ;;  %v1308_v0 = vadd.f32 %v1307_v29, %v8433_v47  ;;  %v8559_v29 = vpack.c.b16 %v1443_v15, %v1442_v53  ;;  %v1940_v15 = vunpack.c.l.b16 %v1377_v4 }
 0x198   : > { %v1390_v60 = vpack.c.bf16 %v1308_v0, %v1259_v48  ;;  %v1424_v48 = vunpack.c.l.b16 %v1388_v44 }
 0x19a   : > { %v1449_v13 = vunpack.c.h.b16 %v1390_v60  ;;  %2015 = vrot.lane.b32.xlu1 %v8541_v61, %s8013_s29  ;;  %v1425_v28 = vunpack.c.l.b16 %v1390_v60  ;;  %v1941_v60 = vunpack.c.l.b16 %v1379_v51  ;;  %v1298_v51 = vadd.f32 %v8496_v6, %v8433_v47 }
 0x19c   : > { %v8545_v17 = vpack.c.b16 %v1449_v13, %v1448_v62  ;;  %v1356_v0 = vpop.f32.mrf.mxu2  ;;  %v8565_v62 = vpack.c.b16 %v1425_v28, %v1424_v48  ;;  %v1436_v13 = vunpack.c.h.b16 %v8445_v63 }
 0x19e   : > { %2043 = vrot.lane.b32.xlu0 %v8545_v17, %s8013_s29  ;;  %v8572_v2 = vpack.c.b16 %v1437_v38, %v1436_v13  ;;  %v1249_v38 = vadd.f32 %v8494_v5, %v8427_v42 }
 0x1a2   : > { %2021 = vrot.lane.b32.xlu1 %v8550_v18, %s8013_s29 }
 0x1a6   : > { %2037 = vrot.lane.b32.xlu0 %v8559_v29, %s8013_s29 }
 0x1a7   : > { %v1261_v40 = vpop.f32.mrf.mxu0  ;;  %v1310_v16 = vpop.f32.mrf.mxu1 }
 0x1a8   : > { %v1262_v58 = vadd.f32 %v1261_v40, %v8427_v42  ;;  %v1311_v44 = vadd.f32 %v1310_v16, %v8433_v47  ;;  %v8581_v40 = vpack.c.b16 %v1941_v60, %v1940_v15  ;;  %v1416_v16 = vunpack.c.l.b16 %v8474_v33 }
 0x1a9   : > { %v1357_v33 = vadd.f32 %v1356_v0, %v8553_v12  ;;  %v1355_v15 = vadd.f32 %v1354_v57, %v8553_v12  ;;  %v1352_v0 = vadd.f32 %v8536_v23, %v8553_v12  ;;  %v1283_v57 = vadd.f32 %v8468_v26, %v8433_v47 }
 0x1aa   : > { %2027 = vrot.lane.b32.xlu1 %v8565_v62, %s8013_s29  ;;  %v8577_v28 = vpack.c.bf16 %v1311_v44, %v1262_v58  ;;  %v8595_v58 = vpack.c.b16 %v1417_v45, %v1416_v16  ;;  %v8598_v44 = vpack.c.bf16 %v1298_v51, %v1249_v38  ;;  %v1234_v16 = vadd.f32 %v8466_v55, %v8427_v42 }
 0x1ab   : > { %v1350_v51 = vadd.f32 %v8518_v59, %v8553_v12  ;;  %v1444_v23 = vunpack.c.h.b16 %v8492_v3  ;;  %v1387_v55 = vpack.c.bf16 %v1352_v0, %v1352_v0  ;;  %v1345_v59 = vadd.f32 %v8498_v7, %v8553_v12 }
 0x1ac   : > { %v1450_v4 = vunpack.c.h.b16 %v8577_v28  ;;  %v1445_v38 = vunpack.c.h.b16 %v8598_v44  ;;  %v1370_v26 = vpack.c.bf16 %v1283_v57, %v1234_v16  ;;  %v1335_v7 = vadd.f32 %v8480_v39, %v8553_v12 }
 0x1ad   : > { %v1438_v16 = vunpack.c.h.b16 %v8464_v25  ;;  %v1501_v39 = vsel %vm1460_vm0, %v8516_v50, 0 }
 0x1ae   : > { %v1359_v53 = vpop.f32.mrf.mxu2  ;;  %2031 = vrot.lane.b32.xlu0 %v8572_v2, %s8013_s29  ;;  %v1439_v0 = vunpack.c.h.b16 %v1370_v26 }
 0x1af   : > { %v1263_v14 = vpop.f32.mrf.mxu0  ;;  %v1312_v63 = vpop.f32.mrf.mxu1  ;;  %v1360_v49 = vadd.f32 %v1359_v53, %v8553_v12 }
 0x1b0   : > { %v1264_v30 = vadd.f32 %v1263_v14, %v8427_v42  ;;  %v1313_v48 = vadd.f32 %v1312_v63, %v8433_v47  ;;  %v1423_v63 = vunpack.c.l.b16 %v8510_v32  ;;  %v1422_v32 = vunpack.c.l.b16 %v8504_v22 }
 0x1b1   : > { %v1393_v14 = vpack.c.bf16 %v1360_v49, %v1360_v49  ;;  %v1389_v49 = vpack.c.bf16 %v1355_v15, %v1355_v15  ;;  %v1347_v42 = vadd.f32 %v8502_v19, %v8553_v12  ;;  %v1456_v22 = vpack.c.b16 %v1445_v38, %v1444_v23 }
 0x1b2   : > { %v8588_v13 = vpack.c.bf16 %v1313_v48, %v1264_v30  ;;  %2510 = vrot.lane.b32.xlu1 %v8581_v40, %s8013_s29  ;;  %v1391_v30 = vpack.c.bf16 %v1357_v33, %v1357_v33  ;;  %v8618_v33 = vpack.c.b16 %v1423_v63, %v1422_v32  ;;  %v1504_v19 = vsel %vm1460_vm0, %v8545_v17, 0 }
 0x1b3   : > { %v1946_v15 = vunpack.c.l.b16 %v1389_v49  ;;  %v1945_v63 = vunpack.c.l.b16 %v1387_v55  ;;  %v1373_v32 = vpack.c.bf16 %v1335_v7, %v1335_v7  ;;  %v1453_v17 = vpack.c.b16 %v1439_v0, %v1438_v16 }
 0x1b4   : > { %v1451_v60 = vunpack.c.h.b16 %v8588_v13  ;;  %v1415_v23 = vunpack.c.l.b16 %v1370_v26  ;;  %v1330_v55 = vadd.f32 %v8476_v34, %v8553_v12  ;;  %v1498_v34 = vsel %vm1460_vm0, %v1456_v22, 0 }
 0x1b6   : > { %v1361_v5 = vpop.f32.mrf.mxu2  ;;  %2019 = vrot.lane.b32.xlu0 %v8595_v58, %s8013_s29  ;;  %v1459_v6 = vpack.c.b16 %v1451_v60, %v1450_v4  ;;  %v1948_v4 = vunpack.c.l.b16 %v1393_v14  ;;  %v1337_v14 = vadd.f32 %v8486_v52, %v8553_v12 }
 0x1b7   : > { %v1362_v53 = vadd.f32 %v1361_v5, %v8553_v12  ;;  %v1947_v5 = vunpack.c.l.b16 %v1391_v30  ;;  %v1381_v30 = vpack.c.bf16 %v1345_v59, %v1345_v59 }
 0x1b8   : > { %2045 = vrot.lane.b32.xlu2 %v1459_v6, %s8013_s29  ;;  %v1507_v45 = vsel %vm1460_vm0, %v1459_v6, 0  ;;  %v1385_v6 = vpack.c.bf16 %v1350_v51, %v1350_v51  ;;  %v1375_v57 = vpack.c.bf16 %v1337_v14, %v1337_v14  ;;  %v1369_v14 = vpack.c.bf16 %v1330_v55, %v1330_v55 }
 0x1b9   : > { %v1395_v48 = vpack.c.bf16 %v1362_v53, %v1362_v53  ;;  %1509 = vmatpush.bf16.xpose.msra.mxu3 %v1507_v45  ;;  %v1383_v53 = vpack.c.bf16 %v1347_v42, %v1347_v42  ;;  %v1956_v45 = vpack.c.b16 %v1947_v5, %v1946_v15  ;;  %v1942_v51 = vunpack.c.l.b16 %v1381_v30 }
 0x1ba   : > { %v1939_v49 = vunpack.c.l.b16 %v1375_v57  ;;  %v1938_v42 = vunpack.c.l.b16 %v1373_v32  ;;  %v1414_v5 = vunpack.c.l.b16 %v8464_v25  ;;  %v1492_v30 = vsel %vm1460_vm0, %v8528_v46, 0 }
 0x1bb   : > { %v1949_v60 = vunpack.c.l.b16 %v1395_v48  ;;  %v1944_v48 = vunpack.c.l.b16 %v1385_v6  ;;  %v1943_v52 = vunpack.c.l.b16 %v1383_v53  ;;  %v1327_v6 = vadd.f32 %v8470_v27, %v8553_v12 }
 0x1bc   : > { %v1952_v59 = vpack.c.b16 %v1939_v49, %v1938_v42  ;;  %v1429_v50 = vpack.c.b16 %v1415_v23, %v1414_v5  ;;  %v1936_v53 = vunpack.c.l.b16 %v1369_v14 }
 0x1bd   : > { %v8622_v47 = vpack.c.b16 %v1949_v60, %v1948_v4  ;;  %v1955_v38 = vpack.c.b16 %v1945_v63, %v1944_v48  ;;  %v1332_v4 = vadd.f32 %v8478_v35, %v8553_v12  ;;  %v1954_v60 = vpack.c.b16 %v1943_v52, %v1942_v51 }
 0x1be   : > { %2025 = vrot.lane.b32.xlu0 %v8618_v33, %s8013_s29  ;;  %v1325_v35 = vadd.f32 %v8462_v24, %v8553_v12  ;;  %v1367_v26 = vpack.c.bf16 %v1327_v6, %v1327_v6  ;;  %v1420_v63 = vunpack.c.l.b16 %v8492_v3  ;;  %v1426_v3 = vunpack.c.l.b16 %v8577_v28 }
 0x1bf   : > { %1966 = vmatpush.bf16.msrb.mxu0 %v8622_v47  ;;  %v1371_v15 = vpack.c.bf16 %v1332_v4, %v1332_v4 }
 0x1c0   : > { %2039 = vrot.lane.b32.xlu2 %v1456_v22, %s8013_s29  ;;  %v1365_v27 = vpack.c.bf16 %v1325_v35, %v1325_v35 }
 0x1c1   : > { %1510 = vmatpush.bf16.xpose.msra.mxu3 %v1504_v19  ;;  %v1937_v25 = vunpack.c.l.b16 %v1371_v15  ;;  %v1421_v19 = vunpack.c.l.b16 %v8598_v44  ;;  %v1427_v44 = vunpack.c.l.b16 %v8588_v13  ;;  %v1486_v13 = vsel %vm1460_vm0, %v8572_v2, 0 }
 0x1c2   : > { %v1934_v12 = vunpack.c.l.b16 %v1365_v27 }
 0x1c3   : > { %1967 = vmatpush.bf16.msrb.mxu0 %v1956_v45  ;;  %v8656_v0 = vpack.c.b16 %v1937_v25, %v1936_v53  ;;  %v1432_v24 = vpack.c.b16 %v1421_v19, %v1420_v63  ;;  %v8667_v7 = vpack.c.b16 %v1427_v44, %v1426_v3  ;;  %v995_v53 = vld [vmem:[%s12260_s21 + $0x10] sm:$0xff] }
 0x1c6   : > { %2516 = vrot.lane.b32.xlu0 %v1956_v45, %s8013_s29  ;;  %v1935_v45 = vunpack.c.l.b16 %v1367_v26 }
 0x1c7   : > { %1968 = vmatpush.bf16.msrb.mxu0 %v1955_v38 }
 0x1c8   : > { %2033 = vrot.lane.b32.xlu2 %v1453_v17, %s8013_s29  ;;  %v8662_v22 = vpack.c.b16 %v1935_v45, %v1934_v12 }
 0x1c9   : > { %1511 = vmatpush.bf16.xpose.msra.mxu3 %v1501_v39 }
 0x1cb   : > { %1969 = vmatpush.bf16.msrb.mxu0 %v1954_v60 }
 0x1ce   : > { %2508 = vrot.lane.b32.xlu0 %v1952_v59, %s8013_s29 }
 0x1cf   : > { %1970 = vmatpush.bf16.msrb.mxu0 %v8581_v40  ;;  %v1495_v40 = vsel %vm1460_vm0, %v8559_v29, 0  ;;  %v1489_v29 = vsel %vm1460_vm0, %v1453_v17, 0 }
 0x1d0   : > { %2017 = vrot.lane.b32.xlu2 %v1429_v50, %s8013_s29 }
 0x1d1   : > { %1512 = vmatpush.bf16.xpose.msra.mxu3 %v1498_v34  ;;  %v993_v34 = vld [vmem:[%s12260_s21] sm:$0xff] }
 0x1d3   : > { %1971 = vmatpush.bf16.msrb.mxu0 %v1952_v59 }
 0x1d7   : > { %1972 = vmatpush.bf16.msrb.mxu0 %v8656_v0 }
 0x1d8   : > { %2023 = vrot.lane.b32.xlu2 %v1432_v24, %s8013_s29 }
 0x1d9   : > { %1513 = vmatpush.bf16.xpose.msra.mxu3 %v1495_v40 }
 0x1db   : > { %1973 = vmatpush.bf16.msrb.mxu0 %v8662_v22 }
 0x1e0   : > { %2029 = vrot.lane.b32.xlu2 %v8667_v7, %s8013_s29 }
 0x1e1   : > { %1514 = vmatpush.bf16.xpose.msra.mxu3 %v1492_v30 }
 0x1e8   : > { %2514 = vrot.lane.b32.xlu2 %v1955_v38, %s8013_s29 }
 0x1e9   : > { %1515 = vmatpush.bf16.xpose.msra.mxu3 %v1489_v29 }
 0x1f0   : > { %2512 = vrot.lane.b32.xlu2 %v1954_v60, %s8013_s29 }
 0x1f1   : > { %1516 = vmatpush.bf16.xpose.msra.mxu3 %v1486_v13 }
 0x1f8   : > { %6885 = vmatmul.msk.bf16.vlgmr.msra.gmra.mxu3 %vm1460_vm0, %v8541_v61  ;;  %2518 = vrot.lane.b32.xlu2 %v8622_v47, %s8013_s29 }
 0x1fc   : > { %v2042_v57 = vpop.permute.xlu1 %2041 }
 0x1fd   : > { %v2087_v61 = vsel %vm1460_vm0, %v2042_v57, 0 }
 0x204   : > { %v2036_v51 = vpop.permute.xlu1 %2035 }
 0x205   : > { %v2078_v4 = vsel %vm1460_vm0, %v2036_v51, 0 }
 0x208   : > { %6886 = vmatmul.msk.bf16.gmra.mxu3 %vm1460_vm0, %v1429_v50 }
 0x20c   : > { %v2016_v42 = vpop.permute.xlu1 %2015 }
 0x210   : > { %v2044_v48 = vpop.permute.xlu0 %2043 }
 0x211   : > { %v2090_v2 = vsel %vm1460_vm0, %v2044_v48, 0  ;;  %v997_v48 = vld [vmem:[%s12260_s21 + $0x20] sm:$0xff] }
 0x212   : > { %v2046_v46 = vpop.permute.xlu2 %2045 }
 0x213   : > { %v2093_v28 = vsel %vm1460_vm0, %v2046_v46, 0 }
 0x214   : > { %2095 = vmatpush.bf16.xpose.msrb.mxu1 %v2093_v28  ;;  %v2022_v6 = vpop.permute.xlu1 %2021 }
 0x218   : > { %6887 = vmatmul.msk.bf16.gmra.mxu3 %vm1460_vm0, %v8595_v58  ;;  %v2038_v32 = vpop.permute.xlu0 %2037 }
 0x219   : > { %v2081_v58 = vsel %vm1460_vm0, %v2038_v32, 0 }
 0x21a   : > { %v2040_v16 = vpop.permute.xlu2 %2039 }
 0x21b   : > { %v2084_v38 = vsel %vm1460_vm0, %v2040_v16, 0 }
 0x21c   : > { %2096 = vmatpush.bf16.xpose.msrb.mxu1 %v2090_v2  ;;  %v2028_v35 = vpop.permute.xlu1 %2027 }
 0x220   : > { %v2032_v49 = vpop.permute.xlu0 %2031 }
 0x221   : > { %v2072_v5 = vsel %vm1460_vm0, %v2032_v49, 0  ;;  %v8766_v49 = vld [vmem:[%s12260_s21 + $0x40] sm:$0xff] }
 0x222   : > { %v2034_v52 = vpop.permute.xlu2 %2033 }
 0x224   : > { %2097 = vmatpush.bf16.xpose.msrb.mxu1 %v2087_v61  ;;  %v2511_v14 = vpop.permute.xlu1 %2510 }
 0x228   : > { %6888 = vmatmul.msk.bf16.gmra.mxu3 %vm1460_vm0, %v8550_v18  ;;  %v2020_v60 = vpop.permute.xlu0 %2019  ;;  %v2075_v18 = vsel %vm1460_vm0, %v2034_v52, 0  ;;  %v998_v52 = vld [vmem:[%s12260_s21 + $0x28] sm:$0xff] }
 0x22a   : > { %v2018_v47 = vpop.permute.xlu2 %2017 }
 0x22c   : > { %2098 = vmatpush.bf16.xpose.msrb.mxu1 %v2084_v38 }
 0x230   : > { %v2026_v59 = vpop.permute.xlu0 %2025 }
 0x232   : > { %v2024_v17 = vpop.permute.xlu2 %2023 }
 0x234   : > { %2099 = vmatpush.bf16.xpose.msrb.mxu1 %v2081_v58  ;;  %v1000_v58 = vld [vmem:[%s12260_s21 + $0x38] sm:$0xff] }
 0x238   : > { %6889 = vmatmul.msk.bf16.gmra.mxu3 %vm1460_vm0, %v1432_v24  ;;  %v2517_v50 = vpop.permute.xlu0 %2516  ;;  %v996_v24 = vld [vmem:[%s12260_s21 + $0x18] sm:$0xff] }
 0x23a   : > { %v2030_v39 = vpop.permute.xlu2 %2029 }
 0x23c   : > { %2100 = vmatpush.bf16.xpose.msrb.mxu1 %v2078_v4 }
 0x242   : > { %v2515_v23 = vpop.permute.xlu2 %2514 }
 0x244   : > { %2101 = vmatpush.bf16.xpose.msrb.mxu1 %v2075_v18 }
 0x248   : > { %6890 = vmatmul.msk.bf16.gmra.mxu3 %vm1460_vm0, %v8618_v33  ;;  %v2509_v33 = vpop.permute.xlu0 %2508 }
 0x24a   : > { %v2513_v55 = vpop.permute.xlu2 %2512 }
 0x24c   : > { %2102 = vmatpush.bf16.xpose.msrb.mxu1 %v2072_v5 }
 0x252   : > { %v2519_v15 = vpop.permute.xlu2 %2518 }
 0x253   : > { %6893 = vmatmul.msk.bf16.vlgmr.msrb.gmra.mxu1 %vm1460_vm0, %v2016_v42  ;;  %2528 = vmatpush.bf16.msrb.mxu2 %v2519_v15  ;;  %v8790_v15 = vld [vmem:[%s12260_s21 + $0x50] sm:$0xff] }
 0x257   : > { %2529 = vmatpush.bf16.msrb.mxu2 %v2517_v50 }
 0x258   : > { %6891 = vmatmul.msk.bf16.gmra.mxu3 %vm1460_vm0, %v8565_v62  ;;  %v994_v62 = vld [vmem:[%s12260_s21 + $0x8] sm:$0xff] }
 0x25b   : > { %2530 = vmatpush.bf16.msrb.mxu2 %v2515_v23  ;;  %v8775_v23 = vld [vmem:[%s12260_s21 + $0x48] sm:$0xff] }
 0x25f   : > { %2531 = vmatpush.bf16.msrb.mxu2 %v2513_v55 }
 0x263   : > { %6894 = vmatmul.msk.bf16.gmra.mxu1 %vm1460_vm0, %v2018_v47  ;;  %2532 = vmatpush.bf16.msrb.mxu2 %v2511_v14  ;;  %v999_v47 = vld [vmem:[%s12260_s21 + $0x30] sm:$0xff] }
 0x267   : > { %2533 = vmatpush.bf16.msrb.mxu2 %v2509_v33 }
 0x268   : > { %6892 = vmatmul.msk.bf16.gmra.mxu3 %vm1460_vm0, %v8667_v7 }
 0x273   : > { %6895 = vmatmul.msk.bf16.gmra.mxu1 %vm1460_vm0, %v2020_v60 }
 0x27b   : > { %v1518_v26 = vpop.f32.mrf.mxu3 }
 0x27c   : > { %v8708_v25 = vadd.f32 %v1518_v26, %v993_v34 }
 0x27e   : > { %1558 = vmax.xlane.f32.xlu0 %v8708_v25 }
 0x283   : > { %v1520_v19 = vpop.f32.mrf.mxu3  ;;  %6896 = vmatmul.msk.bf16.gmra.mxu1 %vm1460_vm0, %v2022_v6 }
 0x284   : > { %v8715_v27 = vadd.f32 %v1520_v19, %v994_v62 }
 0x286   : > { %1560 = vmax.xlane.f32.xlu1 %v8715_v27 }
 0x28b   : > { %v1523_v63 = vpop.f32.mrf.mxu3 }
 0x28c   : > { %v8721_v45 = vadd.f32 %v1523_v63, %v995_v53 }
 0x28e   : > { %1562 = vmax.xlane.f32.xlu2 %v8721_v45 }
 0x293   : > { %v1525_v12 = vpop.f32.mrf.mxu3  ;;  %6897 = vmatmul.msk.bf16.gmra.mxu1 %vm1460_vm0, %v2024_v17 }
 0x294   : > { %v8728_v40 = vadd.f32 %v1525_v12, %v996_v24 }
 0x296   : > { %1564 = vmax.xlane.f32.xlu1 %v8728_v40 }
 0x2a3   : > { %6898 = vmatmul.msk.bf16.gmra.mxu1 %vm1460_vm0, %v2026_v59 }
 0x2b3   : > { %6899 = vmatmul.msk.bf16.gmra.mxu1 %vm1460_vm0, %v2028_v35 }
 0x2c3   : > { %6900 = vmatmul.msk.bf16.gmra.mxu1 %vm1460_vm0, %v2030_v39 }
 0x2d0   : > { %v2104_v44 = vpop.f32.mrf.mxu1 }
 0x2d1   : > { %v2105_v3 = vadd.f32 %v2104_v44, %v993_v34 }
 0x2d3   : > { %2144 = vmax.xlane.f32.xlu0 %v2105_v3 }
 0x2d8   : > { %v2106_v7 = vpop.f32.mrf.mxu1 }
 0x2d9   : > { %v2107_v30 = vadd.f32 %v2106_v7, %v994_v62 }
 0x2db   : > { %2146 = vmax.xlane.f32.xlu1 %v2107_v30 }
 0x2e0   : > { %v2109_v29 = vpop.f32.mrf.mxu1 }
 0x2e1   : > { %v2110_v13 = vadd.f32 %v2109_v29, %v995_v53 }
 0x2e3   : > { %2148 = vmax.xlane.f32.xlu2 %v2110_v13 }
 0x2e8   : > { %v2111_v46 = vpop.f32.mrf.mxu1 }
 0x2e9   : > { %v8734_v28 = vadd.f32 %v2111_v46, %v996_v24 }
 0x2eb   : > { %2150 = vmax.xlane.f32.xlu2 %v8734_v28 }
 0x2f0   : > { %v2114_v16 = vpop.f32.mrf.mxu1 }
 0x2f1   : > { %v8740_v2 = vadd.f32 %v2114_v16, %v997_v48  ;;  %v1559_v33 = vpop.xlane.xlu0 %1558 }
 0x2f3   : > { %2152 = vmax.xlane.f32.xlu0 %v8740_v2 }
 0x2f8   : > { %v2116_v57 = vpop.f32.mrf.mxu1 }
 0x2f9   : > { %v8746_v61 = vadd.f32 %v2116_v57, %v998_v52  ;;  %v1561_v34 = vpop.xlane.xlu1 %1560 }
 0x2fa   : > { %v1591_v57 = vsub.f32 %v8715_v27, %v1561_v34 }
 0x2fb   : > { %2154 = vmax.xlane.f32.xlu1 %v8746_v61 }
 0x300   : > { %v2119_v38 = vpop.f32.mrf.mxu1 }
 0x301   : > { %v8752_v32 = vadd.f32 %v2119_v38, %v999_v47  ;;  %v8801_v63 = vpop.xlane.xlu2 %1562 }
 0x303   : > { %2156 = vmax.xlane.f32.xlu1 %v8752_v32 }
 0x307   : > { %2506 = vrot.lane.b32.xlu0 %v8656_v0, %s8013_s29  ;;  %v1528_v0 = vpop.f32.mrf.mxu3 }
 0x308   : > { %v2121_v17 = vpop.f32.mrf.mxu1  ;;  %v8781_v42 = vadd.f32 %v1528_v0, %v997_v48 }
 0x309   : > { %v8760_v51 = vadd.f32 %v2121_v17, %v1000_v58  ;;  %v8799_v26 = vpop.xlane.xlu1 %1564 }
 0x30b   : > { %2158 = vmax.xlane.f32.xlu1 %v8760_v51 }
 0x30f   : > { %v1530_v55 = vpop.f32.mrf.mxu3 }
 0x310   : > { %v2124_v39 = vpop.f32.mrf.mxu1  ;;  %v8784_v5 = vadd.f32 %v1530_v55, %v998_v52 }
 0x311   : > { %v8769_v4 = vadd.f32 %v2124_v39, %v8766_v49  ;;  %v1590_v39 = vsub.f32 %v8708_v25, %v1559_v33 }
 0x313   : > { %2160 = vmax.xlane.f32.xlu2 %v8769_v4  ;;  %v1606_v27 = vmul.f32 1.442695, %v1590_v39 }
 0x317   : > { %v1533_v59 = vpop.f32.mrf.mxu3 }
 0x318   : > { %v2126_v60 = vpop.f32.mrf.mxu1  ;;  %v8811_v38 = vadd.f32 %v1533_v59, %v999_v47 }
 0x319   : > { %v8778_v18 = vadd.f32 %v2126_v60, %v8775_v23 }
 0x31b   : > { %2162 = vmax.xlane.f32.xlu2 %v8778_v18 }
 0x31f   : > { %v1535_v35 = vpop.f32.mrf.mxu3 }
 0x320   : > { %v2129_v6 = vpop.f32.mrf.mxu1  ;;  %v8796_v14 = vadd.f32 %v1535_v35, %v1000_v58 }
 0x321   : > { %v8793_v50 = vadd.f32 %v2129_v6, %v8790_v15 }
 0x323   : > { %1566 = vmax.xlane.f32.xlu2 %v8781_v42 }
 0x327   : > { %v1538_v33 = vpop.f32.mrf.mxu3 }
 0x328   : > { %v2131_v47 = vpop.f32.mrf.mxu1 }
 0x32b   : > { %1568 = vmax.xlane.f32.xlu2 %v8784_v5 }
 0x330   : > { %v2134_v34 = vpop.f32.mrf.mxu1 }
 0x333   : > { %2164 = vmax.xlane.f32.xlu2 %v8793_v50 }
 0x33b   : > { %1572 = vmax.xlane.f32.xlu2 %v8796_v14 }
 0x346   : > { %v2145_v62 = vpop.xlane.xlu0 %2144 }
 0x347   : > { %v2176_v19 = vsub.f32 %v2105_v3, %v2145_v62  ;;  %v1608_v3 = vmul.f32 1.442695, %v1591_v57  ;;  %v8837_v62 = vld [vmem:[%s12260_s21 + $0x60] sm:$0xff] }
 0x349   : > { %v2192_v53 = vmul.f32 1.442695, %v2176_v19 }
 0x34b   : > { %7600 = vpow2.f32 %v2192_v53 }
 0x34e   : > { %v2147_v24 = vpop.xlane.xlu1 %2146 }
 0x34f   : > { %v2177_v12 = vsub.f32 %v2107_v30, %v2147_v24 }
 0x351   : > { %v8803_v44 = vpop.eup %7600  ;;  %v2194_v7 = vmul.f32 1.442695, %v2177_v12  ;;  %v1540_v12 = vpop.f32.mrf.mxu3 }
 0x352   : > { %2224 = vadd.xlane.f32.xlu1 %v8803_v44 }
 0x353   : > { %7602 = vpow2.f32 %v2194_v7  ;;  %v2136_v7 = vpop.f32.mrf.mxu1 }
 0x356   : > { %v2149_v29 = vpop.xlane.xlu2 %2148 }
 0x357   : > { %v2178_v46 = vsub.f32 %v2110_v13, %v2149_v29 }
 0x359   : > { %v8806_v48 = vpop.eup %7602  ;;  %v2196_v16 = vmul.f32 1.442695, %v2178_v46  ;;  %v8850_v46 = vld [vmem:[%s12260_s21 + $0x68] sm:$0xff] }
 0x35a   : > { %2226 = vadd.xlane.f32.xlu0 %v8806_v48  ;;  %v8856_v57 = vadd.f32 %v2136_v7, %v8850_v46 }
 0x35b   : > { %7604 = vpow2.f32 %v2196_v16  ;;  %v8853_v16 = vadd.f32 %v1540_v12, %v8775_v23 }
 0x35c   : > { %7606 = vpow2.f32 %v1608_v3 }
 0x35e   : > { %v2151_v52 = vpop.xlane.xlu2 %2150 }
 0x35f   : > { %v2179_v30 = vsub.f32 %v8734_v28, %v2151_v52 }
 0x361   : > { %v8813_v17 = vpop.eup %7604  ;;  %v2198_v58 = vmul.f32 1.442695, %v2179_v30  ;;  %v8863_v30 = vadd.f32 %v1538_v33, %v8766_v49  ;;  %v8874_v49 = vld [vmem:[%s12260_s21 + $0x70] sm:$0xff] }
 0x362   : > { %1570 = vmax.xlane.f32.xlu0 %v8811_v38  ;;  %2228 = vadd.xlane.f32.xlu2 %v8813_v17  ;;  %v8819_v60 = vpop.eup %7606 }
 0x363   : > { %7608 = vpow2.f32 %v2198_v58 }
 0x364   : > { %7610 = vpow2.f32 %v1606_v27  ;;  %v2139_v27 = vpop.f32.mrf.mxu1 }
 0x366   : > { %v2153_v13 = vpop.xlane.xlu0 %2152 }
 0x367   : > { %v2180_v0 = vsub.f32 %v8740_v2, %v2153_v13 }
 0x369   : > { %v8821_v28 = vpop.eup %7608  ;;  %v2200_v55 = vmul.f32 1.442695, %v2180_v0 }
 0x36a   : > { %2230 = vadd.xlane.f32.xlu0 %v8821_v28  ;;  %1640 = vadd.xlane.f32.xlu2 %v8819_v60  ;;  %v8828_v6 = vpop.eup %7610 }
 0x36b   : > { %7612 = vpow2.f32 %v2200_v55  ;;  %2504 = vrot.lane.b32.xlu1 %v8662_v22, %s8013_s29  ;;  %v8840_v22 = vadd.f32 %v2134_v34, %v8837_v62 }
 0x36e   : > { %v2155_v25 = vpop.xlane.xlu1 %2154 }
 0x36f   : > { %v2181_v59 = vsub.f32 %v8746_v61, %v2155_v25 }
 0x371   : > { %v8830_v2 = vpop.eup %7612  ;;  %v2202_v35 = vmul.f32 1.442695, %v2181_v59 }
 0x372   : > { %1638 = vadd.xlane.f32.xlu0 %v8828_v6  ;;  %2232 = vadd.xlane.f32.xlu2 %v8830_v2 }
 0x373   : > { %7614 = vpow2.f32 %v2202_v35  ;;  %v1543_v35 = vpop.f32.mrf.mxu3 }
 0x376   : > { %v2157_v61 = vpop.xlane.xlu1 %2156 }
 0x377   : > { %v2182_v24 = vsub.f32 %v8752_v32, %v2157_v61  ;;  %v1593_v32 = vsub.f32 %v8728_v40, %v8799_v26 }
 0x379   : > { %v8842_v19 = vpop.eup %7614  ;;  %v2507_v53 = vpop.permute.xlu0 %2506  ;;  %v2204_v29 = vmul.f32 1.442695, %v2182_v24  ;;  %v1612_v52 = vmul.f32 1.442695, %v1593_v32 }
 0x37a   : > { %2168 = vmax.xlane.f32.xlu0 %v8840_v22  ;;  %2234 = vadd.xlane.f32.xlu2 %v8842_v19 }
 0x37b   : > { %2534 = vmatpush.bf16.msrb.mxu2 %v2507_v53  ;;  %7616 = vpow2.f32 %v2204_v29  ;;  %v1545_v29 = vpop.f32.mrf.mxu3 }
 0x37c   : > { %7618 = vpow2.f32 %v1612_v52 }
 0x37e   : > { %v2159_v39 = vpop.xlane.xlu1 %2158 }
 0x37f   : > { %v2183_v13 = vsub.f32 %v8760_v51, %v2159_v39  ;;  %v1004_v51 = vld [vmem:[%s12260_s21 + $0x58] sm:$0xff] }
 0x380   : > { %v8887_v33 = vadd.f32 %v2131_v47, %v1004_v51 }
 0x381   : > { %v8865_v58 = vpop.eup %7616  ;;  %v2206_v59 = vmul.f32 1.442695, %v2183_v13 }
 0x382   : > { %1576 = vmax.xlane.f32.xlu0 %v8853_v16  ;;  %2170 = vmax.xlane.f32.xlu2 %v8856_v57  ;;  %v8880_v55 = vpop.eup %7618 }
 0x383   : > { %v1548_v13 = vpop.f32.mrf.mxu3 }
 0x386   : > { %v2161_v3 = vpop.xlane.xlu2 %2160 }
 0x387   : > { %v2184_v23 = vsub.f32 %v8769_v4, %v2161_v3  ;;  %v8878_v4 = vadd.f32 %v2139_v27, %v8874_v49  ;;  %v8915_v27 = vld [vmem:[%s12260_s21 + $0x78] sm:$0xff] }
 0x389   : > { %v2208_v40 = vmul.f32 1.442695, %v2184_v23  ;;  %v2141_v23 = vpop.f32.mrf.mxu1 }
 0x38a   : > { %2236 = vadd.xlane.f32.xlu0 %v8865_v58  ;;  %1574 = vmax.xlane.f32.xlu2 %v8863_v30 }
 0x38b   : > { %7620 = vpow2.f32 %v2208_v40  ;;  %v8918_v40 = vadd.f32 %v2141_v23, %v8915_v27 }
 0x38e   : > { %v2163_v26 = vpop.xlane.xlu2 %2162 }
 0x38f   : > { %v2185_v0 = vsub.f32 %v8778_v18, %v2163_v26  ;;  %v1592_v18 = vsub.f32 %v8721_v45, %v8801_v63  ;;  %v8902_v63 = vadd.f32 %v1545_v29, %v1004_v51 }
 0x391   : > { %v2210_v25 = vmul.f32 1.442695, %v2185_v0  ;;  %v8893_v53 = vpop.eup %7620  ;;  %v1610_v7 = vmul.f32 1.442695, %v1592_v18 }
 0x392   : > { %2172 = vmax.xlane.f32.xlu0 %v8878_v4  ;;  %1644 = vadd.xlane.f32.xlu2 %v8880_v55 }
 0x393   : > { %7622 = vpow2.f32 %v2210_v25 }
 0x394   : > { %7624 = vpow2.f32 %v2206_v59  ;;  %v1550_v59 = vpop.f32.mrf.mxu3 }
 0x395   : > { %2166 = vmax.xlane.f32.xlu1 %v8887_v33  ;;  %v8930_v51 = vadd.f32 %v1550_v59, %v8850_v46 }
 0x396   : > { %v1567_v34 = vpop.xlane.xlu2 %1566 }
 0x397   : > { %v1594_v61 = vsub.f32 %v8781_v42, %v1567_v34 }
 0x399   : > { %v8895_v24 = vpop.eup %7622  ;;  %v1614_v12 = vmul.f32 1.442695, %v1594_v61 }
 0x39a   : > { %2242 = vadd.xlane.f32.xlu0 %v8895_v24  ;;  %2240 = vadd.xlane.f32.xlu2 %v8893_v53  ;;  %v8899_v47 = vpop.eup %7624 }
 0x39b   : > { %7626 = vpow2.f32 %v1614_v12 }
 0x39c   : > { %7628 = vpow2.f32 %v1610_v7 }
 0x39d   : > { %2238 = vadd.xlane.f32.xlu1 %v8899_v47 }
 0x39e   : > { %v1569_v45 = vpop.xlane.xlu2 %1568 }
 0x39f   : > { %v1595_v26 = vsub.f32 %v8784_v5, %v1569_v45  ;;  %v1553_v45 = vpop.f32.mrf.mxu3 }
 0x3a1   : > { %v8904_v42 = vpop.eup %7626  ;;  %v1616_v25 = vmul.f32 1.442695, %v1595_v26 }
 0x3a2   : > { %1646 = vadd.xlane.f32.xlu0 %v8904_v42  ;;  %1580 = vmax.xlane.f32.xlu2 %v8902_v63  ;;  %v8908_v32 = vpop.eup %7628 }
 0x3a5   : > { %1642 = vadd.xlane.f32.xlu1 %v8908_v32 }
 0x3a6   : > { %v2165_v3 = vpop.xlane.xlu2 %2164 }
 0x3a7   : > { %v2186_v52 = vsub.f32 %v8793_v50, %v2165_v3  ;;  %v8926_v50 = vadd.f32 %v1543_v35, %v8790_v15  ;;  %v8938_v15 = vadd.f32 %v1548_v13, %v8837_v62 }
 0x3a9   : > { %v2212_v39 = vmul.f32 1.442695, %v2186_v52  ;;  %v8945_v52 = vadd.f32 %v1553_v45, %v8874_v49 }
 0x3ab   : > { %7630 = vpow2.f32 %v2212_v39 }
 0x3ac   : > { %7632 = vpow2.f32 %v1616_v25 }
 0x3ad   : > { %2174 = vmax.xlane.f32.xlu1 %v8918_v40 }
 0x3ae   : > { %v1573_v18 = vpop.xlane.xlu2 %1572 }
 0x3af   : > { %v1597_v5 = vsub.f32 %v8796_v14, %v1573_v18 }
 0x3b1   : > { %v8922_v0 = vpop.eup %7630  ;;  %v1620_v61 = vmul.f32 1.442695, %v1597_v5 }
 0x3b2   : > { %2244 = vadd.xlane.f32.xlu2 %v8922_v0  ;;  %v8933_v34 = vpop.eup %7632 }
 0x3b3   : > { %7634 = vpow2.f32 %v1620_v61 }
 0x3b5   : > { %1578 = vmax.xlane.f32.xlu1 %v8926_v50 }
 0x3b9   : > { %v8941_v46 = vpop.eup %7634 }
 0x3ba   : > { %1584 = vmax.xlane.f32.xlu2 %v8930_v51 }
 0x3bd   : > { %1648 = vadd.xlane.f32.xlu1 %v8933_v34 }
 0x3c5   : > { %1582 = vmax.xlane.f32.xlu1 %v8938_v15  ;;  %v2225_v35 = vpop.xlane.xlu1 %2224 }
 0x3c6   : > { %7636 = vrcp.f32 %v2225_v35  ;;  %v2267_v25 = vand.u32 2147483648, %v2225_v35  ;;  %vm2261_vm2 = vweird.f32 %v2225_v35  ;;  %v2265_v18 = vand.u32 2147483647, %v2225_v35 }
 0x3c8   : > { %vm2266_vm6 = vcmp.eq.f32.partialorder %v2265_v18, 8.507059e+37 }
 0x3cc   : > { %v7637_v12 = vpop.eup %7636 }
 0x3cd   : > { %v2257_v7 = vmul.f32 %v7637_v12, %v2225_v35  ;;  %1652 = vadd.xlane.f32.xlu1 %v8941_v46  ;;  %v2227_v29 = vpop.xlane.xlu0 %2226  ;;  %vm2262_vm1 = vweird.f32 %v7637_v12 }
 0x3ce   : > { %7638 = vrcp.f32 %v2227_v29  ;;  %v2282_v5 = vand.u32 2147483648, %v2227_v29  ;;  %vm2263_vm3 = vmor %vm2261_vm2, %vm2262_vm1  ;;  %vm2276_vm5 = vweird.f32 %v2227_v29 }
 0x3cf   : > { %v2258_v14 = vsub.f32 1.0, %v2257_v7  ;;  %v2280_v7 = vand.u32 2147483647, %v2227_v29 }
 0x3d1   : > { %v2259_v3 = vmul.f32 %v7637_v12, %v2258_v14  ;;  %v2268_v14 = vor.u32 1.1754944e-38, %v2267_v25  ;;  %vm2281_vm8 = vcmp.eq.f32.partialorder %v2280_v7, 8.507059e+37 }
 0x3d3   : > { %v2260_v26 = vadd.f32 %v7637_v12, %v2259_v3  ;;  %v2283_v3 = vor.u32 1.1754944e-38, %v2282_v5 }
 0x3d4   : > { %v7639_v62 = vpop.eup %7638 }
 0x3d5   : > { %v2272_v23 = vmul.f32 %v7639_v62, %v2227_v29  ;;  %v8947_v39 = vpop.xlane.xlu2 %2228  ;;  %1586 = vmax.xlane.f32.xlu1 %v8945_v52  ;;  %v8950_v13 = vpop.xlane.xlu0 %1570  ;;  %v2264_v61 = vsel %vm2263_vm3, %v7637_v12, %v2260_v26  ;;  %vm2277_vm4 = vweird.f32 %v7639_v62 }
 0x3d6   : > { %7640 = vrcp.f32 %v8947_v39  ;;  %v2269_v36 = vsel %vm2266_vm6, %v2268_v14, %v2264_v61  ;;  %vm2278_vm7 = vmor %vm2276_vm5, %vm2277_vm4  ;;  %vm2291_vm10 = vweird.f32 %v8947_v39 }
 0x3d7   : > { %v2273_v59 = vsub.f32 1.0, %v2272_v23  ;;  %v2270_v29 = vmul.f32 %v8803_v44, %v2269_v36  ;;  %v2295_v44 = vand.u32 2147483647, %v8947_v39 }
 0x3d9   : > { %v2274_v49 = vmul.f32 %v7639_v62, %v2273_v59  ;;  %vm2296_vm14 = vcmp.eq.f32.partialorder %v2295_v44, 8.507059e+37 }
 0x3db   : > { %v2275_v45 = vadd.f32 %v7639_v62, %v2274_v49 }
 0x3dc   : > { %v7641_v37 = vpop.eup %7640 }
 0x3dd   : > { %v2287_v10 = vmul.f32 %v7641_v37, %v8947_v39  ;;  %v8954_v11 = vpop.xlane.xlu2 %1640  ;;  %v2505_v23 = vpop.permute.xlu1 %2504  ;;  %v2279_v35 = vsel %vm2278_vm7, %v7639_v62, %v2275_v45  ;;  %vm2292_vm9 = vweird.f32 %v7641_v37 }
 0x3de   : > { %7642 = vrcp.f32 %v8954_v11  ;;  %v2231_v12 = vpop.xlane.xlu0 %2230  ;;  %2535 = vmatpush.bf16.msrb.mxu2 %v2505_v23  ;;  %v2284_v26 = vsel %vm2281_vm8, %v2283_v3, %v2279_v35  ;;  %vm8972_vm11 = vmor %vm2291_vm10, %vm2292_vm9  ;;  %vm1690_vm13 = vweird.f32 %v8954_v11  ;;  %v1694_v43 = vand.u32 2147483647, %v8954_v11 }
 0x3df   : > { %v2288_v25 = vsub.f32 1.0, %v2287_v10  ;;  %7644 = vrcp.f32 %v2231_v12  ;;  %v2285_v59 = vmul.f32 %v8806_v48, %v2284_v26  ;;  %v2297_v48 = vand.u32 2147483648, %v8947_v39 }
 0x3e0   : > { %v2310_v23 = vand.u32 2147483647, %v2231_v12  ;;  %v2312_v26 = vand.u32 2147483648, %v2231_v12  ;;  %v1696_v39 = vand.u32 2147483648, %v8954_v11  ;;  %vm2306_vm15 = vweird.f32 %v2231_v12 }
 0x3e1   : > { %v2496_v18 = vpack.c.bf16 %v2285_v59, %v2270_v29  ;;  %v2289_v5 = vmul.f32 %v7641_v37, %v2288_v25  ;;  %vm1695_vm7 = vcmp.eq.f32.partialorder %v1694_v43, 8.507059e+37 }
 0x3e2   : > { %vm2311_vm1 = vcmp.eq.f32.partialorder %v2310_v23, 8.507059e+37 }
 0x3e3   : > { %2536 = vmatmul.bf16.vlgmr.msrb.gmra.mxu2 %v2496_v18  ;;  %v2290_v45 = vadd.f32 %v7641_v37, %v2289_v5  ;;  %v2298_v18 = vor.u32 1.1754944e-38, %v2297_v48 }
 0x3e4   : > { %v8959_v49 = vpop.eup %7642 }
 0x3e5   : > { %v7645_v61 = vpop.eup %7644  ;;  %v1686_v62 = vmul.f32 %v8959_v49, %v8954_v11  ;;  %v8963_v7 = vpop.xlane.xlu2 %2232  ;;  %v2294_v29 = vsel %vm8972_vm11, %v7641_v37, %v2290_v45  ;;  %v2313_v45 = vor.u32 1.1754944e-38, %v2312_v26  ;;  %vm1691_vm3 = vweird.f32 %v8959_v49 }
 0x3e6   : > { %v2302_v14 = vmul.f32 %v7645_v61, %v2231_v12  ;;  %7646 = vrcp.f32 %v8963_v7  ;;  %v8966_v10 = vpop.xlane.xlu0 %1638  ;;  %vm2307_vm12 = vweird.f32 %v7645_v61  ;;  %v2299_v37 = vsel %vm2296_vm14, %v2298_v18, %v2294_v29  ;;  %vm9001_vm4 = vmor %vm1690_vm13, %vm1691_vm3 }
 0x3e7   : > { %v1687_v36 = vsub.f32 1.0, %v1686_v62  ;;  %7648 = vrcp.f32 %v8966_v10  ;;  %vm2308_vm2 = vmor %vm2306_vm15, %vm2307_vm12  ;;  %v1681_v29 = vand.u32 2147483648, %v8966_v10  ;;  %v2300_v26 = vmul.f32 %v8813_v17, %v2299_v37 }
 0x3e8   : > { %v2303_v3 = vsub.f32 1.0, %v2302_v14  ;;  %v1679_v56 = vand.u32 2147483647, %v8966_v10  ;;  %vm1675_vm6 = vweird.f32 %v8966_v10  ;;  %vm2321_vm11 = vweird.f32 %v8963_v7 }
 0x3e9   : > { %v1688_v25 = vmul.f32 %v8959_v49, %v1687_v36  ;;  %v1682_v37 = vor.u32 1.1754944e-38, %v1681_v29 }
 0x3ea   : > { %v2304_v59 = vmul.f32 %v7645_v61, %v2303_v3  ;;  %vm1680_vm10 = vcmp.eq.f32.partialorder %v1679_v56, 8.507059e+37 }
 0x3eb   : > { %v1689_v12 = vadd.f32 %v8959_v49, %v1688_v25 }
 0x3ec   : > { %v8980_v5 = vpop.eup %7646  ;;  %v2305_v62 = vadd.f32 %v7645_v61, %v2304_v59 }
 0x3ed   : > { %v7649_v14 = vpop.eup %7648  ;;  %v2317_v36 = vmul.f32 %v8980_v5, %v8963_v7  ;;  %v8985_v41 = vpop.xlane.xlu2 %2234  ;;  %v1693_v17 = vsel %vm9001_vm4, %v8959_v49, %v1689_v12  ;;  %vm2322_vm9 = vweird.f32 %v8980_v5  ;;  %v2325_v12 = vand.u32 2147483647, %v8963_v7 }
 0x3ee   : > { %v1671_v44 = vmul.f32 %v7649_v14, %v8966_v10  ;;  %7650 = vrcp.f32 %v8985_v41  ;;  %v2169_v48 = vpop.xlane.xlu0 %2168  ;;  %v2309_v3 = vsel %vm2308_vm2, %v7645_v61, %v2305_v62  ;;  %vm1676_vm5 = vweird.f32 %v7649_v14  ;;  %vm9021_vm12 = vmor %vm2321_vm11, %vm2322_vm9 }
 0x3ef   : > { %v2318_v23 = vsub.f32 1.0, %v2317_v36  ;;  %v2188_v35 = vsub.f32 %v8840_v22, %v2169_v48  ;;  %v2314_v59 = vsel %vm2311_vm1, %v2313_v45, %v2309_v3  ;;  %vm1677_vm8 = vmor %vm1675_vm6, %vm1676_vm5  ;;  %v2327_v10 = vand.u32 2147483648, %v8963_v7 }
 0x3f0   : > { %v1672_v21 = vsub.f32 1.0, %v1671_v44  ;;  %v2315_v18 = vmul.f32 %v8821_v28, %v2314_v59  ;;  %v1697_v28 = vor.u32 1.1754944e-38, %v1696_v39  ;;  %v2340_v56 = vand.u32 2147483647, %v8985_v41 }
 0x3f1   : > { %v2216_v20 = vmul.f32 1.442695, %v2188_v35  ;;  %v2319_v22 = vmul.f32 %v8980_v5, %v2318_v23  ;;  %vm2326_vm14 = vcmp.eq.f32.partialorder %v2325_v12, 8.507059e+37  ;;  %vm2336_vm15 = vweird.f32 %v8985_v41 }
 0x3f2   : > { %v1673_v25 = vmul.f32 %v7649_v14, %v1672_v21  ;;  %v2497_v62 = vpack.c.bf16 %v2315_v18, %v2300_v26  ;;  %v1698_v21 = vsel %vm1695_vm7, %v1697_v28, %v1693_v17  ;;  %vm2341_vm2 = vcmp.eq.f32.partialorder %v2340_v56, 8.507059e+37 }
 0x3f3   : > { %7652 = vpow2.f32 %v2216_v20  ;;  %v2320_v48 = vadd.f32 %v8980_v5, %v2319_v22  ;;  %v1699_v35 = vmul.f32 %v8819_v60, %v1698_v21 }
 0x3f4   : > { %v7651_v36 = vpop.eup %7650  ;;  %2541 = vmatmul.bf16.gmra.mxu2 %v2497_v62  ;;  %v1674_v11 = vadd.f32 %v7649_v14, %v1673_v25  ;;  %v1555_v25 = vpop.f32.mrf.mxu3 }
 0x3f5   : > { %v2332_v45 = vmul.f32 %v7651_v36, %v8985_v41  ;;  %v9011_v44 = vpop.xlane.xlu2 %2170  ;;  %vm2337_vm13 = vweird.f32 %v7651_v36 }
 0x3f6   : > { %v1577_v49 = vpop.xlane.xlu0 %1576  ;;  %v1678_v20 = vsel %vm1677_vm8, %v7649_v14, %v1674_v11  ;;  %v2342_v14 = vand.u32 2147483648, %v8985_v41  ;;  %vm2338_vm1 = vmor %vm2336_vm15, %vm2337_vm13 }
 0x3f7   : > { %v2333_v39 = vsub.f32 1.0, %v2332_v45  ;;  %v1599_v43 = vsub.f32 %v8853_v16, %v1577_v49  ;;  %v1683_v3 = vsel %vm1680_vm10, %v1682_v37, %v1678_v20  ;;  %v2324_v16 = vsel %vm9021_vm12, %v8980_v5, %v2320_v48 }
 0x3f8   : > { %v1684_v23 = vmul.f32 %v8828_v6, %v1683_v3  ;;  %v2328_v6 = vor.u32 1.1754944e-38, %v2327_v10  ;;  %v2343_v22 = vor.u32 1.1754944e-38, %v2342_v14  ;;  %v9040_v45 = vadd.f32 %v1555_v25, %v8915_v27 }
 0x3f9   : > { %v9027_v29 = vpop.eup %7652  ;;  %v1624_v26 = vmul.f32 1.442695, %v1599_v43  ;;  %v2334_v7 = vmul.f32 %v7651_v36, %v2333_v39  ;;  %v1596_v43 = vsub.f32 %v8811_v38, %v8950_v13 }
 0x3fa   : > { %2248 = vadd.xlane.f32.xlu2 %v9027_v29  ;;  %v1910_v60 = vpack.c.bf16 %v1699_v35, %v1684_v23  ;;  %v2329_v61 = vsel %vm2326_vm14, %v2328_v6, %v2324_v16 }
 0x3fb   : > { %7654 = vpow2.f32 %v1624_v26  ;;  %v2335_v18 = vadd.f32 %v7651_v36, %v2334_v7  ;;  %v2330_v11 = vmul.f32 %v8830_v2, %v2329_v61  ;;  %v1618_v38 = vmul.f32 1.442695, %v1596_v43 }
 0x3fc   : > { %1974 = vmatmul.bf16.vlgmr.msrb.gmra.mxu0 %v1910_v60 }
 0x3fd   : > { %v1575_v62 = vpop.xlane.xlu2 %1574  ;;  %v2339_v17 = vsel %vm2338_vm1, %v7651_v36, %v2335_v18 }
 0x3fe   : > { %v9034_v5 = vpop.xlane.xlu0 %2236  ;;  %v2344_v28 = vsel %vm2341_vm2, %v2343_v22, %v2339_v17 }
 0x3ff   : > { %v2345_v37 = vmul.f32 %v8842_v19, %v2344_v28  ;;  %7656 = vrcp.f32 %v9034_v5  ;;  %vm2351_vm4 = vweird.f32 %v9034_v5  ;;  %v2355_v22 = vand.u32 2147483647, %v9034_v5 }
 0x400   : > { %v2357_v25 = vand.u32 2147483648, %v9034_v5 }
 0x401   : > { %v9042_v41 = vpop.eup %7654  ;;  %v2498_v21 = vpack.c.bf16 %v2345_v37, %v2330_v11  ;;  %vm2356_vm6 = vcmp.eq.f32.partialorder %v2355_v22, 8.507059e+37 }
 0x402   : > { %1588 = vmax.xlane.f32.xlu2 %v9040_v45  ;;  %1656 = vadd.xlane.f32.xlu1 %v9042_v41 }
 0x404   : > { %2546 = vmatmul.bf16.gmra.mxu2 %v2498_v21 }
 0x405   : > { %v9046_v36 = vpop.xlane.xlu2 %1644  ;;  %v9048_v48 = vpop.eup %7656 }
 0x406   : > { %v2173_v2 = vpop.xlane.xlu0 %2172  ;;  %v2347_v27 = vmul.f32 %v9048_v48, %v9034_v5  ;;  %7658 = vrcp.f32 %v9046_v36  ;;  %vm2352_vm3 = vweird.f32 %v9048_v48  ;;  %v1726_v43 = vand.u32 2147483648, %v9046_v36 }
 0x407   : > { %v2190_v19 = vsub.f32 %v8878_v4, %v2173_v2  ;;  %vm9093_vm5 = vmor %vm2351_vm4, %vm2352_vm3  ;;  %vm1720_vm10 = vweird.f32 %v9046_v36 }
 0x408   : > { %v2167_v49 = vpop.xlane.xlu1 %2166  ;;  %v2348_v3 = vsub.f32 1.0, %v2347_v27  ;;  %v1727_v28 = vor.u32 1.1754944e-38, %v1726_v43 }
 0x409   : > { %v2220_v20 = vmul.f32 1.442695, %v2190_v19  ;;  %v2187_v10 = vsub.f32 %v8887_v33, %v2167_v49  ;;  %v2189_v33 = vsub.f32 %v8856_v57, %v9011_v44  ;;  %v1598_v44 = vsub.f32 %v8863_v30, %v1575_v62 }
 0x40a   : > { %v2349_v13 = vmul.f32 %v9048_v48, %v2348_v3  ;;  %v2358_v19 = vor.u32 1.1754944e-38, %v2357_v25 }
 0x40b   : > { %7660 = vpow2.f32 %v2220_v20  ;;  %v2214_v39 = vmul.f32 1.442695, %v2187_v10  ;;  %v2218_v26 = vmul.f32 1.442695, %v2189_v33  ;;  %v1622_v11 = vmul.f32 1.442695, %v1598_v44 }
 0x40c   : > { %v9062_v4 = vpop.eup %7658  ;;  %v2350_v7 = vadd.f32 %v9048_v48, %v2349_v13  ;;  %v1724_v10 = vand.u32 2147483647, %v9046_v36 }
 0x40d   : > { %7662 = vpow2.f32 %v2214_v39  ;;  %v9057_v12 = vpop.xlane.xlu2 %2240  ;;  %v1716_v14 = vmul.f32 %v9062_v4, %v9046_v36  ;;  %vm1721_vm11 = vweird.f32 %v9062_v4 }
 0x40e   : > { %v9059_v23 = vpop.xlane.xlu0 %2242  ;;  %7664 = vrcp.f32 %v9057_v12  ;;  %vm9130_vm13 = vcmp.eq.f32.partialorder %v1724_v10, 8.507059e+37  ;;  %vm2381_vm14 = vweird.f32 %v9057_v12  ;;  %vm9144_vm15 = vmor %vm1720_vm10, %vm1721_vm11 }
 0x40f   : > { %7666 = vrcp.f32 %v9059_v23  ;;  %v1717_v61 = vsub.f32 1.0, %v1716_v14  ;;  %vm2396_vm2 = vweird.f32 %v9059_v23 }
 0x410   : > { %v9067_v35 = vpop.xlane.xlu1 %2238 }
 0x411   : > { %v9069_v59 = vpop.eup %7660  ;;  %7668 = vrcp.f32 %v9067_v35  ;;  %v2372_v49 = vand.u32 2147483648, %v9067_v35  ;;  %v1718_v27 = vmul.f32 %v9062_v4, %v1717_v61  ;;  %vm2366_vm8 = vweird.f32 %v9067_v35 }
 0x412   : > { %2252 = vadd.xlane.f32.xlu2 %v9069_v59  ;;  %7670 = vpow2.f32 %v1618_v38 }
 0x413   : > { %v9074_v56 = vpop.eup %7662  ;;  %7672 = vpow2.f32 %v2218_v26  ;;  %v2373_v44 = vor.u32 1.1754944e-38, %v2372_v49 }
 0x414   : > { %2246 = vadd.xlane.f32.xlu0 %v9074_v56  ;;  %v9079_v57 = vpop.eup %7664 }
 0x415   : > { %v1581_v16 = vpop.xlane.xlu2 %1580  ;;  %v9084_v60 = vpop.eup %7666  ;;  %v2377_v5 = vmul.f32 %v9079_v57, %v9057_v12  ;;  %vm2382_vm3 = vweird.f32 %v9079_v57 }
 0x416   : > { %v1601_v6 = vsub.f32 %v8902_v63, %v1581_v16  ;;  %v2354_v63 = vsel %vm9093_vm5, %v9048_v48, %v2350_v7  ;;  %v2392_v37 = vmul.f32 %v9084_v60, %v9059_v23  ;;  %v2370_v48 = vand.u32 2147483647, %v9067_v35 }
 0x417   : > { %v7669_v18 = vpop.eup %7668  ;;  %v2359_v39 = vsel %vm2356_vm6, %v2358_v19, %v2354_v63  ;;  %v2378_v33 = vsub.f32 1.0, %v2377_v5  ;;  %v1719_v16 = vadd.f32 %v9062_v4, %v1718_v27  ;;  %vm2397_vm4 = vweird.f32 %v9084_v60 }
 0x418   : > { %v2362_v30 = vmul.f32 %v7669_v18, %v9067_v35  ;;  %v1628_v62 = vmul.f32 1.442695, %v1601_v6  ;;  %v9091_v17 = vpop.xlane.xlu1 %1642  ;;  %v9105_v2 = vpop.eup %7670  ;;  %vm2367_vm7 = vweird.f32 %v7669_v18  ;;  %v2393_v38 = vsub.f32 1.0, %v2392_v37 }
 0x419   : > { %7674 = vrcp.f32 %v9091_v17  ;;  %v9113_v3 = vpop.eup %7672  ;;  %vm9116_vm9 = vmor %vm2366_vm8, %vm2367_vm7  ;;  %v9125_v6 = vpop.xlane.xlu0 %1646  ;;  %vm2371_vm12 = vcmp.eq.f32.partialorder %v2370_v48, 8.507059e+37  ;;  %v1711_v19 = vand.u32 2147483648, %v9091_v17  ;;  %vm1705_vm5 = vweird.f32 %v9091_v17 }
 0x41a   : > { %v2363_v21 = vsub.f32 1.0, %v2362_v30  ;;  %7676 = vpow2.f32 %v1628_v62  ;;  %v2360_v30 = vmul.f32 %v8865_v58, %v2359_v39  ;;  %v2394_v63 = vmul.f32 %v9084_v60, %v2393_v38  ;;  %vm9175_vm8 = vmor %vm2381_vm14, %vm2382_vm3 }
 0x41b   : > { %7678 = vpow2.f32 %v1622_v11  ;;  %v2379_v11 = vmul.f32 %v9079_v57, %v2378_v33  ;;  %v1709_v58 = vand.u32 2147483647, %v9091_v17  ;;  %v2402_v39 = vand.u32 2147483648, %v9059_v23 }
 0x41c   : > { %1650 = vadd.xlane.f32.xlu0 %v9105_v2  ;;  %v2364_v20 = vmul.f32 %v7669_v18, %v2363_v21  ;;  %7680 = vrcp.f32 %v9125_v6  ;;  %v1712_v43 = vor.u32 1.1754944e-38, %v1711_v19  ;;  %v2385_v38 = vand.u32 2147483647, %v9057_v12 }
 0x41d   : > { %vm1710_vm7 = vcmp.eq.f32.partialorder %v1709_v58, 8.507059e+37 }
 0x41e   : > { %v2365_v13 = vadd.f32 %v7669_v18, %v2364_v20  ;;  %v2387_v20 = vand.u32 2147483648, %v9057_v12  ;;  %vm2386_vm10 = vcmp.eq.f32.partialorder %v2385_v38, 8.507059e+37 }
 0x41f   : > { %v7675_v14 = vpop.eup %7674 }
 0x420   : > { %v9123_v7 = vpop.eup %7676  ;;  %v1701_v61 = vmul.f32 %v7675_v14, %v9091_v17  ;;  %v2175_v22 = vpop.xlane.xlu1 %2174  ;;  %v2369_v35 = vsel %vm9116_vm9, %v7669_v18, %v2365_v13  ;;  %vm1706_vm1 = vweird.f32 %v7675_v14  ;;  %vm9187_vm9 = vmor %vm2396_vm2, %vm2397_vm4 }
 0x421   : > { %1660 = vadd.xlane.f32.xlu2 %v9123_v7  ;;  %v2374_v62 = vsel %vm2371_vm12, %v2373_v44, %v2369_v35  ;;  %v9148_v21 = vpop.eup %7678  ;;  %v2191_v49 = vsub.f32 %v8918_v40, %v2175_v22  ;;  %v2380_v40 = vadd.f32 %v9079_v57, %v2379_v11  ;;  %vm1707_vm6 = vmor %vm1705_vm5, %vm1706_vm1 }
 0x422   : > { %v1702_v5 = vsub.f32 1.0, %v1701_v61  ;;  %v2375_v18 = vmul.f32 %v8899_v47, %v2374_v62  ;;  %v1723_v47 = vsel %vm9144_vm15, %v9062_v4, %v1719_v16  ;;  %v2395_v4 = vadd.f32 %v9084_v60, %v2394_v63  ;;  %v9180_v61 = vpop.eup %7680 }
 0x423   : > { %v1728_v33 = vsel %vm9130_vm13, %v1727_v28, %v1723_v47  ;;  %v2222_v13 = vmul.f32 1.442695, %v2191_v49  ;;  %v2400_v16 = vand.u32 2147483647, %v9059_v23  ;;  %v2388_v28 = vor.u32 1.1754944e-38, %v2387_v20 }
 0x424   : > { %2250 = vadd.xlane.f32.xlu0 %v9113_v3  ;;  %v2499_v36 = vpack.c.bf16 %v2375_v18, %v2360_v30  ;;  %v1703_v27 = vmul.f32 %v7675_v14, %v1702_v5  ;;  %v1729_v25 = vmul.f32 %v8880_v55, %v1728_v33  ;;  %v2384_v30 = vsel %vm9175_vm8, %v9079_v57, %v2380_v40 }
 0x425   : > { %v9160_v48 = vpop.xlane.xlu2 %2244  ;;  %v2403_v23 = vor.u32 1.1754944e-38, %v2402_v39  ;;  %v1731_v11 = vmul.f32 %v9180_v61, %v9125_v6  ;;  %7682 = vpow2.f32 %v2222_v13  ;;  %vm2401_vm11 = vcmp.eq.f32.partialorder %v2400_v16, 8.507059e+37 }
 0x426   : > { %2551 = vmatmul.bf16.gmra.mxu2 %v2499_v36  ;;  %v1704_v10 = vadd.f32 %v7675_v14, %v1703_v27  ;;  %v2389_v63 = vsel %vm2386_vm10, %v2388_v28, %v2384_v30  ;;  %vm1736_vm12 = vweird.f32 %v9180_v61  ;;  %v1741_v40 = vand.u32 2147483648, %v9125_v6 }
 0x427   : > { %v2390_v37 = vmul.f32 %v8893_v53, %v2389_v63  ;;  %vm1735_vm13 = vweird.f32 %v9125_v6  ;;  %v1739_v39 = vand.u32 2147483647, %v9125_v6 }
 0x428   : > { %v1579_v26 = vpop.xlane.xlu1 %1578  ;;  %v1708_v44 = vsel %vm1707_vm6, %v7675_v14, %v1704_v10  ;;  %vm1737_vm14 = vmor %vm1735_vm13, %vm1736_vm12  ;;  %vm2411_vm6 = vweird.f32 %v9160_v48 }
 0x429   : > { %v1600_v22 = vsub.f32 %v8926_v50, %v1579_v26  ;;  %v1713_v35 = vsel %vm1710_vm7, %v1712_v43, %v1708_v44  ;;  %v2399_v50 = vsel %vm9187_vm9, %v9084_v60, %v2395_v4  ;;  %v1732_v60 = vsub.f32 1.0, %v1731_v11 }
 0x42a   : > { %v1714_v12 = vmul.f32 %v8908_v32, %v1713_v35  ;;  %v2404_v57 = vsel %vm2401_vm11, %v2403_v23, %v2399_v50  ;;  %vm1740_vm1 = vcmp.eq.f32.partialorder %v1739_v39, 8.507059e+37 }
 0x42b   : > { %v1626_v62 = vmul.f32 1.442695, %v1600_v22  ;;  %v2405_v58 = vmul.f32 %v8895_v24, %v2404_v57  ;;  %v9205_v47 = vpop.eup %7682 }
 0x42c   : > { %1654 = vadd.xlane.f32.xlu0 %v9148_v21  ;;  %v1911_v32 = vpack.c.bf16 %v1729_v25, %v1714_v12 }
 0x42d   : > { %7684 = vpow2.f32 %v1626_v62  ;;  %v1585_v55 = vpop.xlane.xlu2 %1584  ;;  %v2500_v36 = vpack.c.bf16 %v2405_v58, %v2390_v37 }
 0x42e   : > { %v1603_v5 = vsub.f32 %v8930_v51, %v1585_v55  ;;  %1979 = vmatmul.bf16.gmra.mxu0 %v1911_v32  ;;  %v1733_v51 = vmul.f32 %v9180_v61, %v1732_v60 }
 0x430   : > { %v1649_v18 = vpop.xlane.xlu1 %1648  ;;  %v1632_v19 = vmul.f32 1.442695, %v1603_v5  ;;  %v1734_v24 = vadd.f32 %v9180_v61, %v1733_v51 }
 0x431   : > { %7686 = vrcp.f32 %v1649_v18  ;;  %v1756_v38 = vand.u32 2147483648, %v1649_v18  ;;  %v1754_v44 = vand.u32 2147483647, %v1649_v18  ;;  %vm1750_vm2 = vweird.f32 %v1649_v18 }
 0x432   : > { %7688 = vpow2.f32 %v1632_v19  ;;  %v1738_v13 = vsel %vm1737_vm14, %v9180_v61, %v1734_v24 }
 0x433   : > { %v9207_v49 = vpop.eup %7684  ;;  %v1757_v6 = vor.u32 1.1754944e-38, %v1756_v38  ;;  %vm1755_vm4 = vcmp.eq.f32.partialorder %v1754_v44, 8.507059e+37 }
 0x434   : > { %2254 = vadd.xlane.f32.xlu0 %v9205_v47  ;;  %1658 = vadd.xlane.f32.xlu1 %v9207_v49 }
 0x436   : > { %2556 = vmatmul.bf16.gmra.mxu2 %v2500_v36 }
 0x437   : > { %v7687_v27 = vpop.eup %7686 }
 0x438   : > { %v1746_v20 = vmul.f32 %v7687_v27, %v1649_v18  ;;  %v1583_v53 = vpop.xlane.xlu1 %1582  ;;  %v9218_v43 = vpop.eup %7688  ;;  %vm1751_vm15 = vweird.f32 %v7687_v27 }
 0x439   : > { %v1602_v10 = vsub.f32 %v8938_v15, %v1583_v53  ;;  %v1742_v15 = vor.u32 1.1754944e-38, %v1741_v40  ;;  %vm1752_vm3 = vmor %vm1750_vm2, %vm1751_vm15  ;;  %v2415_v40 = vand.u32 2147483647, %v9160_v48 }
 0x43a   : > { %v1747_v4 = vsub.f32 1.0, %v1746_v20 }
 0x43b   : > { %v1630_v33 = vmul.f32 1.442695, %v1602_v10  ;;  %v1743_v16 = vsel %vm1740_vm1, %v1742_v15, %v1738_v13  ;;  %v2417_v10 = vand.u32 2147483648, %v9160_v48  ;;  %v7378_v15 = vld [vmem:[%s12202_s8 + $0x38] sm:$0xff]  ;;  %vm2416_vm8 = vcmp.eq.f32.partialorder %v2415_v40, 8.507059e+37 }
 0x43c   : > { %1664 = vadd.xlane.f32.xlu1 %v9218_v43  ;;  %v1748_v26 = vmul.f32 %v7687_v27, %v1747_v4  ;;  %v1744_v12 = vmul.f32 %v8904_v42, %v1743_v16  ;;  %2733 = vmatpush.bf16.xpose.msrb.mxu3 %v7378_v15 }
 0x43d   : > { %7690 = vpow2.f32 %v1630_v33 }
 0x43e   : > { %v1749_v17 = vadd.f32 %v7687_v27, %v1748_v26 }
 0x440   : > { %v9222_v22 = vpop.xlane.xlu1 %1652  ;;  %v1753_v35 = vsel %vm1752_vm3, %v7687_v27, %v1749_v17  ;;  %v2418_v17 = vor.u32 1.1754944e-38, %v2417_v10 }
 0x441   : > { %v1758_v14 = vsel %vm1755_vm4, %v1757_v6, %v1753_v35  ;;  %vm1780_vm11 = vweird.f32 %v9222_v22 }
 0x442   : > { %v1759_v61 = vmul.f32 %v8933_v34, %v1758_v14 }
 0x443   : > { %v9226_v25 = vpop.eup %7690 }
 0x444   : > { %1662 = vadd.xlane.f32.xlu0 %v9226_v25  ;;  %v1912_v30 = vpack.c.bf16 %v1759_v61, %v1744_v12 }
 0x446   : > { %1984 = vmatmul.bf16.gmra.mxu0 %v1912_v30 }
 0x448   : > { %v1587_v50 = vpop.xlane.xlu1 %1586 }
 0x449   : > { %v1604_v62 = vsub.f32 %v8945_v52, %v1587_v50 }
 0x44b   : > { %v1634_v28 = vmul.f32 1.442695, %v1604_v62 }
 0x44d   : > { %7692 = vpow2.f32 %v1634_v28  ;;  %v1786_v28 = vand.u32 2147483648, %v9222_v22 }
 0x44e   : > { %7694 = vrcp.f32 %v9160_v48 }
 0x453   : > { %v9230_v23 = vpop.eup %7692 }
 0x454   : > { %1666 = vadd.xlane.f32.xlu2 %v9230_v23  ;;  %v7695_v5 = vpop.eup %7694 }
 0x455   : > { %v2407_v60 = vmul.f32 %v7695_v5, %v9160_v48  ;;  %vm2412_vm5 = vweird.f32 %v7695_v5 }
 0x456   : > { %vm9254_vm7 = vmor %vm2411_vm6, %vm2412_vm5 }
 0x457   : > { %v2408_v36 = vsub.f32 1.0, %v2407_v60 }
 0x459   : > { %v2409_v51 = vmul.f32 %v7695_v5, %v2408_v36 }
 0x45b   : > { %v2410_v24 = vadd.f32 %v7695_v5, %v2409_v51  ;;  %v1787_v51 = vor.u32 1.1754944e-38, %v1786_v28 }
 0x45d   : > { %v2414_v44 = vsel %vm9254_vm7, %v7695_v5, %v2410_v24 }
 0x45e   : > { %v2419_v14 = vsel %vm2416_vm8, %v2418_v17, %v2414_v44 }
 0x466   : > { %v2537_v11 = vpop.f32.mrf.mxu2 }
 0x46d   : > { %v9233_v32 = vpop.xlane.xlu2 %2248 }
 0x46e   : > { %v2539_v42 = vpop.f32.mrf.mxu2  ;;  %vm2441_vm5 = vweird.f32 %v9233_v32 }
 0x46f   : > { %v7504_v34 = vpack.i.bf16 %v2539_v42, %v2537_v11 }
 0x471   : > { %7505 = vrot.lane.b32.xlu1 %v7504_v34, %s8013_s29  ;;  %v1784_v34 = vand.u32 2147483647, %v9222_v22 }
 0x473   : > { %vm1785_vm1 = vcmp.eq.f32.partialorder %v1784_v34, 8.507059e+37 }
 0x475   : > { %v1589_v55 = vpop.xlane.xlu2 %1588  ;;  %v9252_v39 = vpop.xlane.xlu1 %1656 }
 0x476   : > { %v1605_v63 = vsub.f32 %v9040_v45, %v1589_v55 }
 0x477   : > { %v2542_v57 = vpop.f32.mrf.mxu2 }
 0x478   : > { %v1636_v52 = vmul.f32 1.442695, %v1605_v63 }
 0x47a   : > { %7696 = vpow2.f32 %v1636_v52 }
 0x47b   : > { %7698 = vrcp.f32 %v9222_v22 }
 0x47f   : > { %v2544_v18 = vpop.f32.mrf.mxu2 }
 0x480   : > { %v9240_v37 = vpop.eup %7696  ;;  %v7509_v58 = vpack.i.bf16 %v2544_v18, %v2542_v57  ;;  %v2420_v57 = vmul.f32 %v8922_v0, %v2419_v14 }
 0x481   : > { %1668 = vadd.xlane.f32.xlu0 %v9240_v37  ;;  %v9244_v19 = vpop.eup %7698 }
 0x482   : > { %7510 = vrot.lane.b32.xlu2 %v7509_v58, %s8013_s29  ;;  %v1776_v45 = vmul.f32 %v9244_v19, %v9222_v22  ;;  %vm1781_vm9 = vweird.f32 %v9244_v19  ;;  %v7377_v22 = vld [vmem:[%s12202_s8 + $0x30] sm:$0xff] }
 0x483   : > { %vm9277_vm13 = vmor %vm1780_vm11, %vm1781_vm9  ;;  %2734 = vmatpush.bf16.xpose.msrb.mxu3 %v7377_v22 }
 0x484   : > { %v1777_v53 = vsub.f32 1.0, %v1776_v45 }
 0x485   : > { %v9282_v63 = vpop.xlane.xlu2 %2252 }
 0x486   : > { %v1778_v38 = vmul.f32 %v9244_v19, %v1777_v53 }
 0x487   : > { %v2547_v27 = vpop.f32.mrf.mxu2  ;;  %v2247_v20 = vpop.xlane.xlu0 %2246 }
 0x488   : > { %7700 = vrcp.f32 %v2247_v20  ;;  %v2432_v35 = vand.u32 2147483648, %v2247_v20  ;;  %v1779_v12 = vadd.f32 %v9244_v19, %v1778_v38  ;;  %v2430_v50 = vand.u32 2147483647, %v2247_v20 }
 0x489   : > { %7702 = vrcp.f32 %v9233_v32  ;;  %vm2426_vm12 = vweird.f32 %v2247_v20 }
 0x48a   : > { %v2433_v52 = vor.u32 1.1754944e-38, %v2432_v35  ;;  %vm2431_vm15 = vcmp.eq.f32.partialorder %v2430_v50, 8.507059e+37  ;;  %v1783_v36 = vsel %vm9277_vm13, %v9244_v19, %v1779_v12  ;;  %v7376_v12 = vld [vmem:[%s12202_s8 + $0x28] sm:$0xff] }
 0x48b   : > { %v1788_v19 = vsel %vm1785_vm1, %v1787_v51, %v1783_v36  ;;  %2735 = vmatpush.bf16.xpose.msrb.mxu3 %v7376_v12  ;;  %v1816_v36 = vand.u32 2147483648, %v9252_v39 }
 0x48c   : > { %v1789_v15 = vmul.f32 %v8941_v46, %v1788_v19 }
 0x48e   : > { %v7701_v4 = vpop.eup %7700 }
 0x48f   : > { %v2422_v13 = vmul.f32 %v7701_v4, %v2247_v20  ;;  %v9259_v26 = vpop.xlane.xlu0 %1650  ;;  %v2549_v48 = vpop.f32.mrf.mxu2  ;;  %vm2427_vm10 = vweird.f32 %v7701_v4 }
 0x490   : > { %7704 = vrcp.f32 %v9259_v26  ;;  %v9267_v16 = vpop.eup %7702  ;;  %v7514_v30 = vpack.i.bf16 %v2549_v48, %v2547_v27  ;;  %vm2428_vm14 = vmor %vm2426_vm12, %vm2427_vm10  ;;  %v1771_v40 = vand.u32 2147483648, %v9259_v26  ;;  %v1769_v33 = vand.u32 2147483647, %v9259_v26 }
 0x491   : > { %7706 = vrcp.f32 %v9252_v39  ;;  %v2423_v6 = vsub.f32 1.0, %v2422_v13  ;;  %v2437_v62 = vmul.f32 %v9267_v16, %v9233_v32  ;;  %vm1765_vm3 = vweird.f32 %v9259_v26 }
 0x492   : > { %v1772_v14 = vor.u32 1.1754944e-38, %v1771_v40  ;;  %vm1770_vm6 = vcmp.eq.f32.partialorder %v1769_v33, 8.507059e+37  ;;  %vm2442_vm7 = vweird.f32 %v9267_v16  ;;  %v1814_v40 = vand.u32 2147483647, %v9252_v39 }
 0x493   : > { %v2424_v61 = vmul.f32 %v7701_v4, %v2423_v6  ;;  %v2438_v45 = vsub.f32 1.0, %v2437_v62  ;;  %v2445_v62 = vand.u32 2147483647, %v9233_v32  ;;  %vm9336_vm8 = vmor %vm2441_vm5, %vm2442_vm7  ;;  %vm2471_vm7 = vweird.f32 %v9282_v63 }
 0x494   : > { %v9313_v17 = vpop.xlane.xlu2 %1660 }
 0x495   : > { %7515 = vrot.lane.b32.xlu0 %v7514_v30, %s8013_s29  ;;  %v2425_v11 = vadd.f32 %v7701_v4, %v2424_v61  ;;  %v2447_v61 = vand.u32 2147483648, %v9233_v32  ;;  %v7375_v32 = vld [vmem:[%s12202_s8 + $0x20] sm:$0xff]  ;;  %vm2446_vm11 = vcmp.eq.f32.partialorder %v2445_v62, 8.507059e+37 }
 0x496   : > { %v7705_v55 = vpop.eup %7704  ;;  %2736 = vmatpush.bf16.xpose.msrb.mxu3 %v7375_v32 }
 0x497   : > { %v9285_v5 = vpop.eup %7706  ;;  %v1761_v60 = vmul.f32 %v7705_v55, %v9259_v26  ;;  %v9288_v18 = vpop.xlane.xlu0 %2250  ;;  %v2429_v58 = vsel %vm2428_vm14, %v7701_v4, %v2425_v11  ;;  %vm1766_vm2 = vweird.f32 %v7705_v55  ;;  %v2439_v4 = vmul.f32 %v9267_v16, %v2438_v45 }
 0x498   : > { %7708 = vrcp.f32 %v9288_v18  ;;  %v2434_v0 = vsel %vm2431_vm15, %v2433_v52, %v2429_v58  ;;  %v1806_v53 = vmul.f32 %v9285_v5, %v9252_v39  ;;  %vm9305_vm4 = vmor %vm1765_vm3, %vm1766_vm2  ;;  %v2460_v58 = vand.u32 2147483647, %v9288_v18 }
 0x499   : > { %7710 = vrcp.f32 %v9282_v63  ;;  %v1762_v27 = vsub.f32 1.0, %v1761_v60  ;;  %v2435_v20 = vmul.f32 %v9074_v56, %v2434_v0  ;;  %v2440_v46 = vadd.f32 %v9267_v16, %v2439_v4 }
 0x49a   : > { %v1807_v13 = vsub.f32 1.0, %v1806_v53  ;;  %vm2456_vm10 = vweird.f32 %v9288_v18  ;;  %vm1811_vm13 = vweird.f32 %v9285_v5  ;;  %vm1810_vm14 = vweird.f32 %v9252_v39 }
 0x49b   : > { %v2501_v24 = vpack.c.bf16 %v2435_v20, %v2420_v57  ;;  %v1763_v10 = vmul.f32 %v7705_v55, %v1762_v27  ;;  %v2444_v60 = vsel %vm9336_vm8, %v9267_v16, %v2440_v46  ;;  %vm2461_vm15 = vcmp.eq.f32.partialorder %v2460_v58, 8.507059e+37  ;;  %vm9370_vm1 = vmor %vm1810_vm14, %vm1811_vm13  ;;  %v7374_v57 = vld [vmem:[%s12202_s8 + $0x18] sm:$0xff] }
 0x49c   : > { %v1808_v28 = vmul.f32 %v9285_v5, %v1807_v13  ;;  %v2477_v46 = vand.u32 2147483648, %v9282_v63  ;;  %vm1815_vm3 = vcmp.eq.f32.partialorder %v1814_v40, 8.507059e+37 }
 0x49d   : > { %2561 = vmatmul.bf16.gmra.mxu2 %v2501_v24  ;;  %v1764_v38 = vadd.f32 %v7705_v55, %v1763_v10 }
 0x49e   : > { %v7709_v56 = vpop.eup %7708  ;;  %v1809_v16 = vadd.f32 %v9285_v5, %v1808_v28  ;;  %2737 = vmatpush.bf16.xpose.msrb.mxu3 %v7374_v57 }
 0x49f   : > { %v9310_v48 = vpop.eup %7710  ;;  %v2452_v6 = vmul.f32 %v7709_v56, %v9288_v18  ;;  %v9316_v35 = vpop.xlane.xlu0 %1654  ;;  %v1768_v26 = vsel %vm9305_vm4, %v7705_v55, %v1764_v38  ;;  %v2462_v55 = vand.u32 2147483648, %v9288_v18  ;;  %vm2457_vm9 = vweird.f32 %v7709_v56 }
 0x4a0   : > { %7712 = vrcp.f32 %v9316_v35  ;;  %v1773_v50 = vsel %vm1770_vm6, %v1772_v14, %v1768_v26  ;;  %v2467_v11 = vmul.f32 %v9310_v48, %v9282_v63  ;;  %vm9349_vm12 = vmor %vm2456_vm10, %vm2457_vm9  ;;  %v1813_v39 = vsel %vm9370_vm1, %v9285_v5, %v1809_v16 }
 0x4a1   : > { %v2453_v30 = vsub.f32 1.0, %v2452_v6  ;;  %7714 = vrcp.f32 %v9313_v17  ;;  %v1774_v42 = vmul.f32 %v9105_v2, %v1773_v50  ;;  %v2448_v2 = vor.u32 1.1754944e-38, %v2447_v61 }
 0x4a2   : > { %v2468_v0 = vsub.f32 1.0, %v2467_v11  ;;  %v2463_v24 = vor.u32 1.1754944e-38, %v2462_v55  ;;  %v1801_v12 = vand.u32 2147483648, %v9316_v35  ;;  %vm1795_vm4 = vweird.f32 %v9316_v35 }
 0x4a3   : > { %v2454_v34 = vmul.f32 %v7709_v56, %v2453_v30  ;;  %v1913_v52 = vpack.c.bf16 %v1789_v15, %v1774_v42  ;;  %v2449_v53 = vsel %vm2446_vm11, %v2448_v2, %v2444_v60  ;;  %v1799_v30 = vand.u32 2147483647, %v9316_v35 }
 0x4a4   : > { %v2469_v44 = vmul.f32 %v9310_v48, %v2468_v0  ;;  %v2450_v15 = vmul.f32 %v9027_v29, %v2449_v53  ;;  %v2475_v50 = vand.u32 2147483647, %v9282_v63  ;;  %vm2472_vm6 = vweird.f32 %v9310_v48 }
 0x4a5   : > { %v2455_v22 = vadd.f32 %v7709_v56, %v2454_v34  ;;  %1989 = vmatmul.bf16.gmra.mxu0 %v1913_v52  ;;  %v1802_v55 = vor.u32 1.1754944e-38, %v1801_v12  ;;  %vm1800_vm8 = vcmp.eq.f32.partialorder %v1799_v30, 8.507059e+37  ;;  %vm9409_vm9 = vmor %vm2471_vm7, %vm2472_vm6  ;;  %v2478_v63 = vor.u32 1.1754944e-38, %v2477_v46 }
 0x4a6   : > { %v7713_v45 = vpop.eup %7712  ;;  %v2470_v28 = vadd.f32 %v9310_v48, %v2469_v44  ;;  %vm9413_vm10 = vcmp.eq.f32.partialorder %v2475_v50, 8.507059e+37 }
 0x4a7   : > { %v1791_v18 = vmul.f32 %v7713_v45, %v9316_v35  ;;  %v9356_v27 = vpop.xlane.xlu1 %1658  ;;  %v9358_v20 = vpop.xlane.xlu0 %2254  ;;  %v2459_v19 = vsel %vm9349_vm12, %v7709_v56, %v2455_v22  ;;  %v1817_v56 = vor.u32 1.1754944e-38, %v1816_v36  ;;  %vm1796_vm2 = vweird.f32 %v7713_v45 }
 0x4a8   : > { %v9362_v10 = vpop.eup %7714  ;;  %7716 = vrcp.f32 %v9356_v27  ;;  %v2464_v38 = vsel %vm2461_vm15, %v2463_v24, %v2459_v19  ;;  %vm9389_vm5 = vmor %vm1795_vm4, %vm1796_vm2  ;;  %v2492_v19 = vand.u32 2147483648, %v9358_v20  ;;  %vm2486_vm13 = vweird.f32 %v9358_v20 }
 0x4a9   : > { %v1792_v4 = vsub.f32 1.0, %v1791_v18  ;;  %7718 = vrcp.f32 %v9358_v20  ;;  %v2552_v33 = vpop.f32.mrf.mxu2  ;;  %v2465_v6 = vmul.f32 %v9113_v3, %v2464_v38  ;;  %v1836_v26 = vmul.f32 %v9362_v10, %v9313_v17 }
 0x4aa   : > { %v1818_v3 = vsel %vm1815_vm3, %v1817_v56, %v1813_v39  ;;  %vm1841_vm12 = vweird.f32 %v9362_v10  ;;  %vm1825_vm15 = vweird.f32 %v9356_v27  ;;  %v1831_v13 = vand.u32 2147483648, %v9356_v27 }
 0x4ab   : > { %v1793_v14 = vmul.f32 %v7713_v45, %v1792_v4  ;;  %v2502_v61 = vpack.c.bf16 %v2465_v6, %v2450_v15  ;;  %v1837_v42 = vsub.f32 1.0, %v1836_v26  ;;  %v1819_v58 = vmul.f32 %v9042_v41, %v1818_v3 }
 0x4ac   : > { %v2474_v41 = vsel %vm9409_vm9, %v9310_v48, %v2470_v28  ;;  %v2490_v4 = vand.u32 2147483647, %v9358_v20  ;;  %v7373_v48 = vld [vmem:[%s12202_s8 + $0x10] sm:$0xff]  ;;  %v2493_v44 = vor.u32 1.1754944e-38, %v2492_v19  ;;  %vm1840_vm3 = vweird.f32 %v9313_v17 }
 0x4ad   : > { %v1794_v29 = vadd.f32 %v7713_v45, %v1793_v14  ;;  %2566 = vmatmul.bf16.gmra.mxu2 %v2502_v61  ;;  %v1838_v18 = vmul.f32 %v9362_v10, %v1837_v42  ;;  %v1846_v26 = vand.u32 2147483648, %v9313_v17  ;;  %2738 = vmatpush.bf16.xpose.msrb.mxu3 %v7373_v48  ;;  %v1832_v3 = vor.u32 1.1754944e-38, %v1831_v13 }
 0x4ae   : > { %v9387_v5 = vpop.eup %7716  ;;  %vm2491_vm2 = vcmp.eq.f32.partialorder %v2490_v4, 8.507059e+37  ;;  %v1975_v4 = vpop.f32.mrf.mxu0 }
 0x4af   : > { %v7719_v11 = vpop.eup %7718  ;;  %v1821_v35 = vmul.f32 %v9387_v5, %v9356_v27  ;;  %v1798_v34 = vsel %vm9389_vm5, %v7713_v45, %v1794_v29  ;;  %v9404_v60 = vpop.xlane.xlu1 %1664  ;;  %vm1826_vm14 = vweird.f32 %v9387_v5  ;;  %v1839_v15 = vadd.f32 %v9362_v10, %v1838_v18  ;;  %vm1842_vm5 = vmor %vm1840_vm3, %vm1841_vm12 }
 0x4b0   : > { %v2482_v52 = vmul.f32 %v7719_v11, %v9358_v20  ;;  %v1803_v22 = vsel %vm1800_vm8, %v1802_v55, %v1798_v34  ;;  %7720 = vrcp.f32 %v9404_v60  ;;  %vm2487_vm11 = vweird.f32 %v7719_v11  ;;  %vm1827_vm4 = vmor %vm1825_vm15, %vm1826_vm14 }
 0x4b1   : > { %v1822_v36 = vsub.f32 1.0, %v1821_v35  ;;  %v2554_v2 = vpop.f32.mrf.mxu2  ;;  %v1804_v16 = vmul.f32 %v9148_v21, %v1803_v22  ;;  %v2479_v21 = vsel %vm9413_vm10, %v2478_v63, %v2474_v41  ;;  %vm2488_vm1 = vmor %vm2486_vm13, %vm2487_vm11  ;;  %v1829_v20 = vand.u32 2147483647, %v9356_v27 }
 0x4b2   : > { %v2483_v0 = vsub.f32 1.0, %v2482_v52  ;;  %v7519_v51 = vpack.i.bf16 %v2554_v2, %v2552_v33  ;;  %v2480_v46 = vmul.f32 %v9069_v59, %v2479_v21  ;;  %v1844_v29 = vand.u32 2147483647, %v9313_v17  ;;  %v7372_v59 = vld [vmem:[%s12202_s8 + $0x8] sm:$0xff]  ;;  %v7371_v2 = vld [vmem:[%s12202_s8] sm:$0xff] }
 0x4b3   : > { %v1823_v53 = vmul.f32 %v9387_v5, %v1822_v36  ;;  %v1914_v40 = vpack.c.bf16 %v1819_v58, %v1804_v16  ;;  %vm1830_vm6 = vcmp.eq.f32.partialorder %v1829_v20, 8.507059e+37  ;;  %v1843_v27 = vsel %vm1842_vm5, %v9362_v10, %v1839_v15 }
 0x4b4   : > { %v2484_v24 = vmul.f32 %v7719_v11, %v2483_v0  ;;  %7520 = vrot.lane.b32.xlu1 %v7519_v51, %s8013_s29  ;;  %vm1845_vm7 = vcmp.eq.f32.partialorder %v1844_v29, 8.507059e+37  ;;  %v1876_v63 = vand.u32 2147483648, %v9404_v60  ;;  %vm1870_vm12 = vweird.f32 %v9404_v60 }
 0x4b5   : > { %1994 = vmatmul.bf16.gmra.mxu0 %v1914_v40  ;;  %v1824_v38 = vadd.f32 %v9387_v5, %v1823_v53  ;;  %2739 = vmatpush.bf16.xpose.msrb.mxu3 %v7372_v59  ;;  %v1874_v0 = vand.u32 2147483647, %v9404_v60 }
 0x4b6   : > { %v2485_v33 = vadd.f32 %v7719_v11, %v2484_v24  ;;  %v7721_v39 = vpop.eup %7720  ;;  %v1877_v18 = vor.u32 1.1754944e-38, %v1876_v63  ;;  %v1977_v21 = vpop.f32.mrf.mxu0 }
 0x4b7   : > { %v1663_v56 = vpop.xlane.xlu0 %1662  ;;  %v1828_v30 = vsel %vm1827_vm4, %v9387_v5, %v1824_v38  ;;  %v1866_v50 = vmul.f32 %v7721_v39, %v9404_v60  ;;  %vm1871_vm10 = vweird.f32 %v7721_v39  ;;  %vm1875_vm15 = vcmp.eq.f32.partialorder %v1874_v0, 8.507059e+37 }
 0x4b8   : > { %7722 = vrcp.f32 %v1663_v56  ;;  %v2489_v6 = vsel %vm2488_vm1, %v7719_v11, %v2485_v33  ;;  %v1833_v28 = vsel %vm1830_vm6, %v1832_v3, %v1828_v30  ;;  %v1847_v11 = vor.u32 1.1754944e-38, %v1846_v26  ;;  %vm1872_vm13 = vmor %vm1870_vm12, %vm1871_vm10 }
 0x4b9   : > { %v2557_v14 = vpop.f32.mrf.mxu2  ;;  %v2494_v12 = vsel %vm2491_vm2, %v2493_v44, %v2489_v6  ;;  %v1867_v42 = vsub.f32 1.0, %v1866_v50  ;;  %v1834_v35 = vmul.f32 %v9207_v49, %v1833_v28  ;;  %v1861_v32 = vand.u32 2147483648, %v1663_v56 }
 0x4ba   : > { %v2495_v61 = vmul.f32 %v9205_v47, %v2494_v12  ;;  %v1848_v5 = vsel %vm1845_vm7, %v1847_v11, %v1843_v27  ;;  %vm1855_vm9 = vweird.f32 %v1663_v56  ;;  %v1859_v49 = vand.u32 2147483647, %v1663_v56 }
 0x4bb   : > { %v1849_v10 = vmul.f32 %v9123_v7, %v1848_v5  ;;  %v1868_v58 = vmul.f32 %v7721_v39, %v1867_v42  ;;  %v1862_v51 = vor.u32 1.1754944e-38, %v1861_v32 }
 0x4bc   : > { %v2503_v62 = vpack.c.bf16 %v2495_v61, %v2480_v46  ;;  %vm1860_vm14 = vcmp.eq.f32.partialorder %v1859_v49, 8.507059e+37 }
 0x4bd   : > { %v1915_v36 = vpack.c.bf16 %v1849_v10, %v1834_v35  ;;  %v1869_v45 = vadd.f32 %v7721_v39, %v1868_v58  ;;  %2740 = vmatpush.bf16.xpose.msrb.mxu3 %v7371_v2 }
 0x4be   : > { %v7723_v47 = vpop.eup %7722  ;;  %2571 = vmatmul.bf16.gmra.mxu2 %v2503_v62  ;;  %v1980_v15 = vpop.f32.mrf.mxu0 }
 0x4bf   : > { %v1851_v17 = vmul.f32 %v7723_v47, %v1663_v56  ;;  %vm1856_vm8 = vweird.f32 %v7723_v47  ;;  %v1873_v16 = vsel %vm1872_vm13, %v7721_v39, %v1869_v45 }
 0x4c0   : > { %vm1857_vm11 = vmor %vm1855_vm9, %vm1856_vm8  ;;  %v1878_v53 = vsel %vm1875_vm15, %v1877_v18, %v1873_v16 }
 0x4c1   : > { %v1852_v34 = vsub.f32 1.0, %v1851_v17  ;;  %v2559_v55 = vpop.f32.mrf.mxu2  ;;  %v1879_v24 = vmul.f32 %v9218_v43, %v1878_v53 }
 0x4c2   : > { %v7524_v57 = vpack.i.bf16 %v2559_v55, %v2557_v14 }
 0x4c3   : > { %v1853_v52 = vmul.f32 %v7723_v47, %v1852_v34 }
 0x4c4   : > { %7525 = vrot.lane.b32.xlu0 %v7524_v57, %s8013_s29 }
 0x4c5   : > { %1999 = vmatmul.bf16.gmra.mxu0 %v1915_v36  ;;  %v1854_v22 = vadd.f32 %v7723_v47, %v1853_v52 }
 0x4c6   : > { %v1982_v26 = vpop.f32.mrf.mxu0 }
 0x4c7   : > { %v1858_v7 = vsel %vm1857_vm11, %v7723_v47, %v1854_v22  ;;  %v1667_v33 = vpop.xlane.xlu2 %1666 }
 0x4c8   : > { %v1863_v41 = vsel %vm1860_vm14, %v1862_v51, %v1858_v7  ;;  %7724 = vrcp.f32 %v1667_v33  ;;  %v1891_v27 = vand.u32 2147483648, %v1667_v33  ;;  %vm1885_vm2 = vweird.f32 %v1667_v33 }
 0x4c9   : > { %v1864_v19 = vmul.f32 %v9226_v25, %v1863_v41  ;;  %v1889_v11 = vand.u32 2147483647, %v1667_v33 }
 0x4ca   : > { %v1892_v35 = vor.u32 1.1754944e-38, %v1891_v27 }
 0x4cb   : > { %v1916_v40 = vpack.c.bf16 %v1879_v24, %v1864_v19  ;;  %vm1890_vm6 = vcmp.eq.f32.partialorder %v1889_v11, 8.507059e+37 }
 0x4ce   : > { %v7725_v6 = vpop.eup %7724  ;;  %v1985_v59 = vpop.f32.mrf.mxu0 }
 0x4cf   : > { %v1881_v20 = vmul.f32 %v7725_v6, %v1667_v33  ;;  %vm1886_vm1 = vweird.f32 %v7725_v6 }
 0x4d0   : > { %vm1887_vm3 = vmor %vm1885_vm2, %vm1886_vm1 }
 0x4d1   : > { %v1882_v14 = vsub.f32 1.0, %v1881_v20 }
 0x4d3   : > { %v1883_v29 = vmul.f32 %v7725_v6, %v1882_v14 }
 0x4d5   : > { %2004 = vmatmul.bf16.gmra.mxu0 %v1916_v40  ;;  %v1884_v62 = vadd.f32 %v7725_v6, %v1883_v29 }
 0x4d6   : > { %v1987_v45 = vpop.f32.mrf.mxu0 }
 0x4d7   : > { %v1888_v5 = vsel %vm1887_vm3, %v7725_v6, %v1884_v62 }
 0x4d8   : > { %v1893_v55 = vsel %vm1890_vm6, %v1892_v35, %v1888_v5 }
 0x4d9   : > { %v1894_v58 = vmul.f32 %v9230_v23, %v1893_v55 }
 0x4dc   : > { %v7511_v25 = vpop.permute.xlu2 %7510 }
 0x4dd   : > { %v7513_v43 = vunpack.i.h.bf16 %v7511_v25  ;;  %v7512_v39 = vunpack.i.l.bf16 %v7511_v25 }
 0x4df   : > { %v2643_v46 = vsel %vm1460_vm0, %v1980_v15, %v7512_v39  ;;  %v2644_v61 = vsel %vm1460_vm0, %v1982_v26, %v7513_v43  ;;  %v9486_v26 = vld [vmem:[%s12203_s9] ss:$0 sm:$0xff] }
 0x4e0   : > { %v2658_v30 = vpack.c.bf16 %v2644_v61, %v2643_v46 }
 0x4e3   : > { %v7506_v48 = vpop.permute.xlu1 %7505 }
 0x4e4   : > { %v7508_v38 = vunpack.i.h.bf16 %v7506_v48  ;;  %v7507_v60 = vunpack.i.l.bf16 %v7506_v48 }
 0x4e6   : > { %v2641_v13 = vsel %vm1460_vm0, %v1975_v4, %v7507_v60  ;;  %v2642_v56 = vsel %vm1460_vm0, %v1977_v21, %v7508_v38 }
 0x4e7   : > { %v2657_v44 = vpack.c.bf16 %v2642_v56, %v2641_v13 }
 0x4e9   : > { %2741 = vmatmul.bf16.vlgmr.msrb.gmra.mxu3 %v2657_v44 }
 0x4f4   : > { %v1669_v12 = vpop.xlane.xlu0 %1668 }
 0x4f5   : > { %7726 = vrcp.f32 %v1669_v12  ;;  %v1906_v47 = vand.u32 2147483648, %v1669_v12  ;;  %v1904_v42 = vand.u32 2147483647, %v1669_v12  ;;  %vm1900_vm5 = vweird.f32 %v1669_v12 }
 0x4f7   : > { %v1907_v57 = vor.u32 1.1754944e-38, %v1906_v47  ;;  %vm1905_vm8 = vcmp.eq.f32.partialorder %v1904_v42, 8.507059e+37 }
 0x4f9   : > { %2746 = vmatmul.bf16.gmra.mxu3 %v2658_v30 }
 0x4fb   : > { %v7727_v3 = vpop.eup %7726 }
 0x4fc   : > { %v1896_v50 = vmul.f32 %v7727_v3, %v1669_v12  ;;  %vm1901_vm4 = vweird.f32 %v7727_v3 }
 0x4fd   : > { %vm1902_vm7 = vmor %vm1900_vm5, %vm1901_vm4 }
 0x4fe   : > { %v1897_v28 = vsub.f32 1.0, %v1896_v50 }
 0x500   : > { %v1898_v17 = vmul.f32 %v7727_v3, %v1897_v28 }
 0x502   : > { %v1899_v34 = vadd.f32 %v7727_v3, %v1898_v17 }
 0x504   : > { %v1903_v10 = vsel %vm1902_vm7, %v7727_v3, %v1899_v34 }
 0x505   : > { %v1908_v52 = vsel %vm1905_vm8, %v1907_v57, %v1903_v10  ;;  %v12297_v10 = vld [vmem:[#allocation2_spill] sm:$0xff] }
 0x506   : > { %v1909_v36 = vmul.f32 %v9240_v37, %v1908_v52 }
 0x507   : > { %v7516_v2 = vpop.permute.xlu0 %7515 }
 0x508   : > { %v7518_v22 = vunpack.i.h.bf16 %v7516_v2  ;;  %v7517_v32 = vunpack.i.l.bf16 %v7516_v2  ;;  %v1917_v49 = vpack.c.bf16 %v1909_v36, %v1894_v58 }
 0x50a   : > { %2009 = vmatmul.bf16.gmra.mxu0 %v1917_v49  ;;  %v2645_v63 = vsel %vm1460_vm0, %v1985_v59, %v7517_v32  ;;  %v2646_v7 = vsel %vm1460_vm0, %v1987_v45, %v7518_v22 }
 0x50b   : > { %v2659_v0 = vpack.c.bf16 %v2646_v7, %v2645_v63 }
 0x50d   : > { %2751 = vmatmul.bf16.gmra.mxu3 %v2659_v0  ;;  %v12298_v0 = vld [vmem:[#allocation3_spill] sm:$0xff] }
 0x520   : > { %v2562_v51 = vpop.f32.mrf.mxu2 }
 0x522   : > { %v1990_v16 = vpop.f32.mrf.mxu0 }
 0x526   : > { %v7521_v41 = vpop.permute.xlu1 %7520 }
 0x527   : > { %v7522_v18 = vunpack.i.l.bf16 %v7521_v41  ;;  %v7523_v19 = vunpack.i.h.bf16 %v7521_v41 }
 0x528   : > { %v2564_v53 = vpop.f32.mrf.mxu2 }
 0x529   : > { %v7529_v23 = vpack.i.bf16 %v2564_v53, %v2562_v51  ;;  %v2647_v40 = vsel %vm1460_vm0, %v1990_v16, %v7522_v18 }
 0x52a   : > { %v1992_v37 = vpop.f32.mrf.mxu0 }
 0x52b   : > { %7530 = vrot.lane.b32.xlu2 %v7529_v23, %s8013_s29  ;;  %v2648_v24 = vsel %vm1460_vm0, %v1992_v37, %v7523_v19 }
 0x52c   : > { %v2660_v4 = vpack.c.bf16 %v2648_v24, %v2647_v40  ;;  %v8014_v40 = vmov 128.0  }
 0x52d   : > { %7728 = vrcp.f32 %v8014_v40 }
 0x52e   : > { %2756 = vmatmul.bf16.gmra.mxu3 %v2660_v4 }
 0x530   : > { %v2567_v21 = vpop.f32.mrf.mxu2 }
 0x532   : > { %v1995_v48 = vpop.f32.mrf.mxu0 }
 0x533   : > { %v7729_v4 = vpop.eup %7728 }
 0x534   : > { %vm2837_vm9 = vweird.f32 %v7729_v4 }
 0x536   : > { %v7526_v33 = vpop.permute.xlu0 %7525 }
 0x537   : > { %v7527_v38 = vunpack.i.l.bf16 %v7526_v33  ;;  %v7528_v13 = vunpack.i.h.bf16 %v7526_v33 }
 0x538   : > { %v2569_v60 = vpop.f32.mrf.mxu2 }
 0x539   : > { %v7534_v56 = vpack.i.bf16 %v2569_v60, %v2567_v21  ;;  %v2649_v15 = vsel %vm1460_vm0, %v1995_v48, %v7527_v38  ;;  %v2833_v21 = vmul.f32 128.0, %v7729_v4 }
 0x53a   : > { %v1997_v44 = vpop.f32.mrf.mxu0 }
 0x53b   : > { %v2650_v6 = vsel %vm1460_vm0, %v1997_v44, %v7528_v13  ;;  %7535 = vrot.lane.b32.xlu1 %v7534_v56, %s8013_s29  ;;  %v2834_v48 = vsub.f32 1.0, %v2833_v21  ;;  %v12306_v21 = vld [vmem:[#allocation10_spill] sm:$0xff] }
 0x53c   : > { %v2661_v25 = vpack.c.bf16 %v2650_v6, %v2649_v15 }
 0x53d   : > { %v2835_v33 = vmul.f32 %v7729_v4, %v2834_v48 }
 0x53e   : > { %2761 = vmatmul.bf16.gmra.mxu3 %v2661_v25 }
 0x53f   : > { %v2836_v38 = vadd.f32 %v7729_v4, %v2835_v33 }
 0x541   : > { %v2572_v20 = vpop.f32.mrf.mxu2  ;;  %v9529_v60 = vsel %vm2837_vm9, %v7729_v4, %v2836_v38  ;;  %v7383_v4 = vld [vmem:[%s12206_s12 + $0x20] sm:$0xff] }
 0x542   : > { %v2000_v50 = vpop.f32.mrf.mxu0  ;;  %12299 = vst [vmem:[#allocation2_spill] sm:$0xff] %v9529_v60 }
 0x549   : > { %v2574_v43 = vpop.f32.mrf.mxu2 }
 0x54a   : > { %v7539_v39 = vpack.i.bf16 %v2574_v43, %v2572_v20  ;;  %v2002_v17 = vpop.f32.mrf.mxu0 }
 0x54c   : > { %7540 = vrot.lane.b32.xlu0 %v7539_v39, %s8013_s29 }
 0x552   : > { %v2005_v58 = vpop.f32.mrf.mxu0 }
 0x55a   : > { %v2007_v36 = vpop.f32.mrf.mxu0 }
 0x56c   : > { %v2742_v14 = vpop.f32.mrf.mxu3 }
 0x56d   : > { %v2743_v12 = vadd.f32 %v9486_v26, %v2742_v14 }
 0x56f   : > { %v9490_v46 = vadd.f32 %v2743_v12, %v8290_v8  ;;  %v12300_v12 = vld [vmem:[#allocation4_spill] sm:$0xff] }
 0x571   : > { %2800 = vadd.xlane.f32.xlu2 %v9490_v46 }
 0x574   : > { %v2744_v61 = vpop.f32.mrf.mxu3 }
 0x575   : > { %v2745_v30 = vadd.f32 %v9486_v26, %v2744_v61 }
 0x577   : > { %v9495_v29 = vadd.f32 %v2745_v30, %v8292_v9 }
 0x579   : > { %2802 = vadd.xlane.f32.xlu1 %v9495_v29 }
 0x57c   : > { %v2747_v3 = vpop.f32.mrf.mxu3 }
 0x57d   : > { %v2748_v62 = vadd.f32 %v9486_v26, %v2747_v3 }
 0x57f   : > { %v9500_v27 = vadd.f32 %v2748_v62, %v8311_v31 }
 0x581   : > { %2804 = vadd.xlane.f32.xlu0 %v9500_v27 }
 0x584   : > { %v2749_v8 = vpop.f32.mrf.mxu3 }
 0x585   : > { %v2750_v28 = vadd.f32 %v9486_v26, %v2749_v8  ;;  %v7531_v11 = vpop.permute.xlu2 %7530 }
 0x586   : > { %v7533_v59 = vunpack.i.h.bf16 %v7531_v11  ;;  %v7532_v47 = vunpack.i.l.bf16 %v7531_v11 }
 0x587   : > { %v9505_v9 = vadd.f32 %v2750_v28, %v8314_v1  ;;  %v2010_v16 = vpop.f32.mrf.mxu0 }
 0x588   : > { %v2651_v5 = vsel %vm1460_vm0, %v2000_v50, %v7532_v47  ;;  %v2652_v42 = vsel %vm1460_vm0, %v2002_v17, %v7533_v59 }
 0x589   : > { %2806 = vadd.xlane.f32.xlu2 %v9505_v9  ;;  %v2662_v31 = vpack.c.bf16 %v2652_v42, %v2651_v5 }
 0x58b   : > { %2766 = vmatmul.bf16.gmra.mxu3 %v2662_v31 }
 0x58f   : > { %v2012_v23 = vpop.f32.mrf.mxu0 }
 0x590   : > { %v2752_v35 = vpop.f32.mrf.mxu3 }
 0x591   : > { %v2753_v34 = vadd.f32 %v9486_v26, %v2752_v35 }
 0x593   : > { %v9512_v55 = vadd.f32 %v2753_v34, %v8335_v54 }
 0x595   : > { %2808 = vadd.xlane.f32.xlu1 %v9512_v55 }
 0x598   : > { %v2754_v57 = vpop.f32.mrf.mxu3 }
 0x599   : > { %v2755_v1 = vadd.f32 %v9486_v26, %v2754_v57 }
 0x59b   : > { %v9517_v52 = vadd.f32 %v2755_v1, %v12297_v10 }
 0x59d   : > { %2810 = vadd.xlane.f32.xlu2 %v9517_v52 }
 0x5ad   : > { %v7536_v2 = vpop.permute.xlu1 %7535 }
 0x5ae   : > { %v7538_v22 = vunpack.i.h.bf16 %v7536_v2  ;;  %v7537_v32 = vunpack.i.l.bf16 %v7536_v2 }
 0x5b0   : > { %v2653_v49 = vsel %vm1460_vm0, %v2005_v58, %v7537_v32  ;;  %v2654_v54 = vsel %vm1460_vm0, %v2007_v36, %v7538_v22  ;;  %v12303_v36 = vld [vmem:[#allocation8_spill] sm:$0xff] }
 0x5b1   : > { %v2757_v45 = vpop.f32.mrf.mxu3  ;;  %v2663_v63 = vpack.c.bf16 %v2654_v54, %v2653_v49 }
 0x5b2   : > { %v2758_v7 = vadd.f32 %v9486_v26, %v2757_v45  ;;  %v12304_v45 = vld [vmem:[#allocation7_spill] sm:$0xff] }
 0x5b3   : > { %2771 = vmatmul.bf16.gmra.mxu3 %v2663_v63 }
 0x5b4   : > { %v9524_v51 = vadd.f32 %v2758_v7, %v12298_v0  ;;  %v7386_v0 = vld [vmem:[%s12206_s12 + $0x38] sm:$0xff] }
 0x5b5   : > { %3241 = vmatpush.bf16.xpose.msra.mxu0 %v7386_v0 }
 0x5b6   : > { %2812 = vadd.xlane.f32.xlu2 %v9524_v51 }
 0x5b9   : > { %v2759_v44 = vpop.f32.mrf.mxu3 }
 0x5ba   : > { %v2760_v20 = vadd.f32 %v9486_v26, %v2759_v44  ;;  %v7382_v44 = vld [vmem:[%s12206_s12 + $0x18] sm:$0xff] }
 0x5bc   : > { %v9543_v61 = vadd.f32 %v2760_v20, %v12300_v12  ;;  %v7379_v12 = vld [vmem:[%s12206_s12] sm:$0xff] }
 0x5be   : > { %v7541_v41 = vpop.permute.xlu0 %7540 }
 0x5bf   : > { %v7543_v18 = vunpack.i.h.bf16 %v7541_v41  ;;  %v7542_v53 = vunpack.i.l.bf16 %v7541_v41 }
 0x5c1   : > { %v2655_v19 = vsel %vm1460_vm0, %v2010_v16, %v7542_v53  ;;  %v2656_v37 = vsel %vm1460_vm0, %v2012_v23, %v7543_v18  ;;  %v2762_v14 = vpop.f32.mrf.mxu3  ;;  %v7385_v18 = vld [vmem:[%s12206_s12 + $0x30] sm:$0xff] }
 0x5c2   : > { %v2664_v24 = vpack.c.bf16 %v2656_v37, %v2655_v19  ;;  %v2763_v3 = vadd.f32 %v9486_v26, %v2762_v14  ;;  %3242 = vmatpush.bf16.xpose.msra.mxu0 %v7385_v18  ;;  %v7384_v19 = vld [vmem:[%s12206_s12 + $0x28] sm:$0xff]  ;;  %v12305_v37 = vld [vmem:[#allocation9_spill] sm:$0xff] }
 0x5c4   : > { %2776 = vmatmul.bf16.gmra.mxu3 %v2664_v24 }
 0x5c9   : > { %v2764_v11 = vpop.f32.mrf.mxu3 }
 0x5ca   : > { %v2765_v47 = vadd.f32 %v9486_v26, %v2764_v11  ;;  %3243 = vmatpush.bf16.xpose.msra.mxu0 %v7384_v19  ;;  %v9658_v19 = vld [vmem:[%s12204_s10] ss:$0 sm:$0xff] }
 0x5d2   : > { %3244 = vmatpush.bf16.xpose.msra.mxu0 %v7383_v4 }
 0x5da   : > { %3245 = vmatpush.bf16.xpose.msra.mxu0 %v7382_v44 }
 0x5e4   : > { %v2801_v13 = vpop.xlane.xlu2 %2800 }
 0x5e5   : > { %v2839_v56 = vmul.f32 %v9529_v60, %v2801_v13  ;;  %v12307_v13 = vld [vmem:[#allocation11_spill] sm:$0xff] }
 0x5e7   : > { %v9533_v15 = vsub.f32 %v9490_v46, %v2839_v56 }
 0x5e9   : > { %v2871_v6 = vmul.f32 %v9533_v15, %v9533_v15 }
 0x5eb   : > { %2887 = vadd.xlane.f32.xlu0 %v2871_v6  ;;  %v7381_v6 = vld [vmem:[%s12206_s12 + $0x10] sm:$0xff] }
 0x5ec   : > { %v2803_v25 = vpop.xlane.xlu1 %2802  ;;  %3246 = vmatpush.bf16.xpose.msra.mxu0 %v7381_v6 }
 0x5ed   : > { %v2840_v43 = vmul.f32 %v9529_v60, %v2803_v25  ;;  %v7380_v25 = vld [vmem:[%s12206_s12 + $0x8] sm:$0xff] }
 0x5ef   : > { %v9540_v39 = vsub.f32 %v9495_v29, %v2840_v43  ;;  %v12301_v29 = vld [vmem:[#allocation6_spill] sm:$0xff] }
 0x5f0   : > { %v9554_v8 = vadd.f32 %v2763_v3, %v12301_v29 }
 0x5f1   : > { %v2872_v46 = vmul.f32 %v9540_v39, %v9540_v39 }
 0x5f3   : > { %2814 = vadd.xlane.f32.xlu0 %v9543_v61  ;;  %2889 = vadd.xlane.f32.xlu1 %v2872_v46 }
 0x5f4   : > { %v2805_v30 = vpop.xlane.xlu0 %2804  ;;  %3247 = vmatpush.bf16.xpose.msra.mxu0 %v7380_v25 }
 0x5f5   : > { %v2841_v50 = vmul.f32 %v9529_v60, %v2805_v30 }
 0x5f7   : > { %v9551_v62 = vsub.f32 %v9500_v27, %v2841_v50  ;;  %v12302_v27 = vld [vmem:[#allocation5_spill] sm:$0xff] }
 0x5f8   : > { %v9565_v42 = vadd.f32 %v2765_v47, %v12302_v27 }
 0x5f9   : > { %v2873_v28 = vmul.f32 %v9551_v62, %v9551_v62 }
 0x5fb   : > { %2816 = vadd.xlane.f32.xlu0 %v9554_v8  ;;  %2891 = vadd.xlane.f32.xlu1 %v2873_v28 }
 0x5fc   : > { %v2807_v59 = vpop.xlane.xlu2 %2806  ;;  %3248 = vmatpush.bf16.xpose.msra.mxu0 %v7379_v12 }
 0x5fd   : > { %v2842_v17 = vmul.f32 %v9529_v60, %v2807_v59 }
 0x5ff   : > { %v9562_v5 = vsub.f32 %v9505_v9, %v2842_v17 }
 0x601   : > { %v2874_v31 = vmul.f32 %v9562_v5, %v9562_v5 }
 0x603   : > { %2893 = vadd.xlane.f32.xlu2 %v2874_v31  ;;  %2818 = vadd.xlane.f32.xlu1 %v9565_v42 }
 0x608   : > { %v2809_v35 = vpop.xlane.xlu1 %2808 }
 0x609   : > { %v2843_v34 = vmul.f32 %v9529_v60, %v2809_v35 }
 0x60b   : > { %v9572_v57 = vsub.f32 %v9512_v55, %v2843_v34 }
 0x60d   : > { %v2875_v1 = vmul.f32 %v9572_v57, %v9572_v57 }
 0x60e   : > { %v2767_v9 = vpop.f32.mrf.mxu3 }
 0x60f   : > { %v2768_v10 = vadd.f32 %v9486_v26, %v2767_v9  ;;  %2895 = vadd.xlane.f32.xlu2 %v2875_v1 }
 0x610   : > { %v2811_v58 = vpop.xlane.xlu2 %2810 }
 0x611   : > { %v9578_v2 = vadd.f32 %v2768_v10, %v12303_v36  ;;  %v2844_v22 = vmul.f32 %v9529_v60, %v2811_v58 }
 0x613   : > { %2820 = vadd.xlane.f32.xlu1 %v9578_v2  ;;  %v9583_v32 = vsub.f32 %v9517_v52, %v2844_v22 }
 0x615   : > { %v2876_v55 = vmul.f32 %v9583_v32, %v9583_v32 }
 0x616   : > { %v2769_v49 = vpop.f32.mrf.mxu3 }
 0x617   : > { %v2770_v54 = vadd.f32 %v9486_v26, %v2769_v49  ;;  %2897 = vadd.xlane.f32.xlu0 %v2876_v55 }
 0x619   : > { %v9589_v63 = vadd.f32 %v2770_v54, %v12304_v45 }
 0x61b   : > { %2822 = vadd.xlane.f32.xlu2 %v9589_v63 }
 0x629   : > { %v2813_v7 = vpop.xlane.xlu2 %2812 }
 0x62a   : > { %v2845_v52 = vmul.f32 %v9529_v60, %v2813_v7 }
 0x62c   : > { %v9597_v16 = vsub.f32 %v9524_v51, %v2845_v52 }
 0x62e   : > { %v2877_v41 = vmul.f32 %v9597_v16, %v9597_v16 }
 0x630   : > { %2899 = vadd.xlane.f32.xlu0 %v2877_v41 }
 0x636   : > { %v2772_v53 = vpop.f32.mrf.mxu3 }
 0x637   : > { %v2773_v23 = vadd.f32 %v9486_v26, %v2772_v53 }
 0x639   : > { %v9609_v24 = vadd.f32 %v2773_v23, %v12305_v37 }
 0x63b   : > { %2824 = vadd.xlane.f32.xlu2 %v9609_v24 }
 0x63e   : > { %v2774_v51 = vpop.f32.mrf.mxu3 }
 0x63f   : > { %v2775_v40 = vadd.f32 %v9486_v26, %v2774_v51 }
 0x641   : > { %v9617_v48 = vadd.f32 %v2775_v40, %v12306_v21  ;;  %v12308_v21 = vld [vmem:[#allocation12_spill] sm:$0xff] }
 0x643   : > { %2826 = vadd.xlane.f32.xlu0 %v9617_v48 }
 0x647   : > { %v2777_v33 = vpop.f32.mrf.mxu3 }
 0x648   : > { %v2778_v38 = vadd.f32 %v9486_v26, %v2777_v33 }
 0x64a   : > { %v9622_v56 = vadd.f32 %v2778_v38, %v12307_v13 }
 0x64c   : > { %2828 = vadd.xlane.f32.xlu0 %v9622_v56 }
 0x64f   : > { %v2779_v49 = vpop.f32.mrf.mxu3 }
 0x65e   : > { %v2888_v20 = vpop.xlane.xlu0 %2887 }
 0x65f   : > { %v2919_v43 = vmul.f32 %v2888_v20, %v9529_v60 }
 0x661   : > { %v2935_v14 = vadd.f32 1e-05, %v2919_v43 }
 0x663   : > { %7730 = vrsqrt.f32 %v2935_v14  ;;  %vm2957_vm11 = vweird.f32 %v2935_v14 }
 0x666   : > { %v2815_v46 = vpop.xlane.xlu0 %2814  ;;  %v2890_v30 = vpop.xlane.xlu1 %2889 }
 0x667   : > { %v2846_v3 = vmul.f32 %v9529_v60, %v2815_v46  ;;  %v2920_v50 = vmul.f32 %v2890_v30, %v9529_v60 }
 0x669   : > { %v7731_v29 = vpop.eup %7730  ;;  %v9641_v28 = vsub.f32 %v9543_v61, %v2846_v3  ;;  %v2936_v11 = vadd.f32 1e-05, %v2920_v50 }
 0x66a   : > { %v2952_v59 = vmul.f32 %v7731_v29, %v2935_v14  ;;  %vm2958_vm10 = vweird.f32 %v7731_v29 }
 0x66b   : > { %7732 = vrsqrt.f32 %v2936_v11  ;;  %v2878_v47 = vmul.f32 %v9641_v28, %v9641_v28  ;;  %vm2959_vm12 = vmor %vm2957_vm11, %vm2958_vm10  ;;  %vm2967_vm14 = vweird.f32 %v2936_v11 }
 0x66c   : > { %v2953_v17 = vmul.f32 %v7731_v29, %v2952_v59 }
 0x66d   : > { %2901 = vadd.xlane.f32.xlu1 %v2878_v47 }
 0x66e   : > { %v2954_v27 = vmul.f32 0.5, %v2953_v17  ;;  %v2817_v31 = vpop.xlane.xlu0 %2816  ;;  %v2892_v35 = vpop.xlane.xlu1 %2891 }
 0x66f   : > { %v2847_v34 = vmul.f32 %v9529_v60, %v2817_v31  ;;  %v2921_v1 = vmul.f32 %v2892_v35, %v9529_v60 }
 0x670   : > { %v2955_v9 = vsub.f32 1.5, %v2954_v27 }
 0x671   : > { %v7733_v10 = vpop.eup %7732  ;;  %v9648_v61 = vsub.f32 %v9554_v8, %v2847_v34  ;;  %v2937_v58 = vadd.f32 1e-05, %v2921_v1  ;;  %v2780_v8 = vadd.f32 %v9486_v26, %v2779_v49 }
 0x672   : > { %v2956_v36 = vmul.f32 %v7731_v29, %v2955_v9  ;;  %v2962_v22 = vmul.f32 %v7733_v10, %v2936_v11  ;;  %vm2968_vm13 = vweird.f32 %v7733_v10 }
 0x673   : > { %7734 = vrsqrt.f32 %v2937_v58  ;;  %v2879_v55 = vmul.f32 %v9648_v61, %v9648_v61  ;;  %v9665_v33 = vadd.f32 %v2780_v8, %v12308_v21  ;;  %vm2969_vm15 = vmor %vm2967_vm14, %vm2968_vm13  ;;  %vm2977_vm2 = vweird.f32 %v2937_v58 }
 0x674   : > { %v2963_v54 = vmul.f32 %v7733_v10, %v2962_v22  ;;  %v2960_v45 = vsel %vm2959_vm12, %v7731_v29, %v2956_v36 }
 0x675   : > { %2903 = vadd.xlane.f32.xlu1 %v2879_v55  ;;  %v3111_v37 = vmul.f32 %v2960_v45, %v9533_v15 }
 0x676   : > { %v2964_v7 = vmul.f32 0.5, %v2963_v54  ;;  %v2894_v0 = vpop.xlane.xlu2 %2893  ;;  %v2819_v52 = vpop.xlane.xlu1 %2818 }
 0x677   : > { %v2922_v41 = vmul.f32 %v2894_v0, %v9529_v60  ;;  %v2848_v18 = vmul.f32 %v9529_v60, %v2819_v52  ;;  %v3130_v6 = vmul.f32 %v9658_v19, %v3111_v37 }
 0x678   : > { %v2965_v53 = vsub.f32 1.5, %v2964_v7 }
 0x679   : > { %v7735_v23 = vpop.eup %7734  ;;  %v2938_v51 = vadd.f32 1e-05, %v2922_v41  ;;  %v9662_v40 = vsub.f32 %v9565_v42, %v2848_v18  ;;  %v9675_v42 = vld [vmem:[%s12205_s11] ss:$0 sm:$0xff] }
 0x67a   : > { %v2966_v4 = vmul.f32 %v7733_v10, %v2965_v53  ;;  %v2972_v26 = vmul.f32 %v7735_v23, %v2937_v58  ;;  %v9679_v12 = vadd.f32 %v9675_v42, %v3130_v6  ;;  %vm2978_vm1 = vweird.f32 %v7735_v23 }
 0x67b   : > { %7736 = vrsqrt.f32 %v2938_v51  ;;  %v2880_v38 = vmul.f32 %v9662_v40, %v9662_v40  ;;  %vm2979_vm3 = vmor %vm2977_vm2, %vm2978_vm1  ;;  %vm2987_vm5 = vweird.f32 %v2938_v51 }
 0x67c   : > { %v2970_v13 = vsel %vm2969_vm15, %v7733_v10, %v2966_v4  ;;  %v2973_v44 = vmul.f32 %v7735_v23, %v2972_v26 }
 0x67d   : > { %v3112_v15 = vmul.f32 %v2970_v13, %v9540_v39  ;;  %2830 = vadd.xlane.f32.xlu1 %v9665_v33  ;;  %2905 = vadd.xlane.f32.xlu2 %v2880_v38 }
 0x67e   : > { %v2974_v25 = vmul.f32 0.5, %v2973_v44 }
 0x67f   : > { %v3131_v20 = vmul.f32 %v9658_v19, %v3112_v15 }
 0x680   : > { %v2975_v43 = vsub.f32 1.5, %v2974_v25 }
 0x681   : > { %v7737_v14 = vpop.eup %7736  ;;  %v9682_v46 = vadd.f32 %v9675_v42, %v3131_v20 }
 0x682   : > { %v2976_v39 = vmul.f32 %v7735_v23, %v2975_v43  ;;  %v2982_v30 = vmul.f32 %v7737_v14, %v2938_v51  ;;  %v2896_v3 = vpop.xlane.xlu2 %2895  ;;  %vm2988_vm4 = vweird.f32 %v7737_v14 }
 0x683   : > { %v2923_v50 = vmul.f32 %v2896_v3, %v9529_v60  ;;  %v3165_v29 = vpack.c.bf16 %v9682_v46, %v9679_v12  ;;  %vm2989_vm6 = vmor %vm2987_vm5, %vm2988_vm4 }
 0x684   : > { %v2983_v11 = vmul.f32 %v7737_v14, %v2982_v30  ;;  %v2980_v47 = vsel %vm2979_vm3, %v7735_v23, %v2976_v39 }
 0x685   : > { %v2939_v59 = vadd.f32 1e-05, %v2923_v50  ;;  %3249 = vmatmul.bf16.vlgmr.msra.gmra.mxu0 %v3165_v29  ;;  %v3113_v1 = vmul.f32 %v2980_v47, %v9551_v62 }
 0x686   : > { %v2984_v17 = vmul.f32 0.5, %v2983_v11  ;;  %v2821_v27 = vpop.xlane.xlu1 %2820 }
 0x687   : > { %7738 = vrsqrt.f32 %v2939_v59  ;;  %v2849_v31 = vmul.f32 %v9529_v60, %v2821_v27  ;;  %vm2997_vm8 = vweird.f32 %v2939_v59 }
 0x688   : > { %v2985_v35 = vsub.f32 1.5, %v2984_v17 }
 0x689   : > { %v9689_v34 = vsub.f32 %v9578_v2, %v2849_v31  ;;  %v3132_v2 = vmul.f32 %v9658_v19, %v3113_v1 }
 0x68a   : > { %v2986_v9 = vmul.f32 %v7737_v14, %v2985_v35  ;;  %v2898_v10 = vpop.xlane.xlu0 %2897 }
 0x68b   : > { %v2924_v58 = vmul.f32 %v2898_v10, %v9529_v60  ;;  %v2881_v36 = vmul.f32 %v9689_v34, %v9689_v34  ;;  %v9703_v41 = vadd.f32 %v9675_v42, %v3132_v2  ;;  %v7392_v10 = vld [vmem:[%s12208_s14 + $0x28] sm:$0xff] }
 0x68c   : > { %v2990_v22 = vsel %vm2989_vm6, %v7737_v14, %v2986_v9 }
 0x68d   : > { %v7739_v55 = vpop.eup %7738  ;;  %v2940_v49 = vadd.f32 1e-05, %v2924_v58  ;;  %2907 = vadd.xlane.f32.xlu2 %v2881_v36  ;;  %v3114_v54 = vmul.f32 %v2990_v22, %v9562_v5  ;;  %v7391_v36 = vld [vmem:[%s12208_s14 + $0x20] sm:$0xff] }
 0x68e   : > { %v2992_v45 = vmul.f32 %v7739_v55, %v2939_v59  ;;  %v2823_v7 = vpop.xlane.xlu2 %2822  ;;  %vm2998_vm7 = vweird.f32 %v7739_v55 }
 0x68f   : > { %7740 = vrsqrt.f32 %v2940_v49  ;;  %v2850_v62 = vmul.f32 %v9529_v60, %v2823_v7  ;;  %v3133_v0 = vmul.f32 %v9658_v19, %v3114_v54  ;;  %vm2999_vm9 = vmor %vm2997_vm8, %vm2998_vm7  ;;  %vm3007_vm11 = vweird.f32 %v2940_v49 }
 0x690   : > { %v2993_v52 = vmul.f32 %v7739_v55, %v2992_v45 }
 0x691   : > { %v9700_v8 = vsub.f32 %v9589_v63, %v2850_v62  ;;  %v9706_v18 = vadd.f32 %v9675_v42, %v3133_v0  ;;  %v7388_v0 = vld [vmem:[%s12208_s14 + $0x8] sm:$0xff] }
 0x692   : > { %v2994_v5 = vmul.f32 0.5, %v2993_v52 }
 0x693   : > { %v2882_v53 = vmul.f32 %v9700_v8, %v9700_v8  ;;  %v3166_v23 = vpack.c.bf16 %v9706_v18, %v9703_v41 }
 0x694   : > { %v2995_v37 = vsub.f32 1.5, %v2994_v5 }
 0x695   : > { %v7741_v51 = vpop.eup %7740  ;;  %2909 = vadd.xlane.f32.xlu0 %v2882_v53  ;;  %3254 = vmatmul.bf16.gmra.mxu0 %v3166_v23 }
 0x696   : > { %v2996_v4 = vmul.f32 %v7739_v55, %v2995_v37  ;;  %v3002_v63 = vmul.f32 %v7741_v51, %v2940_v49  ;;  %vm3008_vm10 = vweird.f32 %v7741_v51  ;;  %v7389_v49 = vld [vmem:[%s12208_s14 + $0x10] sm:$0xff] }
 0x697   : > { %vm3009_vm12 = vmor %vm3007_vm11, %vm3008_vm10 }
 0x698   : > { %v3003_v26 = vmul.f32 %v7741_v51, %v3002_v63  ;;  %v3000_v21 = vsel %vm2999_vm9, %v7739_v55, %v2996_v4 }
 0x699   : > { %v3115_v44 = vmul.f32 %v3000_v21, %v9572_v57  ;;  %v7394_v57 = vld [vmem:[%s12208_s14 + $0x38] sm:$0xff] }
 0x69a   : > { %v3004_v38 = vmul.f32 0.5, %v3003_v26  ;;  %3382 = vmatpush.bf16.xpose.msra.mxu1 %v7394_v57  ;;  %v7387_v26 = vld [vmem:[%s12208_s14] sm:$0xff] }
 0x69b   : > { %v3134_v20 = vmul.f32 %v9658_v19, %v3115_v44 }
 0x69c   : > { %v3005_v13 = vsub.f32 1.5, %v3004_v38 }
 0x69d   : > { %v9717_v14 = vadd.f32 %v9675_v42, %v3134_v20 }
 0x69e   : > { %v3006_v6 = vmul.f32 %v7741_v51, %v3005_v13 }
 0x6a0   : > { %v3010_v15 = vsel %vm3009_vm12, %v7741_v51, %v3006_v6 }
 0x6a1   : > { %v3116_v25 = vmul.f32 %v3010_v15, %v9583_v32  ;;  %v7393_v32 = vld [vmem:[%s12208_s14 + $0x30] sm:$0xff] }
 0x6a2   : > { %3383 = vmatpush.bf16.xpose.msra.mxu1 %v7393_v32 }
 0x6a3   : > { %v3135_v43 = vmul.f32 %v9658_v19, %v3116_v25  ;;  %v2900_v3 = vpop.xlane.xlu0 %2899 }
 0x6a5   : > { %v9720_v39 = vadd.f32 %v9675_v42, %v3135_v43 }
 0x6a7   : > { %v3167_v30 = vpack.c.bf16 %v9720_v39, %v9717_v14 }
 0x6a9   : > { %3259 = vmatmul.bf16.gmra.mxu0 %v3167_v30 }
 0x6aa   : > { %3384 = vmatpush.bf16.xpose.msra.mxu1 %v7392_v10 }
 0x6ae   : > { %v2825_v50 = vpop.xlane.xlu2 %2824 }
 0x6af   : > { %v2851_v29 = vmul.f32 %v9529_v60, %v2825_v50 }
 0x6b1   : > { %v9732_v11 = vsub.f32 %v9609_v24, %v2851_v29 }
 0x6b2   : > { %3385 = vmatpush.bf16.xpose.msra.mxu1 %v7391_v36 }
 0x6b3   : > { %v2883_v59 = vmul.f32 %v9732_v11, %v9732_v11 }
 0x6b5   : > { %2911 = vadd.xlane.f32.xlu1 %v2883_v59 }
 0x6b6   : > { %v2827_v47 = vpop.xlane.xlu0 %2826 }
 0x6b7   : > { %v2852_v17 = vmul.f32 %v9529_v60, %v2827_v47 }
 0x6b9   : > { %v9738_v27 = vsub.f32 %v9617_v48, %v2852_v17  ;;  %v2925_v48 = vmul.f32 %v2900_v3, %v9529_v60 }
 0x6bb   : > { %v2884_v31 = vmul.f32 %v9738_v27, %v9738_v27  ;;  %v2941_v58 = vadd.f32 1e-05, %v2925_v48 }
 0x6bd   : > { %2913 = vadd.xlane.f32.xlu2 %v2884_v31  ;;  %7742 = vrsqrt.f32 %v2941_v58  ;;  %vm3017_vm14 = vweird.f32 %v2941_v58 }
 0x6bf   : > { %v2829_v35 = vpop.xlane.xlu0 %2828 }
 0x6c0   : > { %v2853_v1 = vmul.f32 %v9529_v60, %v2829_v35 }
 0x6c2   : > { %v9744_v24 = vsub.f32 %v9622_v56, %v2853_v1  ;;  %v7390_v56 = vld [vmem:[%s12208_s14 + $0x18] sm:$0xff] }
 0x6c3   : > { %v7743_v22 = vpop.eup %7742  ;;  %3386 = vmatpush.bf16.xpose.msra.mxu1 %v7390_v56 }
 0x6c4   : > { %v2885_v9 = vmul.f32 %v9744_v24, %v9744_v24  ;;  %v3012_v55 = vmul.f32 %v7743_v22, %v2941_v58  ;;  %vm3018_vm13 = vweird.f32 %v7743_v22 }
 0x6c5   : > { %vm3019_vm15 = vmor %vm3017_vm14, %vm3018_vm13 }
 0x6c6   : > { %2915 = vadd.xlane.f32.xlu0 %v2885_v9  ;;  %v3013_v54 = vmul.f32 %v7743_v22, %v3012_v55 }
 0x6c8   : > { %v3014_v62 = vmul.f32 0.5, %v3013_v54 }
 0x6ca   : > { %v3015_v52 = vsub.f32 1.5, %v3014_v62  ;;  %v9793_v62 = vld [vmem:[%s12207_s13] ss:$0 sm:$0xff] }
 0x6cb   : > { %3387 = vmatpush.bf16.xpose.msra.mxu1 %v7389_v49 }
 0x6cc   : > { %v3016_v51 = vmul.f32 %v7743_v22, %v3015_v52 }
 0x6ce   : > { %v3020_v21 = vsel %vm3019_vm15, %v7743_v22, %v3016_v51 }
 0x6cf   : > { %v3117_v30 = vmul.f32 %v3020_v21, %v9597_v16 }
 0x6d1   : > { %v3136_v17 = vmul.f32 %v9658_v19, %v3117_v30 }
 0x6d3   : > { %3388 = vmatpush.bf16.xpose.msra.mxu1 %v7388_v0  ;;  %v9781_v1 = vadd.f32 %v9675_v42, %v3136_v17 }
 0x6db   : > { %3389 = vmatpush.bf16.xpose.msra.mxu1 %v7387_v26 }
 0x6e0   : > { %v2902_v2 = vpop.xlane.xlu1 %2901 }
 0x6e1   : > { %v2926_v45 = vmul.f32 %v2902_v2, %v9529_v60 }
 0x6e3   : > { %v2942_v7 = vadd.f32 1e-05, %v2926_v45 }
 0x6e5   : > { %7744 = vrsqrt.f32 %v2942_v7  ;;  %vm3027_vm2 = vweird.f32 %v2942_v7 }
 0x6e8   : > { %v2904_v5 = vpop.xlane.xlu1 %2903 }
 0x6e9   : > { %v2927_v53 = vmul.f32 %v2904_v5, %v9529_v60 }
 0x6eb   : > { %v7745_v23 = vpop.eup %7744  ;;  %v2943_v37 = vadd.f32 1e-05, %v2927_v53 }
 0x6ec   : > { %v3022_v4 = vmul.f32 %v7745_v23, %v2942_v7  ;;  %vm3028_vm1 = vweird.f32 %v7745_v23 }
 0x6ed   : > { %7746 = vrsqrt.f32 %v2943_v37  ;;  %vm3029_vm3 = vmor %vm3027_vm2, %vm3028_vm1  ;;  %vm3037_vm5 = vweird.f32 %v2943_v37 }
 0x6ee   : > { %v3023_v63 = vmul.f32 %v7745_v23, %v3022_v4 }
 0x6f0   : > { %v3024_v38 = vmul.f32 0.5, %v3023_v63  ;;  %v2906_v13 = vpop.xlane.xlu2 %2905  ;;  %v2831_v44 = vpop.xlane.xlu1 %2830 }
 0x6f1   : > { %v2928_v6 = vmul.f32 %v2906_v13, %v9529_v60  ;;  %v2854_v15 = vmul.f32 %v9529_v60, %v2831_v44 }
 0x6f2   : > { %v3025_v25 = vsub.f32 1.5, %v3024_v38 }
 0x6f3   : > { %v7747_v20 = vpop.eup %7746  ;;  %v2944_v43 = vadd.f32 1e-05, %v2928_v6  ;;  %v9772_v57 = vsub.f32 %v9665_v33, %v2854_v15 }
 0x6f4   : > { %v3026_v32 = vmul.f32 %v7745_v23, %v3025_v25  ;;  %v3032_v3 = vmul.f32 %v7747_v20, %v2943_v37  ;;  %vm3038_vm4 = vweird.f32 %v7747_v20 }
 0x6f5   : > { %7748 = vrsqrt.f32 %v2944_v43  ;;  %v2886_v50 = vmul.f32 %v9772_v57, %v9772_v57  ;;  %vm3039_vm6 = vmor %vm3037_vm5, %vm3038_vm4  ;;  %vm3047_vm8 = vweird.f32 %v2944_v43 }
 0x6f6   : > { %v3030_v29 = vsel %vm3029_vm3, %v7745_v23, %v3026_v32  ;;  %v3033_v59 = vmul.f32 %v7747_v20, %v3032_v3 }
 0x6f7   : > { %2917 = vadd.xlane.f32.xlu1 %v2886_v50  ;;  %v3118_v47 = vmul.f32 %v3030_v29, %v9641_v28 }
 0x6f8   : > { %v3034_v31 = vmul.f32 0.5, %v3033_v59 }
 0x6f9   : > { %v3137_v33 = vmul.f32 %v9658_v19, %v3118_v47 }
 0x6fa   : > { %v3035_v35 = vsub.f32 1.5, %v3034_v31 }
 0x6fb   : > { %v7749_v16 = vpop.eup %7748  ;;  %v9784_v9 = vadd.f32 %v9675_v42, %v3137_v33 }
 0x6fc   : > { %v3036_v10 = vmul.f32 %v7747_v20, %v3035_v35  ;;  %v3042_v48 = vmul.f32 %v7749_v16, %v2944_v43  ;;  %vm3048_vm7 = vweird.f32 %v7749_v16 }
 0x6fd   : > { %v3168_v58 = vpack.c.bf16 %v9784_v9, %v9781_v1  ;;  %vm3049_vm9 = vmor %vm3047_vm8, %vm3048_vm7 }
 0x6fe   : > { %v3043_v28 = vmul.f32 %v7749_v16, %v3042_v48  ;;  %v3040_v36 = vsel %vm3039_vm6, %v7747_v20, %v3036_v10 }
 0x6ff   : > { %3264 = vmatmul.bf16.gmra.mxu0 %v3168_v58  ;;  %v3119_v45 = vmul.f32 %v3040_v36, %v9648_v61 }
 0x700   : > { %v3044_v56 = vmul.f32 0.5, %v3043_v28  ;;  %v2908_v22 = vpop.xlane.xlu2 %2907 }
 0x701   : > { %v2929_v55 = vmul.f32 %v2908_v22, %v9529_v60  ;;  %v3138_v5 = vmul.f32 %v9658_v19, %v3119_v45 }
 0x702   : > { %v3045_v49 = vsub.f32 1.5, %v3044_v56  ;;  %v3250_v54 = vpop.f32.mrf.mxu0 }
 0x703   : > { %v2945_v2 = vadd.f32 1e-05, %v2929_v55  ;;  %v3251_v23 = vadd.f32 %v9793_v62, %v3250_v54  ;;  %v9802_v21 = vadd.f32 %v9675_v42, %v3138_v5 }
 0x704   : > { %v3046_v7 = vmul.f32 %v7749_v16, %v3045_v49 }
 0x705   : > { %7750 = vrsqrt.f32 %v2945_v2  ;;  %v3290_v13 = vmax.f32 %v3251_v23, 0.0  ;;  %vm3057_vm11 = vweird.f32 %v2945_v2 }
 0x706   : > { %v3050_v0 = vsel %vm3049_vm9, %v7749_v16, %v3046_v7 }
 0x707   : > { %v3120_v52 = vmul.f32 %v3050_v0, %v9662_v40 }
 0x708   : > { %v2910_v53 = vpop.xlane.xlu0 %2909 }
 0x709   : > { %v2930_v37 = vmul.f32 %v2910_v53, %v9529_v60  ;;  %v3139_v61 = vmul.f32 %v9658_v19, %v3120_v52 }
 0x70a   : > { %v3252_v51 = vpop.f32.mrf.mxu0 }
 0x70b   : > { %v7751_v4 = vpop.eup %7750  ;;  %v2946_v63 = vadd.f32 1e-05, %v2930_v37  ;;  %v3253_v26 = vadd.f32 %v9793_v62, %v3252_v51  ;;  %v9805_v38 = vadd.f32 %v9675_v42, %v3139_v61 }
 0x70c   : > { %v3052_v40 = vmul.f32 %v7751_v4, %v2945_v2  ;;  %vm3058_vm10 = vweird.f32 %v7751_v4 }
 0x70d   : > { %7752 = vrsqrt.f32 %v2946_v63  ;;  %v3291_v44 = vmax.f32 %v3253_v26, 0.0  ;;  %v3169_v6 = vpack.c.bf16 %v9805_v38, %v9802_v21  ;;  %vm3059_vm12 = vmor %vm3057_vm11, %vm3058_vm10  ;;  %vm3067_vm14 = vweird.f32 %v2946_v63 }
 0x70e   : > { %v3053_v15 = vmul.f32 %v7751_v4, %v3052_v40 }
 0x70f   : > { %v3306_v25 = vpack.c.bf16 %v3291_v44, %v3290_v13  ;;  %3269 = vmatmul.bf16.gmra.mxu0 %v3169_v6 }
 0x710   : > { %v3054_v20 = vmul.f32 0.5, %v3053_v15 }
 0x711   : > { %3390 = vmatmul.bf16.vlgmr.msra.gmra.mxu1 %v3306_v25 }
 0x712   : > { %v3055_v43 = vsub.f32 1.5, %v3054_v20  ;;  %v3255_v30 = vpop.f32.mrf.mxu0 }
 0x713   : > { %v7753_v32 = vpop.eup %7752  ;;  %v3256_v17 = vadd.f32 %v9793_v62, %v3255_v30 }
 0x714   : > { %v3056_v3 = vmul.f32 %v7751_v4, %v3055_v43  ;;  %v3062_v50 = vmul.f32 %v7753_v32, %v2946_v63  ;;  %vm3068_vm13 = vweird.f32 %v7753_v32 }
 0x715   : > { %vm3069_vm15 = vmor %vm3067_vm14, %vm3068_vm13  ;;  %v3292_v48 = vmax.f32 %v3256_v17, 0.0 }
 0x716   : > { %v3063_v29 = vmul.f32 %v7753_v32, %v3062_v50  ;;  %v3060_v59 = vsel %vm3059_vm12, %v7751_v4, %v3056_v3 }
 0x717   : > { %v3121_v16 = vmul.f32 %v3060_v59, %v9689_v34 }
 0x718   : > { %v3064_v47 = vmul.f32 0.5, %v3063_v29 }
 0x719   : > { %v3140_v22 = vmul.f32 %v9658_v19, %v3121_v16 }
 0x71a   : > { %v3065_v31 = vsub.f32 1.5, %v3064_v47  ;;  %v3257_v33 = vpop.f32.mrf.mxu0 }
 0x71b   : > { %v3258_v35 = vadd.f32 %v9793_v62, %v3257_v33  ;;  %v9816_v49 = vadd.f32 %v9675_v42, %v3140_v22 }
 0x71c   : > { %v3066_v10 = vmul.f32 %v7753_v32, %v3065_v31 }
 0x71d   : > { %v3293_v58 = vmax.f32 %v3258_v35, 0.0 }
 0x71e   : > { %v3070_v28 = vsel %vm3069_vm15, %v7753_v32, %v3066_v10 }
 0x71f   : > { %v3307_v36 = vpack.c.bf16 %v3293_v58, %v3292_v48  ;;  %v3122_v56 = vmul.f32 %v3070_v28, %v9700_v8 }
 0x721   : > { %3395 = vmatmul.bf16.gmra.mxu1 %v3307_v36  ;;  %v3141_v55 = vmul.f32 %v9658_v19, %v3122_v56 }
 0x723   : > { %v9819_v54 = vadd.f32 %v9675_v42, %v3141_v55 }
 0x725   : > { %v3170_v34 = vpack.c.bf16 %v9819_v54, %v9816_v49 }
 0x726   : > { %v3260_v2 = vpop.f32.mrf.mxu0 }
 0x727   : > { %3274 = vmatmul.bf16.gmra.mxu0 %v3170_v34  ;;  %v3261_v0 = vadd.f32 %v9793_v62, %v3260_v2 }
 0x728   : > { %v2912_v45 = vpop.xlane.xlu1 %2911 }
 0x729   : > { %v2931_v7 = vmul.f32 %v2912_v45, %v9529_v60  ;;  %v3294_v53 = vmax.f32 %v3261_v0, 0.0 }
 0x72b   : > { %v2947_v8 = vadd.f32 1e-05, %v2931_v7 }
 0x72d   : > { %7754 = vrsqrt.f32 %v2947_v8  ;;  %vm3077_vm2 = vweird.f32 %v2947_v8 }
 0x72e   : > { %v3262_v52 = vpop.f32.mrf.mxu0 }
 0x72f   : > { %v3263_v5 = vadd.f32 %v9793_v62, %v3262_v52 }
 0x730   : > { %v2914_v37 = vpop.xlane.xlu2 %2913 }
 0x731   : > { %v3295_v23 = vmax.f32 %v3263_v5, 0.0  ;;  %v2932_v61 = vmul.f32 %v2914_v37, %v9529_v60 }
 0x733   : > { %v3308_v51 = vpack.c.bf16 %v3295_v23, %v3294_v53  ;;  %v7755_v4 = vpop.eup %7754  ;;  %v2948_v63 = vadd.f32 1e-05, %v2932_v61 }
 0x734   : > { %v3072_v26 = vmul.f32 %v7755_v4, %v2947_v8  ;;  %vm3078_vm1 = vweird.f32 %v7755_v4 }
 0x735   : > { %3400 = vmatmul.bf16.gmra.mxu1 %v3308_v51  ;;  %7756 = vrsqrt.f32 %v2948_v63  ;;  %vm3079_vm3 = vmor %vm3077_vm2, %vm3078_vm1  ;;  %vm3087_vm5 = vweird.f32 %v2948_v63 }
 0x736   : > { %v3073_v40 = vmul.f32 %v7755_v4, %v3072_v26 }
 0x738   : > { %v3074_v13 = vmul.f32 0.5, %v3073_v40 }
 0x73a   : > { %v3075_v44 = vsub.f32 1.5, %v3074_v13 }
 0x73b   : > { %v7757_v6 = vpop.eup %7756 }
 0x73c   : > { %v3076_v15 = vmul.f32 %v7755_v4, %v3075_v44  ;;  %v3082_v25 = vmul.f32 %v7757_v6, %v2948_v63  ;;  %vm3088_vm4 = vweird.f32 %v7757_v6 }
 0x73d   : > { %vm3089_vm6 = vmor %vm3087_vm5, %vm3088_vm4 }
 0x73e   : > { %v3083_v20 = vmul.f32 %v7757_v6, %v3082_v25  ;;  %v3080_v43 = vsel %vm3079_vm3, %v7755_v4, %v3076_v15 }
 0x73f   : > { %v3123_v3 = vmul.f32 %v3080_v43, %v9732_v11  ;;  %v2916_v11 = vpop.xlane.xlu0 %2915 }
 0x740   : > { %v3084_v30 = vmul.f32 0.5, %v3083_v20  ;;  %v2933_v16 = vmul.f32 %v2916_v11, %v9529_v60 }
 0x741   : > { %v3142_v47 = vmul.f32 %v9658_v19, %v3123_v3 }
 0x742   : > { %v3085_v32 = vsub.f32 1.5, %v3084_v30  ;;  %v2949_v10 = vadd.f32 1e-05, %v2933_v16 }
 0x743   : > { %v9832_v31 = vadd.f32 %v9675_v42, %v3142_v47 }
 0x744   : > { %v3086_v50 = vmul.f32 %v7757_v6, %v3085_v32  ;;  %7758 = vrsqrt.f32 %v2949_v10  ;;  %vm3097_vm8 = vweird.f32 %v2949_v10 }
 0x746   : > { %v3090_v29 = vsel %vm3089_vm6, %v7757_v6, %v3086_v50 }
 0x747   : > { %v3124_v59 = vmul.f32 %v3090_v29, %v9738_v27 }
 0x749   : > { %v3143_v17 = vmul.f32 %v9658_v19, %v3124_v59 }
 0x74a   : > { %v7759_v27 = vpop.eup %7758 }
 0x74b   : > { %v9835_v33 = vadd.f32 %v9675_v42, %v3143_v17  ;;  %v3092_v48 = vmul.f32 %v7759_v27, %v2949_v10  ;;  %vm3098_vm7 = vweird.f32 %v7759_v27 }
 0x74c   : > { %vm3099_vm9 = vmor %vm3097_vm8, %vm3098_vm7 }
 0x74d   : > { %v3171_v35 = vpack.c.bf16 %v9835_v33, %v9832_v31  ;;  %v3093_v58 = vmul.f32 %v7759_v27, %v3092_v48 }
 0x74f   : > { %3279 = vmatmul.bf16.gmra.mxu0 %v3171_v35  ;;  %v3094_v22 = vmul.f32 0.5, %v3093_v58 }
 0x751   : > { %v3095_v55 = vsub.f32 1.5, %v3094_v22 }
 0x753   : > { %v3096_v2 = vmul.f32 %v7759_v27, %v3095_v55 }
 0x755   : > { %v3100_v8 = vsel %vm3099_vm9, %v7759_v27, %v3096_v2 }
 0x756   : > { %v3125_v53 = vmul.f32 %v3100_v8, %v9744_v24 }
 0x758   : > { %v3144_v51 = vmul.f32 %v9658_v19, %v3125_v53 }
 0x75a   : > { %v9848_v13 = vadd.f32 %v9675_v42, %v3144_v51 }
 0x76a   : > { %v2918_v28 = vpop.xlane.xlu1 %2917 }
 0x76b   : > { %v2934_v36 = vmul.f32 %v2918_v28, %v9529_v60 }
 0x76d   : > { %v2950_v56 = vadd.f32 1e-05, %v2934_v36 }
 0x76f   : > { %7760 = vrsqrt.f32 %v2950_v56  ;;  %vm3107_vm11 = vweird.f32 %v2950_v56 }
 0x775   : > { %v7761_v34 = vpop.eup %7760 }
 0x776   : > { %v3102_v45 = vmul.f32 %v7761_v34, %v2950_v56  ;;  %vm3108_vm10 = vweird.f32 %v7761_v34 }
 0x777   : > { %vm3109_vm12 = vmor %vm3107_vm11, %vm3108_vm10 }
 0x778   : > { %v3103_v7 = vmul.f32 %v7761_v34, %v3102_v45 }
 0x77a   : > { %v3104_v0 = vmul.f32 0.5, %v3103_v7 }
 0x77c   : > { %v3105_v52 = vsub.f32 1.5, %v3104_v0  ;;  %v3265_v5 = vpop.f32.mrf.mxu0 }
 0x77d   : > { %v3266_v4 = vadd.f32 %v9793_v62, %v3265_v5 }
 0x77e   : > { %v3106_v23 = vmul.f32 %v7761_v34, %v3105_v52 }
 0x77f   : > { %v3296_v44 = vmax.f32 %v3266_v4, 0.0 }
 0x780   : > { %v3110_v37 = vsel %vm3109_vm12, %v7761_v34, %v3106_v23 }
 0x781   : > { %v3126_v61 = vmul.f32 %v3110_v37, %v9772_v57 }
 0x783   : > { %v3145_v63 = vmul.f32 %v9658_v19, %v3126_v61  ;;  %v9858_v19 = vld [vmem:[%s12209_s15] ss:$0 sm:$0xff] }
 0x784   : > { %v3267_v26 = vpop.f32.mrf.mxu0 }
 0x785   : > { %v3268_v40 = vadd.f32 %v9793_v62, %v3267_v26  ;;  %v9851_v24 = vadd.f32 %v9675_v42, %v3145_v63 }
 0x787   : > { %v3297_v6 = vmax.f32 %v3268_v40, 0.0  ;;  %v3172_v57 = vpack.c.bf16 %v9851_v24, %v9848_v13 }
 0x789   : > { %3284 = vmatmul.bf16.gmra.mxu0 %v3172_v57  ;;  %v3309_v15 = vpack.c.bf16 %v3297_v6, %v3296_v44 }
 0x78b   : > { %3405 = vmatmul.bf16.gmra.mxu1 %v3309_v15 }
 0x78c   : > { %v3270_v25 = vpop.f32.mrf.mxu0 }
 0x78d   : > { %v3271_v30 = vadd.f32 %v9793_v62, %v3270_v25 }
 0x78e   : > { %v3391_v20 = vpop.f32.mrf.mxu1 }
 0x78f   : > { %v3392_v43 = vadd.f32 %v9858_v19, %v3391_v20  ;;  %v3298_v29 = vmax.f32 %v3271_v30, 0.0 }
 0x791   : > { %v3431_v42 = vadd.f32 %v3392_v43, %v9679_v12 }
 0x793   : > { %3449 = vadd.xlane.f32.xlu2 %v3431_v42 }
 0x794   : > { %v3272_v32 = vpop.f32.mrf.mxu0 }
 0x795   : > { %v3273_v3 = vadd.f32 %v9793_v62, %v3272_v32 }
 0x796   : > { %v3393_v50 = vpop.f32.mrf.mxu1 }
 0x797   : > { %v3299_v59 = vmax.f32 %v3273_v3, 0.0  ;;  %v3394_v47 = vadd.f32 %v9858_v19, %v3393_v50 }
 0x799   : > { %v3432_v17 = vadd.f32 %v3394_v47, %v9682_v46  ;;  %v3310_v35 = vpack.c.bf16 %v3299_v59, %v3298_v29 }
 0x79b   : > { %3451 = vadd.xlane.f32.xlu0 %v3432_v17  ;;  %3410 = vmatmul.bf16.gmra.mxu1 %v3310_v35 }
 0x79e   : > { %v3396_v11 = vpop.f32.mrf.mxu1 }
 0x79f   : > { %v3397_v16 = vadd.f32 %v9858_v19, %v3396_v11 }
 0x7a1   : > { %v3433_v12 = vadd.f32 %v3397_v16, %v9703_v41 }
 0x7a3   : > { %3453 = vadd.xlane.f32.xlu1 %v3433_v12 }
 0x7a4   : > { %v3275_v10 = vpop.f32.mrf.mxu0 }
 0x7a5   : > { %v3276_v28 = vadd.f32 %v9793_v62, %v3275_v10 }
 0x7a6   : > { %v3398_v27 = vpop.f32.mrf.mxu1 }
 0x7a7   : > { %v3399_v48 = vadd.f32 %v9858_v19, %v3398_v27  ;;  %v3300_v56 = vmax.f32 %v3276_v28, 0.0 }
 0x7a9   : > { %v9870_v58 = vadd.f32 %v3399_v48, %v9706_v18 }
 0x7ab   : > { %3455 = vadd.xlane.f32.xlu2 %v9870_v58 }
 0x7ac   : > { %v3277_v46 = vpop.f32.mrf.mxu0 }
 0x7ad   : > { %v3278_v36 = vadd.f32 %v9793_v62, %v3277_v46 }
 0x7af   : > { %v3301_v22 = vmax.f32 %v3278_v36, 0.0 }
 0x7b1   : > { %v3311_v55 = vpack.c.bf16 %v3301_v22, %v3300_v56 }
 0x7b2   : > { %v3401_v34 = vpop.f32.mrf.mxu1 }
 0x7b3   : > { %v3402_v41 = vadd.f32 %v9858_v19, %v3401_v34  ;;  %3415 = vmatmul.bf16.gmra.mxu1 %v3311_v55 }
 0x7b5   : > { %v3435_v2 = vadd.f32 %v3402_v41, %v9717_v14 }
 0x7b7   : > { %3457 = vadd.xlane.f32.xlu0 %v3435_v2 }
 0x7ba   : > { %v3403_v45 = vpop.f32.mrf.mxu1 }
 0x7bb   : > { %v3404_v18 = vadd.f32 %v9858_v19, %v3403_v45 }
 0x7bd   : > { %v9879_v7 = vadd.f32 %v3404_v18, %v9720_v39 }
 0x7bf   : > { %3459 = vadd.xlane.f32.xlu1 %v9879_v7 }
 0x7cc   : > { %v3280_v8 = vpop.f32.mrf.mxu0 }
 0x7cd   : > { %v3281_v0 = vadd.f32 %v9793_v62, %v3280_v8 }
 0x7cf   : > { %v3302_v53 = vmax.f32 %v3281_v0, 0.0  ;;  %v7418_v0 = vld [vmem:[%s12200_s6 + $0x178] sm:$0xff] }
 0x7d0   : > { %4115 = vmatpush.bf16.xpose.msrb.mxu0 %v7418_v0 }
 0x7d4   : > { %v3282_v52 = vpop.f32.mrf.mxu0 }
 0x7d5   : > { %v3283_v5 = vadd.f32 %v9793_v62, %v3282_v52  ;;  %v7409_v52 = vld [vmem:[%s12200_s6 + $0x130] sm:$0xff] }
 0x7d7   : > { %v3303_v23 = vmax.f32 %v3283_v5, 0.0  ;;  %v7417_v5 = vld [vmem:[%s12200_s6 + $0x170] sm:$0xff] }
 0x7d8   : > { %4116 = vmatpush.bf16.xpose.msrb.mxu0 %v7417_v5 }
 0x7d9   : > { %v3312_v37 = vpack.c.bf16 %v3303_v23, %v3302_v53  ;;  %v7400_v53 = vld [vmem:[%s12200_s6 + $0xe8] sm:$0xff] }
 0x7da   : > { %v7408_v23 = vld [vmem:[%s12200_s6 + $0x128] sm:$0xff] }
 0x7db   : > { %3420 = vmatmul.bf16.gmra.mxu1 %v3312_v37  ;;  %v7416_v37 = vld [vmem:[%s12200_s6 + $0x168] sm:$0xff] }
 0x7e0   : > { %4117 = vmatpush.bf16.xpose.msrb.mxu0 %v7416_v37 }
 0x806   : > { %v3450_v14 = vpop.xlane.xlu2 %3449  ;;  %v3285_v61 = vpop.f32.mrf.mxu0 }
 0x807   : > { %v3481_v51 = vmul.f32 %v3450_v14, %v9529_v60  ;;  %v3286_v44 = vadd.f32 %v9793_v62, %v3285_v61 }
 0x808   : > { %v3406_v4 = vpop.f32.mrf.mxu1 }
 0x809   : > { %v9885_v63 = vsub.f32 %v3431_v42, %v3481_v51  ;;  %v3407_v39 = vadd.f32 %v9858_v19, %v3406_v4  ;;  %v3304_v43 = vmax.f32 %v3286_v44, 0.0  ;;  %v7399_v51 = vld [vmem:[%s12200_s6 + $0xe0] sm:$0xff]  ;;  %v7398_v44 = vld [vmem:[%s12200_s6 + $0xd8] sm:$0xff] }
 0x80a   : > { %v7407_v4 = vld [vmem:[%s12200_s6 + $0x120] sm:$0xff] }
 0x80b   : > { %v9889_v26 = vadd.f32 %v3407_v39, %v9781_v1  ;;  %v3513_v40 = vmul.f32 %v9885_v63, %v9885_v63  ;;  %v7415_v39 = vld [vmem:[%s12200_s6 + $0x160] sm:$0xff] }
 0x80c   : > { %4118 = vmatpush.bf16.xpose.msrb.mxu0 %v7415_v39 }
 0x80d   : > { %3529 = vadd.xlane.f32.xlu2 %v3513_v40  ;;  %3461 = vadd.xlane.f32.xlu1 %v9889_v26 }
 0x80e   : > { %v3452_v6 = vpop.xlane.xlu0 %3451  ;;  %v3287_v57 = vpop.f32.mrf.mxu0 }
 0x80f   : > { %v3482_v15 = vmul.f32 %v3452_v6, %v9529_v60  ;;  %v3288_v25 = vadd.f32 %v9793_v62, %v3287_v57  ;;  %v7406_v6 = vld [vmem:[%s12200_s6 + $0x118] sm:$0xff] }
 0x810   : > { %v3408_v20 = vpop.f32.mrf.mxu1  ;;  %v7414_v57 = vld [vmem:[%s12200_s6 + $0x158] sm:$0xff] }
 0x811   : > { %v9897_v42 = vsub.f32 %v3432_v17, %v3482_v15  ;;  %v3305_v1 = vmax.f32 %v3288_v25, 0.0  ;;  %v3409_v30 = vadd.f32 %v9858_v19, %v3408_v20  ;;  %v7405_v15 = vld [vmem:[%s12200_s6 + $0x110] sm:$0xff]  ;;  %v7396_v20 = vld [vmem:[%s12200_s6 + $0xc8] sm:$0xff] }
 0x812   : > { %v7413_v25 = vld [vmem:[%s12200_s6 + $0x150] sm:$0xff] }
 0x813   : > { %v9901_v32 = vadd.f32 %v3409_v30, %v9784_v9  ;;  %v3514_v3 = vmul.f32 %v9897_v42, %v9897_v42  ;;  %v3313_v50 = vpack.c.bf16 %v3305_v1, %v3304_v43  ;;  %v7404_v43 = vld [vmem:[%s12200_s6 + $0x108] sm:$0xff] }
 0x814   : > { %4119 = vmatpush.bf16.xpose.msrb.mxu0 %v7414_v57  ;;  %v7412_v1 = vld [vmem:[%s12200_s6 + $0x148] sm:$0xff] }
 0x815   : > { %3531 = vadd.xlane.f32.xlu0 %v3514_v3  ;;  %3463 = vadd.xlane.f32.xlu2 %v9901_v32 }
 0x816   : > { %3425 = vmatmul.bf16.gmra.mxu1 %v3313_v50  ;;  %v3454_v29 = vpop.xlane.xlu1 %3453 }
 0x817   : > { %v3483_v62 = vmul.f32 %v3454_v29, %v9529_v60 }
 0x818   : > { %v3411_v59 = vpop.f32.mrf.mxu1 }
 0x819   : > { %v9907_v47 = vsub.f32 %v3433_v12, %v3483_v62  ;;  %v3412_v17 = vadd.f32 %v9858_v19, %v3411_v59 }
 0x81b   : > { %v9911_v35 = vadd.f32 %v3412_v17, %v9802_v21  ;;  %v3515_v9 = vmul.f32 %v9907_v47, %v9907_v47 }
 0x81c   : > { %4120 = vmatpush.bf16.xpose.msrb.mxu0 %v7413_v25 }
 0x81d   : > { %3465 = vadd.xlane.f32.xlu2 %v9911_v35  ;;  %3533 = vadd.xlane.f32.xlu0 %v3515_v9  ;;  %v7395_v9 = vld [vmem:[%s12200_s6 + $0xc0] sm:$0xff] }
 0x81e   : > { %v3456_v11 = vpop.xlane.xlu2 %3455 }
 0x81f   : > { %v3484_v16 = vmul.f32 %v3456_v11, %v9529_v60  ;;  %v7403_v11 = vld [vmem:[%s12200_s6 + $0x100] sm:$0xff] }
 0x820   : > { %v3413_v10 = vpop.f32.mrf.mxu1 }
 0x821   : > { %v9918_v27 = vsub.f32 %v9870_v58, %v3484_v16  ;;  %v3414_v12 = vadd.f32 %v9858_v19, %v3413_v10  ;;  %v7411_v16 = vld [vmem:[%s12200_s6 + $0x140] sm:$0xff] }
 0x823   : > { %v9922_v48 = vadd.f32 %v3414_v12, %v9805_v38  ;;  %v3516_v21 = vmul.f32 %v9918_v27, %v9918_v27 }
 0x824   : > { %4121 = vmatpush.bf16.xpose.msrb.mxu0 %v7412_v1 }
 0x825   : > { %3535 = vadd.xlane.f32.xlu1 %v3516_v21  ;;  %3467 = vadd.xlane.f32.xlu0 %v9922_v48 }
 0x82a   : > { %v3458_v28 = vpop.xlane.xlu0 %3457 }
 0x82b   : > { %v3485_v46 = vmul.f32 %v3458_v28, %v9529_v60 }
 0x82c   : > { %4122 = vmatpush.bf16.xpose.msrb.mxu0 %v7411_v16  ;;  %v10078_v16 = vld [vmem:[%s12211_s17] ss:$0 sm:$0xff] }
 0x82d   : > { %v9928_v36 = vsub.f32 %v3435_v2, %v3485_v46 }
 0x82f   : > { %v3517_v58 = vmul.f32 %v9928_v36, %v9928_v36 }
 0x830   : > { %v3416_v56 = vpop.f32.mrf.mxu1 }
 0x831   : > { %v3417_v22 = vadd.f32 %v9858_v19, %v3416_v56  ;;  %3537 = vadd.xlane.f32.xlu1 %v3517_v58 }
 0x832   : > { %v3460_v38 = vpop.xlane.xlu1 %3459 }
 0x833   : > { %v9934_v55 = vadd.f32 %v3417_v22, %v9816_v49  ;;  %v3486_v34 = vmul.f32 %v3460_v38, %v9529_v60  ;;  %v7402_v49 = vld [vmem:[%s12200_s6 + $0xf8] sm:$0xff] }
 0x834   : > { %4017 = vmatpush.bf16.xpose.msra.mxu2 %v7402_v49 }
 0x835   : > { %v9938_v41 = vsub.f32 %v9879_v7, %v3486_v34  ;;  %3469 = vadd.xlane.f32.xlu0 %v9934_v55  ;;  %v7410_v7 = vld [vmem:[%s12200_s6 + $0x138] sm:$0xff] }
 0x836   : > { %4066 = vmatpush.bf16.xpose.msra.mxu3 %v7410_v7 }
 0x837   : > { %v3518_v2 = vmul.f32 %v9938_v41, %v9938_v41 }
 0x838   : > { %v3418_v45 = vpop.f32.mrf.mxu1 }
 0x839   : > { %v3419_v18 = vadd.f32 %v9858_v19, %v3418_v45  ;;  %3539 = vadd.xlane.f32.xlu2 %v3518_v2 }
 0x83b   : > { %v9945_v8 = vadd.f32 %v3419_v18, %v9819_v54  ;;  %v7401_v54 = vld [vmem:[%s12200_s6 + $0xf0] sm:$0xff] }
 0x83c   : > { %4018 = vmatpush.bf16.xpose.msra.mxu2 %v7401_v54 }
 0x83d   : > { %3471 = vadd.xlane.f32.xlu1 %v9945_v8 }
 0x83e   : > { %4067 = vmatpush.bf16.xpose.msra.mxu3 %v7409_v52 }
 0x844   : > { %4019 = vmatpush.bf16.xpose.msra.mxu2 %v7400_v53 }
 0x846   : > { %4068 = vmatpush.bf16.xpose.msra.mxu3 %v7408_v23 }
 0x84c   : > { %4020 = vmatpush.bf16.xpose.msra.mxu2 %v7399_v51 }
 0x84e   : > { %4069 = vmatpush.bf16.xpose.msra.mxu3 %v7407_v4 }
 0x854   : > { %4021 = vmatpush.bf16.xpose.msra.mxu2 %v7398_v44 }
 0x856   : > { %4070 = vmatpush.bf16.xpose.msra.mxu3 %v7406_v6 }
 0x858   : > { %v3421_v14 = vpop.f32.mrf.mxu1 }
 0x859   : > { %v3422_v61 = vadd.f32 %v9858_v19, %v3421_v14 }
 0x85b   : > { %v9986_v40 = vadd.f32 %v3422_v61, %v9832_v31  ;;  %v7397_v31 = vld [vmem:[%s12200_s6 + $0xd0] sm:$0xff] }
 0x85c   : > { %4022 = vmatpush.bf16.xpose.msra.mxu2 %v7397_v31 }
 0x85d   : > { %3473 = vadd.xlane.f32.xlu1 %v9986_v40 }
 0x85e   : > { %4071 = vmatpush.bf16.xpose.msra.mxu3 %v7405_v15 }
 0x860   : > { %v3423_v10 = vpop.f32.mrf.mxu1 }
 0x861   : > { %v3424_v21 = vadd.f32 %v9858_v19, %v3423_v10 }
 0x863   : > { %v10039_v34 = vadd.f32 %v3424_v21, %v9835_v33 }
 0x864   : > { %4023 = vmatpush.bf16.xpose.msra.mxu2 %v7396_v20 }
 0x866   : > { %4072 = vmatpush.bf16.xpose.msra.mxu3 %v7404_v43 }
 0x86c   : > { %4024 = vmatpush.bf16.xpose.msra.mxu2 %v7395_v9 }
 0x86e   : > { %4073 = vmatpush.bf16.xpose.msra.mxu3 %v7403_v11 }
 0x880   : > { %v3530_v30 = vpop.xlane.xlu2 %3529  ;;  %v3462_v3 = vpop.xlane.xlu1 %3461 }
 0x881   : > { %v3561_v50 = vmul.f32 %v3530_v30, %v9529_v60  ;;  %v3487_v29 = vmul.f32 %v3462_v3, %v9529_v60 }
 0x883   : > { %v3577_v62 = vadd.f32 1e-05, %v3561_v50  ;;  %v10019_v59 = vsub.f32 %v9889_v26, %v3487_v29 }
 0x885   : > { %7762 = vrsqrt.f32 %v3577_v62  ;;  %v3519_v17 = vmul.f32 %v10019_v59, %v10019_v59  ;;  %vm3599_vm14 = vweird.f32 %v3577_v62 }
 0x887   : > { %3541 = vadd.xlane.f32.xlu2 %v3519_v17 }
 0x888   : > { %v3532_v26 = vpop.xlane.xlu0 %3531  ;;  %v3464_v12 = vpop.xlane.xlu2 %3463 }
 0x889   : > { %v3562_v28 = vmul.f32 %v3532_v26, %v9529_v60  ;;  %v3488_v46 = vmul.f32 %v3464_v12, %v9529_v60 }
 0x88b   : > { %v7763_v58 = vpop.eup %7762  ;;  %v3578_v56 = vadd.f32 1e-05, %v3562_v28  ;;  %v10036_v22 = vsub.f32 %v9901_v32, %v3488_v46 }
 0x88c   : > { %v3594_v38 = vmul.f32 %v7763_v58, %v3577_v62  ;;  %vm3600_vm13 = vweird.f32 %v7763_v58 }
 0x88d   : > { %7764 = vrsqrt.f32 %v3578_v56  ;;  %v3520_v2 = vmul.f32 %v10036_v22, %v10036_v22  ;;  %vm3601_vm15 = vmor %vm3599_vm14, %vm3600_vm13  ;;  %vm3609_vm2 = vweird.f32 %v3578_v56 }
 0x88e   : > { %v3595_v45 = vmul.f32 %v7763_v58, %v3594_v38 }
 0x88f   : > { %3543 = vadd.xlane.f32.xlu0 %v3520_v2  ;;  %3475 = vadd.xlane.f32.xlu2 %v10039_v34 }
 0x890   : > { %v3596_v18 = vmul.f32 0.5, %v3595_v45  ;;  %v3466_v49 = vpop.xlane.xlu2 %3465  ;;  %v3534_v7 = vpop.xlane.xlu0 %3533 }
 0x891   : > { %v3489_v0 = vmul.f32 %v3466_v49, %v9529_v60  ;;  %v3563_v32 = vmul.f32 %v3534_v7, %v9529_v60 }
 0x892   : > { %v3597_v54 = vsub.f32 1.5, %v3596_v18 }
 0x893   : > { %v7765_v52 = vpop.eup %7764  ;;  %v10047_v33 = vsub.f32 %v9911_v35, %v3489_v0  ;;  %v3579_v5 = vadd.f32 1e-05, %v3563_v32  ;;  %v3426_v53 = vpop.f32.mrf.mxu1 }
 0x894   : > { %v3598_v23 = vmul.f32 %v7763_v58, %v3597_v54  ;;  %v3604_v37 = vmul.f32 %v7765_v52, %v3578_v56  ;;  %v3427_v14 = vadd.f32 %v9858_v19, %v3426_v53  ;;  %vm3610_vm1 = vweird.f32 %v7765_v52 }
 0x895   : > { %7766 = vrsqrt.f32 %v3579_v5  ;;  %v3521_v61 = vmul.f32 %v10047_v33, %v10047_v33  ;;  %vm3611_vm3 = vmor %vm3609_vm2, %vm3610_vm1  ;;  %vm3619_vm5 = vweird.f32 %v3579_v5 }
 0x896   : > { %v3605_v51 = vmul.f32 %v7765_v52, %v3604_v37  ;;  %v10053_v4 = vadd.f32 %v3427_v14, %v9848_v13  ;;  %v3602_v35 = vsel %vm3601_vm15, %v7763_v58, %v3598_v23  ;;  %v10061_v13 = vld [vmem:[%s12210_s16] ss:$0 sm:$0xff] }
 0x897   : > { %3545 = vadd.xlane.f32.xlu0 %v3521_v61  ;;  %v3753_v20 = vmul.f32 %v3602_v35, %v9885_v63 }
 0x898   : > { %v3606_v39 = vmul.f32 0.5, %v3605_v51  ;;  %3477 = vadd.xlane.f32.xlu2 %v10053_v4  ;;  %v3468_v44 = vpop.xlane.xlu0 %3467  ;;  %v3536_v6 = vpop.xlane.xlu1 %3535 }
 0x899   : > { %v3490_v57 = vmul.f32 %v3468_v44, %v9529_v60  ;;  %v3564_v31 = vmul.f32 %v3536_v6, %v9529_v60  ;;  %v3772_v63 = vmul.f32 %v10061_v13, %v3753_v20 }
 0x89a   : > { %v3607_v15 = vsub.f32 1.5, %v3606_v39 }
 0x89b   : > { %v7767_v25 = vpop.eup %7766  ;;  %v10065_v43 = vsub.f32 %v9922_v48, %v3490_v57  ;;  %v3580_v1 = vadd.f32 1e-05, %v3564_v31  ;;  %v3428_v30 = vpop.f32.mrf.mxu1 }
 0x89c   : > { %v3608_v3 = vmul.f32 %v7765_v52, %v3607_v15  ;;  %v3614_v50 = vmul.f32 %v7767_v25, %v3579_v5  ;;  %v3429_v29 = vadd.f32 %v9858_v19, %v3428_v30  ;;  %vm3620_vm4 = vweird.f32 %v7767_v25 }
 0x89d   : > { %7768 = vrsqrt.f32 %v3580_v1  ;;  %v3522_v62 = vmul.f32 %v10065_v43, %v10065_v43  ;;  %vm3621_vm6 = vmor %vm3619_vm5, %vm3620_vm4  ;;  %vm3629_vm8 = vweird.f32 %v3580_v1 }
 0x89e   : > { %v3612_v17 = vsel %vm3611_vm3, %v7765_v52, %v3608_v3  ;;  %v3615_v9 = vmul.f32 %v7767_v25, %v3614_v50  ;;  %v10071_v11 = vadd.f32 %v3429_v29, %v9851_v24  ;;  %v10083_v24 = vadd.f32 %v10078_v16, %v3772_v63 }
 0x89f   : > { %v3754_v48 = vmul.f32 %v3612_v17, %v9897_v42  ;;  %3547 = vadd.xlane.f32.xlu1 %v3522_v62 }
 0x8a0   : > { %v3616_v19 = vmul.f32 0.5, %v3615_v9  ;;  %3479 = vadd.xlane.f32.xlu0 %v10071_v11 }
 0x8a1   : > { %v3773_v10 = vmul.f32 %v10061_v13, %v3754_v48 }
 0x8a2   : > { %v3617_v26 = vsub.f32 1.5, %v3616_v19 }
 0x8a3   : > { %v7769_v12 = vpop.eup %7768  ;;  %v10086_v21 = vadd.f32 %v10078_v16, %v3773_v10 }
 0x8a4   : > { %v3618_v42 = vmul.f32 %v7767_v25, %v3617_v26  ;;  %v3624_v28 = vmul.f32 %v7769_v12, %v3580_v1  ;;  %v3538_v46 = vpop.xlane.xlu1 %3537  ;;  %vm3630_vm7 = vweird.f32 %v7769_v12 }
 0x8a5   : > { %v3565_v58 = vmul.f32 %v3538_v46, %v9529_v60  ;;  %v3807_v56 = vpack.c.bf16 %v10086_v21, %v10083_v24  ;;  %vm3631_vm9 = vmor %vm3629_vm8, %vm3630_vm7 }
 0x8a6   : > { %v3625_v38 = vmul.f32 %v7769_v12, %v3624_v28  ;;  %v3622_v45 = vsel %vm3621_vm6, %v7767_v25, %v3618_v42 }
 0x8a7   : > { %v3581_v2 = vadd.f32 1e-05, %v3565_v58  ;;  %4025 = vmatmul.bf16.vlgmr.msra.gmra.mxu2 %v3807_v56  ;;  %4074 = vmatmul.bf16.vlgmr.msra.gmra.mxu3 %v3807_v56  ;;  %v3755_v54 = vmul.f32 %v3622_v45, %v9907_v47 }
 0x8a8   : > { %v3626_v18 = vmul.f32 0.5, %v3625_v38  ;;  %4123 = vmatmul.bf16.vlgmr.msrb.gmra.mxu0 %v3807_v56  ;;  %v3470_v49 = vpop.xlane.xlu0 %3469 }
 0x8a9   : > { %7770 = vrsqrt.f32 %v3581_v2  ;;  %v3491_v7 = vmul.f32 %v3470_v49, %v9529_v60  ;;  %vm3639_vm11 = vweird.f32 %v3581_v2 }
 0x8aa   : > { %v3627_v0 = vsub.f32 1.5, %v3626_v18 }
 0x8ab   : > { %v10093_v32 = vsub.f32 %v9934_v55, %v3491_v7  ;;  %v3774_v55 = vmul.f32 %v10061_v13, %v3755_v54 }
 0x8ac   : > { %v3628_v52 = vmul.f32 %v7769_v12, %v3627_v0  ;;  %v3540_v5 = vpop.xlane.xlu2 %3539 }
 0x8ad   : > { %v3566_v53 = vmul.f32 %v3540_v5, %v9529_v60  ;;  %v3523_v23 = vmul.f32 %v10093_v32, %v10093_v32  ;;  %v10107_v31 = vadd.f32 %v10078_v16, %v3774_v55 }
 0x8ae   : > { %v3632_v37 = vsel %vm3631_vm9, %v7769_v12, %v3628_v52 }
 0x8af   : > { %v7771_v14 = vpop.eup %7770  ;;  %v3582_v61 = vadd.f32 1e-05, %v3566_v53  ;;  %3549 = vadd.xlane.f32.xlu1 %v3523_v23  ;;  %v3756_v51 = vmul.f32 %v3632_v37, %v9918_v27 }
 0x8b0   : > { %v3634_v35 = vmul.f32 %v7771_v14, %v3581_v2  ;;  %v3472_v39 = vpop.xlane.xlu1 %3471  ;;  %vm3640_vm10 = vweird.f32 %v7771_v14 }
 0x8b1   : > { %7772 = vrsqrt.f32 %v3582_v61  ;;  %v3492_v47 = vmul.f32 %v3472_v39, %v9529_v60  ;;  %v3775_v44 = vmul.f32 %v10061_v13, %v3756_v51  ;;  %vm3641_vm12 = vmor %vm3639_vm11, %vm3640_vm10  ;;  %vm3649_vm14 = vweird.f32 %v3582_v61 }
 0x8b2   : > { %v3635_v6 = vmul.f32 %v7771_v14, %v3634_v35 }
 0x8b3   : > { %v10104_v57 = vsub.f32 %v9945_v8, %v3492_v47  ;;  %v10110_v15 = vadd.f32 %v10078_v16, %v3775_v44 }
 0x8b4   : > { %v3636_v27 = vmul.f32 0.5, %v3635_v6 }
 0x8b5   : > { %v3808_v25 = vpack.c.bf16 %v10110_v15, %v10107_v31  ;;  %v3524_v20 = vmul.f32 %v10104_v57, %v10104_v57 }
 0x8b6   : > { %v3637_v1 = vsub.f32 1.5, %v3636_v27 }
 0x8b7   : > { %v7773_v30 = vpop.eup %7772  ;;  %4030 = vmatmul.bf16.gmra.mxu2 %v3808_v25  ;;  %4079 = vmatmul.bf16.gmra.mxu3 %v3808_v25 }
 0x8b8   : > { %v3638_v3 = vmul.f32 %v7771_v14, %v3637_v1  ;;  %v3644_v8 = vmul.f32 %v7773_v30, %v3582_v61  ;;  %4128 = vmatmul.bf16.gmra.mxu0 %v3808_v25  ;;  %3551 = vadd.xlane.f32.xlu2 %v3524_v20  ;;  %vm3650_vm13 = vweird.f32 %v7773_v30 }
 0x8b9   : > { %vm3651_vm15 = vmor %vm3649_vm14, %vm3650_vm13 }
 0x8ba   : > { %v3645_v50 = vmul.f32 %v7773_v30, %v3644_v8  ;;  %v3642_v29 = vsel %vm3641_vm12, %v7771_v14, %v3638_v3 }
 0x8bb   : > { %v3757_v9 = vmul.f32 %v3642_v29, %v9928_v36 }
 0x8bc   : > { %v3646_v62 = vmul.f32 0.5, %v3645_v50 }
 0x8bd   : > { %v3776_v10 = vmul.f32 %v10061_v13, %v3757_v9 }
 0x8be   : > { %v3647_v17 = vsub.f32 1.5, %v3646_v62 }
 0x8bf   : > { %v10121_v12 = vadd.f32 %v10078_v16, %v3776_v10 }
 0x8c0   : > { %v3648_v63 = vmul.f32 %v7773_v30, %v3647_v17 }
 0x8c2   : > { %v3652_v48 = vsel %vm3651_vm15, %v7773_v30, %v3648_v63 }
 0x8c3   : > { %v3758_v19 = vmul.f32 %v3652_v48, %v9938_v41 }
 0x8c5   : > { %v3777_v26 = vmul.f32 %v10061_v13, %v3758_v19 }
 0x8c7   : > { %v10124_v42 = vadd.f32 %v10078_v16, %v3777_v26 }
 0x8c9   : > { %12309 = vst [vmem:[#allocation3_spill] sm:$0xff] %v10124_v42  ;;  %v3809_v28 = vpack.c.bf16 %v10124_v42, %v10121_v12 }
 0x8cb   : > { %4035 = vmatmul.bf16.gmra.mxu2 %v3809_v28  ;;  %4084 = vmatmul.bf16.gmra.mxu3 %v3809_v28 }
 0x8cc   : > { %4133 = vmatmul.bf16.gmra.mxu0 %v3809_v28 }
 0x8d0   : > { %v3474_v36 = vpop.xlane.xlu1 %3473 }
 0x8d1   : > { %v3493_v46 = vmul.f32 %v3474_v36, %v9529_v60 }
 0x8d3   : > { %v10130_v41 = vsub.f32 %v9986_v40, %v3493_v46 }
 0x8d5   : > { %v3525_v58 = vmul.f32 %v10130_v41, %v10130_v41 }
 0x8d7   : > { %3553 = vadd.xlane.f32.xlu0 %v3525_v58 }
 0x8fa   : > { %v3542_v56 = vpop.xlane.xlu2 %3541 }
 0x8fb   : > { %v3567_v38 = vmul.f32 %v3542_v56, %v9529_v60 }
 0x8fd   : > { %v3583_v2 = vadd.f32 1e-05, %v3567_v38 }
 0x8ff   : > { %7774 = vrsqrt.f32 %v3583_v2  ;;  %vm3659_vm2 = vweird.f32 %v3583_v2 }
 0x902   : > { %v3544_v45 = vpop.xlane.xlu0 %3543  ;;  %v3476_v18 = vpop.xlane.xlu2 %3475 }
 0x903   : > { %v3568_v49 = vmul.f32 %v3544_v45, %v9529_v60  ;;  %v3494_v7 = vmul.f32 %v3476_v18, %v9529_v60  ;;  %v7045_v45 = vld [vmem:[%s12201_s7 + $0x3] sm:$0x7] }
 0x905   : > { %v7775_v0 = vpop.eup %7774  ;;  %v3584_v54 = vadd.f32 1e-05, %v3568_v49  ;;  %v10138_v40 = vsub.f32 %v10039_v34, %v3494_v7 }
 0x906   : > { %v3654_v52 = vmul.f32 %v7775_v0, %v3583_v2  ;;  %vm3660_vm1 = vweird.f32 %v7775_v0 }
 0x907   : > { %7776 = vrsqrt.f32 %v3584_v54  ;;  %v3526_v5 = vmul.f32 %v10138_v40, %v10138_v40  ;;  %vm3661_vm3 = vmor %vm3659_vm2, %vm3660_vm1  ;;  %vm3669_vm5 = vweird.f32 %v3584_v54 }
 0x908   : > { %v3655_v53 = vmul.f32 %v7775_v0, %v3654_v52 }
 0x909   : > { %3555 = vadd.xlane.f32.xlu1 %v3526_v5 }
 0x90a   : > { %v3656_v23 = vmul.f32 0.5, %v3655_v53  ;;  %v3546_v37 = vpop.xlane.xlu0 %3545 }
 0x90b   : > { %v3569_v14 = vmul.f32 %v3546_v37, %v9529_v60  ;;  %v3478_v61 = vpop.xlane.xlu2 %3477 }
 0x90c   : > { %v3657_v51 = vsub.f32 1.5, %v3656_v23  ;;  %v3495_v55 = vmul.f32 %v3478_v61, %v9529_v60 }
 0x90d   : > { %v7777_v35 = vpop.eup %7776  ;;  %v3585_v39 = vadd.f32 1e-05, %v3569_v14 }
 0x90e   : > { %v3658_v47 = vmul.f32 %v7775_v0, %v3657_v51  ;;  %v3664_v34 = vmul.f32 %v7777_v35, %v3584_v54  ;;  %v10145_v44 = vsub.f32 %v10053_v4, %v3495_v55  ;;  %vm3670_vm4 = vweird.f32 %v7777_v35 }
 0x90f   : > { %7778 = vrsqrt.f32 %v3585_v39  ;;  %vm3671_vm6 = vmor %vm3669_vm5, %vm3670_vm4  ;;  %vm3679_vm8 = vweird.f32 %v3585_v39  ;;  %v10171_v54 = vperm.slane %v7045_v45, 2  ;;  %v10176_v51 = vperm.slane %v7045_v45, 0 }
 0x910   : > { %v3665_v6 = vmul.f32 %v7777_v35, %v3664_v34  ;;  %v3527_v27 = vmul.f32 %v10145_v44, %v10145_v44  ;;  %v3662_v25 = vsel %vm3661_vm3, %v7775_v0, %v3658_v47  ;;  %v10178_v55 = vperm.slane %v7045_v45, 1 }
 0x911   : > { %v3759_v62 = vmul.f32 %v3662_v25, %v10019_v59 }
 0x912   : > { %v3666_v20 = vmul.f32 0.5, %v3665_v6  ;;  %3557 = vadd.xlane.f32.xlu2 %v3527_v27  ;;  %v3548_v1 = vpop.xlane.xlu1 %3547 }
 0x913   : > { %v3480_v30 = vpop.xlane.xlu0 %3479  ;;  %v3570_v3 = vmul.f32 %v3548_v1, %v9529_v60  ;;  %v3778_v28 = vmul.f32 %v10061_v13, %v3759_v62 }
 0x914   : > { %v3667_v8 = vsub.f32 1.5, %v3666_v20  ;;  %v3496_v50 = vmul.f32 %v3480_v30, %v9529_v60 }
 0x915   : > { %v7779_v4 = vpop.eup %7778  ;;  %v3586_v29 = vadd.f32 1e-05, %v3570_v3 }
 0x916   : > { %v3668_v17 = vmul.f32 %v7777_v35, %v3667_v8  ;;  %v3674_v9 = vmul.f32 %v7779_v4, %v3585_v39  ;;  %v10153_v63 = vsub.f32 %v10071_v11, %v3496_v50  ;;  %v10161_v11 = vadd.f32 %v10078_v16, %v3778_v28 }
 0x917   : > { %7780 = vrsqrt.f32 %v3586_v29  ;;  %vm3680_vm7 = vweird.f32 %v7779_v4  ;;  %vm3689_vm11 = vweird.f32 %v3586_v29 }
 0x918   : > { %v3672_v48 = vsel %vm3671_vm6, %v7777_v35, %v3668_v17  ;;  %v3675_v19 = vmul.f32 %v7779_v4, %v3674_v9  ;;  %v3528_v10 = vmul.f32 %v10153_v63, %v10153_v63  ;;  %12310 = vst [vmem:[#allocation4_spill] sm:$0xff] %v10161_v11  ;;  %vm3681_vm9 = vmor %vm3679_vm8, %vm3680_vm7 }
 0x919   : > { %v3760_v26 = vmul.f32 %v3672_v48, %v10036_v22 }
 0x91a   : > { %v3676_v36 = vmul.f32 0.5, %v3675_v19  ;;  %3559 = vadd.xlane.f32.xlu0 %v3528_v10 }
 0x91b   : > { %v3779_v59 = vmul.f32 %v10061_v13, %v3760_v26 }
 0x91c   : > { %v3677_v46 = vsub.f32 1.5, %v3676_v36 }
 0x91d   : > { %v7781_v58 = vpop.eup %7780  ;;  %v10164_v56 = vadd.f32 %v10078_v16, %v3779_v59 }
 0x91e   : > { %v3678_v38 = vmul.f32 %v7779_v4, %v3677_v46  ;;  %v3684_v2 = vmul.f32 %v7781_v58, %v3586_v29  ;;  %vm3690_vm10 = vweird.f32 %v7781_v58 }
 0x91f   : > { %12311 = vst [vmem:[#allocation6_spill] sm:$0xff] %v10164_v56  ;;  %v3810_v22 = vpack.c.bf16 %v10164_v56, %v10161_v11  ;;  %vm3691_vm12 = vmor %vm3689_vm11, %vm3690_vm10 }
 0x920   : > { %v3685_v18 = vmul.f32 %v7781_v58, %v3684_v2  ;;  %v3682_v49 = vsel %vm3681_vm9, %v7779_v4, %v3678_v38 }
 0x921   : > { %4040 = vmatmul.bf16.gmra.mxu2 %v3810_v22  ;;  %4089 = vmatmul.bf16.gmra.mxu3 %v3810_v22  ;;  %v3761_v37 = vmul.f32 %v3682_v49, %v10047_v33 }
 0x922   : > { %v3686_v7 = vmul.f32 0.5, %v3685_v18  ;;  %4138 = vmatmul.bf16.gmra.mxu0 %v3810_v22  ;;  %v3550_v0 = vpop.xlane.xlu1 %3549 }
 0x923   : > { %v3571_v52 = vmul.f32 %v3550_v0, %v9529_v60  ;;  %v3780_v47 = vmul.f32 %v10061_v13, %v3761_v37 }
 0x924   : > { %v3687_v5 = vsub.f32 1.5, %v3686_v7 }
 0x925   : > { %v3587_v53 = vadd.f32 1e-05, %v3571_v52  ;;  %v4124_v23 = vpop.f32.mrf.mxu0  ;;  %v10189_v50 = vadd.f32 %v10078_v16, %v3780_v47 }
 0x926   : > { %v3688_v14 = vmul.f32 %v7781_v58, %v3687_v5  ;;  %v4125_v61 = vadd.f32 %v4124_v23, %v10171_v54 }
 0x927   : > { %7782 = vrsqrt.f32 %v3587_v53  ;;  %12312 = vst [vmem:[#allocation5_spill] sm:$0xff] %v10189_v50  ;;  %vm3699_vm14 = vweird.f32 %v3587_v53 }
 0x928   : > { %v3692_v35 = vsel %vm3691_vm12, %v7781_v58, %v3688_v14  ;;  %v4165_v29 = vpack.c.bf16 %v4125_v61, %v4125_v61 }
 0x929   : > { %v3762_v39 = vmul.f32 %v3692_v35, %v10065_v43 }
 0x92a   : > { %v4026_v34 = vpop.f32.mrf.mxu2  ;;  %v4075_v6 = vpop.f32.mrf.mxu3  ;;  %v4733_v26 = vunpack.c.l.b16 %v4165_v29 }
 0x92b   : > { %v4027_v27 = vadd.f32 %v4026_v34, %v10176_v51  ;;  %v4076_v33 = vadd.f32 %v4075_v6, %v10178_v55  ;;  %v3552_v25 = vpop.xlane.xlu2 %3551  ;;  %v3781_v20 = vmul.f32 %v10061_v13, %v3762_v39 }
 0x92c   : > { %v3572_v1 = vmul.f32 %v3552_v25, %v9529_v60 }
 0x92d   : > { %v7783_v30 = vpop.eup %7782  ;;  %v10186_v3 = vpack.c.bf16 %v4076_v33, %v4027_v27  ;;  %v4126_v8 = vpop.f32.mrf.mxu0  ;;  %v10192_v43 = vadd.f32 %v10078_v16, %v3781_v20 }
 0x92e   : > { %v3694_v4 = vmul.f32 %v7783_v30, %v3587_v53  ;;  %v3588_v62 = vadd.f32 1e-05, %v3572_v1  ;;  %v4127_v17 = vadd.f32 %v4126_v8, %v10171_v54  ;;  %vm3700_vm13 = vweird.f32 %v7783_v30 }
 0x92f   : > { %12313 = vst [vmem:[#allocation8_spill] sm:$0xff] %v10192_v43  ;;  %v3811_v9 = vpack.c.bf16 %v10192_v43, %v10189_v50  ;;  %vm3701_vm15 = vmor %vm3699_vm14, %vm3700_vm13 }
 0x930   : > { %v3695_v48 = vmul.f32 %v7783_v30, %v3694_v4  ;;  %7784 = vrsqrt.f32 %v3588_v62  ;;  %v4167_v19 = vpack.c.bf16 %v4127_v17, %v4127_v17  ;;  %vm3709_vm2 = vweird.f32 %v3588_v62 }
 0x931   : > { %4045 = vmatmul.bf16.gmra.mxu2 %v3811_v9  ;;  %4094 = vmatmul.bf16.gmra.mxu3 %v3811_v9 }
 0x932   : > { %v3696_v10 = vmul.f32 0.5, %v3695_v48  ;;  %v4734_v28 = vunpack.c.l.b16 %v4167_v19  ;;  %4143 = vmatmul.bf16.gmra.mxu0 %v3811_v9  ;;  %v10197_v36 = vpop.f32.mrf.mxu2  ;;  %v10199_v59 = vpop.f32.mrf.mxu3 }
 0x934   : > { %v3697_v46 = vsub.f32 1.5, %v3696_v10  ;;  %v10201_v58 = vpack.c.b16 %v4734_v28, %v4733_v26 }
 0x935   : > { %v4129_v38 = vpop.f32.mrf.mxu0 }
 0x936   : > { %v7785_v2 = vpop.eup %7784  ;;  %v4130_v22 = vadd.f32 %v4129_v38, %v10171_v54  ;;  %v3698_v45 = vmul.f32 %v7783_v30, %v3697_v46 }
 0x937   : > { %v3704_v18 = vmul.f32 %v7785_v2, %v3588_v62  ;;  %vm3710_vm1 = vweird.f32 %v7785_v2 }
 0x938   : > { %v3702_v52 = vsel %vm3701_vm15, %v7783_v30, %v3698_v45  ;;  %v4169_v39 = vpack.c.bf16 %v4130_v22, %v4130_v22  ;;  %vm3711_vm3 = vmor %vm3709_vm2, %vm3710_vm1 }
 0x939   : > { %v3705_v49 = vmul.f32 %v7785_v2, %v3704_v18  ;;  %v3763_v53 = vmul.f32 %v3702_v52, %v10093_v32 }
 0x93a   : > { %v4031_v7 = vpop.f32.mrf.mxu2  ;;  %v4080_v0 = vpop.f32.mrf.mxu3  ;;  %v4735_v33 = vunpack.c.l.b16 %v4169_v39 }
 0x93b   : > { %v3706_v5 = vmul.f32 0.5, %v3705_v49  ;;  %v4032_v23 = vadd.f32 %v4031_v7, %v10176_v51  ;;  %v4081_v37 = vadd.f32 %v4080_v0, %v10178_v55  ;;  %v3782_v1 = vmul.f32 %v10061_v13, %v3763_v53 }
 0x93d   : > { %v3707_v14 = vsub.f32 1.5, %v3706_v5  ;;  %v10206_v61 = vpack.c.bf16 %v4081_v37, %v4032_v23  ;;  %v4131_v35 = vpop.f32.mrf.mxu0  ;;  %v10220_v32 = vadd.f32 %v10078_v16, %v3782_v1 }
 0x93e   : > { %v4132_v47 = vadd.f32 %v4131_v35, %v10171_v54 }
 0x93f   : > { %v3708_v34 = vmul.f32 %v7785_v2, %v3707_v14  ;;  %12314 = vst [vmem:[#allocation7_spill] sm:$0xff] %v10220_v32 }
 0x940   : > { %v4171_v6 = vpack.c.bf16 %v4132_v47, %v4132_v47 }
 0x941   : > { %v3712_v27 = vsel %vm3711_vm3, %v7785_v2, %v3708_v34 }
 0x942   : > { %v4736_v25 = vunpack.c.l.b16 %v4171_v6  ;;  %v3764_v20 = vmul.f32 %v3712_v27, %v10104_v57  ;;  %v10215_v4 = vpop.f32.mrf.mxu2  ;;  %v10217_v29 = vpop.f32.mrf.mxu3 }
 0x944   : > { %v3783_v30 = vmul.f32 %v10061_v13, %v3764_v20  ;;  %v10213_v8 = vpack.c.b16 %v4736_v25, %v4735_v33 }
 0x946   : > { %v10223_v62 = vadd.f32 %v10078_v16, %v3783_v30 }
 0x948   : > { %12315 = vst [vmem:[#allocation9_spill] sm:$0xff] %v10223_v62  ;;  %v3812_v17 = vpack.c.bf16 %v10223_v62, %v10220_v32 }
 0x949   : > { %v4134_v57 = vpop.f32.mrf.mxu0 }
 0x94a   : > { %v4135_v9 = vadd.f32 %v4134_v57, %v10171_v54  ;;  %4050 = vmatmul.bf16.gmra.mxu2 %v3812_v17  ;;  %4099 = vmatmul.bf16.gmra.mxu3 %v3812_v17  ;;  %v3554_v7 = vpop.xlane.xlu0 %3553 }
 0x94b   : > { %4148 = vmatmul.bf16.gmra.mxu0 %v3812_v17  ;;  %v3573_v0 = vmul.f32 %v3554_v7, %v9529_v60 }
 0x94c   : > { %v4173_v38 = vpack.c.bf16 %v4135_v9, %v4135_v9 }
 0x94d   : > { %v3589_v52 = vadd.f32 1e-05, %v3573_v0 }
 0x94e   : > { %v4036_v48 = vpop.f32.mrf.mxu2  ;;  %v4085_v19 = vpop.f32.mrf.mxu3  ;;  %v4737_v45 = vunpack.c.l.b16 %v4173_v38 }
 0x94f   : > { %v4037_v10 = vadd.f32 %v4036_v48, %v10176_v51  ;;  %v4086_v26 = vadd.f32 %v4085_v19, %v10178_v55  ;;  %7786 = vrsqrt.f32 %v3589_v52  ;;  %vm3719_vm5 = vweird.f32 %v3589_v52 }
 0x951   : > { %v10230_v28 = vpack.c.bf16 %v4086_v26, %v4037_v10  ;;  %v4136_v46 = vpop.f32.mrf.mxu0 }
 0x952   : > { %v4137_v2 = vadd.f32 %v4136_v46, %v10171_v54 }
 0x954   : > { %v4175_v22 = vpack.c.bf16 %v4137_v2, %v4137_v2 }
 0x955   : > { %v7787_v5 = vpop.eup %7786 }
 0x956   : > { %v4738_v18 = vunpack.c.l.b16 %v4175_v22  ;;  %v3714_v23 = vmul.f32 %v7787_v5, %v3589_v52  ;;  %vm3720_vm4 = vweird.f32 %v7787_v5 }
 0x957   : > { %vm3721_vm6 = vmor %vm3719_vm5, %vm3720_vm4 }
 0x958   : > { %v10233_v49 = vpack.c.b16 %v4738_v18, %v4737_v45  ;;  %v3715_v37 = vmul.f32 %v7787_v5, %v3714_v23 }
 0x95a   : > { %v3716_v47 = vmul.f32 0.5, %v3715_v37 }
 0x95c   : > { %v3717_v53 = vsub.f32 1.5, %v3716_v47  ;;  %v10253_v47 = vpop.f32.mrf.mxu3 }
 0x95e   : > { %v3718_v33 = vmul.f32 %v7787_v5, %v3717_v53 }
 0x960   : > { %v3722_v30 = vsel %vm3721_vm6, %v7787_v5, %v3718_v33 }
 0x961   : > { %v3765_v19 = vmul.f32 %v3722_v30, %v10130_v41 }
 0x963   : > { %v3784_v18 = vmul.f32 %v10061_v13, %v3765_v19 }
 0x965   : > { %v10244_v5 = vadd.f32 %v10078_v16, %v3784_v18 }
 0x967   : > { %12316 = vst [vmem:[#allocation10_spill] sm:$0xff] %v10244_v5 }
 0x97c   : > { %v3556_v14 = vpop.xlane.xlu1 %3555 }
 0x97d   : > { %v3574_v35 = vmul.f32 %v3556_v14, %v9529_v60 }
 0x97f   : > { %v3590_v39 = vadd.f32 1e-05, %v3574_v35 }
 0x981   : > { %7788 = vrsqrt.f32 %v3590_v39  ;;  %vm3729_vm8 = vweird.f32 %v3590_v39 }
 0x985   : > { %v3558_v34 = vpop.xlane.xlu2 %3557 }
 0x986   : > { %v3575_v6 = vmul.f32 %v3558_v34, %v9529_v60 }
 0x987   : > { %v7789_v27 = vpop.eup %7788 }
 0x988   : > { %v3724_v25 = vmul.f32 %v7789_v27, %v3590_v39  ;;  %v3591_v20 = vadd.f32 1e-05, %v3575_v6  ;;  %vm3730_vm7 = vweird.f32 %v7789_v27  ;;  %v10251_v39 = vpop.f32.mrf.mxu2 }
 0x989   : > { %vm3731_vm9 = vmor %vm3729_vm8, %vm3730_vm7 }
 0x98a   : > { %v3725_v1 = vmul.f32 %v7789_v27, %v3724_v25  ;;  %7790 = vrsqrt.f32 %v3591_v20  ;;  %vm3739_vm11 = vweird.f32 %v3591_v20 }
 0x98c   : > { %v3726_v17 = vmul.f32 0.5, %v3725_v1 }
 0x98d   : > { %v3560_v57 = vpop.xlane.xlu0 %3559 }
 0x98e   : > { %v3727_v9 = vsub.f32 1.5, %v3726_v17  ;;  %v3576_v48 = vmul.f32 %v3560_v57, %v9529_v60 }
 0x990   : > { %v7791_v10 = vpop.eup %7790  ;;  %v3728_v26 = vmul.f32 %v7789_v27, %v3727_v9  ;;  %v3592_v46 = vadd.f32 1e-05, %v3576_v48 }
 0x991   : > { %v3734_v38 = vmul.f32 %v7791_v10, %v3591_v20  ;;  %vm3740_vm10 = vweird.f32 %v7791_v10 }
 0x992   : > { %v3732_v2 = vsel %vm3731_vm9, %v7789_v27, %v3728_v26  ;;  %7792 = vrsqrt.f32 %v3592_v46  ;;  %vm3741_vm12 = vmor %vm3739_vm11, %vm3740_vm10  ;;  %vm3749_vm14 = vweird.f32 %v3592_v46 }
 0x993   : > { %v3735_v22 = vmul.f32 %v7791_v10, %v3734_v38  ;;  %v3766_v45 = vmul.f32 %v3732_v2, %v10138_v40 }
 0x995   : > { %v3736_v7 = vmul.f32 0.5, %v3735_v22  ;;  %v3785_v0 = vmul.f32 %v10061_v13, %v3766_v45 }
 0x997   : > { %v3737_v52 = vsub.f32 1.5, %v3736_v7  ;;  %v10247_v41 = vadd.f32 %v10078_v16, %v3785_v0 }
 0x998   : > { %v7793_v23 = vpop.eup %7792 }
 0x999   : > { %12317 = vst [vmem:[#allocation11_spill] sm:$0xff] %v10247_v41  ;;  %v3738_v37 = vmul.f32 %v7791_v10, %v3737_v52  ;;  %v3744_v14 = vmul.f32 %v7793_v23, %v3592_v46  ;;  %v3813_v35 = vpack.c.bf16 %v10247_v41, %v10244_v5  ;;  %vm3750_vm13 = vweird.f32 %v7793_v23 }
 0x99a   : > { %vm3751_vm15 = vmor %vm3749_vm14, %vm3750_vm13 }
 0x99b   : > { %v3745_v40 = vmul.f32 %v7793_v23, %v3744_v14  ;;  %4055 = vmatmul.bf16.gmra.mxu2 %v3813_v35  ;;  %4104 = vmatmul.bf16.gmra.mxu3 %v3813_v35  ;;  %v3742_v53 = vsel %vm3741_vm12, %v7791_v10, %v3738_v37 }
 0x99c   : > { %4153 = vmatmul.bf16.gmra.mxu0 %v3813_v35  ;;  %v3767_v25 = vmul.f32 %v3742_v53, %v10145_v44 }
 0x99d   : > { %v3746_v34 = vmul.f32 0.5, %v3745_v40 }
 0x99e   : > { %v3786_v9 = vmul.f32 %v10061_v13, %v3767_v25 }
 0x99f   : > { %v3747_v6 = vsub.f32 1.5, %v3746_v34  ;;  %v4139_v27 = vpop.f32.mrf.mxu0 }
 0x9a0   : > { %v4140_v33 = vadd.f32 %v4139_v27, %v10171_v54  ;;  %v10266_v2 = vadd.f32 %v10078_v16, %v3786_v9 }
 0x9a1   : > { %v3748_v1 = vmul.f32 %v7793_v23, %v3747_v6 }
 0x9a2   : > { %v4177_v44 = vpack.c.bf16 %v4140_v33, %v4140_v33  ;;  %12318 = vst [vmem:[#allocation12_spill] sm:$0xff] %v10266_v2 }
 0x9a3   : > { %v3752_v20 = vsel %vm3751_vm15, %v7793_v23, %v3748_v1 }
 0x9a4   : > { %v4041_v30 = vpop.f32.mrf.mxu2  ;;  %v4090_v17 = vpop.f32.mrf.mxu3  ;;  %v3768_v57 = vmul.f32 %v3752_v20, %v10153_v63  ;;  %v4739_v18 = vunpack.c.l.b16 %v4177_v44 }
 0x9a5   : > { %v4042_v48 = vadd.f32 %v4041_v30, %v10176_v51  ;;  %v4091_v19 = vadd.f32 %v4090_v17, %v10178_v55 }
 0x9a6   : > { %v3787_v10 = vmul.f32 %v10061_v13, %v3768_v57 }
 0x9a7   : > { %v10262_v26 = vpack.c.bf16 %v4091_v19, %v4042_v48  ;;  %v4141_v38 = vpop.f32.mrf.mxu0 }
 0x9a8   : > { %v4142_v46 = vadd.f32 %v4141_v38, %v10171_v54  ;;  %v10269_v22 = vadd.f32 %v10078_v16, %v3787_v10 }
 0x9aa   : > { %12319 = vst [vmem:[#allocation13_spill] sm:$0xff] %v10269_v22  ;;  %v4179_v63 = vpack.c.bf16 %v4142_v46, %v4142_v46  ;;  %v3814_v45 = vpack.c.bf16 %v10269_v22, %v10266_v2 }
 0x9ac   : > { %v4740_v7 = vunpack.c.l.b16 %v4179_v63  ;;  %4060 = vmatmul.bf16.gmra.mxu2 %v3814_v45  ;;  %4109 = vmatmul.bf16.gmra.mxu3 %v3814_v45  ;;  %v10276_v23 = vpop.f32.mrf.mxu2  ;;  %v10278_v37 = vpop.f32.mrf.mxu3 }
 0x9ad   : > { %4158 = vmatmul.bf16.gmra.mxu0 %v3814_v45 }
 0x9ae   : > { %v10273_v13 = vpack.c.b16 %v4740_v7, %v4739_v18 }
 0x9af   : > { %v4144_v0 = vpop.f32.mrf.mxu0 }
 0x9b0   : > { %v4145_v52 = vadd.f32 %v4144_v0, %v10171_v54 }
 0x9b2   : > { %v4181_v14 = vpack.c.bf16 %v4145_v52, %v4145_v52 }
 0x9b4   : > { %v4046_v53 = vpop.f32.mrf.mxu2  ;;  %v4095_v34 = vpop.f32.mrf.mxu3  ;;  %v4741_v6 = vunpack.c.l.b16 %v4181_v14 }
 0x9b5   : > { %v4047_v45 = vadd.f32 %v4046_v53, %v10176_v51  ;;  %v4096_v18 = vadd.f32 %v4095_v34, %v10178_v55  ;;  %v4083_v53 = vadd.f32 %v10217_v29, %v10178_v55 }
 0x9b7   : > { %v4146_v16 = vpop.f32.mrf.mxu0 }
 0x9b8   : > { %v4147_v35 = vadd.f32 %v4146_v16, %v10171_v54 }
 0x9ba   : > { %v4183_v40 = vpack.c.bf16 %v4147_v35, %v4147_v35 }
 0x9bc   : > { %v4742_v27 = vunpack.c.l.b16 %v4183_v40  ;;  %v4048_v25 = vpop.f32.mrf.mxu2  ;;  %v4097_v1 = vpop.f32.mrf.mxu3 }
 0x9bd   : > { %v4049_v44 = vadd.f32 %v4048_v25, %v10176_v51  ;;  %v4098_v46 = vadd.f32 %v4097_v1, %v10178_v55 }
 0x9be   : > { %v10281_v33 = vpack.c.b16 %v4742_v27, %v4741_v6  ;;  %v4180_v6 = vpack.c.bf16 %v4096_v18, %v4047_v45  ;;  %v4034_v27 = vadd.f32 %v10215_v4, %v10176_v51 }
 0x9bf   : > { %v4182_v14 = vpack.c.bf16 %v4098_v46, %v4049_v44 }
 0x9c0   : > { %v4244_v25 = vunpack.c.h.b16 %v4180_v6  ;;  %v4170_v1 = vpack.c.bf16 %v4083_v53, %v4034_v27  ;;  %v4044_v27 = vadd.f32 %v10276_v23, %v10176_v51  ;;  %v4093_v53 = vadd.f32 %v10278_v37, %v10178_v55 }
 0x9c1   : > { %v4245_v34 = vunpack.c.h.b16 %v4182_v14  ;;  %v4078_v23 = vadd.f32 %v10199_v59, %v10178_v55 }
 0x9c2   : > { %v4215_v4 = vunpack.c.l.b16 %v4170_v1 }
 0x9cd   : > { %v4051_v20 = vpop.f32.mrf.mxu2  ;;  %v4100_v30 = vpop.f32.mrf.mxu3 }
 0x9ce   : > { %v4052_v17 = vadd.f32 %v4051_v20, %v10176_v51  ;;  %v4101_v57 = vadd.f32 %v4100_v30, %v10178_v55  ;;  %v10301_v20 = vpack.c.b16 %v4245_v34, %v4244_v25  ;;  %v4239_v30 = vunpack.c.h.b16 %v4170_v1 }
 0x9d0   : > { %v4184_v19 = vpack.c.bf16 %v4101_v57, %v4052_v17  ;;  %v4238_v17 = vunpack.c.h.b16 %v10206_v61 }
 0x9d2   : > { %v4222_v7 = vunpack.c.l.b16 %v4184_v19  ;;  %v4246_v0 = vunpack.c.h.b16 %v4184_v19  ;;  %v10306_v57 = vpack.c.b16 %v4239_v30, %v4238_v17  ;;  %v4220_v19 = vunpack.c.l.b16 %v4180_v6 }
 0x9d3   : > { %v10333_v17 = vpack.c.bf16 %v4093_v53, %v4044_v27 }
 0x9d5   : > { %v4053_v9 = vpop.f32.mrf.mxu2  ;;  %v4102_v48 = vpop.f32.mrf.mxu3 }
 0x9d6   : > { %v4054_v10 = vadd.f32 %v4053_v9, %v10176_v51  ;;  %v4103_v38 = vadd.f32 %v4102_v48, %v10178_v55  ;;  %v4214_v9 = vunpack.c.l.b16 %v10206_v61  ;;  %v4221_v48 = vunpack.c.l.b16 %v4182_v14 }
 0x9d8   : > { %v4186_v63 = vpack.c.bf16 %v4103_v38, %v4054_v10  ;;  %v10311_v29 = vpack.c.b16 %v4215_v4, %v4214_v9  ;;  %v10315_v10 = vpack.c.b16 %v4221_v48, %v4220_v19  ;;  %v4149_v38 = vpop.f32.mrf.mxu0  ;;  %v4029_v9 = vadd.f32 %v10197_v36, %v10176_v51 }
 0x9da   : > { %v4223_v52 = vunpack.c.l.b16 %v4186_v63  ;;  %v4247_v16 = vunpack.c.h.b16 %v4186_v63 }
 0x9dc   : > { %v10291_v35 = vpack.c.b16 %v4247_v16, %v4246_v0  ;;  %v10293_v40 = vpack.c.b16 %v4223_v52, %v4222_v7 }
 0x9de   : > { %4840 = vrot.lane.b32.xlu0 %v10291_v35, %s8013_s29 }
 0x9e0   : > { %v4151_v44 = vpop.f32.mrf.mxu0 }
 0x9e1   : > { %v4152_v27 = vadd.f32 %v4151_v44, %v10171_v54 }
 0x9e6   : > { %4838 = vrot.lane.b32.xlu0 %v10301_v20, %s8013_s29 }
 0x9ee   : > { %4832 = vrot.lane.b32.xlu0 %v10306_v57, %s8013_s29 }
 0x9f6   : > { %4816 = vrot.lane.b32.xlu0 %v10311_v29, %s8013_s29 }
 0x9fe   : > { %4822 = vrot.lane.b32.xlu0 %v10315_v10, %s8013_s29 }
 0xa19   : > { %v4154_v46 = vpop.f32.mrf.mxu0 }
 0xa1a   : > { %v4155_v36 = vadd.f32 %v4154_v46, %v10171_v54 }
 0xa1e   : > { %v4056_v63 = vpop.f32.mrf.mxu2  ;;  %v4105_v45 = vpop.f32.mrf.mxu3 }
 0xa1f   : > { %v4057_v61 = vadd.f32 %v4056_v63, %v10176_v51  ;;  %v4106_v7 = vadd.f32 %v4105_v45, %v10178_v55  ;;  %v4243_v63 = vunpack.c.h.b16 %v10333_v17 }
 0xa21   : > { %v4156_v18 = vpop.f32.mrf.mxu0  ;;  %v10321_v16 = vpack.c.bf16 %v4106_v7, %v4057_v61  ;;  %v10346_v61 = vpack.c.bf16 %v4078_v23, %v4029_v9  ;;  %v4189_v9 = vpack.c.bf16 %v4155_v36, %v4155_v36  ;;  %v4236_v36 = vunpack.c.h.b16 %v10186_v3 }
 0xa22   : > { %v4157_v45 = vadd.f32 %v4156_v18, %v10171_v54 }
 0xa23   : > { %v4248_v1 = vunpack.c.h.b16 %v10321_v16  ;;  %v4237_v18 = vunpack.c.h.b16 %v10346_v61 }
 0xa24   : > { %v4191_v53 = vpack.c.bf16 %v4157_v45, %v4157_v45  ;;  %v4088_v45 = vadd.f32 %v10253_v47, %v10178_v55 }
 0xa26   : > { %v4058_v0 = vpop.f32.mrf.mxu2  ;;  %v4107_v52 = vpop.f32.mrf.mxu3 }
 0xa27   : > { %v4059_v14 = vadd.f32 %v4058_v0, %v10176_v51  ;;  %v4108_v6 = vadd.f32 %v4107_v52, %v10178_v55  ;;  %v4242_v0 = vunpack.c.h.b16 %v10262_v26 }
 0xa29   : > { %v10329_v34 = vpack.c.bf16 %v4108_v6, %v4059_v14 }
 0xa2a   : > { %v4159_v25 = vpop.f32.mrf.mxu0 }
 0xa2b   : > { %v4249_v30 = vunpack.c.h.b16 %v10329_v34  ;;  %v4160_v48 = vadd.f32 %v4159_v25, %v10171_v54 }
 0xa2d   : > { %v10335_v4 = vpack.c.b16 %v4249_v30, %v4248_v1  ;;  %v4193_v52 = vpack.c.bf16 %v4160_v48, %v4160_v48  ;;  %v10354_v1 = vpack.c.b16 %v4243_v63, %v4242_v0  ;;  %v4150_v30 = vadd.f32 %v4149_v38, %v10171_v54 }
 0xa2e   : > { %v4746_v38 = vunpack.c.l.b16 %v4191_v53 }
 0xa2f   : > { %v4061_v37 = vpop.f32.mrf.mxu2  ;;  %v4110_v19 = vpop.f32.mrf.mxu3  ;;  %4842 = vrot.lane.b32.xlu2 %v10335_v4, %s8013_s29  ;;  %v4747_v23 = vunpack.c.l.b16 %v4193_v52  ;;  %v4185_v52 = vpack.c.bf16 %v4150_v30, %v4150_v30 }
 0xa30   : > { %v4062_v14 = vadd.f32 %v4061_v37, %v10176_v51  ;;  %v4111_v6 = vadd.f32 %v4110_v19, %v10178_v55  ;;  %v4039_v37 = vadd.f32 %v10251_v39, %v10176_v51 }
 0xa32   : > { %v4161_v7 = vpop.f32.mrf.mxu0  ;;  %v4192_v44 = vpack.c.bf16 %v4111_v6, %v4062_v14  ;;  %v4174_v6 = vpack.c.bf16 %v4088_v45, %v4039_v37 }
 0xa33   : > { %v4162_v59 = vadd.f32 %v4161_v7, %v10171_v54  ;;  %v4187_v54 = vpack.c.bf16 %v4152_v27, %v4152_v27 }
 0xa34   : > { %v4250_v2 = vunpack.c.h.b16 %v4192_v44  ;;  %v4217_v27 = vunpack.c.l.b16 %v4174_v6  ;;  %v4241_v30 = vunpack.c.h.b16 %v4174_v6 }
 0xa35   : > { %v4195_v25 = vpack.c.bf16 %v4162_v59, %v4162_v59  ;;  %v4745_v59 = vunpack.c.l.b16 %v4189_v9 }
 0xa37   : > { %v4748_v46 = vunpack.c.l.b16 %v4195_v25  ;;  %v4063_v48 = vpop.f32.mrf.mxu2  ;;  %v4112_v22 = vpop.f32.mrf.mxu3  ;;  %4836 = vrot.lane.b32.xlu2 %v10354_v1, %s8013_s29  ;;  %v4226_v25 = vunpack.c.l.b16 %v4192_v44 }
 0xa38   : > { %v4064_v19 = vadd.f32 %v4063_v48, %v10176_v51  ;;  %v4113_v63 = vadd.f32 %v4112_v22, %v10178_v55  ;;  %v4744_v51 = vunpack.c.l.b16 %v4187_v54  ;;  %v4755_v48 = vpack.c.b16 %v4746_v38, %v4745_v59 }
 0xa39   : > { %v4756_v7 = vpack.c.b16 %v4748_v46, %v4747_v23  ;;  %v4252_v22 = vpack.c.b16 %v4237_v18, %v4236_v36  ;;  %v4743_v55 = vunpack.c.l.b16 %v4185_v52  ;;  %v4216_v18 = vunpack.c.l.b16 %v10230_v28 }
 0xa3a   : > { %v4194_v0 = vpack.c.bf16 %v4113_v63, %v4064_v19  ;;  %v4213_v46 = vunpack.c.l.b16 %v10346_v61  ;;  %v4219_v61 = vunpack.c.l.b16 %v10333_v17  ;;  %v4224_v19 = vunpack.c.l.b16 %v10321_v16 }
 0xa3b   : > { %4765 = vmatpush.bf16.msrb.mxu2 %v4756_v7  ;;  %v4754_v53 = vpack.c.b16 %v4744_v51, %v4743_v55  ;;  %v4230_v9 = vpack.c.b16 %v4217_v27, %v4216_v18  ;;  %v4285_v16 = vsel %vm1460_vm0, %v4252_v22, 0 }
 0xa3c   : > { %v4227_v39 = vunpack.c.l.b16 %v4194_v0  ;;  %v4251_v14 = vunpack.c.h.b16 %v4194_v0 }
 0xa3e   : > { %v4259_v41 = vpack.c.b16 %v4251_v14, %v4250_v2  ;;  %v10367_v5 = vpack.c.b16 %v4227_v39, %v4226_v25  ;;  %v4240_v2 = vunpack.c.h.b16 %v10230_v28  ;;  %v4212_v28 = vunpack.c.l.b16 %v10186_v3 }
 0xa3f   : > { %4766 = vmatpush.bf16.msrb.mxu2 %v4755_v48  ;;  %4830 = vrot.lane.b32.xlu2 %v4252_v22, %s8013_s29  ;;  %v4218_v3 = vunpack.c.l.b16 %v10262_v26  ;;  %v4294_v26 = vsel %vm1460_vm0, %v10354_v1, 0 }
 0xa40   : > { %4844 = vrot.lane.b32.xlu1 %v4259_v41, %s8013_s29  ;;  %4828 = vrot.lane.b32.xlu0 %v10367_v5, %s8013_s29  ;;  %v4306_v47 = vsel %vm1460_vm0, %v4259_v41, 0  ;;  %v4254_v23 = vpack.c.b16 %v4241_v30, %v4240_v2  ;;  %v4303_v41 = vsel %vm1460_vm0, %v10335_v4, 0  ;;  %v4228_v37 = vpack.c.b16 %v4213_v46, %v4212_v28  ;;  %v7987_v28 = vld [vmem:[%s12260_s21 + $0x8] sm:$0xff] }
 0xa41   : > { %4308 = vmatpush.bf16.xpose.msrb.mxu1 %v4306_v47  ;;  %v4300_v4 = vsel %vm1460_vm0, %v10291_v35, 0  ;;  %v4231_v44 = vpack.c.b16 %v4219_v61, %v4218_v3  ;;  %v4225_v35 = vunpack.c.l.b16 %v10329_v34 }
 0xa42   : > { %v4291_v63 = vsel %vm1460_vm0, %v4254_v23, 0 }
 0xa43   : > { %4767 = vmatpush.bf16.msrb.mxu2 %v4754_v53  ;;  %v4234_v17 = vpack.c.b16 %v4225_v35, %v4224_v19  ;;  %v7990_v19 = vld [vmem:[%s12260_s21 + $0x20] sm:$0xff] }
 0xa47   : > { %4768 = vmatpush.bf16.msrb.mxu2 %v10281_v33  ;;  %4818 = vrot.lane.b32.xlu2 %v4230_v9, %s8013_s29 }
 0xa48   : > { %4834 = vrot.lane.b32.xlu1 %v4254_v23, %s8013_s29  ;;  %5317 = vrot.lane.b32.xlu0 %v4756_v7, %s8013_s29  ;;  %v7986_v23 = vld [vmem:[%s12260_s21] sm:$0xff] }
 0xa49   : > { %4309 = vmatpush.bf16.xpose.msrb.mxu1 %v4303_v41 }
 0xa4b   : > { %4769 = vmatpush.bf16.msrb.mxu2 %v10273_v13 }
 0xa4f   : > { %4770 = vmatpush.bf16.msrb.mxu2 %v10233_v49  ;;  %4824 = vrot.lane.b32.xlu2 %v10293_v40, %s8013_s29 }
 0xa50   : > { %4814 = vrot.lane.b32.xlu1 %v4228_v37, %s8013_s29  ;;  %5307 = vrot.lane.b32.xlu0 %v10233_v49, %s8013_s29  ;;  %v4297_v49 = vsel %vm1460_vm0, %v10301_v20, 0  ;;  %v4288_v20 = vsel %vm1460_vm0, %v10306_v57, 0  ;;  %v4841_v34 = vpop.permute.xlu0 %4840 }
 0xa51   : > { %4310 = vmatpush.bf16.xpose.msrb.mxu1 %v4300_v4  ;;  %v7988_v4 = vld [vmem:[%s12260_s21 + $0x10] sm:$0xff] }
 0xa53   : > { %4771 = vmatpush.bf16.msrb.mxu2 %v10213_v8 }
 0xa57   : > { %4772 = vmatpush.bf16.msrb.mxu2 %v10201_v58  ;;  %5315 = vrot.lane.b32.xlu2 %v4755_v48, %s8013_s29  ;;  %v4886_v48 = vsel %vm1460_vm0, %v4841_v34, 0 }
 0xa58   : > { %4820 = vrot.lane.b32.xlu1 %v4231_v44, %s8013_s29  ;;  %v4839_v45 = vpop.permute.xlu0 %4838 }
 0xa59   : > { %4311 = vmatpush.bf16.xpose.msrb.mxu1 %v4297_v49  ;;  %v4883_v55 = vsel %vm1460_vm0, %v4839_v45, 0 }
 0xa5f   : > { %5313 = vrot.lane.b32.xlu2 %v4754_v53, %s8013_s29 }
 0xa60   : > { %4826 = vrot.lane.b32.xlu1 %v4234_v17, %s8013_s29  ;;  %v4833_v54 = vpop.permute.xlu0 %4832 }
 0xa61   : > { %4312 = vmatpush.bf16.xpose.msrb.mxu1 %v4294_v26  ;;  %v4874_v18 = vsel %vm1460_vm0, %v4833_v54, 0 }
 0xa68   : > { %5311 = vrot.lane.b32.xlu1 %v10281_v33, %s8013_s29  ;;  %v4817_v7 = vpop.permute.xlu0 %4816 }
 0xa69   : > { %4313 = vmatpush.bf16.xpose.msrb.mxu1 %v4291_v63  ;;  %v7991_v63 = vld [vmem:[%s12260_s21 + $0x28] sm:$0xff] }
 0xa70   : > { %5309 = vrot.lane.b32.xlu1 %v10273_v13, %s8013_s29  ;;  %v10419_v57 = vpop.permute.xlu0 %4822 }
 0xa71   : > { %4314 = vmatpush.bf16.xpose.msrb.mxu1 %v4288_v20 }
 0xa79   : > { %4315 = vmatpush.bf16.xpose.msrb.mxu1 %v4285_v16 }
 0xa80   : > { %7142 = vmatmul.msk.bf16.vlgmr.msrb.gmra.mxu1 %vm1460_vm0, %v4228_v37 }
 0xa89   : > { %v4843_v1 = vpop.permute.xlu2 %4842 }
 0xa8a   : > { %v4889_v14 = vsel %vm1460_vm0, %v4843_v1, 0 }
 0xa90   : > { %7143 = vmatmul.msk.bf16.gmra.mxu1 %vm1460_vm0, %v10311_v29 }
 0xa91   : > { %v4837_v33 = vpop.permute.xlu2 %4836 }
 0xa92   : > { %v4880_v27 = vsel %vm1460_vm0, %v4837_v33, 0 }
 0xa99   : > { %v4831_v38 = vpop.permute.xlu2 %4830 }
 0xaa0   : > { %7144 = vmatmul.msk.bf16.gmra.mxu1 %vm1460_vm0, %v4230_v9 }
 0xaa1   : > { %v4819_v13 = vpop.permute.xlu2 %4818 }
 0xaa9   : > { %v10421_v0 = vpop.permute.xlu2 %4824 }
 0xab0   : > { %7145 = vmatmul.msk.bf16.gmra.mxu1 %vm1460_vm0, %v4231_v44  ;;  %v7989_v44 = vld [vmem:[%s12260_s21 + $0x18] sm:$0xff] }
 0xab1   : > { %v5316_v29 = vpop.permute.xlu2 %5315 }
 0xab2   : > { %v4845_v36 = vpop.permute.xlu1 %4844  ;;  %v10424_v52 = vpop.permute.xlu0 %4828 }
 0xab3   : > { %v4892_v59 = vsel %vm1460_vm0, %v4845_v36, 0 }
 0xab4   : > { %4894 = vmatpush.bf16.xpose.msrb.mxu3 %v4892_v59  ;;  %v7992_v59 = vld [vmem:[%s12260_s21 + $0x30] sm:$0xff] }
 0xab9   : > { %v5314_v6 = vpop.permute.xlu2 %5313 }
 0xaba   : > { %v4835_v25 = vpop.permute.xlu1 %4834  ;;  %v5318_v39 = vpop.permute.xlu0 %5317 }
 0xabb   : > { %5327 = vmatpush.bf16.msra.mxu0 %v5318_v39  ;;  %v10514_v39 = vld [vmem:[%s12260_s21 + $0x38] sm:$0xff] }
 0xabc   : > { %4895 = vmatpush.bf16.xpose.msrb.mxu3 %v4889_v14 }
 0xabf   : > { %5328 = vmatpush.bf16.msra.mxu0 %v5316_v29 }
 0xac0   : > { %7146 = vmatmul.msk.bf16.gmra.mxu1 %vm1460_vm0, %v10315_v10  ;;  %v4877_v10 = vsel %vm1460_vm0, %v4835_v25, 0 }
 0xac2   : > { %v4815_v51 = vpop.permute.xlu1 %4814  ;;  %v5308_v2 = vpop.permute.xlu0 %5307 }
 0xac3   : > { %5329 = vmatpush.bf16.msra.mxu0 %v5314_v6 }
 0xac4   : > { %4896 = vmatpush.bf16.xpose.msrb.mxu3 %v4886_v48 }
 0xaca   : > { %v4821_v22 = vpop.permute.xlu1 %4820 }
 0xacc   : > { %4897 = vmatpush.bf16.xpose.msrb.mxu3 %v4883_v55  ;;  %v10532_v55 = vld [vmem:[%s12260_s21 + $0x50] sm:$0xff] }
 0xad0   : > { %7147 = vmatmul.msk.bf16.gmra.mxu1 %vm1460_vm0, %v10293_v40  ;;  %v4871_v40 = vsel %vm1460_vm0, %v4831_v38, 0 }
 0xad2   : > { %v4827_v47 = vpop.permute.xlu1 %4826 }
 0xad4   : > { %4898 = vmatpush.bf16.xpose.msrb.mxu3 %v4880_v27 }
 0xada   : > { %v5312_v53 = vpop.permute.xlu1 %5311 }
 0xadb   : > { %5330 = vmatpush.bf16.msra.mxu0 %v5312_v53 }
 0xadc   : > { %4899 = vmatpush.bf16.xpose.msrb.mxu3 %v4877_v10  ;;  %v10541_v10 = vld [vmem:[%s12260_s21 + $0x58] sm:$0xff] }
 0xae0   : > { %7148 = vmatmul.msk.bf16.gmra.mxu1 %vm1460_vm0, %v4234_v17 }
 0xae2   : > { %v5310_v30 = vpop.permute.xlu1 %5309 }
 0xae3   : > { %5331 = vmatpush.bf16.msra.mxu0 %v5310_v30 }
 0xae4   : > { %4900 = vmatpush.bf16.xpose.msrb.mxu3 %v4874_v18  ;;  %v10549_v18 = vld [vmem:[%s12260_s21 + $0x48] sm:$0xff] }
 0xae7   : > { %5332 = vmatpush.bf16.msra.mxu0 %v5308_v2 }
 0xaec   : > { %4901 = vmatpush.bf16.xpose.msrb.mxu3 %v4871_v40 }
 0xaf0   : > { %7149 = vmatmul.msk.bf16.gmra.mxu1 %vm1460_vm0, %v10367_v5 }
 0xaf3   : > { %7150 = vmatmul.msk.bf16.vlgmr.msrb.gmra.mxu3 %vm1460_vm0, %v4815_v51  ;;  %v10523_v51 = vld [vmem:[%s12260_s21 + $0x40] sm:$0xff] }
 0xafd   : > { %v4317_v9 = vpop.f32.mrf.mxu1 }
 0xafe   : > { %v10445_v41 = vadd.f32 %v7986_v23, %v4317_v9 }
 0xb00   : > { %4357 = vmax.xlane.f32.xlu2 %v10445_v41 }
 0xb03   : > { %7151 = vmatmul.msk.bf16.gmra.mxu3 %vm1460_vm0, %v4817_v7 }
 0xb05   : > { %v4319_v46 = vpop.f32.mrf.mxu1 }
 0xb06   : > { %v10452_v37 = vadd.f32 %v7987_v28, %v4319_v46 }
 0xb08   : > { %4359 = vmax.xlane.f32.xlu1 %v10452_v37 }
 0xb0d   : > { %v4322_v5 = vpop.f32.mrf.mxu1 }
 0xb0e   : > { %v10458_v61 = vadd.f32 %v7988_v4, %v4322_v5 }
 0xb10   : > { %4361 = vmax.xlane.f32.xlu0 %v10458_v61 }
 0xb13   : > { %7152 = vmatmul.msk.bf16.gmra.mxu3 %vm1460_vm0, %v4819_v13 }
 0xb15   : > { %v4324_v3 = vpop.f32.mrf.mxu1 }
 0xb16   : > { %v10465_v49 = vadd.f32 %v7989_v44, %v4324_v3 }
 0xb18   : > { %4363 = vmax.xlane.f32.xlu1 %v10465_v49 }
 0xb1d   : > { %v4327_v35 = vpop.f32.mrf.mxu1 }
 0xb1e   : > { %v10471_v17 = vadd.f32 %v7990_v19, %v4327_v35 }
 0xb20   : > { %4365 = vmax.xlane.f32.xlu0 %v10471_v17 }
 0xb23   : > { %7153 = vmatmul.msk.bf16.gmra.mxu3 %vm1460_vm0, %v4821_v22 }
 0xb25   : > { %v4329_v26 = vpop.f32.mrf.mxu1 }
 0xb26   : > { %v10478_v20 = vadd.f32 %v7991_v63, %v4329_v26 }
 0xb28   : > { %4367 = vmax.xlane.f32.xlu2 %v10478_v20 }
 0xb2d   : > { %v4332_v9 = vpop.f32.mrf.mxu1 }
 0xb2e   : > { %v10557_v46 = vadd.f32 %v7992_v59, %v4332_v9 }
 0xb33   : > { %7154 = vmatmul.msk.bf16.gmra.mxu3 %vm1460_vm0, %v10419_v57 }
 0xb43   : > { %7155 = vmatmul.msk.bf16.gmra.mxu3 %vm1460_vm0, %v10421_v0 }
 0xb53   : > { %7156 = vmatmul.msk.bf16.gmra.mxu3 %vm1460_vm0, %v4827_v47 }
 0xb63   : > { %7157 = vmatmul.msk.bf16.gmra.mxu3 %vm1460_vm0, %v10424_v52 }
 0xb73   : > { %v4358_v5 = vpop.xlane.xlu2 %4357 }
 0xb76   : > { %v4903_v16 = vpop.f32.mrf.mxu3 }
 0xb77   : > { %v4904_v34 = vadd.f32 %v7986_v23, %v4903_v16 }
 0xb79   : > { %4943 = vmax.xlane.f32.xlu2 %v4904_v34 }
 0xb7b   : > { %v4360_v53 = vpop.xlane.xlu1 %4359 }
 0xb7c   : > { %v4390_v40 = vsub.f32 %v10452_v37, %v4360_v53  ;;  %v10568_v37 = vld [vmem:[%s12260_s21 + $0x68] sm:$0xff] }
 0xb7e   : > { %v4905_v1 = vpop.f32.mrf.mxu3  ;;  %v4407_v23 = vmul.f32 1.442695, %v4390_v40 }
 0xb7f   : > { %v10488_v45 = vadd.f32 %v7987_v28, %v4905_v1 }
 0xb80   : > { %7794 = vpow2.f32 %v4407_v23 }
 0xb81   : > { %4945 = vmax.xlane.f32.xlu1 %v10488_v45 }
 0xb86   : > { %v4908_v33 = vpop.f32.mrf.mxu3 }
 0xb87   : > { %v10491_v54 = vadd.f32 %v7988_v4, %v4908_v33  ;;  %v10560_v4 = vpop.eup %7794 }
 0xb89   : > { %4947 = vmax.xlane.f32.xlu0 %v10491_v54 }
 0xb8b   : > { %v4364_v26 = vpop.xlane.xlu1 %4363 }
 0xb8e   : > { %v4910_v38 = vpop.f32.mrf.mxu3 }
 0xb8f   : > { %v10494_v7 = vadd.f32 %v7989_v44, %v4910_v38 }
 0xb91   : > { %4949 = vmax.xlane.f32.xlu2 %v10494_v7 }
 0xb96   : > { %v4913_v13 = vpop.f32.mrf.mxu3 }
 0xb97   : > { %v10497_v57 = vadd.f32 %v7990_v19, %v4913_v13  ;;  %v4362_v19 = vpop.xlane.xlu0 %4361 }
 0xb99   : > { %4951 = vmax.xlane.f32.xlu1 %v10497_v57 }
 0xb9b   : > { %v10563_v3 = vpop.xlane.xlu2 %4367 }
 0xb9e   : > { %v4915_v0 = vpop.f32.mrf.mxu3 }
 0xb9f   : > { %v10500_v36 = vadd.f32 %v7991_v63, %v4915_v0  ;;  %v10574_v33 = vpop.xlane.xlu0 %4365 }
 0xba1   : > { %4953 = vmax.xlane.f32.xlu0 %v10500_v36 }
 0xba6   : > { %v4918_v52 = vpop.f32.mrf.mxu3 }
 0xba7   : > { %v10506_v29 = vadd.f32 %v7992_v59, %v4918_v52  ;;  %v4389_v59 = vsub.f32 %v10445_v41, %v4358_v5 }
 0xba9   : > { %5305 = vrot.lane.b32.xlu2 %v10213_v8, %s8013_s29  ;;  %4955 = vmax.xlane.f32.xlu1 %v10506_v29 }
 0xbae   : > { %v4920_v25 = vpop.f32.mrf.mxu3 }
 0xbaf   : > { %v10517_v14 = vadd.f32 %v10514_v39, %v4920_v25  ;;  %v4405_v25 = vmul.f32 1.442695, %v4389_v59  ;;  %v4392_v59 = vsub.f32 %v10465_v49, %v4364_v26 }
 0xbb1   : > { %4957 = vmax.xlane.f32.xlu1 %v10517_v14 }
 0xbb6   : > { %v4923_v6 = vpop.f32.mrf.mxu3 }
 0xbb7   : > { %v10526_v8 = vadd.f32 %v10523_v51, %v4923_v6 }
 0xbb9   : > { %4959 = vmax.xlane.f32.xlu1 %v10526_v8 }
 0xbbe   : > { %v4925_v48 = vpop.f32.mrf.mxu3 }
 0xbbf   : > { %v10552_v2 = vadd.f32 %v10549_v18, %v4925_v48 }
 0xbc6   : > { %v4928_v22 = vpop.f32.mrf.mxu3 }
 0xbc7   : > { %v10535_v47 = vadd.f32 %v10532_v55, %v4928_v22 }
 0xbc9   : > { %4963 = vmax.xlane.f32.xlu0 %v10535_v47 }
 0xbce   : > { %v4930_v27 = vpop.f32.mrf.mxu3 }
 0xbcf   : > { %v10544_v30 = vadd.f32 %v10541_v10, %v4930_v27 }
 0xbd1   : > { %4965 = vmax.xlane.f32.xlu0 %v10544_v30 }
 0xbd2   : > { %4961 = vmax.xlane.f32.xlu2 %v10552_v2 }
 0xbd6   : > { %v4933_v28 = vpop.f32.mrf.mxu3 }
 0xbd9   : > { %4369 = vmax.xlane.f32.xlu0 %v10557_v46 }
 0xbde   : > { %v4935_v44 = vpop.f32.mrf.mxu3 }
 0xbdf   : > { %v10571_v35 = vadd.f32 %v10568_v37, %v4935_v44  ;;  %v10595_v44 = vpop.f32.mrf.mxu1 }
 0xbe1   : > { %4439 = vadd.xlane.f32.xlu0 %v10560_v4 }
 0xbe9   : > { %4969 = vmax.xlane.f32.xlu0 %v10571_v35 }
 0xbec   : > { %v4944_v63 = vpop.xlane.xlu2 %4943 }
 0xbed   : > { %v4975_v16 = vsub.f32 %v4904_v34, %v4944_v63 }
 0xbef   : > { %v4991_v1 = vmul.f32 1.442695, %v4975_v16 }
 0xbf1   : > { %7796 = vpow2.f32 %v4991_v1  ;;  %v10602_v1 = vld [vmem:[%s12260_s21 + $0x60] sm:$0xff] }
 0xbf4   : > { %v4946_v38 = vpop.xlane.xlu1 %4945 }
 0xbf5   : > { %v4976_v13 = vsub.f32 %v10488_v45, %v4946_v38  ;;  %v10605_v38 = vadd.f32 %v10602_v1, %v4933_v28  ;;  %v4391_v28 = vsub.f32 %v10458_v61, %v4362_v19  ;;  %v4938_v61 = vpop.f32.mrf.mxu3 }
 0xbf7   : > { %v10577_v0 = vpop.eup %7796  ;;  %v4993_v52 = vmul.f32 1.442695, %v4976_v13  ;;  %v4409_v26 = vmul.f32 1.442695, %v4391_v28 }
 0xbf8   : > { %5023 = vadd.xlane.f32.xlu1 %v10577_v0 }
 0xbf9   : > { %7798 = vpow2.f32 %v4993_v52  ;;  %v4337_v52 = vpop.f32.mrf.mxu1 }
 0xbfa   : > { %7800 = vpow2.f32 %v4405_v25  ;;  %v4411_v25 = vmul.f32 1.442695, %v4392_v59 }
 0xbfc   : > { %v4948_v6 = vpop.xlane.xlu0 %4947 }
 0xbfd   : > { %v4977_v48 = vsub.f32 %v10491_v54, %v4948_v6  ;;  %v10613_v6 = vadd.f32 %v10523_v51, %v4337_v52 }
 0xbff   : > { %v10582_v34 = vpop.eup %7798  ;;  %v4995_v22 = vmul.f32 1.442695, %v4977_v48 }
 0xc00   : > { %5025 = vadd.xlane.f32.xlu2 %v10582_v34  ;;  %v10586_v53 = vpop.eup %7800 }
 0xc01   : > { %7802 = vpow2.f32 %v4995_v22  ;;  %v4339_v49 = vpop.f32.mrf.mxu1 }
 0xc02   : > { %v10624_v51 = vadd.f32 %v10549_v18, %v4339_v49 }
 0xc04   : > { %v4950_v45 = vpop.xlane.xlu2 %4949 }
 0xc05   : > { %v4978_v27 = vsub.f32 %v10494_v7, %v4950_v45 }
 0xc07   : > { %v10588_v41 = vpop.eup %7802  ;;  %v4997_v40 = vmul.f32 1.442695, %v4978_v27 }
 0xc08   : > { %5027 = vadd.xlane.f32.xlu1 %v10588_v41  ;;  %4437 = vadd.xlane.f32.xlu2 %v10586_v53 }
 0xc09   : > { %7804 = vpow2.f32 %v4997_v40 }
 0xc0c   : > { %v5306_v54 = vpop.permute.xlu2 %5305  ;;  %v4952_v9 = vpop.xlane.xlu1 %4951 }
 0xc0d   : > { %v4979_v23 = vsub.f32 %v10497_v57, %v4952_v9  ;;  %5333 = vmatpush.bf16.msra.mxu0 %v5306_v54  ;;  %v4342_v54 = vpop.f32.mrf.mxu1  ;;  %v4940_v9 = vpop.f32.mrf.mxu3 }
 0xc0f   : > { %v10593_v5 = vpop.eup %7804  ;;  %v4999_v7 = vmul.f32 1.442695, %v4979_v23 }
 0xc10   : > { %5029 = vadd.xlane.f32.xlu2 %v10593_v5 }
 0xc11   : > { %7806 = vpow2.f32 %v4999_v7  ;;  %v10638_v7 = vadd.f32 %v10532_v55, %v4342_v54 }
 0xc14   : > { %v4954_v63 = vpop.xlane.xlu0 %4953 }
 0xc15   : > { %v4980_v16 = vsub.f32 %v10500_v36, %v4954_v63  ;;  %v10643_v63 = vld [vmem:[%s12260_s21 + $0x78] sm:$0xff]  ;;  %v4344_v49 = vpop.f32.mrf.mxu1 }
 0xc17   : > { %v10607_v57 = vpop.eup %7806  ;;  %v5001_v13 = vmul.f32 1.442695, %v4980_v16  ;;  %v10646_v16 = vadd.f32 %v10643_v63, %v4940_v9 }
 0xc18   : > { %4967 = vmax.xlane.f32.xlu2 %v10605_v38  ;;  %5031 = vadd.xlane.f32.xlu0 %v10607_v57 }
 0xc19   : > { %7808 = vpow2.f32 %v5001_v13 }
 0xc1a   : > { %7810 = vpow2.f32 %v4411_v25 }
 0xc1b   : > { %7812 = vpow2.f32 %v4409_v26 }
 0xc1c   : > { %v4956_v36 = vpop.xlane.xlu1 %4955 }
 0xc1d   : > { %v4981_v22 = vsub.f32 %v10506_v29, %v4956_v36 }
 0xc1f   : > { %v10615_v48 = vpop.eup %7808  ;;  %v5003_v27 = vmul.f32 1.442695, %v4981_v22 }
 0xc20   : > { %4373 = vmax.xlane.f32.xlu2 %v10613_v6  ;;  %5033 = vadd.xlane.f32.xlu0 %v10615_v48  ;;  %v10626_v40 = vpop.eup %7810 }
 0xc21   : > { %5303 = vrot.lane.b32.xlu1 %v10201_v58, %s8013_s29  ;;  %7814 = vpow2.f32 %v5003_v27  ;;  %v10630_v29 = vpop.eup %7812 }
 0xc24   : > { %v4958_v45 = vpop.xlane.xlu1 %4957 }
 0xc25   : > { %v4982_v36 = vsub.f32 %v10517_v14, %v4958_v45 }
 0xc27   : > { %v10632_v58 = vpop.eup %7814 }
 0xc28   : > { %4443 = vadd.xlane.f32.xlu2 %v10626_v40  ;;  %4375 = vmax.xlane.f32.xlu0 %v10624_v51 }
 0xc2c   : > { %v4960_v19 = vpop.xlane.xlu1 %4959 }
 0xc2d   : > { %v4983_v18 = vsub.f32 %v10526_v8, %v4960_v19  ;;  %v4394_v8 = vsub.f32 %v10478_v20, %v10563_v3  ;;  %v5005_v20 = vmul.f32 1.442695, %v4982_v36  ;;  %v10663_v19 = vadd.f32 %v10514_v39, %v10595_v44 }
 0xc2e   : > { %v10693_v36 = vadd.f32 %v10541_v10, %v4344_v49 }
 0xc2f   : > { %v5007_v23 = vmul.f32 1.442695, %v4983_v18  ;;  %v4415_v52 = vmul.f32 1.442695, %v4394_v8 }
 0xc30   : > { %4441 = vadd.xlane.f32.xlu0 %v10630_v29  ;;  %5035 = vadd.xlane.f32.xlu2 %v10632_v58 }
 0xc31   : > { %7816 = vpow2.f32 %v5007_v23  ;;  %v8001_v23 = vld [vmem:[%s12260_s21 + $0x70] sm:$0xff] }
 0xc32   : > { %7818 = vpow2.f32 %v4415_v52  ;;  %v10684_v8 = vadd.f32 %v8001_v23, %v4938_v61 }
 0xc37   : > { %v10652_v55 = vpop.eup %7816 }
 0xc38   : > { %4973 = vmax.xlane.f32.xlu0 %v10646_v16  ;;  %4377 = vmax.xlane.f32.xlu2 %v10638_v7  ;;  %v10658_v27 = vpop.eup %7818 }
 0xc3c   : > { %v4964_v13 = vpop.xlane.xlu0 %4963 }
 0xc3d   : > { %v4985_v59 = vsub.f32 %v10535_v47, %v4964_v13 }
 0xc3f   : > { %v5011_v28 = vmul.f32 1.442695, %v4985_v59 }
 0xc40   : > { %5039 = vadd.xlane.f32.xlu0 %v10652_v55 }
 0xc41   : > { %7820 = vpow2.f32 %v5011_v28 }
 0xc44   : > { %v4966_v25 = vpop.xlane.xlu0 %4965 }
 0xc45   : > { %v4962_v22 = vpop.xlane.xlu2 %4961  ;;  %v4986_v39 = vsub.f32 %v10544_v30, %v4966_v25  ;;  %v4393_v30 = vsub.f32 %v10471_v17, %v10574_v33 }
 0xc46   : > { %v4984_v26 = vsub.f32 %v10552_v2, %v4962_v22  ;;  %v4347_v2 = vpop.f32.mrf.mxu1 }
 0xc47   : > { %v10666_v47 = vpop.eup %7820  ;;  %v5013_v54 = vmul.f32 1.442695, %v4986_v39  ;;  %v10679_v9 = vadd.f32 %v10602_v1, %v4347_v2  ;;  %v4413_v1 = vmul.f32 1.442695, %v4393_v30 }
 0xc48   : > { %v5009_v3 = vmul.f32 1.442695, %v4984_v26  ;;  %4447 = vadd.xlane.f32.xlu0 %v10658_v27 }
 0xc4a   : > { %7822 = vpow2.f32 %v5009_v3 }
 0xc4b   : > { %4371 = vmax.xlane.f32.xlu1 %v10663_v19  ;;  %7824 = vpow2.f32 %v5005_v20 }
 0xc4c   : > { %v4370_v14 = vpop.xlane.xlu0 %4369  ;;  %7826 = vpow2.f32 %v5013_v54 }
 0xc4d   : > { %7828 = vpow2.f32 %v4413_v1  ;;  %v4395_v33 = vsub.f32 %v10557_v46, %v4370_v14 }
 0xc4e   : > { %v4349_v13 = vpop.f32.mrf.mxu1 }
 0xc4f   : > { %v4417_v10 = vmul.f32 1.442695, %v4395_v33  ;;  %v10709_v49 = vadd.f32 %v10568_v37, %v4349_v13 }
 0xc50   : > { %v10668_v45 = vpop.eup %7822  ;;  %5043 = vadd.xlane.f32.xlu0 %v10666_v47 }
 0xc51   : > { %5041 = vadd.xlane.f32.xlu2 %v10668_v45  ;;  %v10672_v18 = vpop.eup %7824 }
 0xc52   : > { %v10690_v59 = vpop.eup %7826 }
 0xc53   : > { %5037 = vadd.xlane.f32.xlu1 %v10672_v18  ;;  %v10701_v17 = vpop.eup %7828 }
 0xc54   : > { %v10676_v44 = vpop.xlane.xlu0 %4439 }
 0xc55   : > { %v4495_v33 = vand.u32 2147483648, %v10676_v44  ;;  %vm4489_vm2 = vweird.f32 %v10676_v44 }
 0xc56   : > { %v4352_v25 = vpop.f32.mrf.mxu1 }
 0xc57   : > { %v10698_v22 = vadd.f32 %v8001_v23, %v4352_v25 }
 0xc59   : > { %4381 = vmax.xlane.f32.xlu2 %v10679_v9 }
 0xc5b   : > { %4971 = vmax.xlane.f32.xlu1 %v10684_v8 }
 0xc5c   : > { %v4970_v52 = vpop.xlane.xlu0 %4969 }
 0xc5d   : > { %v4988_v61 = vsub.f32 %v10571_v35, %v4970_v52 }
 0xc5e   : > { %v4354_v30 = vpop.f32.mrf.mxu1 }
 0xc5f   : > { %v5017_v28 = vmul.f32 1.442695, %v4988_v61  ;;  %v10732_v61 = vadd.f32 %v10643_v63, %v4354_v30  ;;  %v4496_v30 = vor.u32 1.1754944e-38, %v4495_v33 }
 0xc61   : > { %5045 = vadd.xlane.f32.xlu2 %v10690_v59  ;;  %7830 = vpow2.f32 %v5017_v28 }
 0xc62   : > { %7832 = vrcp.f32 %v10676_v44 }
 0xc63   : > { %4379 = vmax.xlane.f32.xlu1 %v10693_v36  ;;  %7834 = vpow2.f32 %v4417_v10 }
 0xc67   : > { %v10706_v35 = vpop.eup %7830 }
 0xc68   : > { %v7833_v26 = vpop.eup %7832 }
 0xc69   : > { %4385 = vmax.xlane.f32.xlu2 %v10698_v22  ;;  %v4485_v46 = vmul.f32 %v7833_v26, %v10676_v44  ;;  %v10720_v14 = vpop.eup %7834  ;;  %vm4490_vm1 = vweird.f32 %v7833_v26 }
 0xc6a   : > { %vm4491_vm3 = vmor %vm4489_vm2, %vm4490_vm1 }
 0xc6b   : > { %4445 = vadd.xlane.f32.xlu1 %v10701_v17  ;;  %v10712_v20 = vpop.xlane.xlu1 %5023  ;;  %v4486_v37 = vsub.f32 1.0, %v4485_v46 }
 0xc6c   : > { %vm5060_vm11 = vweird.f32 %v10712_v20 }
 0xc6d   : > { %v4487_v13 = vmul.f32 %v7833_v26, %v4486_v37  ;;  %v4493_v37 = vand.u32 2147483647, %v10676_v44 }
 0xc6f   : > { %v4488_v25 = vadd.f32 %v7833_v26, %v4487_v13  ;;  %vm4494_vm4 = vcmp.eq.f32.partialorder %v4493_v37, 8.507059e+37 }
 0xc71   : > { %5049 = vadd.xlane.f32.xlu2 %v10706_v35 }
 0xc73   : > { %v10714_v3 = vpop.xlane.xlu2 %5025  ;;  %4383 = vmax.xlane.f32.xlu1 %v10709_v49 }
 0xc74   : > { %7836 = vrcp.f32 %v10714_v3  ;;  %vm5075_vm9 = vweird.f32 %v10714_v3  ;;  %v5079_v33 = vand.u32 2147483647, %v10714_v3 }
 0xc75   : > { %7838 = vrcp.f32 %v10712_v20 }
 0xc76   : > { %vm5080_vm15 = vcmp.eq.f32.partialorder %v5079_v33, 8.507059e+37 }
 0xc7a   : > { %v10722_v2 = vpop.eup %7836 }
 0xc7b   : > { %v10724_v39 = vpop.eup %7838  ;;  %v4438_v54 = vpop.xlane.xlu2 %4437  ;;  %4449 = vadd.xlane.f32.xlu1 %v10720_v14  ;;  %v5071_v23 = vmul.f32 %v10722_v2, %v10714_v3  ;;  %vm5076_vm6 = vweird.f32 %v10722_v2 }
 0xc7c   : > { %7840 = vrcp.f32 %v4438_v54  ;;  %v5056_v52 = vmul.f32 %v10724_v39, %v10712_v20  ;;  %v10735_v46 = vpop.xlane.xlu1 %5027  ;;  %v4480_v43 = vand.u32 2147483648, %v4438_v54  ;;  %v4478_v50 = vand.u32 2147483647, %v4438_v54  ;;  %vm10759_vm12 = vmor %vm5075_vm9, %vm5076_vm6 }
 0xc7d   : > { %v5072_v1 = vsub.f32 1.0, %v5071_v23  ;;  %v4492_v23 = vsel %vm4491_vm3, %v7833_v26, %v4488_v25  ;;  %vm5061_vm7 = vweird.f32 %v10724_v39  ;;  %v5081_v26 = vand.u32 2147483648, %v10714_v3 }
 0xc7e   : > { %v5057_v10 = vsub.f32 1.0, %v5056_v52  ;;  %v4497_v56 = vsel %vm4494_vm4, %v4496_v30, %v4492_v23  ;;  %vm4474_vm8 = vweird.f32 %v4438_v54  ;;  %vm4479_vm13 = vcmp.eq.f32.partialorder %v4478_v50, 8.507059e+37  ;;  %vm5062_vm14 = vmor %vm5060_vm11, %vm5061_vm7 }
 0xc7f   : > { %v5073_v63 = vmul.f32 %v10722_v2, %v5072_v1  ;;  %v5064_v3 = vand.u32 2147483647, %v10712_v20  ;;  %v4498_v11 = vmul.f32 %v10560_v4, %v4497_v56  ;;  %v5082_v50 = vor.u32 1.1754944e-38, %v5081_v26 }
 0xc80   : > { %v5058_v52 = vmul.f32 %v10724_v39, %v5057_v10  ;;  %v4481_v10 = vor.u32 1.1754944e-38, %v4480_v43 }
 0xc81   : > { %v5074_v60 = vadd.f32 %v10722_v2, %v5073_v63  ;;  %v5066_v63 = vand.u32 2147483648, %v10712_v20  ;;  %vm5065_vm1 = vcmp.eq.f32.partialorder %v5064_v3, 8.507059e+37 }
 0xc82   : > { %v7841_v28 = vpop.eup %7840  ;;  %v5059_v25 = vadd.f32 %v10724_v39, %v5058_v52 }
 0xc83   : > { %v4470_v62 = vmul.f32 %v7841_v28, %v4438_v54  ;;  %v10739_v32 = vpop.xlane.xlu2 %5029  ;;  %4387 = vmax.xlane.f32.xlu1 %v10732_v61  ;;  %vm4475_vm5 = vweird.f32 %v7841_v28  ;;  %v5078_v43 = vsel %vm10759_vm12, %v10722_v2, %v5074_v60  ;;  %v5067_v23 = vor.u32 1.1754944e-38, %v5066_v63 }
 0xc84   : > { %7842 = vrcp.f32 %v10739_v32  ;;  %vm4476_vm10 = vmor %vm4474_vm8, %vm4475_vm5  ;;  %v5083_v60 = vsel %vm5080_vm15, %v5082_v50, %v5078_v43  ;;  %vm5105_vm4 = vweird.f32 %v10739_v32  ;;  %vm5090_vm5 = vweird.f32 %v10735_v46 }
 0xc85   : > { %v4471_v13 = vsub.f32 1.0, %v4470_v62  ;;  %7844 = vrcp.f32 %v10735_v46  ;;  %v5084_v56 = vmul.f32 %v10582_v34, %v5083_v60 }
 0xc87   : > { %v4472_v44 = vmul.f32 %v7841_v28, %v4471_v13 }
 0xc89   : > { %v4473_v62 = vadd.f32 %v7841_v28, %v4472_v44 }
 0xc8a   : > { %v10750_v1 = vpop.eup %7842 }
 0xc8b   : > { %v10755_v37 = vpop.eup %7844  ;;  %v4477_v54 = vsel %vm4476_vm10, %v7841_v28, %v4473_v62  ;;  %v10763_v13 = vpop.xlane.xlu2 %4967  ;;  %v5101_v44 = vmul.f32 %v10750_v1, %v10739_v32  ;;  %v5063_v62 = vsel %vm5062_vm14, %v10724_v39, %v5059_v25  ;;  %vm5106_vm2 = vweird.f32 %v10750_v1 }
 0xc8c   : > { %v10765_v30 = vpop.xlane.xlu0 %5031  ;;  %v4482_v52 = vsel %vm4479_vm13, %v4481_v10, %v4477_v54  ;;  %v5086_v20 = vmul.f32 %v10755_v37, %v10735_v46  ;;  %v5068_v54 = vsel %vm5065_vm1, %v5067_v23, %v5063_v62  ;;  %vm5091_vm3 = vweird.f32 %v10755_v37  ;;  %vm10802_vm6 = vmor %vm5105_vm4, %vm5106_vm2 }
 0xc8d   : > { %v4483_v28 = vmul.f32 %v10586_v53, %v4482_v52  ;;  %v5102_v10 = vsub.f32 1.0, %v5101_v44  ;;  %v5069_v53 = vmul.f32 %v10577_v0, %v5068_v54  ;;  %v5111_v0 = vand.u32 2147483648, %v10739_v32  ;;  %vm5092_vm7 = vmor %vm5090_vm5, %vm5091_vm3 }
 0xc8e   : > { %v5087_v4 = vsub.f32 1.0, %v5086_v20  ;;  %v5096_v44 = vand.u32 2147483648, %v10735_v46  ;;  %v5094_v20 = vand.u32 2147483647, %v10735_v46  ;;  %vm5120_vm13 = vweird.f32 %v10765_v30 }
 0xc8f   : > { %v4709_v2 = vpack.c.bf16 %v4498_v11, %v4483_v28  ;;  %v5103_v39 = vmul.f32 %v10750_v1, %v5102_v10  ;;  %v5295_v34 = vpack.c.bf16 %v5084_v56, %v5069_v53  ;;  %v5112_v60 = vor.u32 1.1754944e-38, %v5111_v0 }
 0xc90   : > { %v5088_v11 = vmul.f32 %v10755_v37, %v5087_v4  ;;  %v5097_v46 = vor.u32 1.1754944e-38, %v5096_v44  ;;  %vm5095_vm9 = vcmp.eq.f32.partialorder %v5094_v20, 8.507059e+37 }
 0xc91   : > { %4773 = vmatmul.bf16.vlgmr.msrb.gmra.mxu2 %v4709_v2  ;;  %v5104_v3 = vadd.f32 %v10750_v1, %v5103_v39 }
 0xc93   : > { %v4374_v42 = vpop.xlane.xlu2 %4373  ;;  %v5304_v33 = vpop.permute.xlu1 %5303 }
 0xc94   : > { %v10781_v26 = vpop.xlane.xlu0 %5033  ;;  %v4397_v25 = vsub.f32 %v10613_v6, %v4374_v42  ;;  %5334 = vmatpush.bf16.msra.mxu0 %v5304_v33  ;;  %v5089_v42 = vadd.f32 %v10755_v37, %v5088_v11  ;;  %v5109_v6 = vand.u32 2147483647, %v10739_v32  ;;  %v5108_v32 = vsel %vm10802_vm6, %v10750_v1, %v5104_v3 }
 0xc95   : > { %7846 = vrcp.f32 %v10781_v26  ;;  %v5141_v50 = vand.u32 2147483648, %v10781_v26  ;;  %vm5135_vm12 = vweird.f32 %v10781_v26 }
 0xc96   : > { %7848 = vrcp.f32 %v10765_v30  ;;  %v4421_v63 = vmul.f32 1.442695, %v4397_v25  ;;  %vm5110_vm8 = vcmp.eq.f32.partialorder %v5109_v6, 8.507059e+37  ;;  %v5093_v54 = vsel %vm5092_vm7, %v10755_v37, %v5089_v42 }
 0xc97   : > { %5335 = vmatmul.bf16.vlgmr.msra.gmra.mxu0 %v5295_v34  ;;  %v5113_v56 = vsel %vm5110_vm8, %v5112_v60, %v5108_v32  ;;  %v5098_v53 = vsel %vm5095_vm9, %v5097_v46, %v5093_v54  ;;  %v5126_v42 = vand.u32 2147483648, %v10765_v30 }
 0xc98   : > { %7850 = vpow2.f32 %v4421_v63  ;;  %v5114_v1 = vmul.f32 %v10593_v5, %v5113_v56  ;;  %v5099_v34 = vmul.f32 %v10588_v41, %v5098_v53  ;;  %v5139_v5 = vand.u32 2147483647, %v10781_v26 }
 0xc99   : > { %v5124_v41 = vand.u32 2147483647, %v10765_v30  ;;  %v5127_v32 = vor.u32 1.1754944e-38, %v5126_v42 }
 0xc9a   : > { %v5296_v0 = vpack.c.bf16 %v5114_v1, %v5099_v34  ;;  %vm5140_vm2 = vcmp.eq.f32.partialorder %v5139_v5, 8.507059e+37 }
 0xc9b   : > { %v10792_v43 = vpop.eup %7846  ;;  %v10806_v28 = vpop.xlane.xlu2 %4443  ;;  %vm5125_vm6 = vcmp.eq.f32.partialorder %v5124_v41, 8.507059e+37 }
 0xc9c   : > { %v10798_v52 = vpop.eup %7848  ;;  %v10808_v62 = vpop.xlane.xlu0 %4375  ;;  %v5131_v23 = vmul.f32 %v10792_v43, %v10781_v26  ;;  %7852 = vrcp.f32 %v10806_v28  ;;  %vm5136_vm10 = vweird.f32 %v10792_v43  ;;  %v4525_v53 = vand.u32 2147483648, %v10806_v28 }
 0xc9d   : > { %v5116_v10 = vmul.f32 %v10798_v52, %v10765_v30  ;;  %vm5121_vm11 = vweird.f32 %v10798_v52  ;;  %vm10838_vm14 = vmor %vm5135_vm12, %vm5136_vm10  ;;  %v5142_v30 = vor.u32 1.1754944e-38, %v5141_v50  ;;  %vm4519_vm3 = vweird.f32 %v10806_v28 }
 0xc9e   : > { %v10817_v2 = vpop.eup %7850  ;;  %v5132_v4 = vsub.f32 1.0, %v5131_v23  ;;  %vm10846_vm1 = vmor %vm5120_vm13, %vm5121_vm11  ;;  %v4523_v1 = vand.u32 2147483647, %v10806_v28 }
 0xc9f   : > { %4453 = vadd.xlane.f32.xlu1 %v10817_v2  ;;  %v5117_v25 = vsub.f32 1.0, %v5116_v10 }
 0xca0   : > { %v5133_v63 = vmul.f32 %v10792_v43, %v5132_v4  ;;  %vm4524_vm8 = vcmp.eq.f32.partialorder %v4523_v1, 8.507059e+37 }
 0xca1   : > { %v5118_v3 = vmul.f32 %v10798_v52, %v5117_v25 }
 0xca2   : > { %v7853_v39 = vpop.eup %7852  ;;  %v5134_v6 = vadd.f32 %v10792_v43, %v5133_v63 }
 0xca3   : > { %v4515_v33 = vmul.f32 %v7853_v39, %v10806_v28  ;;  %v5119_v23 = vadd.f32 %v10798_v52, %v5118_v3  ;;  %vm4520_vm15 = vweird.f32 %v7853_v39  ;;  %v4526_v28 = vor.u32 1.1754944e-38, %v4525_v53 }
 0xca4   : > { %v4442_v11 = vpop.xlane.xlu0 %4441  ;;  %v5138_v4 = vsel %vm10838_vm14, %v10792_v43, %v5134_v6  ;;  %vm10856_vm4 = vmor %vm4519_vm3, %vm4520_vm15  ;;  %v4398_v53 = vsub.f32 %v10624_v51, %v10808_v62 }
 0xca5   : > { %7854 = vrcp.f32 %v4442_v11  ;;  %v4516_v37 = vsub.f32 1.0, %v4515_v33  ;;  %v4510_v34 = vand.u32 2147483648, %v4442_v11  ;;  %v4508_v3 = vand.u32 2147483647, %v4442_v11 }
 0xca6   : > { %vm4504_vm7 = vweird.f32 %v4442_v11 }
 0xca7   : > { %v4517_v44 = vmul.f32 %v7853_v39, %v4516_v37  ;;  %5340 = vmatmul.bf16.gmra.mxu0 %v5296_v0  ;;  %v5143_v37 = vsel %vm5140_vm2, %v5142_v30, %v5138_v4  ;;  %v4511_v5 = vor.u32 1.1754944e-38, %v4510_v34  ;;  %vm4509_vm10 = vcmp.eq.f32.partialorder %v4508_v3, 8.507059e+37 }
 0xca8   : > { %v4987_v4 = vsub.f32 %v10605_v38, %v10763_v13 }
 0xca9   : > { %v4518_v46 = vadd.f32 %v7853_v39, %v4517_v44  ;;  %v5144_v44 = vmul.f32 %v10615_v48, %v5143_v37 }
 0xcab   : > { %v7855_v20 = vpop.eup %7854  ;;  %v4522_v0 = vsel %vm10856_vm4, %v7853_v39, %v4518_v46 }
 0xcac   : > { %v4500_v10 = vmul.f32 %v7855_v20, %v4442_v11  ;;  %v4974_v54 = vpop.xlane.xlu0 %4973  ;;  %vm4505_vm5 = vweird.f32 %v7855_v20 }
 0xcad   : > { %v4990_v56 = vsub.f32 %v10646_v16, %v4974_v54  ;;  %v5123_v16 = vsel %vm10846_vm1, %v10798_v52, %v5119_v23  ;;  %vm4506_vm9 = vmor %vm4504_vm7, %vm4505_vm5  ;;  %v10862_v52 = vpop.xlane.xlu2 %5035  ;;  %v4527_v23 = vsel %vm4524_vm8, %v4526_v28, %v4522_v0 }
 0xcae   : > { %v4501_v25 = vsub.f32 1.0, %v4500_v10  ;;  %v5128_v6 = vsel %vm5125_vm6, %v5127_v32, %v5123_v16  ;;  %v4528_v11 = vmul.f32 %v10626_v40, %v4527_v23  ;;  %v4423_v16 = vmul.f32 1.442695, %v4398_v53 }
 0xcaf   : > { %v5021_v33 = vmul.f32 1.442695, %v4990_v56  ;;  %v5129_v41 = vmul.f32 %v10607_v57, %v5128_v6  ;;  %vm5150_vm12 = vweird.f32 %v10862_v52  ;;  %v5154_v0 = vand.u32 2147483647, %v10862_v52 }
 0xcb0   : > { %v4502_v63 = vmul.f32 %v7855_v20, %v4501_v25  ;;  %v5156_v28 = vand.u32 2147483648, %v10862_v52 }
 0xcb1   : > { %7856 = vpow2.f32 %v5021_v33  ;;  %v5297_v39 = vpack.c.bf16 %v5144_v44, %v5129_v41  ;;  %vm5155_vm15 = vcmp.eq.f32.partialorder %v5154_v0, 8.507059e+37 }
 0xcb2   : > { %v4503_v42 = vadd.f32 %v7855_v20, %v4502_v63  ;;  %7858 = vrcp.f32 %v10862_v52 }
 0xcb4   : > { %v4507_v50 = vsel %vm4506_vm9, %v7855_v20, %v4503_v42 }
 0xcb5   : > { %v4512_v60 = vsel %vm4509_vm10, %v4511_v5, %v4507_v50  ;;  %v10872_v20 = vpop.xlane.xlu2 %4377 }
 0xcb6   : > { %v4513_v54 = vmul.f32 %v10630_v29, %v4512_v60  ;;  %v10879_v29 = vpop.xlane.xlu0 %5039 }
 0xcb7   : > { %v10866_v10 = vpop.eup %7856  ;;  %5345 = vmatmul.bf16.gmra.mxu0 %v5297_v39  ;;  %vm5180_vm8 = vweird.f32 %v10879_v29 }
 0xcb8   : > { %5053 = vadd.xlane.f32.xlu1 %v10866_v10  ;;  %v4710_v48 = vpack.c.bf16 %v4528_v11, %v4513_v54  ;;  %v10874_v32 = vpop.eup %7858  ;;  %v5157_v54 = vor.u32 1.1754944e-38, %v5156_v28 }
 0xcb9   : > { %v5146_v56 = vmul.f32 %v10874_v32, %v10862_v52  ;;  %vm5151_vm11 = vweird.f32 %v10874_v32 }
 0xcba   : > { %4778 = vmatmul.bf16.gmra.mxu2 %v4710_v48  ;;  %vm10906_vm13 = vmor %vm5150_vm12, %vm5151_vm11 }
 0xcbb   : > { %v5147_v30 = vsub.f32 1.0, %v5146_v56 }
 0xcbd   : > { %v5148_v33 = vmul.f32 %v10874_v32, %v5147_v30 }
 0xcbe   : > { %v4372_v57 = vpop.xlane.xlu1 %4371  ;;  %v10893_v38 = vpop.xlane.xlu0 %4447 }
 0xcbf   : > { %v4396_v46 = vsub.f32 %v10663_v19, %v4372_v57  ;;  %v5015_v19 = vmul.f32 1.442695, %v4987_v4  ;;  %v5149_v43 = vadd.f32 %v10874_v32, %v5148_v33 }
 0xcc1   : > { %v4419_v40 = vmul.f32 1.442695, %v4396_v46 }
 0xcc3   : > { %7860 = vpow2.f32 %v4419_v40 }
 0xcc4   : > { %v10883_v26 = vpop.xlane.xlu2 %5041 }
 0xcc5   : > { %7862 = vrcp.f32 %v10883_v26  ;;  %vm5195_vm6 = vweird.f32 %v10883_v26 }
 0xcc6   : > { %v5038_v25 = vpop.xlane.xlu1 %5037  ;;  %v10927_v46 = vpop.xlane.xlu0 %5043 }
 0xcc7   : > { %7864 = vrcp.f32 %v5038_v25  ;;  %v5171_v41 = vand.u32 2147483648, %v5038_v25  ;;  %vm5165_vm1 = vweird.f32 %v5038_v25 }
 0xcc8   : > { %7866 = vrcp.f32 %v10879_v29 }
 0xcc9   : > { %v10888_v1 = vpop.eup %7860  ;;  %7868 = vpow2.f32 %v5015_v19 }
 0xcca   : > { %4451 = vadd.xlane.f32.xlu0 %v10888_v1  ;;  %7870 = vpow2.f32 %v4423_v16 }
 0xccb   : > { %v10895_v13 = vpop.eup %7862  ;;  %7872 = vrcp.f32 %v10893_v38 }
 0xccc   : > { %v4382_v51 = vpop.xlane.xlu2 %4381  ;;  %v5191_v5 = vmul.f32 %v10895_v13, %v10883_v26  ;;  %vm5196_vm4 = vweird.f32 %v10895_v13 }
 0xccd   : > { %v7865_v62 = vpop.eup %7864  ;;  %v4401_v63 = vsub.f32 %v10679_v9, %v4382_v51  ;;  %v4399_v9 = vsub.f32 %v10638_v7, %v10872_v20  ;;  %v5169_v7 = vand.u32 2147483647, %v5038_v25  ;;  %vm10962_vm7 = vmor %vm5195_vm6, %vm5196_vm4 }
 0xcce   : > { %v5161_v34 = vmul.f32 %v7865_v62, %v5038_v25  ;;  %v4972_v37 = vpop.xlane.xlu1 %4971  ;;  %v10901_v3 = vpop.eup %7866  ;;  %vm5166_vm14 = vweird.f32 %v7865_v62  ;;  %v5192_v48 = vsub.f32 1.0, %v5191_v5 }
 0xccf   : > { %v4429_v42 = vmul.f32 1.442695, %v4401_v63  ;;  %v4989_v6 = vsub.f32 %v10684_v8, %v4972_v37  ;;  %v10915_v23 = vpop.eup %7868  ;;  %v5153_v8 = vsel %vm10906_vm13, %v10874_v32, %v5149_v43  ;;  %v5176_v60 = vmul.f32 %v10901_v3, %v10879_v29  ;;  %vm5167_vm2 = vmor %vm5165_vm1, %vm5166_vm14 }
 0xcd0   : > { %v5162_v50 = vsub.f32 1.0, %v5161_v34  ;;  %v10923_v11 = vpop.eup %7870  ;;  %v5172_v32 = vor.u32 1.1754944e-38, %v5171_v41  ;;  %v5158_v56 = vsel %vm5155_vm15, %v5157_v54, %v5153_v8  ;;  %v4425_v4 = vmul.f32 1.442695, %v4399_v9 }
 0xcd1   : > { %7874 = vpow2.f32 %v4429_v42  ;;  %v5019_v52 = vmul.f32 1.442695, %v4989_v6  ;;  %v10929_v40 = vpop.eup %7872  ;;  %v5177_v30 = vsub.f32 1.0, %v5176_v60  ;;  %vm5170_vm3 = vcmp.eq.f32.partialorder %v5169_v7, 8.507059e+37 }
 0xcd2   : > { %v5163_v39 = vmul.f32 %v7865_v62, %v5162_v50  ;;  %5047 = vadd.xlane.f32.xlu0 %v10915_v23  ;;  %v5193_v51 = vmul.f32 %v10895_v13, %v5192_v48  ;;  %v5159_v43 = vmul.f32 %v10632_v58, %v5158_v56  ;;  %v5201_v6 = vand.u32 2147483648, %v10883_v26 }
 0xcd3   : > { %7876 = vpow2.f32 %v5019_v52  ;;  %vm5181_vm5 = vweird.f32 %v10901_v3  ;;  %v5199_v50 = vand.u32 2147483647, %v10883_v26  ;;  %v5186_v52 = vand.u32 2147483648, %v10879_v29 }
 0xcd4   : > { %v5164_v20 = vadd.f32 %v7865_v62, %v5163_v39  ;;  %v10925_v57 = vpop.xlane.xlu2 %5045  ;;  %v5194_v28 = vadd.f32 %v10895_v13, %v5193_v51  ;;  %v5184_v39 = vand.u32 2147483647, %v10879_v29  ;;  %vm10978_vm9 = vmor %vm5180_vm8, %vm5181_vm5  ;;  %v5202_v56 = vor.u32 1.1754944e-38, %v5201_v6 }
 0xcd5   : > { %7878 = vrcp.f32 %v10925_v57  ;;  %vm5200_vm10 = vcmp.eq.f32.partialorder %v5199_v50, 8.507059e+37  ;;  %vm4550_vm12 = vweird.f32 %v10929_v40  ;;  %vm4549_vm13 = vweird.f32 %v10893_v38 }
 0xcd6   : > { %v4380_v53 = vpop.xlane.xlu1 %4379  ;;  %v5168_v19 = vsel %vm5167_vm2, %v7865_v62, %v5164_v20  ;;  %7880 = vrcp.f32 %v10927_v46  ;;  %v4545_v62 = vmul.f32 %v10929_v40, %v10893_v38  ;;  %v5198_v7 = vsel %vm10962_vm7, %v10895_v13, %v5194_v28  ;;  %vm10998_vm14 = vmor %vm4549_vm13, %vm4550_vm12 }
 0xcd7   : > { %v10931_v33 = vpop.eup %7874  ;;  %v4400_v25 = vsub.f32 %v10693_v36, %v4380_v53  ;;  %v5173_v16 = vsel %vm5170_vm3, %v5172_v32, %v5168_v19  ;;  %7882 = vpow2.f32 %v4425_v4  ;;  %v5178_v36 = vmul.f32 %v10901_v3, %v5177_v30 }
 0xcd8   : > { %4461 = vadd.xlane.f32.xlu1 %v10931_v33  ;;  %v5174_v63 = vmul.f32 %v10672_v18, %v5173_v16  ;;  %v4546_v42 = vsub.f32 1.0, %v4545_v62  ;;  %v5187_v13 = vor.u32 1.1754944e-38, %v5186_v52  ;;  %v5203_v4 = vsel %vm5200_vm10, %v5202_v56, %v5198_v7 }
 0xcd9   : > { %v10940_v34 = vpop.eup %7876  ;;  %v4427_v37 = vmul.f32 1.442695, %v4400_v25  ;;  %v5179_v5 = vadd.f32 %v10901_v3, %v5178_v36  ;;  %vm5185_vm11 = vcmp.eq.f32.partialorder %v5184_v39, 8.507059e+37  ;;  %v4555_v62 = vand.u32 2147483648, %v10893_v38 }
 0xcda   : > { %4455 = vadd.xlane.f32.xlu0 %v10923_v11  ;;  %5051 = vadd.xlane.f32.xlu2 %v10940_v34  ;;  %v5298_v0 = vpack.c.bf16 %v5174_v63, %v5159_v43  ;;  %v4547_v20 = vmul.f32 %v10929_v40, %v4546_v42  ;;  %v5204_v63 = vmul.f32 %v10668_v45, %v5203_v4  ;;  %vm5225_vm6 = vweird.f32 %v10925_v57 }
 0xcdb   : > { %7884 = vpow2.f32 %v4427_v37  ;;  %v10949_v18 = vpop.eup %7878  ;;  %v5183_v29 = vsel %vm10978_vm9, %v10901_v3, %v5179_v5  ;;  %v4553_v3 = vand.u32 2147483647, %v10893_v38  ;;  %v4556_v50 = vor.u32 1.1754944e-38, %v4555_v62 }
 0xcdc   : > { %5350 = vmatmul.bf16.gmra.mxu0 %v5298_v0  ;;  %v4386_v58 = vpop.xlane.xlu2 %4385  ;;  %v10953_v9 = vpop.eup %7880  ;;  %v5221_v26 = vmul.f32 %v10949_v18, %v10925_v57  ;;  %v4548_v19 = vadd.f32 %v10929_v40, %v4547_v20  ;;  %v5188_v16 = vsel %vm5185_vm11, %v5187_v13, %v5183_v29  ;;  %vm5226_vm2 = vweird.f32 %v10949_v18 }
 0xcdd   : > { %v4403_v44 = vsub.f32 %v10698_v22, %v4386_v58  ;;  %v10967_v22 = vpop.eup %7882  ;;  %v5206_v32 = vmul.f32 %v10953_v9, %v10927_v46  ;;  %v5189_v58 = vmul.f32 %v10652_v55, %v5188_v16  ;;  %vm4554_vm1 = vcmp.eq.f32.partialorder %v4553_v3, 8.507059e+37  ;;  %vm11027_vm7 = vmor %vm5225_vm6, %vm5226_vm2 }
 0xcde   : > { %v10959_v41 = vpop.xlane.xlu1 %4445  ;;  %v5222_v30 = vsub.f32 1.0, %v5221_v26  ;;  %v4552_v38 = vsel %vm10998_vm14, %v10929_v40, %v4548_v19  ;;  %vm5211_vm4 = vweird.f32 %v10953_v9  ;;  %v5229_v26 = vand.u32 2147483647, %v10925_v57 }
 0xcdf   : > { %v4433_v60 = vmul.f32 1.442695, %v4403_v44  ;;  %7886 = vrcp.f32 %v10959_v41  ;;  %v5207_v25 = vsub.f32 1.0, %v5206_v32  ;;  %v5299_v5 = vpack.c.bf16 %v5204_v63, %v5189_v58 }
 0xce0   : > { %v5223_v0 = vmul.f32 %v10949_v18, %v5222_v30  ;;  %v4538_v55 = vand.u32 2147483647, %v10959_v41  ;;  %vm4534_vm3 = vweird.f32 %v10959_v41  ;;  %v4557_v39 = vsel %vm4554_vm1, %v4556_v50, %v4552_v38 }
 0xce1   : > { %v10976_v54 = vpop.eup %7884  ;;  %7888 = vpow2.f32 %v4433_v60  ;;  %v5208_v45 = vmul.f32 %v10953_v9, %v5207_v25  ;;  %v5231_v60 = vand.u32 2147483648, %v10925_v57  ;;  %vm5210_vm9 = vweird.f32 %v10927_v46 }
 0xce2   : > { %4457 = vadd.xlane.f32.xlu0 %v10967_v22  ;;  %4459 = vadd.xlane.f32.xlu2 %v10976_v54  ;;  %v5224_v52 = vadd.f32 %v10949_v18, %v5223_v0  ;;  %vm4539_vm8 = vcmp.eq.f32.partialorder %v4538_v55, 8.507059e+37  ;;  %v5214_v56 = vand.u32 2147483647, %v10927_v46  ;;  %vm5212_vm10 = vmor %vm5210_vm9, %vm5211_vm4  ;;  %vm5230_vm11 = vcmp.eq.f32.partialorder %v5229_v26, 8.507059e+37 }
 0xce3   : > { %v5209_v40 = vadd.f32 %v10953_v9, %v5208_v45  ;;  %v5232_v4 = vor.u32 1.1754944e-38, %v5231_v60 }
 0xce4   : > { %v5228_v57 = vsel %vm11027_vm7, %v10949_v18, %v5224_v52  ;;  %vm5215_vm12 = vcmp.eq.f32.partialorder %v5214_v56, 8.507059e+37 }
 0xce5   : > { %v7887_v53 = vpop.eup %7886  ;;  %v5233_v16 = vsel %vm5230_vm11, %v5232_v4, %v5228_v57 }
 0xce6   : > { %v4530_v51 = vmul.f32 %v7887_v53, %v10959_v41  ;;  %v4384_v43 = vpop.xlane.xlu1 %4383  ;;  %vm4535_vm15 = vweird.f32 %v7887_v53 }
 0xce7   : > { %v4402_v37 = vsub.f32 %v10709_v49, %v4384_v43  ;;  %v11004_v42 = vpop.eup %7888  ;;  %v4540_v49 = vand.u32 2147483648, %v10959_v41  ;;  %vm4536_vm5 = vmor %vm4534_vm3, %vm4535_vm15  ;;  %v5216_v41 = vand.u32 2147483648, %v10927_v46  ;;  %v5213_v46 = vsel %vm5212_vm10, %v10953_v9, %v5209_v40  ;;  %v7425_v40 = vld [vmem:[%s12202_s8 + $0x70] sm:$0xff] }
 0xce8   : > { %v4531_v28 = vsub.f32 1.0, %v4530_v51  ;;  %v5234_v43 = vmul.f32 %v10690_v59, %v5233_v16 }
 0xce9   : > { %v4431_v6 = vmul.f32 1.442695, %v4402_v37  ;;  %v4541_v7 = vor.u32 1.1754944e-38, %v4540_v49  ;;  %v5217_v19 = vor.u32 1.1754944e-38, %v5216_v41 }
 0xcea   : > { %v4532_v44 = vmul.f32 %v7887_v53, %v4531_v28  ;;  %4465 = vadd.xlane.f32.xlu2 %v11004_v42 }
 0xceb   : > { %7890 = vpow2.f32 %v4431_v6  ;;  %v5218_v18 = vsel %vm5215_vm12, %v5217_v19, %v5213_v46  ;;  %v7426_v6 = vld [vmem:[%s12202_s8 + $0x78] sm:$0xff] }
 0xcec   : > { %v4533_v8 = vadd.f32 %v7887_v53, %v4532_v44  ;;  %5355 = vmatmul.bf16.gmra.mxu0 %v5299_v5  ;;  %5534 = vmatpush.bf16.xpose.msra.mxu1 %v7426_v6 }
 0xcee   : > { %v11022_v48 = vpop.xlane.xlu1 %4449  ;;  %v4537_v20 = vsel %vm4536_vm5, %v7887_v53, %v4533_v8  ;;  %v4558_v53 = vmul.f32 %v10658_v27, %v4557_v39 }
 0xcef   : > { %v4542_v29 = vsel %vm4539_vm8, %v4541_v7, %v4537_v20  ;;  %v4570_v4 = vand.u32 2147483648, %v11022_v48  ;;  %vm4564_vm14 = vweird.f32 %v11022_v48  ;;  %v4568_v46 = vand.u32 2147483647, %v11022_v48 }
 0xcf0   : > { %v4543_v30 = vmul.f32 %v10701_v17, %v4542_v29  ;;  %v5219_v17 = vmul.f32 %v10666_v47, %v5218_v18 }
 0xcf1   : > { %v11036_v13 = vpop.eup %7890  ;;  %vm4569_vm4 = vcmp.eq.f32.partialorder %v4568_v46, 8.507059e+37 }
 0xcf2   : > { %4463 = vadd.xlane.f32.xlu0 %v11036_v13  ;;  %v4711_v25 = vpack.c.bf16 %v4558_v53, %v4543_v30  ;;  %v5300_v27 = vpack.c.bf16 %v5234_v43, %v5219_v17 }
 0xcf4   : > { %4783 = vmatmul.bf16.gmra.mxu2 %v4711_v25  ;;  %5535 = vmatpush.bf16.xpose.msra.mxu1 %v7425_v40 }
 0xcf6   : > { %v4388_v51 = vpop.xlane.xlu1 %4387 }
 0xcf7   : > { %v4404_v63 = vsub.f32 %v10732_v61, %v4388_v51  ;;  %v11053_v61 = vpop.xlane.xlu2 %5049  ;;  %v7424_v51 = vld [vmem:[%s12202_s8 + $0x68] sm:$0xff] }
 0xcf8   : > { %v5259_v53 = vand.u32 2147483647, %v11053_v61  ;;  %v5261_v19 = vand.u32 2147483648, %v11053_v61  ;;  %vm5255_vm3 = vweird.f32 %v11053_v61 }
 0xcf9   : > { %v4435_v3 = vmul.f32 1.442695, %v4404_v63 }
 0xcfa   : > { %vm11126_vm8 = vcmp.eq.f32.partialorder %v5259_v53, 8.507059e+37 }
 0xcfb   : > { %7892 = vpow2.f32 %v4435_v3 }
 0xcfc   : > { %5360 = vmatmul.bf16.gmra.mxu0 %v5300_v27  ;;  %7894 = vrcp.f32 %v11022_v48  ;;  %5536 = vmatpush.bf16.xpose.msra.mxu1 %v7424_v51 }
 0xcfd   : > { %7896 = vrcp.f32 %v11053_v61 }
 0xd01   : > { %v11047_v62 = vpop.eup %7892 }
 0xd02   : > { %4467 = vadd.xlane.f32.xlu1 %v11047_v62  ;;  %v11056_v58 = vpop.eup %7894 }
 0xd03   : > { %v4560_v38 = vmul.f32 %v11056_v58, %v11022_v48  ;;  %v11066_v50 = vpop.eup %7896  ;;  %vm4565_vm13 = vweird.f32 %v11056_v58 }
 0xd04   : > { %v5251_v52 = vmul.f32 %v11066_v50, %v11053_v61  ;;  %vm5256_vm15 = vweird.f32 %v11066_v50  ;;  %vm11094_vm1 = vmor %vm4564_vm14, %vm4565_vm13 }
 0xd05   : > { %v4561_v55 = vsub.f32 1.0, %v4560_v38  ;;  %vm11122_vm7 = vmor %vm5255_vm3, %vm5256_vm15 }
 0xd06   : > { %v5252_v26 = vsub.f32 1.0, %v5251_v52 }
 0xd07   : > { %v4562_v39 = vmul.f32 %v11056_v58, %v4561_v55 }
 0xd08   : > { %v5253_v57 = vmul.f32 %v11066_v50, %v5252_v26 }
 0xd09   : > { %v4563_v29 = vadd.f32 %v11056_v58, %v4562_v39 }
 0xd0a   : > { %v5254_v27 = vadd.f32 %v11066_v50, %v5253_v57 }
 0xd0b   : > { %v4567_v3 = vsel %vm11094_vm1, %v11056_v58, %v4563_v29 }
 0xd0c   : > { %v5258_v55 = vsel %vm11122_vm7, %v11066_v50, %v5254_v27 }
 0xd12   : > { %v11058_v45 = vpop.xlane.xlu1 %4453 }
 0xd13   : > { %7898 = vrcp.f32 %v11058_v45  ;;  %vm4594_vm10 = vweird.f32 %v11058_v45  ;;  %v4600_v52 = vand.u32 2147483648, %v11058_v45 }
 0xd14   : > { %v5336_v9 = vpop.f32.mrf.mxu0 }
 0xd19   : > { %v11071_v8 = vpop.eup %7898 }
 0xd1a   : > { %v4590_v41 = vmul.f32 %v11071_v8, %v11058_v45  ;;  %vm4595_vm11 = vweird.f32 %v11071_v8 }
 0xd1b   : > { %vm11167_vm13 = vmor %vm4594_vm10, %vm4595_vm11 }
 0xd1c   : > { %v5338_v37 = vpop.f32.mrf.mxu0  ;;  %v4591_v16 = vsub.f32 1.0, %v4590_v41 }
 0xd1d   : > { %v7544_v36 = vpack.i.bf16 %v5338_v37, %v5336_v9  ;;  %v4571_v9 = vor.u32 1.1754944e-38, %v4570_v4  ;;  %v4598_v4 = vand.u32 2147483647, %v11058_v45 }
 0xd1f   : > { %7545 = vrot.lane.b32.xlu0 %v7544_v36, %s8013_s29  ;;  %vm4599_vm1 = vcmp.eq.f32.partialorder %v4598_v4, 8.507059e+37 }
 0xd24   : > { %v5341_v0 = vpop.f32.mrf.mxu0 }
 0xd2b   : > { %v11082_v32 = vpop.xlane.xlu1 %5053 }
 0xd2c   : > { %v5343_v28 = vpop.f32.mrf.mxu0  ;;  %vm5285_vm10 = vweird.f32 %v11082_v32 }
 0xd2d   : > { %v7549_v59 = vpack.i.bf16 %v5343_v28, %v5341_v0  ;;  %v4592_v0 = vmul.f32 %v11071_v8, %v4591_v16 }
 0xd2f   : > { %7550 = vrot.lane.b32.xlu2 %v7549_v59, %s8013_s29 }
 0xd34   : > { %v5346_v47 = vpop.f32.mrf.mxu0 }
 0xd3c   : > { %v5348_v44 = vpop.f32.mrf.mxu0 }
 0xd3d   : > { %v7554_v49 = vpack.i.bf16 %v5348_v44, %v5346_v47  ;;  %v4452_v5 = vpop.xlane.xlu0 %4451  ;;  %v4572_v47 = vsel %vm4569_vm4, %v4571_v9, %v4567_v3  ;;  %v5262_v44 = vor.u32 1.1754944e-38, %v5261_v19 }
 0xd3e   : > { %7900 = vrcp.f32 %v4452_v5  ;;  %v4585_v18 = vand.u32 2147483648, %v4452_v5  ;;  %v4583_v48 = vand.u32 2147483647, %v4452_v5  ;;  %vm4579_vm5 = vweird.f32 %v4452_v5 }
 0xd3f   : > { %7555 = vrot.lane.b32.xlu1 %v7554_v49, %s8013_s29  ;;  %v4573_v40 = vmul.f32 %v10720_v14, %v4572_v47  ;;  %v5263_v25 = vsel %vm11126_vm8, %v5262_v44, %v5258_v55 }
 0xd40   : > { %v4586_v28 = vor.u32 1.1754944e-38, %v4585_v18  ;;  %vm4584_vm9 = vcmp.eq.f32.partialorder %v4583_v48, 8.507059e+37 }
 0xd44   : > { %v7901_v60 = vpop.eup %7900 }
 0xd45   : > { %v4575_v7 = vmul.f32 %v7901_v60, %v4452_v5  ;;  %v11077_v20 = vpop.xlane.xlu0 %5047  ;;  %vm4580_vm2 = vweird.f32 %v7901_v60 }
 0xd46   : > { %7902 = vrcp.f32 %v11077_v20  ;;  %vm4581_vm6 = vmor %vm4579_vm5, %vm4580_vm2  ;;  %v5246_v41 = vand.u32 2147483648, %v11077_v20  ;;  %vm5240_vm14 = vweird.f32 %v11077_v20 }
 0xd47   : > { %v4576_v56 = vsub.f32 1.0, %v4575_v7  ;;  %7904 = vrcp.f32 %v11082_v32  ;;  %v4593_v7 = vadd.f32 %v11071_v8, %v4592_v0 }
 0xd48   : > { %v5247_v48 = vor.u32 1.1754944e-38, %v5246_v41 }
 0xd49   : > { %v4577_v30 = vmul.f32 %v7901_v60, %v4576_v56  ;;  %v4597_v51 = vsel %vm11167_vm13, %v11071_v8, %v4593_v7 }
 0xd4b   : > { %v4578_v63 = vadd.f32 %v7901_v60, %v4577_v30  ;;  %v5244_v30 = vand.u32 2147483647, %v11077_v20 }
 0xd4c   : > { %v11101_v43 = vpop.eup %7902 }
 0xd4d   : > { %v11103_v17 = vpop.xlane.xlu2 %5051  ;;  %v5236_v37 = vmul.f32 %v11101_v43, %v11077_v20  ;;  %v11111_v36 = vpop.xlane.xlu0 %4455  ;;  %v4582_v38 = vsel %vm4581_vm6, %v7901_v60, %v4578_v63  ;;  %v7423_v60 = vld [vmem:[%s12202_s8 + $0x60] sm:$0xff]  ;;  %vm5241_vm12 = vweird.f32 %v11101_v43  ;;  %v4601_v63 = vor.u32 1.1754944e-38, %v4600_v52 }
 0xd4e   : > { %7906 = vrcp.f32 %v11103_v17  ;;  %v11118_v58 = vpop.eup %7904  ;;  %v4587_v5 = vsel %vm4584_vm9, %v4586_v28, %v4582_v38  ;;  %5537 = vmatpush.bf16.xpose.msra.mxu1 %v7423_v60  ;;  %vm11177_vm15 = vmor %vm5240_vm14, %vm5241_vm12  ;;  %vm5245_vm2 = vcmp.eq.f32.partialorder %v5244_v30, 8.507059e+37  ;;  %v4613_v0 = vand.u32 2147483647, %v11111_v36 }
 0xd4f   : > { %7908 = vrcp.f32 %v11111_v36  ;;  %v5237_v59 = vsub.f32 1.0, %v5236_v37  ;;  %v4588_v39 = vmul.f32 %v10888_v1, %v4587_v5  ;;  %v5281_v50 = vmul.f32 %v11118_v58, %v11082_v32 }
 0xd50   : > { %v5264_v37 = vmul.f32 %v10706_v35, %v5263_v25  ;;  %v4615_v28 = vand.u32 2147483648, %v11111_v36  ;;  %v4602_v8 = vsel %vm4599_vm1, %v4601_v63, %v4597_v51  ;;  %v7422_v35 = vld [vmem:[%s12202_s8 + $0x58] sm:$0xff]  ;;  %vm4609_vm4 = vweird.f32 %v11111_v36  ;;  %v7421_v25 = vld [vmem:[%s12202_s8 + $0x50] sm:$0xff] }
 0xd51   : > { %v5238_v49 = vmul.f32 %v11101_v43, %v5237_v59  ;;  %v4712_v29 = vpack.c.bf16 %v4588_v39, %v4573_v40  ;;  %v5282_v20 = vsub.f32 1.0, %v5281_v50  ;;  %v4603_v52 = vmul.f32 %v10817_v2, %v4602_v8  ;;  %v11215_v2 = vpop.xlane.xlu1 %4461 }
 0xd52   : > { %vm4614_vm6 = vcmp.eq.f32.partialorder %v4613_v0, 8.507059e+37  ;;  %v4616_v40 = vor.u32 1.1754944e-38, %v4615_v28  ;;  %vm5286_vm8 = vweird.f32 %v11118_v58  ;;  %v5276_v41 = vand.u32 2147483648, %v11103_v17 }
 0xd53   : > { %v5239_v14 = vadd.f32 %v11101_v43, %v5238_v49  ;;  %4788 = vmatmul.bf16.gmra.mxu2 %v4712_v29  ;;  %v5283_v44 = vmul.f32 %v11118_v58, %v5282_v20  ;;  %vm5270_vm9 = vweird.f32 %v11103_v17  ;;  %v5274_v29 = vand.u32 2147483647, %v11103_v17  ;;  %vm11241_vm12 = vmor %vm5285_vm10, %vm5286_vm8 }
 0xd54   : > { %v11141_v26 = vpop.eup %7906  ;;  %v5277_v51 = vor.u32 1.1754944e-38, %v5276_v41 }
 0xd55   : > { %v11148_v56 = vpop.eup %7908  ;;  %v5266_v1 = vmul.f32 %v11141_v26, %v11103_v17  ;;  %v11154_v57 = vpop.xlane.xlu2 %4459  ;;  %v5243_v27 = vsel %vm11177_vm15, %v11101_v43, %v5239_v14  ;;  %vm5271_vm7 = vweird.f32 %v11141_v26  ;;  %v5284_v50 = vadd.f32 %v11118_v58, %v5283_v44 }
 0xd56   : > { %v4605_v53 = vmul.f32 %v11148_v56, %v11111_v36  ;;  %v11160_v46 = vpop.xlane.xlu0 %4457  ;;  %7910 = vrcp.f32 %v11154_v57  ;;  %v5248_v59 = vsel %vm5245_vm2, %v5247_v48, %v5243_v27  ;;  %vm4610_vm3 = vweird.f32 %v11148_v56  ;;  %5538 = vmatpush.bf16.xpose.msra.mxu1 %v7422_v35  ;;  %vm11224_vm11 = vmor %vm5270_vm9, %vm5271_vm7 }
 0xd57   : > { %7912 = vrcp.f32 %v11160_v46  ;;  %v5267_v45 = vsub.f32 1.0, %v5266_v1  ;;  %v5249_v61 = vmul.f32 %v10915_v23, %v5248_v59  ;;  %v5291_v23 = vand.u32 2147483648, %v11082_v32  ;;  %vm4611_vm5 = vmor %vm4609_vm4, %vm4610_vm3 }
 0xd58   : > { %v4606_v18 = vsub.f32 1.0, %v4605_v53  ;;  %v5289_v17 = vand.u32 2147483647, %v11082_v32  ;;  %7914 = vrcp.f32 %v11215_v2  ;;  %vm5275_vm13 = vcmp.eq.f32.partialorder %v5274_v29, 8.507059e+37 }
 0xd59   : > { %v5351_v3 = vpop.f32.mrf.mxu0  ;;  %v5268_v43 = vmul.f32 %v11141_v26, %v5267_v45  ;;  %v5301_v55 = vpack.c.bf16 %v5264_v37, %v5249_v61  ;;  %v5292_v45 = vor.u32 1.1754944e-38, %v5291_v23  ;;  %v5288_v32 = vsel %vm11241_vm12, %v11118_v58, %v5284_v50 }
 0xd5a   : > { %v4607_v9 = vmul.f32 %v11148_v56, %v4606_v18  ;;  %vm5290_vm1 = vcmp.eq.f32.partialorder %v5289_v17, 8.507059e+37  ;;  %vm4639_vm2 = vweird.f32 %v11154_v57  ;;  %v4645_v27 = vand.u32 2147483648, %v11154_v57 }
 0xd5b   : > { %v5269_v60 = vadd.f32 %v11141_v26, %v5268_v43  ;;  %5365 = vmatmul.bf16.gmra.mxu0 %v5301_v55  ;;  %vm4624_vm3 = vweird.f32 %v11160_v46  ;;  %v4628_v58 = vand.u32 2147483647, %v11160_v46  ;;  %v4643_v37 = vand.u32 2147483647, %v11154_v57 }
 0xd5c   : > { %v11191_v47 = vpop.eup %7910  ;;  %v4608_v6 = vadd.f32 %v11148_v56, %v4607_v9  ;;  %v5293_v28 = vsel %vm5290_vm1, %v5292_v45, %v5288_v32  ;;  %v4646_v35 = vor.u32 1.1754944e-38, %v4645_v27  ;;  %vm4654_vm12 = vweird.f32 %v11215_v2 }
 0xd5d   : > { %v11200_v38 = vpop.eup %7912  ;;  %v4635_v49 = vmul.f32 %v11191_v47, %v11154_v57  ;;  %v5273_v16 = vsel %vm11224_vm11, %v11141_v26, %v5269_v60  ;;  %vm4640_vm14 = vweird.f32 %v11191_v47  ;;  %v5294_v44 = vmul.f32 %v10866_v10, %v5293_v28 }
 0xd5e   : > { %v4620_v5 = vmul.f32 %v11200_v38, %v11160_v46  ;;  %v4612_v36 = vsel %vm4611_vm5, %v11148_v56, %v4608_v6  ;;  %5539 = vmatpush.bf16.xpose.msra.mxu1 %v7421_v25  ;;  %vm4625_vm15 = vweird.f32 %v11200_v38  ;;  %v5278_v48 = vsel %vm5275_vm13, %v5277_v51, %v5273_v16  ;;  %vm11262_vm4 = vmor %vm4639_vm2, %vm4640_vm14  ;;  %v11267_v59 = vpop.eup %7914 }
 0xd5f   : > { %v4636_v39 = vsub.f32 1.0, %v4635_v49  ;;  %v4617_v1 = vsel %vm4614_vm6, %v4616_v40, %v4612_v36  ;;  %vm4626_vm5 = vmor %vm4624_vm3, %vm4625_vm15  ;;  %v5279_v8 = vmul.f32 %v10940_v34, %v5278_v48  ;;  %v4650_v49 = vmul.f32 %v11267_v59, %v11215_v2 }
 0xd60   : > { %v4621_v7 = vsub.f32 1.0, %v4620_v5  ;;  %v4618_v30 = vmul.f32 %v10923_v11, %v4617_v1  ;;  %vm4629_vm6 = vcmp.eq.f32.partialorder %v4628_v58, 8.507059e+37  ;;  %vm4644_vm7 = vcmp.eq.f32.partialorder %v4643_v37, 8.507059e+37  ;;  %v4774_v37 = vpop.f32.mrf.mxu2 }
 0xd61   : > { %v5353_v14 = vpop.f32.mrf.mxu0  ;;  %v4637_v19 = vmul.f32 %v11191_v47, %v4636_v39  ;;  %v5302_v5 = vpack.c.bf16 %v5294_v44, %v5279_v8  ;;  %v4651_v23 = vsub.f32 1.0, %v4650_v49  ;;  %vm4655_vm9 = vweird.f32 %v11267_v59 }
 0xd62   : > { %v7559_v4 = vpack.i.bf16 %v5353_v14, %v5351_v3  ;;  %v4622_v53 = vmul.f32 %v11200_v38, %v4621_v7  ;;  %v4713_v11 = vpack.c.bf16 %v4618_v30, %v4603_v52  ;;  %v4630_v3 = vand.u32 2147483648, %v11160_v46  ;;  %v7420_v46 = vld [vmem:[%s12202_s8 + $0x48] sm:$0xff]  ;;  %v7419_v7 = vld [vmem:[%s12202_s8 + $0x40] sm:$0xff]  ;;  %vm4656_vm13 = vmor %vm4654_vm12, %vm4655_vm9 }
 0xd63   : > { %v4638_v20 = vadd.f32 %v11191_v47, %v4637_v19  ;;  %v4652_v50 = vmul.f32 %v11267_v59, %v4651_v23  ;;  %v4660_v56 = vand.u32 2147483648, %v11215_v2 }
 0xd64   : > { %7560 = vrot.lane.b32.xlu0 %v7559_v4, %s8013_s29  ;;  %v4623_v26 = vadd.f32 %v11200_v38, %v4622_v53  ;;  %4793 = vmatmul.bf16.gmra.mxu2 %v4713_v11  ;;  %v4631_v61 = vor.u32 1.1754944e-38, %v4630_v3  ;;  %v4658_v53 = vand.u32 2147483647, %v11215_v2 }
 0xd65   : > { %v11245_v63 = vpop.xlane.xlu0 %4463  ;;  %v4642_v43 = vsel %vm11262_vm4, %v11191_v47, %v4638_v20  ;;  %v11283_v47 = vpop.xlane.xlu2 %4465  ;;  %v4661_v45 = vor.u32 1.1754944e-38, %v4660_v56 }
 0xd66   : > { %7916 = vrcp.f32 %v11245_v63  ;;  %v4627_v6 = vsel %vm4626_vm5, %v11200_v38, %v4623_v26  ;;  %v4647_v52 = vsel %vm4644_vm7, %v4646_v35, %v4642_v43  ;;  %5540 = vmatpush.bf16.xpose.msra.mxu1 %v7420_v46  ;;  %vm4669_vm10 = vweird.f32 %v11245_v63 }
 0xd67   : > { %v4632_v55 = vsel %vm4629_vm6, %v4631_v61, %v4627_v6  ;;  %v4648_v10 = vmul.f32 %v10976_v54, %v4647_v52  ;;  %7918 = vrcp.f32 %v11283_v47  ;;  %v4653_v54 = vadd.f32 %v11267_v59, %v4652_v50 }
 0xd68   : > { %v4633_v39 = vmul.f32 %v10967_v22, %v4632_v55  ;;  %v4675_v22 = vand.u32 2147483648, %v11245_v63  ;;  %v4673_v29 = vand.u32 2147483647, %v11245_v63  ;;  %vm4659_vm15 = vcmp.eq.f32.partialorder %v4658_v53, 8.507059e+37  ;;  %v4776_v35 = vpop.f32.mrf.mxu2 }
 0xd69   : > { %v5356_v0 = vpop.f32.mrf.mxu0  ;;  %v4657_v18 = vsel %vm4656_vm13, %v11267_v59, %v4653_v54  ;;  %v4690_v46 = vand.u32 2147483648, %v11283_v47  ;;  %vm4684_vm5 = vweird.f32 %v11283_v47 }
 0xd6a   : > { %v4714_v41 = vpack.c.bf16 %v4648_v10, %v4633_v39  ;;  %v4676_v17 = vor.u32 1.1754944e-38, %v4675_v22  ;;  %vm4674_vm14 = vcmp.eq.f32.partialorder %v4673_v29, 8.507059e+37  ;;  %v4662_v32 = vsel %vm4659_vm15, %v4661_v45, %v4657_v18 }
 0xd6b   : > { %5370 = vmatmul.bf16.gmra.mxu0 %v5302_v5  ;;  %v4663_v27 = vmul.f32 %v10931_v33, %v4662_v32  ;;  %v4688_v33 = vand.u32 2147483647, %v11283_v47 }
 0xd6c   : > { %v7917_v57 = vpop.eup %7916 }
 0xd6d   : > { %v4665_v34 = vmul.f32 %v7917_v57, %v11245_v63  ;;  %vm4670_vm8 = vweird.f32 %v7917_v57  ;;  %v7919_v30 = vpop.eup %7918 }
 0xd6e   : > { %5541 = vmatpush.bf16.xpose.msra.mxu1 %v7419_v7  ;;  %vm4671_vm11 = vmor %vm4669_vm10, %vm4670_vm8  ;;  %v4680_v11 = vmul.f32 %v7919_v30, %v11283_v47  ;;  %vm4685_vm2 = vweird.f32 %v7919_v30  ;;  %vm4689_vm8 = vcmp.eq.f32.partialorder %v4688_v33, 8.507059e+37 }
 0xd6f   : > { %v4666_v38 = vsub.f32 1.0, %v4665_v34  ;;  %vm4686_vm6 = vmor %vm4684_vm5, %vm4685_vm2 }
 0xd70   : > { %v4681_v26 = vsub.f32 1.0, %v4680_v11  ;;  %v4779_v39 = vpop.f32.mrf.mxu2 }
 0xd71   : > { %v5358_v40 = vpop.f32.mrf.mxu0  ;;  %v4667_v36 = vmul.f32 %v7917_v57, %v4666_v38 }
 0xd72   : > { %v7564_v60 = vpack.i.bf16 %v5358_v40, %v5356_v0  ;;  %v4682_v58 = vmul.f32 %v7919_v30, %v4681_v26 }
 0xd73   : > { %v4668_v1 = vadd.f32 %v7917_v57, %v4667_v36 }
 0xd74   : > { %7565 = vrot.lane.b32.xlu2 %v7564_v60, %s8013_s29  ;;  %4798 = vmatmul.bf16.gmra.mxu2 %v4714_v41  ;;  %v4683_v59 = vadd.f32 %v7919_v30, %v4682_v58 }
 0xd75   : > { %v4468_v14 = vpop.xlane.xlu1 %4467  ;;  %v4672_v19 = vsel %vm4671_vm11, %v7917_v57, %v4668_v1  ;;  %v4691_v57 = vor.u32 1.1754944e-38, %v4690_v46 }
 0xd76   : > { %7920 = vrcp.f32 %v4468_v14  ;;  %v4677_v51 = vsel %vm4674_vm14, %v4676_v17, %v4672_v19  ;;  %v4705_v28 = vand.u32 2147483648, %v4468_v14  ;;  %vm4699_vm3 = vweird.f32 %v4468_v14 }
 0xd77   : > { %v4678_v48 = vmul.f32 %v11036_v13, %v4677_v51  ;;  %v4703_v8 = vand.u32 2147483647, %v4468_v14  ;;  %v4687_v43 = vsel %vm4686_vm6, %v7919_v30, %v4683_v59 }
 0xd78   : > { %v4706_v6 = vor.u32 1.1754944e-38, %v4705_v28  ;;  %v4692_v44 = vsel %vm4689_vm8, %v4691_v57, %v4687_v43  ;;  %v4781_v36 = vpop.f32.mrf.mxu2  ;;  %v11328_v57 = vld [vmem:[%s12203_s9 + $0x1] ss:$0 sm:$0xff] }
 0xd79   : > { %v5361_v4 = vpop.f32.mrf.mxu0  ;;  %v4715_v9 = vpack.c.bf16 %v4678_v48, %v4663_v27  ;;  %vm4704_vm7 = vcmp.eq.f32.partialorder %v4703_v8, 8.507059e+37  ;;  %v4693_v52 = vmul.f32 %v11004_v42, %v4692_v44 }
 0xd7c   : > { %v7921_v25 = vpop.eup %7920 }
 0xd7d   : > { %v4695_v16 = vmul.f32 %v7921_v25, %v4468_v14  ;;  %vm4700_vm1 = vweird.f32 %v7921_v25 }
 0xd7e   : > { %vm4701_vm4 = vmor %vm4699_vm3, %vm4700_vm1 }
 0xd7f   : > { %v4696_v63 = vsub.f32 1.0, %v4695_v16 }
 0xd80   : > { %v4784_v42 = vpop.f32.mrf.mxu2 }
 0xd81   : > { %v5363_v20 = vpop.f32.mrf.mxu0  ;;  %v4697_v3 = vmul.f32 %v7921_v25, %v4696_v63 }
 0xd82   : > { %v7569_v2 = vpack.i.bf16 %v5363_v20, %v5361_v4 }
 0xd83   : > { %v4698_v0 = vadd.f32 %v7921_v25, %v4697_v3 }
 0xd84   : > { %7570 = vrot.lane.b32.xlu0 %v7569_v2, %s8013_s29  ;;  %4803 = vmatmul.bf16.gmra.mxu2 %v4715_v9 }
 0xd85   : > { %v4702_v13 = vsel %vm4701_vm4, %v7921_v25, %v4698_v0 }
 0xd86   : > { %v4707_v61 = vsel %vm4704_vm7, %v4706_v6, %v4702_v13 }
 0xd87   : > { %v4708_v49 = vmul.f32 %v11047_v62, %v4707_v61 }
 0xd88   : > { %v4786_v54 = vpop.f32.mrf.mxu2 }
 0xd89   : > { %v4716_v47 = vpack.c.bf16 %v4708_v49, %v4693_v52  ;;  %v7551_v10 = vpop.permute.xlu2 %7550 }
 0xd8a   : > { %v7553_v60 = vunpack.i.h.bf16 %v7551_v10  ;;  %v7552_v7 = vunpack.i.l.bf16 %v7551_v10 }
 0xd8c   : > { %v5442_v62 = vsel %vm1460_vm0, %v4779_v39, %v7552_v7  ;;  %v5443_v50 = vsel %vm1460_vm0, %v4781_v36, %v7553_v60  ;;  %v12356_v7 = vld [vmem:[#allocation3_spill] sm:$0xff] }
 0xd8d   : > { %v5457_v41 = vpack.c.bf16 %v5443_v50, %v5442_v62 }
 0xd91   : > { %v7546_v34 = vpop.permute.xlu0 %7545 }
 0xd92   : > { %v7548_v5 = vunpack.i.h.bf16 %v7546_v34  ;;  %v7547_v55 = vunpack.i.l.bf16 %v7546_v34 }
 0xd94   : > { %v5441_v38 = vsel %vm1460_vm0, %v4776_v35, %v7548_v5  ;;  %v5440_v23 = vsel %vm1460_vm0, %v4774_v37, %v7547_v55  ;;  %4808 = vmatmul.bf16.gmra.mxu2 %v4716_v47 }
 0xd95   : > { %v5456_v40 = vpack.c.bf16 %v5441_v38, %v5440_v23 }
 0xd97   : > { %5542 = vmatmul.bf16.vlgmr.msra.gmra.mxu1 %v5456_v40 }
 0xda7   : > { %5547 = vmatmul.bf16.gmra.mxu1 %v5457_v41 }
 0xdb1   : > { %v7556_v14 = vpop.permute.xlu1 %7555 }
 0xdb2   : > { %v7558_v1 = vunpack.i.h.bf16 %v7556_v14  ;;  %v7557_v22 = vunpack.i.l.bf16 %v7556_v14 }
 0xdb4   : > { %v5444_v29 = vsel %vm1460_vm0, %v4784_v42, %v7557_v22  ;;  %v5445_v4 = vsel %vm1460_vm0, %v4786_v54, %v7558_v1 }
 0xdb5   : > { %v5458_v30 = vpack.c.bf16 %v5445_v4, %v5444_v29  ;;  %v12357_v4 = vld [vmem:[#allocation4_spill] sm:$0xff] }
 0xdb7   : > { %5552 = vmatmul.bf16.gmra.mxu1 %v5458_v30 }
 0xdce   : > { %v7566_v20 = vpop.permute.xlu2 %7565 }
 0xdcf   : > { %v7568_v48 = vunpack.i.h.bf16 %v7566_v20  ;;  %v7567_v2 = vunpack.i.l.bf16 %v7566_v20 }
 0xdd6   : > { %v4789_v56 = vpop.f32.mrf.mxu2  ;;  %v7561_v53 = vpop.permute.xlu0 %7560 }
 0xdd7   : > { %v7562_v25 = vunpack.i.l.bf16 %v7561_v53  ;;  %v7563_v17 = vunpack.i.h.bf16 %v7561_v53 }
 0xdd8   : > { %v5366_v19 = vpop.f32.mrf.mxu0 }
 0xdd9   : > { %v5446_v16 = vsel %vm1460_vm0, %v4789_v56, %v7562_v25 }
 0xdde   : > { %v4791_v11 = vpop.f32.mrf.mxu2 }
 0xddf   : > { %v5447_v18 = vsel %vm1460_vm0, %v4791_v11, %v7563_v17 }
 0xde0   : > { %v5459_v45 = vpack.c.bf16 %v5447_v18, %v5446_v16  ;;  %v5368_v51 = vpop.f32.mrf.mxu0 }
 0xde1   : > { %v7574_v63 = vpack.i.bf16 %v5368_v51, %v5366_v19 }
 0xde2   : > { %5557 = vmatmul.bf16.gmra.mxu1 %v5459_v45  ;;  %v12358_v45 = vld [vmem:[#allocation2_spill] sm:$0xff] }
 0xde3   : > { %7575 = vrot.lane.b32.xlu1 %v7574_v63, %s8013_s29 }
 0xde7   : > { %v4794_v32 = vpop.f32.mrf.mxu2 }
 0xde8   : > { %v5371_v26 = vpop.f32.mrf.mxu0  ;;  %v5448_v27 = vsel %vm1460_vm0, %v4794_v32, %v7567_v2 }
 0xdef   : > { %v4796_v3 = vpop.f32.mrf.mxu2 }
 0xdf0   : > { %v5449_v58 = vsel %vm1460_vm0, %v4796_v3, %v7568_v48  ;;  %v5373_v37 = vpop.f32.mrf.mxu0 }
 0xdf1   : > { %v5460_v9 = vpack.c.bf16 %v5449_v58, %v5448_v27  ;;  %v7579_v0 = vpack.i.bf16 %v5373_v37, %v5371_v26  ;;  %v12359_v27 = vld [vmem:[#allocation6_spill] sm:$0xff] }
 0xdf3   : > { %5562 = vmatmul.bf16.gmra.mxu1 %v5460_v9  ;;  %7580 = vrot.lane.b32.xlu2 %v7579_v0, %s8013_s29 }
 0xdf6   : > { %v7571_v59 = vpop.permute.xlu0 %7570 }
 0xdf7   : > { %v4799_v28 = vpop.f32.mrf.mxu2  ;;  %v7572_v8 = vunpack.i.l.bf16 %v7571_v59  ;;  %v7573_v46 = vunpack.i.h.bf16 %v7571_v59 }
 0xdf9   : > { %v5450_v13 = vsel %vm1460_vm0, %v4799_v28, %v7572_v8 }
 0xdff   : > { %v4801_v33 = vpop.f32.mrf.mxu2 }
 0xe00   : > { %v5451_v6 = vsel %vm1460_vm0, %v4801_v33, %v7573_v46  ;;  %v12360_v46 = vld [vmem:[#allocation5_spill] sm:$0xff] }
 0xe01   : > { %v5461_v43 = vpack.c.bf16 %v5451_v6, %v5450_v13 }
 0xe03   : > { %5567 = vmatmul.bf16.gmra.mxu1 %v5461_v43 }
 0xe07   : > { %v4804_v36 = vpop.f32.mrf.mxu2 }
 0xe0f   : > { %v4806_v62 = vpop.f32.mrf.mxu2 }
 0xe14   : > { %v5543_v61 = vpop.f32.mrf.mxu1 }
 0xe15   : > { %v5544_v35 = vadd.f32 %v11328_v57, %v5543_v61 }
 0xe17   : > { %v5583_v44 = vadd.f32 %v5544_v35, %v10083_v24  ;;  %v4809_v1 = vpop.f32.mrf.mxu2 }
 0xe19   : > { %5603 = vadd.xlane.f32.xlu0 %v5583_v44 }
 0xe1c   : > { %v5545_v49 = vpop.f32.mrf.mxu1 }
 0xe1d   : > { %v5546_v34 = vadd.f32 %v11328_v57, %v5545_v49  ;;  %v12361_v49 = vld [vmem:[#allocation8_spill] sm:$0xff] }
 0xe1f   : > { %v5584_v5 = vadd.f32 %v5546_v34, %v10086_v21  ;;  %v4811_v19 = vpop.f32.mrf.mxu2 }
 0xe21   : > { %5605 = vadd.xlane.f32.xlu1 %v5584_v5 }
 0xe24   : > { %v5548_v55 = vpop.f32.mrf.mxu1 }
 0xe25   : > { %v5549_v52 = vadd.f32 %v11328_v57, %v5548_v55 }
 0xe27   : > { %v5585_v38 = vadd.f32 %v5549_v52, %v10107_v31 }
 0xe29   : > { %5607 = vadd.xlane.f32.xlu2 %v5585_v38 }
 0xe2c   : > { %v5550_v23 = vpop.f32.mrf.mxu1 }
 0xe2d   : > { %v5551_v47 = vadd.f32 %v11328_v57, %v5550_v23 }
 0xe2f   : > { %v5586_v40 = vadd.f32 %v5551_v47, %v10110_v15  ;;  %v12362_v47 = vld [vmem:[#allocation7_spill] sm:$0xff] }
 0xe31   : > { %5609 = vadd.xlane.f32.xlu0 %v5586_v40 }
 0xe34   : > { %v5553_v24 = vpop.f32.mrf.mxu1 }
 0xe35   : > { %v5554_v39 = vadd.f32 %v11328_v57, %v5553_v24 }
 0xe37   : > { %v11340_v10 = vadd.f32 %v5554_v39, %v10121_v12 }
 0xe39   : > { %5611 = vadd.xlane.f32.xlu1 %v11340_v10 }
 0xe3c   : > { %v5555_v21 = vpop.f32.mrf.mxu1 }
 0xe3d   : > { %v5556_v60 = vadd.f32 %v11328_v57, %v5555_v21 }
 0xe3f   : > { %v11345_v31 = vadd.f32 %v5556_v60, %v12356_v7 }
 0xe41   : > { %5613 = vadd.xlane.f32.xlu2 %v11345_v31 }
 0xe4d   : > { %v7581_v54 = vpop.permute.xlu2 %7580 }
 0xe4e   : > { %v7583_v56 = vunpack.i.h.bf16 %v7581_v54  ;;  %v7582_v53 = vunpack.i.l.bf16 %v7581_v54  ;;  %v12364_v54 = vld [vmem:[#allocation10_spill] sm:$0xff] }
 0xe50   : > { %v5454_v25 = vsel %vm1460_vm0, %v4809_v1, %v7582_v53  ;;  %v5455_v17 = vsel %vm1460_vm0, %v4811_v19, %v7583_v56  ;;  %v7431_v53 = vld [vmem:[%s12206_s12 + $0x60] sm:$0xff]  ;;  %v12365_v19 = vld [vmem:[#allocation11_spill] sm:$0xff] }
 0xe51   : > { %v5463_v11 = vpack.c.bf16 %v5455_v17, %v5454_v25 }
 0xe55   : > { %v7576_v15 = vpop.permute.xlu1 %7575 }
 0xe56   : > { %v7578_v50 = vunpack.i.h.bf16 %v7576_v15  ;;  %v7577_v41 = vunpack.i.l.bf16 %v7576_v15 }
 0xe58   : > { %v5452_v42 = vsel %vm1460_vm0, %v4804_v36, %v7577_v41  ;;  %v5453_v12 = vsel %vm1460_vm0, %v4806_v62, %v7578_v50  ;;  %v7434_v50 = vld [vmem:[%s12206_s12 + $0x78] sm:$0xff]  ;;  %v7433_v41 = vld [vmem:[%s12206_s12 + $0x70] sm:$0xff] }
 0xe59   : > { %v5462_v14 = vpack.c.bf16 %v5453_v12, %v5452_v42  ;;  %6039 = vmatpush.bf16.xpose.msra.mxu2 %v7434_v50 }
 0xe5b   : > { %5572 = vmatmul.bf16.gmra.mxu1 %v5462_v14 }
 0xe5f   : > { %v5558_v22 = vpop.f32.mrf.mxu1 }
 0xe60   : > { %v5559_v29 = vadd.f32 %v11328_v57, %v5558_v22  ;;  %v7432_v22 = vld [vmem:[%s12206_s12 + $0x68] sm:$0xff] }
 0xe61   : > { %6040 = vmatpush.bf16.xpose.msra.mxu2 %v7433_v41 }
 0xe62   : > { %v11352_v30 = vadd.f32 %v5559_v29, %v12357_v4 }
 0xe64   : > { %5615 = vadd.xlane.f32.xlu2 %v11352_v30 }
 0xe67   : > { %v5560_v16 = vpop.f32.mrf.mxu1 }
 0xe68   : > { %v5561_v48 = vadd.f32 %v11328_v57, %v5560_v16  ;;  %v12366_v16 = vld [vmem:[#allocation12_spill] sm:$0xff] }
 0xe69   : > { %6041 = vmatpush.bf16.xpose.msra.mxu2 %v7432_v22 }
 0xe6a   : > { %v11367_v58 = vadd.f32 %v5561_v48, %v12359_v27  ;;  %v7427_v27 = vld [vmem:[%s12206_s12 + $0x40] sm:$0xff] }
 0xe6b   : > { %5577 = vmatmul.bf16.gmra.mxu1 %v5463_v11 }
 0xe70   : > { %v5563_v26 = vpop.f32.mrf.mxu1 }
 0xe71   : > { %v5564_v0 = vadd.f32 %v11328_v57, %v5563_v26  ;;  %6042 = vmatpush.bf16.xpose.msra.mxu2 %v7431_v53  ;;  %v7428_v26 = vld [vmem:[%s12206_s12 + $0x48] sm:$0xff] }
 0xe73   : > { %v11377_v33 = vadd.f32 %v5564_v0, %v12360_v46 }
 0xe78   : > { %v5565_v59 = vpop.f32.mrf.mxu1 }
 0xe79   : > { %v5566_v43 = vadd.f32 %v11328_v57, %v5565_v59 }
 0xe7b   : > { %v11387_v34 = vadd.f32 %v5566_v43, %v12361_v49 }
 0xe8c   : > { %v5604_v18 = vpop.xlane.xlu0 %5603 }
 0xe8d   : > { %v5635_v51 = vmul.f32 %v5604_v18, %v12358_v45 }
 0xe8f   : > { %v11358_v63 = vsub.f32 %v5583_v44, %v5635_v51  ;;  %v5568_v44 = vpop.f32.mrf.mxu1  ;;  %v7430_v51 = vld [vmem:[%s12206_s12 + $0x58] sm:$0xff] }
 0xe90   : > { %v5569_v52 = vadd.f32 %v11328_v57, %v5568_v44  ;;  %6043 = vmatpush.bf16.xpose.msra.mxu2 %v7430_v51 }
 0xe91   : > { %v5667_v32 = vmul.f32 %v11358_v63, %v11358_v63 }
 0xe93   : > { %5683 = vadd.xlane.f32.xlu0 %v5667_v32  ;;  %v7429_v32 = vld [vmem:[%s12206_s12 + $0x50] sm:$0xff] }
 0xe94   : > { %v5606_v20 = vpop.xlane.xlu1 %5605 }
 0xe95   : > { %v5636_v2 = vmul.f32 %v5606_v20, %v12358_v45 }
 0xe97   : > { %v11364_v3 = vsub.f32 %v5584_v5, %v5636_v2  ;;  %v5570_v39 = vpop.f32.mrf.mxu1 }
 0xe98   : > { %v5571_v60 = vadd.f32 %v11328_v57, %v5570_v39  ;;  %6044 = vmatpush.bf16.xpose.msra.mxu2 %v7429_v32 }
 0xe99   : > { %v5668_v9 = vmul.f32 %v11364_v3, %v11364_v3 }
 0xe9b   : > { %5685 = vadd.xlane.f32.xlu1 %v5668_v9  ;;  %5617 = vadd.xlane.f32.xlu0 %v11367_v58 }
 0xe9c   : > { %v5608_v37 = vpop.xlane.xlu2 %5607 }
 0xe9d   : > { %v5637_v28 = vmul.f32 %v5608_v37, %v12358_v45 }
 0xe9f   : > { %v11374_v8 = vsub.f32 %v5585_v38, %v5637_v28 }
 0xea0   : > { %6045 = vmatpush.bf16.xpose.msra.mxu2 %v7428_v26 }
 0xea1   : > { %v5669_v13 = vmul.f32 %v11374_v8, %v11374_v8 }
 0xea3   : > { %5619 = vadd.xlane.f32.xlu0 %v11377_v33  ;;  %5687 = vadd.xlane.f32.xlu1 %v5669_v13 }
 0xea4   : > { %v5610_v6 = vpop.xlane.xlu0 %5609 }
 0xea5   : > { %v5638_v61 = vmul.f32 %v5610_v6, %v12358_v45 }
 0xea7   : > { %v11384_v35 = vsub.f32 %v5586_v40, %v5638_v61  ;;  %v11398_v40 = vadd.f32 %v5569_v52, %v12362_v47 }
 0xea8   : > { %6046 = vmatpush.bf16.xpose.msra.mxu2 %v7427_v27 }
 0xea9   : > { %v5670_v5 = vmul.f32 %v11384_v35, %v11384_v35 }
 0xeab   : > { %5689 = vadd.xlane.f32.xlu2 %v5670_v5  ;;  %5621 = vadd.xlane.f32.xlu1 %v11387_v34 }
 0xeac   : > { %v5612_v55 = vpop.xlane.xlu1 %5611 }
 0xead   : > { %v5639_v38 = vmul.f32 %v5612_v55, %v12358_v45 }
 0xeaf   : > { %v11395_v23 = vsub.f32 %v11340_v10, %v5639_v38  ;;  %v12363_v10 = vld [vmem:[#allocation9_spill] sm:$0xff] }
 0xeb0   : > { %v11409_v62 = vadd.f32 %v5571_v60, %v12363_v10 }
 0xeb1   : > { %v5671_v24 = vmul.f32 %v11395_v23, %v11395_v23 }
 0xeb3   : > { %5691 = vadd.xlane.f32.xlu2 %v5671_v24  ;;  %5623 = vadd.xlane.f32.xlu1 %v11398_v40 }
 0xeb4   : > { %v5614_v21 = vpop.xlane.xlu2 %5613 }
 0xeb5   : > { %v5640_v7 = vmul.f32 %v5614_v21, %v12358_v45 }
 0xeb7   : > { %v11406_v36 = vsub.f32 %v11345_v31, %v5640_v7 }
 0xeb9   : > { %v5672_v15 = vmul.f32 %v11406_v36, %v11406_v36 }
 0xebb   : > { %5625 = vadd.xlane.f32.xlu2 %v11409_v62  ;;  %5693 = vadd.xlane.f32.xlu0 %v5672_v15 }
 0xed7   : > { %v5616_v31 = vpop.xlane.xlu2 %5615 }
 0xed8   : > { %v5641_v42 = vmul.f32 %v5616_v31, %v12358_v45  ;;  %v5573_v12 = vpop.f32.mrf.mxu1 }
 0xed9   : > { %v5574_v1 = vadd.f32 %v11328_v57, %v5573_v12 }
 0xeda   : > { %v11422_v14 = vsub.f32 %v11352_v30, %v5641_v42 }
 0xedb   : > { %v11429_v29 = vadd.f32 %v5574_v1, %v12364_v54  ;;  %v11480_v54 = vld [vmem:[%s12204_s10 + $0x1] ss:$0 sm:$0xff] }
 0xedc   : > { %v5673_v4 = vmul.f32 %v11422_v14, %v11422_v14 }
 0xedd   : > { %5627 = vadd.xlane.f32.xlu2 %v11429_v29 }
 0xede   : > { %5695 = vadd.xlane.f32.xlu0 %v5673_v4 }
 0xee0   : > { %v5575_v56 = vpop.f32.mrf.mxu1 }
 0xee1   : > { %v5576_v30 = vadd.f32 %v11328_v57, %v5575_v56 }
 0xee3   : > { %v11439_v25 = vadd.f32 %v5576_v30, %v12365_v19  ;;  %v12367_v19 = vld [vmem:[#allocation13_spill] sm:$0xff] }
 0xee6   : > { %5629 = vadd.xlane.f32.xlu0 %v11439_v25 }
 0xee8   : > { %v5578_v17 = vpop.f32.mrf.mxu1 }
 0xee9   : > { %v5579_v11 = vadd.f32 %v11328_v57, %v5578_v17 }
 0xeeb   : > { %v11444_v18 = vadd.f32 %v5579_v11, %v12366_v16 }
 0xeee   : > { %5631 = vadd.xlane.f32.xlu0 %v11444_v18 }
 0xef0   : > { %v5580_v7 = vpop.f32.mrf.mxu1 }
 0xf06   : > { %v5684_v20 = vpop.xlane.xlu0 %5683 }
 0xf07   : > { %v5715_v48 = vmul.f32 %v5684_v20, %v12358_v45 }
 0xf09   : > { %v5731_v2 = vadd.f32 1e-05, %v5715_v48 }
 0xf0b   : > { %7922 = vrsqrt.f32 %v5731_v2  ;;  %vm5753_vm9 = vweird.f32 %v5731_v2 }
 0xf0e   : > { %v5686_v9 = vpop.xlane.xlu1 %5685  ;;  %v5618_v37 = vpop.xlane.xlu0 %5617 }
 0xf0f   : > { %v5716_v0 = vmul.f32 %v5686_v9, %v12358_v45  ;;  %v5642_v28 = vmul.f32 %v5618_v37, %v12358_v45 }
 0xf11   : > { %v7923_v59 = vpop.eup %7922  ;;  %v5732_v46 = vadd.f32 1e-05, %v5716_v0  ;;  %v11463_v13 = vsub.f32 %v11367_v58, %v5642_v28 }
 0xf12   : > { %v5748_v6 = vmul.f32 %v7923_v59, %v5731_v2  ;;  %vm5754_vm0 = vweird.f32 %v7923_v59 }
 0xf13   : > { %7924 = vrsqrt.f32 %v5732_v46  ;;  %v5674_v43 = vmul.f32 %v11463_v13, %v11463_v13  ;;  %vm5755_vm10 = vmor %vm5753_vm9, %vm5754_vm0  ;;  %vm5763_vm12 = vweird.f32 %v5732_v46 }
 0xf14   : > { %v5749_v61 = vmul.f32 %v7923_v59, %v5748_v6 }
 0xf15   : > { %5697 = vadd.xlane.f32.xlu1 %v5674_v43 }
 0xf16   : > { %v5750_v44 = vmul.f32 0.5, %v5749_v61  ;;  %v5620_v49 = vpop.xlane.xlu0 %5619  ;;  %v5688_v5 = vpop.xlane.xlu1 %5687 }
 0xf17   : > { %v5643_v55 = vmul.f32 %v5620_v49, %v12358_v45  ;;  %v5717_v52 = vmul.f32 %v5688_v5, %v12358_v45 }
 0xf18   : > { %v5751_v38 = vsub.f32 1.5, %v5750_v44 }
 0xf19   : > { %v7925_v47 = vpop.eup %7924  ;;  %v11470_v24 = vsub.f32 %v11377_v33, %v5643_v55  ;;  %v5733_v58 = vadd.f32 1e-05, %v5717_v52  ;;  %v5581_v33 = vadd.f32 %v11328_v57, %v5580_v7 }
 0xf1a   : > { %v5752_v39 = vmul.f32 %v7923_v59, %v5751_v38  ;;  %v5758_v21 = vmul.f32 %v7925_v47, %v5732_v46  ;;  %vm5764_vm11 = vweird.f32 %v7925_v47 }
 0xf1b   : > { %7926 = vrsqrt.f32 %v5733_v58  ;;  %v5675_v60 = vmul.f32 %v11470_v24, %v11470_v24  ;;  %v11487_v17 = vadd.f32 %v5581_v33, %v12367_v19  ;;  %vm5765_vm13 = vmor %vm5763_vm12, %vm5764_vm11  ;;  %vm5773_vm15 = vweird.f32 %v5733_v58 }
 0xf1c   : > { %v5759_v10 = vmul.f32 %v7925_v47, %v5758_v21  ;;  %v5756_v15 = vsel %vm5755_vm10, %v7923_v59, %v5752_v39 }
 0xf1d   : > { %5699 = vadd.xlane.f32.xlu1 %v5675_v60  ;;  %v5907_v4 = vmul.f32 %v5756_v15, %v11358_v63  ;;  %v11494_v63 = vld [vmem:[%s12205_s11 + $0x1] ss:$0 sm:$0xff] }
 0xf1e   : > { %v5760_v50 = vmul.f32 0.5, %v5759_v10  ;;  %v5622_v41 = vpop.xlane.xlu1 %5621  ;;  %v5690_v31 = vpop.xlane.xlu2 %5689 }
 0xf1f   : > { %v5644_v42 = vmul.f32 %v5622_v41, %v12358_v45  ;;  %v5718_v12 = vmul.f32 %v5690_v31, %v12358_v45 }
 0xf20   : > { %v5761_v1 = vsub.f32 1.5, %v5760_v50 }
 0xf21   : > { %v7927_v22 = vpop.eup %7926  ;;  %v11484_v56 = vsub.f32 %v11387_v34, %v5644_v42  ;;  %v5734_v30 = vadd.f32 1e-05, %v5718_v12  ;;  %v5926_v34 = vmul.f32 %v11480_v54, %v5907_v4 }
 0xf22   : > { %v5762_v53 = vmul.f32 %v7925_v47, %v5761_v1  ;;  %v5768_v57 = vmul.f32 %v7927_v22, %v5733_v58  ;;  %vm5774_vm14 = vweird.f32 %v7927_v22 }
 0xf23   : > { %7928 = vrsqrt.f32 %v5734_v30  ;;  %v5676_v11 = vmul.f32 %v11484_v56, %v11484_v56  ;;  %v11503_v28 = vadd.f32 %v11494_v63, %v5926_v34  ;;  %vm5775_vm1 = vmor %vm5773_vm15, %vm5774_vm14  ;;  %vm5783_vm3 = vweird.f32 %v5734_v30 }
 0xf24   : > { %v5766_v16 = vsel %vm5765_vm13, %v7925_v47, %v5762_v53  ;;  %v5769_v51 = vmul.f32 %v7927_v22, %v5768_v57 }
 0xf25   : > { %v5908_v32 = vmul.f32 %v5766_v16, %v11364_v3  ;;  %5633 = vadd.xlane.f32.xlu1 %v11487_v17  ;;  %5701 = vadd.xlane.f32.xlu2 %v5676_v11 }
 0xf26   : > { %v5770_v26 = vmul.f32 0.5, %v5769_v51  ;;  %v5624_v20 = vpop.xlane.xlu1 %5623  ;;  %v5692_v48 = vpop.xlane.xlu2 %5691 }
 0xf27   : > { %v5927_v2 = vmul.f32 %v11480_v54, %v5908_v32  ;;  %v5645_v27 = vmul.f32 %v5624_v20, %v12358_v45  ;;  %v5719_v9 = vmul.f32 %v5692_v48, %v12358_v45 }
 0xf28   : > { %v5771_v37 = vsub.f32 1.5, %v5770_v26 }
 0xf29   : > { %v7929_v0 = vpop.eup %7928  ;;  %v11506_v59 = vadd.f32 %v11494_v63, %v5927_v2  ;;  %v11509_v3 = vsub.f32 %v11398_v40, %v5645_v27  ;;  %v5735_v46 = vadd.f32 1e-05, %v5719_v9 }
 0xf2a   : > { %v5772_v6 = vmul.f32 %v7927_v22, %v5771_v37  ;;  %v5778_v43 = vmul.f32 %v7929_v0, %v5734_v30  ;;  %vm5784_vm2 = vweird.f32 %v7929_v0 }
 0xf2b   : > { %7930 = vrsqrt.f32 %v5735_v46  ;;  %v5961_v61 = vpack.c.bf16 %v11506_v59, %v11503_v28  ;;  %v5677_v44 = vmul.f32 %v11509_v3, %v11509_v3  ;;  %vm5785_vm4 = vmor %vm5783_vm3, %vm5784_vm2  ;;  %vm5793_vm6 = vweird.f32 %v5735_v46 }
 0xf2c   : > { %v5779_v49 = vmul.f32 %v7929_v0, %v5778_v43  ;;  %v5776_v5 = vsel %vm5775_vm1, %v7927_v22, %v5772_v6 }
 0xf2d   : > { %6047 = vmatmul.bf16.vlgmr.msra.gmra.mxu2 %v5961_v61  ;;  %5703 = vadd.xlane.f32.xlu2 %v5677_v44  ;;  %v5909_v60 = vmul.f32 %v5776_v5, %v11374_v8 }
 0xf2e   : > { %v5780_v55 = vmul.f32 0.5, %v5779_v49  ;;  %v5694_v40 = vpop.xlane.xlu0 %5693  ;;  %v5626_v52 = vpop.xlane.xlu2 %5625 }
 0xf2f   : > { %v5720_v38 = vmul.f32 %v5694_v40, %v12358_v45  ;;  %v5646_v47 = vmul.f32 %v5626_v52, %v12358_v45  ;;  %v5928_v42 = vmul.f32 %v11480_v54, %v5909_v60 }
 0xf30   : > { %v5781_v39 = vsub.f32 1.5, %v5780_v55 }
 0xf31   : > { %v7931_v21 = vpop.eup %7930  ;;  %v5736_v7 = vadd.f32 1e-05, %v5720_v38  ;;  %v11519_v58 = vsub.f32 %v11409_v62, %v5646_v47  ;;  %v11527_v22 = vadd.f32 %v11494_v63, %v5928_v42 }
 0xf32   : > { %v5782_v10 = vmul.f32 %v7929_v0, %v5781_v39  ;;  %v5788_v15 = vmul.f32 %v7931_v21, %v5735_v46  ;;  %vm5794_vm5 = vweird.f32 %v7931_v21  ;;  %v7439_v39 = vld [vmem:[%s12208_s14 + $0x60] sm:$0xff] }
 0xf33   : > { %7932 = vrsqrt.f32 %v5736_v7  ;;  %v5678_v50 = vmul.f32 %v11519_v58, %v11519_v58  ;;  %vm5795_vm7 = vmor %vm5793_vm6, %vm5794_vm5  ;;  %vm5803_vm0 = vweird.f32 %v5736_v7 }
 0xf34   : > { %v5786_v41 = vsel %vm5785_vm4, %v7929_v0, %v5782_v10  ;;  %v5789_v31 = vmul.f32 %v7931_v21, %v5788_v15 }
 0xf35   : > { %v5910_v33 = vmul.f32 %v5786_v41, %v11384_v35  ;;  %5705 = vadd.xlane.f32.xlu0 %v5678_v50  ;;  %v7437_v41 = vld [vmem:[%s12208_s14 + $0x50] sm:$0xff] }
 0xf36   : > { %v5790_v8 = vmul.f32 0.5, %v5789_v31 }
 0xf37   : > { %v5929_v12 = vmul.f32 %v11480_v54, %v5910_v33 }
 0xf38   : > { %v5791_v62 = vsub.f32 1.5, %v5790_v8 }
 0xf39   : > { %v7933_v1 = vpop.eup %7932  ;;  %v11530_v4 = vadd.f32 %v11494_v63, %v5929_v12 }
 0xf3a   : > { %v5792_v30 = vmul.f32 %v7931_v21, %v5791_v62  ;;  %v5798_v53 = vmul.f32 %v7933_v1, %v5736_v7  ;;  %vm5804_vm8 = vweird.f32 %v7933_v1 }
 0xf3b   : > { %v5962_v35 = vpack.c.bf16 %v11530_v4, %v11527_v22  ;;  %vm5805_vm9 = vmor %vm5803_vm0, %vm5804_vm8 }
 0xf3c   : > { %v5799_v57 = vmul.f32 %v7933_v1, %v5798_v53  ;;  %v5796_v19 = vsel %vm5795_vm7, %v7931_v21, %v5792_v30  ;;  %v7438_v21 = vld [vmem:[%s12208_s14 + $0x58] sm:$0xff] }
 0xf3d   : > { %6052 = vmatmul.bf16.gmra.mxu2 %v5962_v35  ;;  %v5911_v51 = vmul.f32 %v5796_v19, %v11395_v23  ;;  %v7442_v23 = vld [vmem:[%s12208_s14 + $0x78] sm:$0xff] }
 0xf3e   : > { %v5800_v11 = vmul.f32 0.5, %v5799_v57  ;;  %6182 = vmatpush.bf16.xpose.msra.mxu3 %v7442_v23  ;;  %v7435_v23 = vld [vmem:[%s12208_s14 + $0x40] sm:$0xff] }
 0xf3f   : > { %v5930_v20 = vmul.f32 %v11480_v54, %v5911_v51 }
 0xf40   : > { %v5801_v16 = vsub.f32 1.5, %v5800_v11 }
 0xf41   : > { %v11539_v2 = vadd.f32 %v11494_v63, %v5930_v20 }
 0xf42   : > { %v5802_v34 = vmul.f32 %v7933_v1, %v5801_v16 }
 0xf44   : > { %v5806_v32 = vsel %vm5805_vm9, %v7933_v1, %v5802_v34  ;;  %v7436_v1 = vld [vmem:[%s12208_s14 + $0x48] sm:$0xff] }
 0xf45   : > { %v5912_v26 = vmul.f32 %v5806_v32, %v11406_v36  ;;  %v7441_v36 = vld [vmem:[%s12208_s14 + $0x70] sm:$0xff] }
 0xf46   : > { %6183 = vmatpush.bf16.xpose.msra.mxu3 %v7441_v36 }
 0xf47   : > { %v5931_v48 = vmul.f32 %v11480_v54, %v5912_v26 }
 0xf49   : > { %v11542_v27 = vadd.f32 %v11494_v63, %v5931_v48 }
 0xf4b   : > { %v5963_v9 = vpack.c.bf16 %v11542_v27, %v11539_v2 }
 0xf4d   : > { %6057 = vmatmul.bf16.gmra.mxu2 %v5963_v9 }
 0xf50   : > { %v5628_v37 = vpop.xlane.xlu2 %5627 }
 0xf51   : > { %v5696_v0 = vpop.xlane.xlu0 %5695  ;;  %v5647_v46 = vmul.f32 %v5628_v37, %v12358_v45 }
 0xf52   : > { %v5721_v38 = vmul.f32 %v5696_v0, %v12358_v45 }
 0xf53   : > { %v11554_v6 = vsub.f32 %v11429_v29, %v5647_v46 }
 0xf54   : > { %v5737_v47 = vadd.f32 1e-05, %v5721_v38 }
 0xf55   : > { %v5679_v43 = vmul.f32 %v11554_v6, %v11554_v6 }
 0xf56   : > { %7934 = vrsqrt.f32 %v5737_v47  ;;  %vm5813_vm11 = vweird.f32 %v5737_v47 }
 0xf57   : > { %5707 = vadd.xlane.f32.xlu1 %v5679_v43 }
 0xf59   : > { %v5630_v61 = vpop.xlane.xlu0 %5629 }
 0xf5a   : > { %v5648_v44 = vmul.f32 %v5630_v61, %v12358_v45 }
 0xf5c   : > { %v11560_v49 = vsub.f32 %v11439_v25, %v5648_v44  ;;  %v7440_v25 = vld [vmem:[%s12208_s14 + $0x68] sm:$0xff] }
 0xf5d   : > { %6184 = vmatpush.bf16.xpose.msra.mxu3 %v7440_v25 }
 0xf5e   : > { %v5680_v5 = vmul.f32 %v11560_v49, %v11560_v49 }
 0xf60   : > { %5709 = vadd.xlane.f32.xlu2 %v5680_v5 }
 0xf61   : > { %v5632_v55 = vpop.xlane.xlu0 %5631 }
 0xf62   : > { %v5649_v40 = vmul.f32 %v5632_v55, %v12358_v45 }
 0xf64   : > { %v11566_v29 = vsub.f32 %v11444_v18, %v5649_v40  ;;  %v7935_v18 = vpop.eup %7934 }
 0xf65   : > { %6185 = vmatpush.bf16.xpose.msra.mxu3 %v7439_v39  ;;  %v5808_v60 = vmul.f32 %v7935_v18, %v5737_v47  ;;  %vm5814_vm10 = vweird.f32 %v7935_v18 }
 0xf66   : > { %v5681_v52 = vmul.f32 %v11566_v29, %v11566_v29  ;;  %vm5815_vm12 = vmor %vm5813_vm11, %vm5814_vm10 }
 0xf67   : > { %v5809_v7 = vmul.f32 %v7935_v18, %v5808_v60 }
 0xf68   : > { %5711 = vadd.xlane.f32.xlu0 %v5681_v52 }
 0xf69   : > { %v5810_v31 = vmul.f32 0.5, %v5809_v7 }
 0xf6b   : > { %v5811_v33 = vsub.f32 1.5, %v5810_v31 }
 0xf6d   : > { %6186 = vmatpush.bf16.xpose.msra.mxu3 %v7438_v21  ;;  %v5812_v30 = vmul.f32 %v7935_v18, %v5811_v33 }
 0xf6f   : > { %v5816_v57 = vsel %vm5815_vm12, %v7935_v18, %v5812_v30 }
 0xf70   : > { %v5913_v20 = vmul.f32 %v5816_v57, %v11422_v14 }
 0xf75   : > { %6187 = vmatpush.bf16.xpose.msra.mxu3 %v7437_v41 }
 0xf7d   : > { %6188 = vmatpush.bf16.xpose.msra.mxu3 %v7436_v1 }
 0xf85   : > { %6189 = vmatpush.bf16.xpose.msra.mxu3 %v7435_v23 }
 0xf88   : > { %v5698_v10 = vpop.xlane.xlu1 %5697 }
 0xf89   : > { %v5722_v15 = vmul.f32 %v5698_v10, %v12358_v45 }
 0xf8b   : > { %v5738_v50 = vadd.f32 1e-05, %v5722_v15 }
 0xf8d   : > { %7936 = vrsqrt.f32 %v5738_v50  ;;  %vm5823_vm14 = vweird.f32 %v5738_v50 }
 0xf90   : > { %v5700_v42 = vpop.xlane.xlu1 %5699 }
 0xf91   : > { %v5723_v8 = vmul.f32 %v5700_v42, %v12358_v45 }
 0xf93   : > { %v7937_v12 = vpop.eup %7936  ;;  %v5739_v62 = vadd.f32 1e-05, %v5723_v8 }
 0xf94   : > { %v5818_v53 = vmul.f32 %v7937_v12, %v5738_v50  ;;  %vm5824_vm13 = vweird.f32 %v7937_v12 }
 0xf95   : > { %7938 = vrsqrt.f32 %v5739_v62  ;;  %vm5825_vm15 = vmor %vm5823_vm14, %vm5824_vm13  ;;  %vm5833_vm2 = vweird.f32 %v5739_v62 }
 0xf96   : > { %v5819_v35 = vmul.f32 %v7937_v12, %v5818_v53 }
 0xf98   : > { %v5820_v19 = vmul.f32 0.5, %v5819_v35  ;;  %v5634_v11 = vpop.xlane.xlu1 %5633  ;;  %v5702_v16 = vpop.xlane.xlu2 %5701 }
 0xf99   : > { %v5650_v51 = vmul.f32 %v5634_v11, %v12358_v45  ;;  %v5724_v34 = vmul.f32 %v5702_v16, %v12358_v45 }
 0xf9a   : > { %v5821_v32 = vsub.f32 1.5, %v5820_v19 }
 0xf9b   : > { %v7939_v26 = vpop.eup %7938  ;;  %v11592_v48 = vsub.f32 %v11487_v17, %v5650_v51  ;;  %v5740_v9 = vadd.f32 1e-05, %v5724_v34  ;;  %v5932_v17 = vmul.f32 %v11480_v54, %v5913_v20 }
 0xf9c   : > { %v5822_v36 = vmul.f32 %v7937_v12, %v5821_v32  ;;  %v5828_v37 = vmul.f32 %v7939_v26, %v5739_v62  ;;  %vm5834_vm1 = vweird.f32 %v7939_v26 }
 0xf9d   : > { %7940 = vrsqrt.f32 %v5740_v9  ;;  %v5682_v0 = vmul.f32 %v11592_v48, %v11592_v48  ;;  %v11604_v25 = vadd.f32 %v11494_v63, %v5932_v17  ;;  %vm5835_vm3 = vmor %vm5833_vm2, %vm5834_vm1  ;;  %vm5843_vm5 = vweird.f32 %v5740_v9 }
 0xf9e   : > { %v5826_v46 = vsel %vm5825_vm15, %v7937_v12, %v5822_v36  ;;  %v5829_v43 = vmul.f32 %v7939_v26, %v5828_v37 }
 0xf9f   : > { %v5914_v14 = vmul.f32 %v5826_v46, %v11463_v13  ;;  %5713 = vadd.xlane.f32.xlu1 %v5682_v0 }
 0xfa0   : > { %v5830_v61 = vmul.f32 0.5, %v5829_v43  ;;  %v5704_v44 = vpop.xlane.xlu2 %5703 }
 0xfa1   : > { %v5725_v5 = vmul.f32 %v5704_v44, %v12358_v45  ;;  %v5933_v55 = vmul.f32 %v11480_v54, %v5914_v14 }
 0xfa2   : > { %v5831_v40 = vsub.f32 1.5, %v5830_v61 }
 0xfa3   : > { %v7941_v52 = vpop.eup %7940  ;;  %v5741_v38 = vadd.f32 1e-05, %v5725_v5  ;;  %v11607_v47 = vadd.f32 %v11494_v63, %v5933_v55 }
 0xfa4   : > { %v5832_v39 = vmul.f32 %v7939_v26, %v5831_v40  ;;  %v5838_v13 = vmul.f32 %v7941_v52, %v5740_v9  ;;  %vm5844_vm4 = vweird.f32 %v7941_v52 }
 0xfa5   : > { %7942 = vrsqrt.f32 %v5741_v38  ;;  %v5964_v18 = vpack.c.bf16 %v11607_v47, %v11604_v25  ;;  %vm5845_vm6 = vmor %vm5843_vm5, %vm5844_vm4  ;;  %vm5853_vm8 = vweird.f32 %v5741_v38 }
 0xfa6   : > { %v5839_v21 = vmul.f32 %v7941_v52, %v5838_v13  ;;  %v5836_v60 = vsel %vm5835_vm3, %v7939_v26, %v5832_v39 }
 0xfa7   : > { %6062 = vmatmul.bf16.gmra.mxu2 %v5964_v18  ;;  %v5915_v31 = vmul.f32 %v5836_v60, %v11470_v24  ;;  %v11619_v24 = vld [vmem:[%s12207_s13 + $0x1] ss:$0 sm:$0xff] }
 0xfa8   : > { %v5840_v7 = vmul.f32 0.5, %v5839_v21  ;;  %v5706_v10 = vpop.xlane.xlu0 %5705 }
 0xfa9   : > { %v5726_v15 = vmul.f32 %v5706_v10, %v12358_v45  ;;  %v5934_v30 = vmul.f32 %v11480_v54, %v5915_v31 }
 0xfaa   : > { %v5841_v50 = vsub.f32 1.5, %v5840_v7 }
 0xfab   : > { %v7943_v41 = vpop.eup %7942  ;;  %v5742_v33 = vadd.f32 1e-05, %v5726_v15  ;;  %v11622_v16 = vadd.f32 %v11494_v63, %v5934_v30 }
 0xfac   : > { %v5842_v42 = vmul.f32 %v7941_v52, %v5841_v50  ;;  %v5848_v8 = vmul.f32 %v7943_v41, %v5741_v38  ;;  %vm5854_vm7 = vweird.f32 %v7943_v41 }
 0xfad   : > { %7944 = vrsqrt.f32 %v5742_v33  ;;  %vm5855_vm0 = vmor %vm5853_vm8, %vm5854_vm7  ;;  %vm5863_vm10 = vweird.f32 %v5742_v33 }
 0xfae   : > { %v5846_v12 = vsel %vm5845_vm6, %v7941_v52, %v5842_v42  ;;  %v5849_v62 = vmul.f32 %v7943_v41, %v5848_v8 }
 0xfaf   : > { %v5916_v1 = vmul.f32 %v5846_v12, %v11484_v56 }
 0xfb0   : > { %v5850_v53 = vmul.f32 0.5, %v5849_v62  ;;  %v6048_v35 = vpop.f32.mrf.mxu2 }
 0xfb1   : > { %v5935_v57 = vmul.f32 %v11480_v54, %v5916_v1  ;;  %v6049_v20 = vadd.f32 %v11619_v24, %v6048_v35 }
 0xfb2   : > { %v5851_v19 = vsub.f32 1.5, %v5850_v53 }
 0xfb3   : > { %v7945_v11 = vpop.eup %7944  ;;  %v11625_v51 = vadd.f32 %v11494_v63, %v5935_v57  ;;  %v6088_v43 = vmax.f32 %v6049_v20, 0.0 }
 0xfb4   : > { %v5852_v56 = vmul.f32 %v7943_v41, %v5851_v19  ;;  %v5858_v34 = vmul.f32 %v7945_v11, %v5742_v33  ;;  %vm5864_vm9 = vweird.f32 %v7945_v11 }
 0xfb5   : > { %v5965_v32 = vpack.c.bf16 %v11625_v51, %v11622_v16  ;;  %vm5865_vm11 = vmor %vm5863_vm10, %vm5864_vm9 }
 0xfb6   : > { %v5859_v26 = vmul.f32 %v7945_v11, %v5858_v34  ;;  %v5856_v9 = vsel %vm5855_vm0, %v7943_v41, %v5852_v56 }
 0xfb7   : > { %6067 = vmatmul.bf16.gmra.mxu2 %v5965_v32  ;;  %v5917_v46 = vmul.f32 %v5856_v9, %v11509_v3 }
 0xfb8   : > { %v5860_v23 = vmul.f32 0.5, %v5859_v26  ;;  %v6050_v36 = vpop.f32.mrf.mxu2 }
 0xfb9   : > { %v6051_v37 = vadd.f32 %v11619_v24, %v6050_v36  ;;  %v5936_v55 = vmul.f32 %v11480_v54, %v5917_v46 }
 0xfba   : > { %v5861_v0 = vsub.f32 1.5, %v5860_v23 }
 0xfbb   : > { %v6089_v14 = vmax.f32 %v6051_v37, 0.0  ;;  %v11636_v38 = vadd.f32 %v11494_v63, %v5936_v55 }
 0xfbc   : > { %v5862_v17 = vmul.f32 %v7945_v11, %v5861_v0 }
 0xfbd   : > { %v6104_v61 = vpack.c.bf16 %v6089_v14, %v6088_v43 }
 0xfbe   : > { %v5866_v44 = vsel %vm5865_vm11, %v7945_v11, %v5862_v17 }
 0xfbf   : > { %v5918_v5 = vmul.f32 %v5866_v44, %v11519_v58  ;;  %6190 = vmatmul.bf16.vlgmr.msra.gmra.mxu3 %v6104_v61 }
 0xfc0   : > { %v6053_v40 = vpop.f32.mrf.mxu2 }
 0xfc1   : > { %v5937_v52 = vmul.f32 %v11480_v54, %v5918_v5  ;;  %v6054_v13 = vadd.f32 %v11619_v24, %v6053_v40 }
 0xfc3   : > { %v11639_v3 = vadd.f32 %v11494_v63, %v5937_v52  ;;  %v6090_v21 = vmax.f32 %v6054_v13, 0.0 }
 0xfc5   : > { %v5966_v39 = vpack.c.bf16 %v11639_v3, %v11636_v38 }
 0xfc7   : > { %6072 = vmatmul.bf16.gmra.mxu2 %v5966_v39 }
 0xfc8   : > { %v6055_v18 = vpop.f32.mrf.mxu2 }
 0xfc9   : > { %v6056_v58 = vadd.f32 %v11619_v24, %v6055_v18 }
 0xfca   : > { %v5708_v10 = vpop.xlane.xlu1 %5707 }
 0xfcb   : > { %v6091_v60 = vmax.f32 %v6056_v58, 0.0  ;;  %v5727_v15 = vmul.f32 %v5708_v10, %v12358_v45 }
 0xfcd   : > { %v6105_v7 = vpack.c.bf16 %v6091_v60, %v6090_v21  ;;  %v5743_v41 = vadd.f32 1e-05, %v5727_v15 }
 0xfcf   : > { %6195 = vmatmul.bf16.gmra.mxu3 %v6105_v7  ;;  %7946 = vrsqrt.f32 %v5743_v41  ;;  %vm5873_vm13 = vweird.f32 %v5743_v41 }
 0xfd0   : > { %v6058_v50 = vpop.f32.mrf.mxu2 }
 0xfd1   : > { %v6059_v33 = vadd.f32 %v11619_v24, %v6058_v50 }
 0xfd3   : > { %v5710_v31 = vpop.xlane.xlu2 %5709  ;;  %v6092_v53 = vmax.f32 %v6059_v33, 0.0 }
 0xfd4   : > { %v5728_v42 = vmul.f32 %v5710_v31, %v12358_v45 }
 0xfd5   : > { %v7947_v12 = vpop.eup %7946 }
 0xfd6   : > { %v5744_v62 = vadd.f32 1e-05, %v5728_v42  ;;  %v5868_v30 = vmul.f32 %v7947_v12, %v5743_v41  ;;  %vm5874_vm12 = vweird.f32 %v7947_v12 }
 0xfd7   : > { %vm5875_vm14 = vmor %vm5873_vm13, %vm5874_vm12 }
 0xfd8   : > { %v6060_v8 = vpop.f32.mrf.mxu2  ;;  %7948 = vrsqrt.f32 %v5744_v62  ;;  %v5869_v57 = vmul.f32 %v7947_v12, %v5868_v30  ;;  %vm5883_vm1 = vweird.f32 %v5744_v62 }
 0xfd9   : > { %v6061_v1 = vadd.f32 %v11619_v24, %v6060_v8 }
 0xfda   : > { %v5870_v11 = vmul.f32 0.5, %v5869_v57 }
 0xfdb   : > { %v6093_v35 = vmax.f32 %v6061_v1, 0.0 }
 0xfdc   : > { %v5871_v56 = vsub.f32 1.5, %v5870_v11 }
 0xfdd   : > { %v6106_v19 = vpack.c.bf16 %v6093_v35, %v6092_v53 }
 0xfde   : > { %v7949_v34 = vpop.eup %7948  ;;  %v5872_v32 = vmul.f32 %v7947_v12, %v5871_v56 }
 0xfdf   : > { %6200 = vmatmul.bf16.gmra.mxu3 %v6106_v19  ;;  %v5878_v26 = vmul.f32 %v7949_v34, %v5744_v62  ;;  %vm5884_vm15 = vweird.f32 %v7949_v34 }
 0xfe0   : > { %v5876_v9 = vsel %vm5875_vm14, %v7947_v12, %v5872_v32  ;;  %vm5885_vm2 = vmor %vm5883_vm1, %vm5884_vm15 }
 0xfe1   : > { %v5879_v20 = vmul.f32 %v7949_v34, %v5878_v26  ;;  %v5919_v37 = vmul.f32 %v5876_v9, %v11554_v6  ;;  %v5712_v6 = vpop.xlane.xlu0 %5711 }
 0xfe2   : > { %v5729_v55 = vmul.f32 %v5712_v6, %v12358_v45 }
 0xfe3   : > { %v5880_v23 = vmul.f32 0.5, %v5879_v20  ;;  %v5938_v14 = vmul.f32 %v11480_v54, %v5919_v37 }
 0xfe4   : > { %v5745_v40 = vadd.f32 1e-05, %v5729_v55 }
 0xfe5   : > { %v5881_v36 = vsub.f32 1.5, %v5880_v23  ;;  %v11654_v61 = vadd.f32 %v11494_v63, %v5938_v14 }
 0xfe6   : > { %7950 = vrsqrt.f32 %v5745_v40  ;;  %vm5893_vm4 = vweird.f32 %v5745_v40 }
 0xfe7   : > { %v5882_v0 = vmul.f32 %v7949_v34, %v5881_v36 }
 0xfe9   : > { %v5886_v46 = vsel %vm5885_vm2, %v7949_v34, %v5882_v0 }
 0xfea   : > { %v5920_v43 = vmul.f32 %v5886_v46, %v11560_v49 }
 0xfec   : > { %v5939_v17 = vmul.f32 %v11480_v54, %v5920_v43  ;;  %v7951_v49 = vpop.eup %7950 }
 0xfed   : > { %v5888_v52 = vmul.f32 %v7951_v49, %v5745_v40  ;;  %vm5894_vm3 = vweird.f32 %v7951_v49 }
 0xfee   : > { %v11657_v44 = vadd.f32 %v11494_v63, %v5939_v17  ;;  %vm5895_vm5 = vmor %vm5893_vm4, %vm5894_vm3 }
 0xfef   : > { %v5889_v39 = vmul.f32 %v7951_v49, %v5888_v52 }
 0xff0   : > { %v5967_v5 = vpack.c.bf16 %v11657_v44, %v11654_v61 }
 0xff1   : > { %v5890_v21 = vmul.f32 0.5, %v5889_v39 }
 0xff2   : > { %6077 = vmatmul.bf16.gmra.mxu2 %v5967_v5 }
 0xff3   : > { %v5891_v60 = vsub.f32 1.5, %v5890_v21 }
 0xff5   : > { %v5892_v10 = vmul.f32 %v7951_v49, %v5891_v60 }
 0xff7   : > { %v5896_v41 = vsel %vm5895_vm5, %v7951_v49, %v5892_v10 }
 0xff8   : > { %v5921_v42 = vmul.f32 %v5896_v41, %v11566_v29 }
 0xffa   : > { %v5940_v1 = vmul.f32 %v11480_v54, %v5921_v42 }
 0xffc   : > { %v11668_v35 = vadd.f32 %v11494_v63, %v5940_v1 }
0x1012   : > { %v5714_v13 = vpop.xlane.xlu1 %5713 }
0x1013   : > { %v5730_v18 = vmul.f32 %v5714_v13, %v12358_v45 }
0x1015   : > { %v5746_v58 = vadd.f32 1e-05, %v5730_v18 }
0x1017   : > { %7952 = vrsqrt.f32 %v5746_v58  ;;  %vm5903_vm7 = vweird.f32 %v5746_v58 }
0x101d   : > { %v7953_v7 = vpop.eup %7952 }
0x101e   : > { %v5898_v15 = vmul.f32 %v7953_v7, %v5746_v58  ;;  %vm5904_vm6 = vweird.f32 %v7953_v7 }
0x101f   : > { %vm5905_vm8 = vmor %vm5903_vm7, %vm5904_vm6 }
0x1020   : > { %v5899_v50 = vmul.f32 %v7953_v7, %v5898_v15 }
0x1022   : > { %v5900_v31 = vmul.f32 0.5, %v5899_v50 }
0x1024   : > { %v5901_v33 = vsub.f32 1.5, %v5900_v31 }
0x1026   : > { %v5902_v8 = vmul.f32 %v7953_v7, %v5901_v33 }
0x1028   : > { %v5906_v12 = vsel %vm5905_vm8, %v7953_v7, %v5902_v8 }
0x1029   : > { %v5922_v62 = vmul.f32 %v5906_v12, %v11592_v48 }
0x102a   : > { %v6063_v30 = vpop.f32.mrf.mxu2 }
0x102b   : > { %v5941_v53 = vmul.f32 %v11480_v54, %v5922_v62  ;;  %v6064_v19 = vadd.f32 %v11619_v24, %v6063_v30 }
0x102d   : > { %v11671_v57 = vadd.f32 %v11494_v63, %v5941_v53  ;;  %v6094_v56 = vmax.f32 %v6064_v19, 0.0  ;;  %v7596_v53 = vld [vmem:[%s12209_s15 + $0x1] ss:$0 sm:$0xff] }
0x102f   : > { %v5968_v29 = vpack.c.bf16 %v11671_v57, %v11668_v35 }
0x1031   : > { %6082 = vmatmul.bf16.gmra.mxu2 %v5968_v29 }
0x1032   : > { %v6065_v11 = vpop.f32.mrf.mxu2 }
0x1033   : > { %v6066_v48 = vadd.f32 %v11619_v24, %v6065_v11 }
0x1035   : > { %v6095_v34 = vmax.f32 %v6066_v48, 0.0 }
0x1037   : > { %v6107_v32 = vpack.c.bf16 %v6095_v34, %v6094_v56 }
0x1039   : > { %6205 = vmatmul.bf16.gmra.mxu3 %v6107_v32 }
0x103a   : > { %v6068_v54 = vpop.f32.mrf.mxu2 }
0x103b   : > { %v6069_v26 = vadd.f32 %v11619_v24, %v6068_v54 }
0x103d   : > { %v6096_v9 = vmax.f32 %v6069_v26, 0.0 }
0x1042   : > { %v6070_v20 = vpop.f32.mrf.mxu2  ;;  %v6191_v52 = vpop.f32.mrf.mxu3 }
0x1043   : > { %v6071_v63 = vadd.f32 %v11619_v24, %v6070_v20 }
0x1045   : > { %v6097_v23 = vmax.f32 %v6071_v63, 0.0 }
0x1047   : > { %v6108_v36 = vpack.c.bf16 %v6097_v23, %v6096_v9 }
0x1049   : > { %6210 = vmatmul.bf16.gmra.mxu3 %v6108_v36 }
0x104a   : > { %v6073_v37 = vpop.f32.mrf.mxu2  ;;  %v11683_v58 = vpop.f32.mrf.mxu3 }
0x104b   : > { %v6074_v0 = vadd.f32 %v11619_v24, %v6073_v37 }
0x104d   : > { %v6098_v14 = vmax.f32 %v6074_v0, 0.0 }
0x1052   : > { %v6075_v46 = vpop.f32.mrf.mxu2  ;;  %v11685_v21 = vpop.f32.mrf.mxu3 }
0x1053   : > { %v6076_v43 = vadd.f32 %v11619_v24, %v6075_v46 }
0x1055   : > { %v6099_v17 = vmax.f32 %v6076_v43, 0.0 }
0x1057   : > { %v6109_v5 = vpack.c.bf16 %v6099_v17, %v6098_v14 }
0x1059   : > { %6215 = vmatmul.bf16.gmra.mxu3 %v6109_v5 }
0x105a   : > { %v11687_v60 = vpop.f32.mrf.mxu3 }
0x1062   : > { %v11689_v7 = vpop.f32.mrf.mxu3 }
0x106a   : > { %v6203_v10 = vpop.f32.mrf.mxu3 }
0x1075   : > { %v6078_v6 = vpop.f32.mrf.mxu2 }
0x1076   : > { %v6079_v55 = vadd.f32 %v11619_v24, %v6078_v6 }
0x1078   : > { %v6100_v39 = vmax.f32 %v6079_v55, 0.0 }
0x107d   : > { %v6080_v40 = vpop.f32.mrf.mxu2 }
0x107e   : > { %v6081_v49 = vadd.f32 %v11619_v24, %v6080_v40  ;;  %v6197_v40 = vadd.f32 %v7596_v53, %v11685_v21 }
0x1080   : > { %v6101_v13 = vmax.f32 %v6081_v49, 0.0  ;;  %v6202_v49 = vadd.f32 %v7596_v53, %v11689_v7 }
0x1082   : > { %v6110_v18 = vpack.c.bf16 %v6101_v13, %v6100_v39  ;;  %v6199_v39 = vadd.f32 %v7596_v53, %v11687_v60 }
0x1084   : > { %6220 = vmatmul.bf16.gmra.mxu3 %v6110_v18  ;;  %v11747_v21 = vadd.f32 %v6199_v39, %v11530_v4 }
0x10b4   : > { %v6083_v15 = vpop.f32.mrf.mxu2 }
0x10b5   : > { %v6084_v50 = vadd.f32 %v11619_v24, %v6083_v15 }
0x10b7   : > { %v6102_v42 = vmax.f32 %v6084_v50, 0.0 }
0x10bc   : > { %v6085_v41 = vpop.f32.mrf.mxu2  ;;  %v6206_v31 = vpop.f32.mrf.mxu3 }
0x10bd   : > { %v6086_v33 = vadd.f32 %v11619_v24, %v6085_v41  ;;  %v6207_v26 = vadd.f32 %v7596_v53, %v6206_v31 }
0x10bf   : > { %v6103_v8 = vmax.f32 %v6086_v33, 0.0  ;;  %v6237_v9 = vadd.f32 %v6207_v26, %v11604_v25 }
0x10c1   : > { %v6111_v12 = vpack.c.bf16 %v6103_v8, %v6102_v42 }
0x10c3   : > { %6225 = vmatmul.bf16.gmra.mxu3 %v6111_v12 }
0x10c4   : > { %v6208_v62 = vpop.f32.mrf.mxu3 }
0x10c5   : > { %v6209_v17 = vadd.f32 %v7596_v53, %v6208_v62 }
0x10c7   : > { %v11722_v55 = vadd.f32 %v6209_v17, %v11607_v47  ;;  %v11737_v47 = vadd.f32 %v6202_v49, %v11539_v2 }
0x10cc   : > { %v6211_v1 = vpop.f32.mrf.mxu3 }
0x10cd   : > { %v6212_v25 = vadd.f32 %v7596_v53, %v6211_v1 }
0x10cf   : > { %v11711_v14 = vadd.f32 %v6212_v25, %v11622_v16 }
0x10d4   : > { %v6213_v30 = vpop.f32.mrf.mxu3 }
0x10d5   : > { %v6214_v5 = vadd.f32 %v7596_v53, %v6213_v30 }
0x10d7   : > { %v11725_v16 = vadd.f32 %v6214_v5, %v11625_v51  ;;  %v6194_v51 = vadd.f32 %v7596_v53, %v11683_v58 }
0x10d9   : > { %v11744_v18 = vadd.f32 %v6194_v51, %v11506_v59 }
0x10dc   : > { %v6216_v29 = vpop.f32.mrf.mxu3 }
0x10dd   : > { %v6217_v19 = vadd.f32 %v7596_v53, %v6216_v29 }
0x10df   : > { %v6241_v11 = vadd.f32 %v6217_v19, %v11636_v38  ;;  %v6204_v38 = vadd.f32 %v7596_v53, %v6203_v10 }
0x10e1   : > { %6271 = vadd.xlane.f32.xlu0 %v6241_v11  ;;  %v6236_v36 = vadd.f32 %v6204_v38, %v11542_v27 }
0x10e4   : > { %v6218_v48 = vpop.f32.mrf.mxu3 }
0x10e5   : > { %v6219_v56 = vadd.f32 %v7596_v53, %v6218_v48 }
0x10e7   : > { %v6242_v24 = vadd.f32 %v6219_v56, %v11639_v3  ;;  %v6192_v3 = vadd.f32 %v7596_v53, %v6191_v52  ;;  %v11734_v52 = vadd.f32 %v6197_v40, %v11527_v22 }
0x10e9   : > { %6273 = vadd.xlane.f32.xlu1 %v6242_v24  ;;  %v11703_v37 = vadd.f32 %v6192_v3, %v11503_v28 }
0x1107   : > { %v6221_v34 = vpop.f32.mrf.mxu3 }
0x1108   : > { %v6222_v32 = vadd.f32 %v7596_v53, %v6221_v34 }
0x110a   : > { %v6243_v54 = vadd.f32 %v6222_v32, %v11654_v61 }
0x110c   : > { %6275 = vadd.xlane.f32.xlu1 %v6243_v54 }
0x110f   : > { %v6223_v20 = vpop.f32.mrf.mxu3 }
0x1110   : > { %v6224_v63 = vadd.f32 %v7596_v53, %v6223_v20 }
0x1112   : > { %v6244_v23 = vadd.f32 %v6224_v63, %v11657_v44 }
0x1114   : > { %6277 = vadd.xlane.f32.xlu2 %v6244_v23  ;;  %6263 = vadd.xlane.f32.xlu1 %v6237_v9 }
0x111c   : > { %6261 = vadd.xlane.f32.xlu1 %v6236_v36 }
0x1124   : > { %6251 = vadd.xlane.f32.xlu1 %v11703_v37 }
0x1146   : > { %v6226_v61 = vpop.f32.mrf.mxu3 }
0x1147   : > { %v6227_v0 = vadd.f32 %v7596_v53, %v6226_v61 }
0x1149   : > { %v11707_v46 = vadd.f32 %v6227_v0, %v11668_v35 }
0x114b   : > { %6279 = vadd.xlane.f32.xlu2 %v11707_v46 }
0x114e   : > { %v6228_v44 = vpop.f32.mrf.mxu3 }
0x114f   : > { %v6229_v43 = vadd.f32 %v7596_v53, %v6228_v44 }
0x1151   : > { %v11714_v27 = vadd.f32 %v6229_v43, %v11671_v57 }
0x1153   : > { %6281 = vadd.xlane.f32.xlu0 %v11714_v27  ;;  %6267 = vadd.xlane.f32.xlu2 %v11711_v14 }
0x1154   : > { %v6272_v28 = vpop.xlane.xlu0 %6271 }
0x1155   : > { %v6293_v35 = vmul.f32 %v6272_v28, %v12358_v45 }
0x1157   : > { %v11719_v6 = vsub.f32 %v6241_v11, %v6293_v35 }
0x1159   : > { %v6325_v57 = vmul.f32 %v11719_v6, %v11719_v6 }
0x115b   : > { %6269 = vadd.xlane.f32.xlu0 %v11725_v16  ;;  %6265 = vadd.xlane.f32.xlu2 %v11722_v55 }
0x115c   : > { %6351 = vadd.xlane.f32.xlu1 %v6325_v57  ;;  %v6274_v13 = vpop.xlane.xlu1 %6273 }
0x115d   : > { %v6294_v22 = vmul.f32 %v6274_v13, %v12358_v45 }
0x115f   : > { %v11752_v2 = vsub.f32 %v6242_v24, %v6294_v22 }
0x1161   : > { %v6326_v58 = vmul.f32 %v11752_v2, %v11752_v2 }
0x1163   : > { %6259 = vadd.xlane.f32.xlu0 %v11737_v47  ;;  %6255 = vadd.xlane.f32.xlu2 %v11734_v52 }
0x116b   : > { %6257 = vadd.xlane.f32.xlu0 %v11747_v21  ;;  %6253 = vadd.xlane.f32.xlu2 %v11744_v18 }
0x1173   : > { %6353 = vadd.xlane.f32.xlu2 %v6326_v58 }
0x117f   : > { %v6276_v60 = vpop.xlane.xlu1 %6275 }
0x1180   : > { %v6295_v7 = vmul.f32 %v6276_v60, %v12358_v45 }
0x1182   : > { %v11757_v59 = vsub.f32 %v6243_v54, %v6295_v7 }
0x1184   : > { %v6327_v4 = vmul.f32 %v11757_v59, %v11757_v59 }
0x1186   : > { %6355 = vadd.xlane.f32.xlu2 %v6327_v4 }
0x1187   : > { %v6278_v10 = vpop.xlane.xlu2 %6277  ;;  %v6264_v15 = vpop.xlane.xlu1 %6263 }
0x1188   : > { %v6296_v50 = vmul.f32 %v6278_v10, %v12358_v45  ;;  %v6289_v41 = vmul.f32 %v6264_v15, %v12358_v45 }
0x118a   : > { %v11763_v31 = vsub.f32 %v6244_v23, %v6296_v50  ;;  %v11765_v33 = vsub.f32 %v6237_v9, %v6289_v41 }
0x118c   : > { %v6328_v42 = vmul.f32 %v11763_v31, %v11763_v31  ;;  %v6321_v8 = vmul.f32 %v11765_v33, %v11765_v33 }
0x118e   : > { %6357 = vadd.xlane.f32.xlu0 %v6328_v42  ;;  %6343 = vadd.xlane.f32.xlu2 %v6321_v8 }
0x118f   : > { %v6262_v12 = vpop.xlane.xlu1 %6261 }
0x1190   : > { %v6288_v62 = vmul.f32 %v6262_v12, %v12358_v45 }
0x1192   : > { %v11772_v1 = vsub.f32 %v6236_v36, %v6288_v62 }
0x1194   : > { %v6320_v30 = vmul.f32 %v11772_v1, %v11772_v1 }
0x1196   : > { %6341 = vadd.xlane.f32.xlu2 %v6320_v30 }
0x1197   : > { %v6252_v53 = vpop.xlane.xlu1 %6251 }
0x1198   : > { %v6283_v29 = vmul.f32 %v6252_v53, %v12358_v45 }
0x119a   : > { %v11778_v19 = vsub.f32 %v11703_v37, %v6283_v29 }
0x119c   : > { %v6315_v11 = vmul.f32 %v11778_v19, %v11778_v19 }
0x119e   : > { %6331 = vadd.xlane.f32.xlu2 %v6315_v11 }
0x11be   : > { %v6280_v48 = vpop.xlane.xlu2 %6279 }
0x11bf   : > { %v6297_v56 = vmul.f32 %v6280_v48, %v12358_v45 }
0x11c1   : > { %v11784_v24 = vsub.f32 %v11707_v46, %v6297_v56 }
0x11c3   : > { %v6329_v34 = vmul.f32 %v11784_v24, %v11784_v24 }
0x11c5   : > { %6359 = vadd.xlane.f32.xlu0 %v6329_v34 }
0x11c6   : > { %v6282_v32 = vpop.xlane.xlu0 %6281  ;;  %v6268_v54 = vpop.xlane.xlu2 %6267 }
0x11c7   : > { %v6298_v26 = vmul.f32 %v6282_v32, %v12358_v45  ;;  %v6291_v20 = vmul.f32 %v6268_v54, %v12358_v45 }
0x11c9   : > { %v11791_v63 = vsub.f32 %v11714_v27, %v6298_v26  ;;  %v11794_v9 = vsub.f32 %v11711_v14, %v6291_v20 }
0x11cb   : > { %v6323_v23 = vmul.f32 %v11794_v9, %v11794_v9  ;;  %v6330_v38 = vmul.f32 %v11791_v63, %v11791_v63 }
0x11cd   : > { %6347 = vadd.xlane.f32.xlu0 %v6323_v23  ;;  %6361 = vadd.xlane.f32.xlu1 %v6330_v38 }
0x11ce   : > { %v6270_v36 = vpop.xlane.xlu0 %6269  ;;  %v6266_v3 = vpop.xlane.xlu2 %6265 }
0x11cf   : > { %v6292_v37 = vmul.f32 %v6270_v36, %v12358_v45  ;;  %v6290_v61 = vmul.f32 %v6266_v3, %v12358_v45  ;;  %v6352_v22 = vpop.xlane.xlu1 %6351 }
0x11d0   : > { %v6373_v60 = vmul.f32 %v6352_v22, %v12358_v45 }
0x11d1   : > { %v11803_v0 = vsub.f32 %v11725_v16, %v6292_v37  ;;  %v11806_v46 = vsub.f32 %v11722_v55, %v6290_v61 }
0x11d3   : > { %v6322_v25 = vmul.f32 %v11806_v46, %v11806_v46  ;;  %v6324_v44 = vmul.f32 %v11803_v0, %v11803_v0 }
0x11d5   : > { %6345 = vadd.xlane.f32.xlu0 %v6322_v25  ;;  %6349 = vadd.xlane.f32.xlu1 %v6324_v44 }
0x11d6   : > { %v6260_v43 = vpop.xlane.xlu0 %6259  ;;  %v6256_v14 = vpop.xlane.xlu2 %6255 }
0x11d7   : > { %v6287_v27 = vmul.f32 %v6260_v43, %v12358_v45  ;;  %v6285_v28 = vmul.f32 %v6256_v14, %v12358_v45 }
0x11d9   : > { %v11815_v17 = vsub.f32 %v11737_v47, %v6287_v27  ;;  %v11818_v5 = vsub.f32 %v11734_v52, %v6285_v28 }
0x11db   : > { %v6317_v35 = vmul.f32 %v11818_v5, %v11818_v5  ;;  %v6319_v55 = vmul.f32 %v11815_v17, %v11815_v17 }
0x11dd   : > { %6335 = vadd.xlane.f32.xlu0 %v6317_v35  ;;  %6339 = vadd.xlane.f32.xlu1 %v6319_v55 }
0x11de   : > { %v6258_v16 = vpop.xlane.xlu0 %6257  ;;  %v6254_v57 = vpop.xlane.xlu2 %6253 }
0x11df   : > { %v6286_v40 = vmul.f32 %v6258_v16, %v12358_v45  ;;  %v6284_v49 = vmul.f32 %v6254_v57, %v12358_v45 }
0x11e1   : > { %v11827_v47 = vsub.f32 %v11747_v21, %v6286_v40  ;;  %v11830_v52 = vsub.f32 %v11744_v18, %v6284_v49  ;;  %v6389_v21 = vadd.f32 1e-05, %v6373_v60 }
0x11e3   : > { %v6316_v51 = vmul.f32 %v11830_v52, %v11830_v52  ;;  %v6318_v39 = vmul.f32 %v11827_v47, %v11827_v47  ;;  %vm6501_vm11 = vweird.f32 %v6389_v21 }
0x11e5   : > { %6333 = vadd.xlane.f32.xlu0 %v6316_v51  ;;  %6337 = vadd.xlane.f32.xlu1 %v6318_v39 }
0x11e6   : > { %v6354_v13 = vpop.xlane.xlu2 %6353 }
0x11e7   : > { %v6374_v58 = vmul.f32 %v6354_v13, %v12358_v45 }
0x11e9   : > { %v6390_v7 = vadd.f32 1e-05, %v6374_v58 }
0x11eb   : > { %7954 = vrsqrt.f32 %v6390_v7  ;;  %vm6511_vm10 = vweird.f32 %v6390_v7 }
0x11ec   : > { %7956 = vrsqrt.f32 %v6389_v21 }
0x11f1   : > { %v7955_v10 = vpop.eup %7954 }
0x11f2   : > { %v7957_v50 = vpop.eup %7956  ;;  %v6506_v42 = vmul.f32 %v7955_v10, %v6390_v7  ;;  %vm6512_vm0 = vweird.f32 %v7955_v10 }
0x11f3   : > { %v6496_v12 = vmul.f32 %v7957_v50, %v6389_v21  ;;  %vm6502_vm9 = vweird.f32 %v7957_v50  ;;  %vm6513_vm12 = vmor %vm6511_vm10, %vm6512_vm0 }
0x11f4   : > { %v6507_v53 = vmul.f32 %v7955_v10, %v6506_v42  ;;  %vm11869_vm13 = vmor %vm6501_vm11, %vm6502_vm9 }
0x11f5   : > { %v6497_v11 = vmul.f32 %v7957_v50, %v6496_v12 }
0x11f6   : > { %v6508_v48 = vmul.f32 0.5, %v6507_v53 }
0x11f7   : > { %v6498_v34 = vmul.f32 0.5, %v6497_v11 }
0x11f8   : > { %v6509_v20 = vsub.f32 1.5, %v6508_v48 }
0x11f9   : > { %v6356_v4 = vpop.xlane.xlu2 %6355  ;;  %v6499_v23 = vsub.f32 1.5, %v6498_v34 }
0x11fa   : > { %v6375_v15 = vmul.f32 %v6356_v4, %v12358_v45  ;;  %v6510_v25 = vmul.f32 %v7955_v10, %v6509_v20  ;;  %v11909_v20 = vld [vmem:[%s12211_s17 + $0x1] ss:$0 sm:$0xff] }
0x11fb   : > { %v6500_v43 = vmul.f32 %v7957_v50, %v6499_v23 }
0x11fc   : > { %v11840_v62 = vadd.f32 1e-05, %v6375_v15  ;;  %v6514_v16 = vsel %vm6513_vm12, %v7955_v10, %v6510_v25 }
0x11fd   : > { %v6504_v40 = vsel %vm11869_vm13, %v7957_v50, %v6500_v43  ;;  %v6566_v60 = vmul.f32 %v6514_v16, %v11752_v2  ;;  %v11895_v2 = vld [vmem:[%s12210_s16 + $0x1] ss:$0 sm:$0xff] }
0x11fe   : > { %7958 = vrsqrt.f32 %v11840_v62  ;;  %v6565_v15 = vmul.f32 %v6504_v40, %v11719_v6  ;;  %vm6521_vm14 = vweird.f32 %v11840_v62 }
0x11ff   : > { %v6585_v6 = vmul.f32 %v11895_v2, %v6566_v60 }
0x1200   : > { %v6584_v23 = vmul.f32 %v11895_v2, %v6565_v15 }
0x1201   : > { %v6358_v18 = vpop.xlane.xlu0 %6357  ;;  %v6344_v8 = vpop.xlane.xlu2 %6343  ;;  %v11921_v25 = vadd.f32 %v11909_v20, %v6585_v6 }
0x1202   : > { %v6376_v41 = vmul.f32 %v6358_v18, %v12358_v45  ;;  %v6369_v29 = vmul.f32 %v6344_v8, %v12358_v45 }
0x1204   : > { %v11842_v30 = vadd.f32 1e-05, %v6376_v41  ;;  %v11847_v56 = vadd.f32 1e-05, %v6369_v29  ;;  %v11849_v54 = vpop.eup %7958 }
0x1205   : > { %v6516_v36 = vmul.f32 %v11849_v54, %v11840_v62  ;;  %vm6522_vm15 = vweird.f32 %v11849_v54 }
0x1206   : > { %7960 = vrsqrt.f32 %v11842_v30  ;;  %vm11932_vm2 = vmor %vm6521_vm14, %vm6522_vm15  ;;  %vm6531_vm3 = vweird.f32 %v11842_v30  ;;  %vm6461_vm6 = vweird.f32 %v11847_v56 }
0x1207   : > { %7962 = vrsqrt.f32 %v11847_v56  ;;  %v6517_v27 = vmul.f32 %v11849_v54, %v6516_v36 }
0x1209   : > { %v6342_v32 = vpop.xlane.xlu2 %6341  ;;  %v6518_v13 = vmul.f32 0.5, %v6517_v27 }
0x120a   : > { %v6368_v3 = vmul.f32 %v6342_v32, %v12358_v45 }
0x120b   : > { %v6519_v42 = vsub.f32 1.5, %v6518_v13 }
0x120c   : > { %v11851_v26 = vpop.eup %7960  ;;  %v11865_v28 = vadd.f32 1e-05, %v6368_v3 }
0x120d   : > { %v6526_v61 = vmul.f32 %v11851_v26, %v11842_v30  ;;  %v11862_v14 = vpop.eup %7962  ;;  %vm6532_vm1 = vweird.f32 %v11851_v26 }
0x120e   : > { %v6456_v49 = vmul.f32 %v11862_v14, %v11847_v56  ;;  %vm11949_vm4 = vmor %vm6531_vm3, %vm6532_vm1  ;;  %vm6462_vm7 = vweird.f32 %v11862_v14 }
0x120f   : > { %v6527_v35 = vmul.f32 %v11851_v26, %v6526_v61  ;;  %vm11987_vm10 = vmor %vm6461_vm6, %vm6462_vm7  ;;  %vm6451_vm7 = vweird.f32 %v11865_v28 }
0x1210   : > { %v6457_v50 = vmul.f32 %v11862_v14, %v6456_v49 }
0x1211   : > { %v6332_v57 = vpop.xlane.xlu2 %6331  ;;  %v6528_v7 = vmul.f32 0.5, %v6527_v35 }
0x1212   : > { %v6363_v4 = vmul.f32 %v6332_v57, %v12358_v45  ;;  %v6458_v11 = vmul.f32 0.5, %v6457_v50 }
0x1213   : > { %v6529_v8 = vsub.f32 1.5, %v6528_v7 }
0x1214   : > { %v11903_v29 = vadd.f32 1e-05, %v6363_v4  ;;  %v6459_v40 = vsub.f32 1.5, %v6458_v11 }
0x1216   : > { %v11965_v15 = vmul.f32 %v11862_v14, %v6459_v40 }
0x1238   : > { %v6360_v38 = vpop.xlane.xlu0 %6359 }
0x1239   : > { %v6377_v37 = vmul.f32 %v6360_v38, %v12358_v45  ;;  %v6520_v38 = vmul.f32 %v11849_v54, %v6519_v42 }
0x123b   : > { %v11860_v44 = vadd.f32 1e-05, %v6377_v37  ;;  %v6530_v37 = vmul.f32 %v11851_v26, %v6529_v8 }
0x123d   : > { %7964 = vrsqrt.f32 %v11860_v44  ;;  %v6534_v30 = vsel %vm11949_vm4, %v11851_v26, %v6530_v37  ;;  %vm6541_vm8 = vweird.f32 %v11860_v44 }
0x123e   : > { %7966 = vrsqrt.f32 %v11865_v28 }
0x1240   : > { %v6348_v51 = vpop.xlane.xlu0 %6347  ;;  %v6362_v39 = vpop.xlane.xlu1 %6361 }
0x1241   : > { %v6371_v22 = vmul.f32 %v6348_v51, %v12358_v45  ;;  %v6378_v58 = vmul.f32 %v6362_v39, %v12358_v45  ;;  %v11939_v51 = vadd.f32 %v11909_v20, %v6584_v23  ;;  %v6524_v39 = vsel %vm11932_vm2, %v11849_v54, %v6520_v38 }
0x1242   : > { %v6567_v4 = vmul.f32 %v6524_v39, %v11757_v59  ;;  %v6568_v59 = vmul.f32 %v6534_v30, %v11763_v31 }
0x1243   : > { %v11881_v21 = vpop.eup %7964  ;;  %v11884_v18 = vadd.f32 1e-05, %v6371_v22  ;;  %v11886_v10 = vadd.f32 1e-05, %v6378_v58  ;;  %v6616_v54 = vpack.c.bf16 %v11921_v25, %v11939_v51 }
0x1244   : > { %v6536_v41 = vmul.f32 %v11881_v21, %v11860_v44  ;;  %v11901_v53 = vpop.eup %7966  ;;  %vm6542_vm5 = vweird.f32 %v11881_v21 }
0x1245   : > { %7968 = vrsqrt.f32 %v11884_v18  ;;  %v6446_v61 = vmul.f32 %v11901_v53, %v11865_v28  ;;  %vm11979_vm0 = vmor %vm6541_vm8, %vm6542_vm5  ;;  %vm6551_vm11 = vweird.f32 %v11886_v10  ;;  %vm6481_vm13 = vweird.f32 %v11884_v18 }
0x1246   : > { %v6537_v12 = vmul.f32 %v11881_v21, %v6536_v41  ;;  %7970 = vrsqrt.f32 %v11886_v10  ;;  %vm6452_vm8 = vweird.f32 %v11901_v53 }
0x1247   : > { %7972 = vrsqrt.f32 %v11903_v29  ;;  %v6447_v22 = vmul.f32 %v11901_v53, %v6446_v61  ;;  %v6586_v61 = vmul.f32 %v11895_v2, %v6567_v4 }
0x1248   : > { %v6538_v48 = vmul.f32 0.5, %v6537_v12  ;;  %v6346_v34 = vpop.xlane.xlu0 %6345  ;;  %v6350_v32 = vpop.xlane.xlu1 %6349 }
0x1249   : > { %v6370_v36 = vmul.f32 %v6346_v34, %v12358_v45  ;;  %v6372_v3 = vmul.f32 %v6350_v32, %v12358_v45  ;;  %v11975_v6 = vmul.f32 0.5, %v6447_v22  ;;  %v6587_v22 = vmul.f32 %v11895_v2, %v6568_v59 }
0x124a   : > { %v6539_v27 = vsub.f32 1.5, %v6538_v48 }
0x124b   : > { %v11923_v43 = vpop.eup %7968  ;;  %v11926_v35 = vadd.f32 1e-05, %v6370_v36  ;;  %v11928_v55 = vadd.f32 1e-05, %v6372_v3  ;;  %v6464_v3 = vsel %vm11987_vm10, %v11862_v14, %v11965_v15  ;;  %v6449_v39 = vsub.f32 1.5, %v11975_v6  ;;  %vm12094_vm10 = vmor %vm6451_vm7, %vm6452_vm8 }
0x124c   : > { %v7971_v16 = vpop.eup %7970  ;;  %v6476_v49 = vmul.f32 %v11923_v43, %v11884_v18  ;;  %v6540_v60 = vmul.f32 %v11881_v21, %v6539_v27  ;;  %vm6482_vm14 = vweird.f32 %v11923_v43 }
0x124d   : > { %v6546_v13 = vmul.f32 %v7971_v16, %v11886_v10  ;;  %7974 = vrsqrt.f32 %v11926_v35  ;;  %v11969_v42 = vpop.eup %7972  ;;  %vm6552_vm9 = vweird.f32 %v7971_v16  ;;  %vm12042_vm2 = vmor %vm6481_vm13, %vm6482_vm14  ;;  %vm6491_vm3 = vweird.f32 %v11928_v55 }
0x124e   : > { %v6477_v58 = vmul.f32 %v11923_v43, %v6476_v49  ;;  %7976 = vrsqrt.f32 %v11928_v55  ;;  %v6544_v31 = vsel %vm11979_vm0, %v11881_v21, %v6540_v60  ;;  %v6396_v56 = vmul.f32 %v11969_v42, %v11903_v29  ;;  %vm6553_vm12 = vmor %vm6551_vm11, %vm6552_vm9 }
0x124f   : > { %v6547_v7 = vmul.f32 %v7971_v16, %v6546_v13  ;;  %v6569_v57 = vmul.f32 %v6544_v31, %v11784_v24  ;;  %vm6471_vm4 = vweird.f32 %v11926_v35  ;;  %vm6401_vm0 = vweird.f32 %v11903_v29 }
0x1250   : > { %v6336_v50 = vpop.xlane.xlu0 %6335  ;;  %v6340_v41 = vpop.xlane.xlu1 %6339  ;;  %v6478_v48 = vmul.f32 0.5, %v6477_v58  ;;  %v6397_v10 = vmul.f32 %v11969_v42, %v6396_v56 }
0x1251   : > { %v6548_v26 = vmul.f32 0.5, %v6547_v7  ;;  %v6365_v8 = vmul.f32 %v6336_v50, %v12358_v45  ;;  %v6367_v12 = vmul.f32 %v6340_v41, %v12358_v45 }
0x1252   : > { %v6479_v40 = vsub.f32 1.5, %v6478_v48 }
0x1253   : > { %v11983_v34 = vpop.eup %7974  ;;  %v6549_v32 = vsub.f32 1.5, %v6548_v26  ;;  %v11994_v23 = vadd.f32 1e-05, %v6365_v8  ;;  %v11996_v38 = vadd.f32 1e-05, %v6367_v12  ;;  %v6588_v26 = vmul.f32 %v11895_v2, %v6569_v57 }
0x1254   : > { %v7977_v36 = vpop.eup %7976  ;;  %v6466_v37 = vmul.f32 %v11983_v34, %v11926_v35  ;;  %vm6472_vm1 = vweird.f32 %v11983_v34  ;;  %v6606_v35 = vadd.f32 %v11909_v20, %v6587_v22  ;;  %v6450_v22 = vmul.f32 %v11901_v53, %v6449_v39 }
0x1255   : > { %v6550_v21 = vmul.f32 %v7971_v16, %v6549_v32  ;;  %v6486_v27 = vmul.f32 %v7977_v36, %v11928_v55  ;;  %7978 = vrsqrt.f32 %v11994_v23  ;;  %vm6492_vm15 = vweird.f32 %v7977_v36  ;;  %vm12057_vm6 = vmor %vm6471_vm4, %vm6472_vm1 }
0x1256   : > { %v6467_v49 = vmul.f32 %v11983_v34, %v6466_v37  ;;  %7980 = vrsqrt.f32 %v11996_v38  ;;  %vm6493_vm5 = vmor %vm6491_vm3, %vm6492_vm15  ;;  %v6607_v18 = vadd.f32 %v11909_v20, %v6588_v26  ;;  %vm6441_vm11 = vweird.f32 %v11996_v38 }
0x1257   : > { %v6554_v13 = vsel %vm6553_vm12, %v7971_v16, %v6550_v21  ;;  %v6487_v62 = vmul.f32 %v7977_v36, %v6486_v27  ;;  %v6480_v16 = vmul.f32 %v11923_v43, %v6479_v40  ;;  %vm6421_vm14 = vweird.f32 %v11994_v23 }
0x1258   : > { %v6570_v58 = vmul.f32 %v6554_v13, %v11791_v63  ;;  %v6468_v24 = vmul.f32 0.5, %v6467_v49  ;;  %v6334_v30 = vpop.xlane.xlu0 %6333  ;;  %v6338_v60 = vpop.xlane.xlu1 %6337  ;;  %vm6402_vm1 = vweird.f32 %v11969_v42 }
0x1259   : > { %v6488_v7 = vmul.f32 0.5, %v6487_v62  ;;  %v6364_v4 = vmul.f32 %v6334_v30, %v12358_v45  ;;  %v6366_v50 = vmul.f32 %v6338_v60, %v12358_v45  ;;  %v6484_v27 = vsel %vm12042_vm2, %v11923_v43, %v6480_v16 }
0x125a   : > { %v6469_v41 = vsub.f32 1.5, %v6468_v24  ;;  %v6589_v8 = vmul.f32 %v11895_v2, %v6570_v58  ;;  %v6605_v24 = vadd.f32 %v11909_v20, %v6586_v61  ;;  %v6398_v30 = vmul.f32 0.5, %v6397_v10 }
0x125b   : > { %v12025_v12 = vpop.eup %7978  ;;  %v6489_v63 = vsub.f32 1.5, %v6488_v7  ;;  %v12027_v59 = vadd.f32 1e-05, %v6364_v4  ;;  %v12029_v6 = vadd.f32 1e-05, %v6366_v50  ;;  %v6561_v61 = vmul.f32 %v6464_v3, %v11765_v33 }
0x125c   : > { %v12031_v11 = vpop.eup %7980  ;;  %v6470_v48 = vmul.f32 %v11983_v34, %v6469_v41  ;;  %v6416_v45 = vmul.f32 %v12025_v12, %v11994_v23  ;;  %v6608_v31 = vadd.f32 %v11909_v20, %v6589_v8  ;;  %v6617_v10 = vpack.c.bf16 %v6606_v35, %v6605_v24  ;;  %v7450_v8 = vld [vmem:[%s12212_s18 + $0x30] sm:$0xff]  ;;  %v7449_v35 = vld [vmem:[%s12212_s18 + $0x28] sm:$0xff] }
0x125d   : > { %v6490_v56 = vmul.f32 %v7977_v36, %v6489_v63  ;;  %v6436_v37 = vmul.f32 %v12031_v11, %v11996_v38  ;;  %7982 = vrsqrt.f32 %v12027_v59  ;;  %vm6442_vm9 = vweird.f32 %v12031_v11 }
0x125e   : > { %v6417_v21 = vmul.f32 %v12025_v12, %v6416_v45  ;;  %7984 = vrsqrt.f32 %v12029_v6  ;;  %v6474_v49 = vsel %vm12057_vm6, %v11983_v34, %v6470_v48  ;;  %v6618_v58 = vpack.c.bf16 %v6608_v31, %v6607_v18  ;;  %vm6443_vm13 = vmor %vm6441_vm11, %vm6442_vm9 }
0x125f   : > { %v6494_v57 = vsel %vm6493_vm5, %v7977_v36, %v6490_v56  ;;  %v6437_v40 = vmul.f32 %v12031_v11, %v6436_v37  ;;  %v7451_v36 = vld [vmem:[%s12212_s18 + $0x38] sm:$0xff]  ;;  %v6563_v34 = vmul.f32 %v6484_v27, %v11794_v9  ;;  %v6562_v7 = vmul.f32 %v6474_v49, %v11806_v46  ;;  %vm12135_vm5 = vmor %vm6401_vm0, %vm6402_vm1 }
0x1260   : > { %v6564_v13 = vmul.f32 %v6494_v57, %v11803_v0  ;;  %v6418_v62 = vmul.f32 0.5, %v6417_v21  ;;  %6625 = vmatpush.bf16.msrb.mxu0 %v6618_v58  ;;  %6708 = vmatpush.bf16.xpose.msrb.mxu1 %v7451_v36  ;;  %vm6422_vm12 = vweird.f32 %v12025_v12  ;;  %v6454_v38 = vsel %vm12094_vm10, %v11901_v53, %v6450_v22 }
0x1261   : > { %v6438_v43 = vmul.f32 0.5, %v6437_v40  ;;  %v6399_v3 = vsub.f32 1.5, %v6398_v30  ;;  %v6582_v50 = vmul.f32 %v11895_v2, %v6563_v34  ;;  %v6581_v26 = vmul.f32 %v11895_v2, %v6562_v7  ;;  %vm12113_vm15 = vmor %vm6421_vm14, %vm6422_vm12  ;;  %v7446_v7 = vld [vmem:[%s12212_s18 + $0x10] sm:$0xff] }
0x1262   : > { %v6419_v60 = vsub.f32 1.5, %v6418_v62  ;;  %v6583_v44 = vmul.f32 %v11895_v2, %v6564_v13  ;;  %v6580_v23 = vmul.f32 %v11895_v2, %v6561_v61  ;;  %vm6411_vm3 = vweird.f32 %v12027_v59  ;;  %v7443_v61 = vld [vmem:[%s12388_s2] sm:$0xff] }
0x1263   : > { %v12075_v0 = vpop.eup %7982  ;;  %v6439_v4 = vsub.f32 1.5, %v6438_v43  ;;  %v6400_v56 = vmul.f32 %v11969_v42, %v6399_v3  ;;  %v6600_v21 = vadd.f32 %v11909_v20, %v6581_v26  ;;  %vm6431_vm7 = vweird.f32 %v12029_v6 }
0x1264   : > { %v7985_v9 = vpop.eup %7984  ;;  %v6406_v39 = vmul.f32 %v12075_v0, %v12027_v59  ;;  %v6420_v46 = vmul.f32 %v12025_v12, %v6419_v60  ;;  %6626 = vmatpush.bf16.msrb.mxu0 %v6617_v10  ;;  %v6602_v45 = vadd.f32 %v11909_v20, %v6583_v44  ;;  %vm6412_vm2 = vweird.f32 %v12075_v0  ;;  %v7599_v44 = vld [vmem:[%s12213_s19] ss:$0 sm:$0xff] }
0x1265   : > { %v6440_v14 = vmul.f32 %v12031_v11, %v6439_v4  ;;  %v6426_v15 = vmul.f32 %v7985_v9, %v12029_v6  ;;  %vm6432_vm4 = vweird.f32 %v7985_v9  ;;  %vm6413_vm6 = vmor %vm6411_vm3, %vm6412_vm2  ;;  %v6599_v27 = vadd.f32 %v11909_v20, %v6580_v23  ;;  %v7444_v4 = vld [vmem:[%s12212_s18] sm:$0xff] }
0x1266   : > { %v6407_v28 = vmul.f32 %v12075_v0, %v6406_v39  ;;  %v6424_v31 = vsel %vm12113_vm15, %v12025_v12, %v6420_v46  ;;  %vm6433_vm8 = vmor %vm6431_vm7, %vm6432_vm4 }
0x1267   : > { %v6444_v16 = vsel %vm6443_vm13, %v12031_v11, %v6440_v14  ;;  %v6427_v41 = vmul.f32 %v7985_v9, %v6426_v15  ;;  %v6560_v11 = vmul.f32 %v6454_v38, %v11772_v1  ;;  %v6557_v18 = vmul.f32 %v6424_v31, %v11818_v5 }
0x1268   : > { %v6559_v63 = vmul.f32 %v6444_v16, %v11815_v17  ;;  %v6408_v48 = vmul.f32 0.5, %v6407_v28  ;;  %6627 = vmatpush.bf16.msrb.mxu0 %v6616_v54  ;;  %v6601_v17 = vadd.f32 %v11909_v20, %v6582_v50  ;;  %6709 = vmatpush.bf16.xpose.msrb.mxu1 %v7450_v8  ;;  %v6404_v5 = vsel %vm12135_vm5, %v11969_v42, %v6400_v56 }
0x1269   : > { %v6428_v32 = vmul.f32 0.5, %v6427_v41  ;;  %v6579_v29 = vmul.f32 %v11895_v2, %v6560_v11  ;;  %v6614_v40 = vpack.c.bf16 %v6600_v21, %v6599_v27  ;;  %v6576_v62 = vmul.f32 %v11895_v2, %v6557_v18 }
0x126a   : > { %v6409_v37 = vsub.f32 1.5, %v6408_v48  ;;  %v6615_v51 = vpack.c.bf16 %v6602_v45, %v6601_v17  ;;  %v6578_v54 = vmul.f32 %v11895_v2, %v6559_v63  ;;  %v6555_v58 = vmul.f32 %v6404_v5, %v11778_v19  ;;  %v7448_v19 = vld [vmem:[%s12212_s18 + $0x20] sm:$0xff] }
0x126b   : > { %v6429_v1 = vsub.f32 1.5, %v6428_v32  ;;  %v6598_v43 = vadd.f32 %v11909_v20, %v6579_v29  ;;  %v6595_v36 = vadd.f32 %v11909_v20, %v6576_v62 }
0x126c   : > { %v6410_v25 = vmul.f32 %v12075_v0, %v6409_v37  ;;  %6628 = vmatpush.bf16.msrb.mxu0 %v6615_v51  ;;  %v6597_v13 = vadd.f32 %v11909_v20, %v6578_v54  ;;  %v6574_v30 = vmul.f32 %v11895_v2, %v6555_v58 }
0x126d   : > { %v6430_v59 = vmul.f32 %v7985_v9, %v6429_v1 }
0x126e   : > { %v6414_v55 = vsel %vm6413_vm6, %v12075_v0, %v6410_v25  ;;  %v6613_v24 = vpack.c.bf16 %v6598_v43, %v6597_v13  ;;  %v6593_v60 = vadd.f32 %v11909_v20, %v6574_v30 }
0x126f   : > { %v6434_v57 = vsel %vm6433_vm8, %v7985_v9, %v6430_v59  ;;  %v6556_v6 = vmul.f32 %v6414_v55, %v11830_v52 }
0x1270   : > { %v6558_v49 = vmul.f32 %v6434_v57, %v11827_v47  ;;  %6629 = vmatpush.bf16.msrb.mxu0 %v6614_v40  ;;  %6710 = vmatpush.bf16.xpose.msrb.mxu1 %v7449_v35 }
0x1271   : > { %v6575_v52 = vmul.f32 %v11895_v2, %v6556_v6 }
0x1272   : > { %v6577_v42 = vmul.f32 %v11895_v2, %v6558_v49  ;;  %v7447_v2 = vld [vmem:[%s12212_s18 + $0x18] sm:$0xff] }
0x1273   : > { %v6594_v34 = vadd.f32 %v11909_v20, %v6575_v52 }
0x1274   : > { %v6596_v22 = vadd.f32 %v11909_v20, %v6577_v42  ;;  %6630 = vmatpush.bf16.msrb.mxu0 %v6613_v24  ;;  %v7445_v20 = vld [vmem:[%s12212_s18 + $0x8] sm:$0xff] }
0x1275   : > { %v6611_v0 = vpack.c.bf16 %v6594_v34, %v6593_v60 }
0x1276   : > { %v6612_v47 = vpack.c.bf16 %v6596_v22, %v6595_v36 }
0x1278   : > { %6631 = vmatpush.bf16.msrb.mxu0 %v6612_v47  ;;  %6711 = vmatpush.bf16.xpose.msrb.mxu1 %v7448_v19 }
0x127c   : > { %6632 = vmatpush.bf16.msrb.mxu0 %v6611_v0 }
0x127f   : > { %6633 = vmatmul.bf16.vlgmr.msrb.gmra.mxu0 %v7443_v61 }
0x1280   : > { %6712 = vmatpush.bf16.xpose.msrb.mxu1 %v7447_v2 }
0x1288   : > { %6713 = vmatpush.bf16.xpose.msrb.mxu1 %v7446_v7 }
0x1290   : > { %6714 = vmatpush.bf16.xpose.msrb.mxu1 %v7445_v20 }
0x1298   : > { %6715 = vmatpush.bf16.xpose.msrb.mxu1 %v7444_v4 }
0x12fc   : > { %v6634_v9 = vpop.f32.mrf.mxu0 }
0x1304   : > { %v6636_v39 = vpop.f32.mrf.mxu0 }
0x1305   : > { %v6639_v10 = vpack.c.bf16 %v6636_v39, %v6634_v9 }
0x1307   : > { %6716 = vmatmul.bf16.vlgmr.msrb.gmra.mxu1 %v6639_v10 }
0x1384   : > { %v6717_v33 = vpop.f32.mrf.mxu1 }
0x1385   : > { %v6718_v46 = vadd.f32 %v7599_v44, %v6717_v33 }
0x1387   : > { %6722 = vst [vmem:[%s631_s27] sm:$0xff] %v6718_v46 }
0x138c   : > { %v6719_v14 = vpop.f32.mrf.mxu1 }
0x138d   : > { %v6720_v15 = vadd.f32 %v7599_v44, %v6719_v14 }
0x138f   : > { %6723 = vst [vmem:[%s631_s27 + $0x8] sm:$0xff] %v6720_v15 }
0x1390 PF: > { %s30_s1 = sadd.s32 1, %s8008_s1  }
0x1391   : > { %p27_p5 = scmp.ge.s32.totalorder %s30_s1, 4  }
0x1393   :  { %29 = sbr.rel (!%p27_p5) target bundleno = 6 (0x6), region = 142 }

</bundles_post_ra>
